<compile_context>
chip_gen: v7x
topology: tpu7x:2x2x1
jax: 0.10.0
libtpu: 0.0.40
codegen_flags: <defaults>
</compile_context>

<pallas_src>
import numpy as np
import jax
import jax.numpy as jnp
from jax.experimental import pallas as pl
from jax.experimental.pallas import tpu as pltpu


def _round_up(x, m):
    return (x + m - 1) // m * m


# ----------------------------------------------------------------------------
# Wrapper-side im2col for the network input only (Cin=3, ~12 KB -> ~55 KB).
# ----------------------------------------------------------------------------
def _im2col_patches(x_nhwc):
    """(N, H, W, C) -> (N, H*W, 9*C), raster (h, w) order, tap order (kh, kw, c)."""
    N, H, W, C = x_nhwc.shape
    xp = jnp.pad(x_nhwc, ((0, 0), (1, 1), (1, 1), (0, 0)))
    taps = [xp[:, kh:kh + H, kw:kw + W, :] for kh in range(3) for kw in range(3)]
    return jnp.concatenate(taps, axis=-1).reshape(N, H * W, 9 * C)


# ----------------------------------------------------------------------------
# Fully-fused forward (jitted).  All compute is inside one Pallas kernel.
# ----------------------------------------------------------------------------
def lightweight_cnn_forward(params, x_nchw):
    (l1, l2, l3, l4), (wfc, bfc) = params
    w1, b1 = l1
    w2, b2 = l2
    w3, b3 = l3
    w4, b4 = l4

    if x_nchw.ndim == 3:
        x_nchw = x_nchw[None]
    x = jnp.transpose(x_nchw, (0, 2, 3, 1)).astype(jnp.float32)   # NHWC, once
    N, H, W, Cin = x.shape
    assert W >= 8 and (W & (W - 1)) == 0 and H % 8 == 0, \
        "kernel assumes power-of-two W and H divisible by 8"

    C1, C2, C3, C4 = w1.shape[1], w2.shape[1], w3.shape[1], w4.shape[1]
    ncls = wfc.shape[1]

    # Static per-stage spatial geometry.
    H1, W1 = H, W
    H2, W2 = H1 // 2, W1 // 2
    H3, W3 = H2 // 2, W2 // 2
    H4, W4 = H3 // 2, W3 // 2

    # Flat zero-padded activation scratch: activation rows live at
    # [base, base + Hs*Ws); +/-(Ws+1) row slack gives all 9 conv taps room.
    def pad_geom(Hs, Ws):
        base = _round_up(Ws + 1, 8)
        rows = _round_up(base + Hs * Ws + Ws + 1, 8)
        return base, rows

    base2, rows2 = pad_geom(H2, W2)
    base3, rows3 = pad_geom(H3, W3)
    base4, rows4 = pad_geom(H4, W4)

    # Stage-1 patches built in the wrapper (lane-dense 9*Cin=27, tiny input).
    p1 = _im2col_patches(x).astype(jnp.bfloat16)                  # (N, H*W, 27)
    HW1, K1 = H1 * W1, 9 * Cin

    def kernel(p1_ref, w1_ref, b1_ref, w2_ref, b2_ref, w3_ref, b3_ref,
               w4_ref, b4_ref, wfc_ref, bfc_ref, o_ref,
               pad2, pad3, pad4, hb1, hb2, hb3):

        def conv_relu(pad_ref, base, Hs, Ws, Cc, w_ref, b_ref):
            """3x3 'same' conv (BN folded) + ReLU from a flat padded scratch."""
            HWs = Hs * Ws
            col = jax.lax.broadcasted_iota(jnp.int32, (HWs, Cc), 0) & (Ws - 1)
            not_first = col != 0           # mask for kw == 0 (w-1 wraparound)
            not_last = col != (Ws - 1)     # mask for kw == 2 (w+1 wraparound)
            taps = []
            for kh in range(3):
                for kw in range(3):
                    off = base + (kh - 1) * Ws + (kw - 1)
                    t = pad_ref[off:off + HWs, :]
                    if kw == 0:
                        t = jnp.where(not_first, t, 0.0)
                    elif kw == 2:
                        t = jnp.where(not_last, t, 0.0)
                    taps.append(t)
            patches = jnp.concatenate(taps, axis=-1).astype(jnp.bfloat16)
            y = jnp.dot(patches, w_ref[...], preferred_element_type=jnp.float32)
            return jnp.maximum(y + b_ref[...], 0.0)               # (HWs, Cout) f32

        def maxpool2(y, Hs, Ws, hbuf):
            """2x2/stride-2 max-pool of a flat raster (Hs*Ws, C) f32 value."""
            Ho, Wo = Hs // 2, Ws // 2
            for r in range(Ho):            # pair rows h=2r and h=2r+1
                top = y[(2 * r) * Ws:(2 * r + 1) * Ws, :]
                bot = y[(2 * r + 1) * Ws:(2 * r + 2) * Ws, :]
                hbuf[r * Ws:(r + 1) * Ws, :] = jnp.maximum(top, bot)
            n = Ho * Wo                    # pair columns w=2j and w=2j+1
            return jnp.maximum(hbuf[pl.ds(0, n, 2), :], hbuf[pl.ds(1, n, 2), :])

        # ---- stage 1: conv1 + ReLU + maxpool (patches came in lane-dense) ----
        y1 = jnp.dot(p1_ref[0], w1_ref[...], preferred_element_type=jnp.float32)
        y1 = jnp.maximum(y1 + b1_ref[...], 0.0)                   # (H1*W1, C1)
        a2 = maxpool2(y1, H1, W1, hb1)                            # (H2*W2, C1)

        # ---- stage 2 ----
        pad2[...] = jnp.zeros((rows2, C1), jnp.float32)
        pad2[base2:base2 + H2 * W2, :] = a2
        y2 = conv_relu(pad2, base2, H2, W2, C1, w2_ref, b2_ref)
        a3 = maxpool2(y2, H2, W2, hb2)                            # (H3*W3, C2)

        # ---- stage 3 ----
        pad3[...] = jnp.zeros((rows3, C2), jnp.float32)
        pad3[base3:base3 + H3 * W3, :] = a3
        y3 = conv_relu(pad3, base3, H3, W3, C2, w3_ref, b3_ref)
        a4 = maxpool2(y3, H3, W3, hb3)                            # (H4*W4, C3)

        # ---- stage 4 + global average pool + Linear head ----
        pad4[...] = jnp.zeros((rows4, C3), jnp.float32)
        pad4[base4:base4 + H4 * W4, :] = a4
        y4 = conv_relu(pad4, base4, H4, W4, C3, w4_ref, b4_ref)   # (H4*W4, C4)
        pooled = jnp.sum(y4, axis=0, keepdims=True) * (1.0 / (H4 * W4))  # (1, C4)
        logits = jnp.dot(pooled, wfc_ref[...], preferred_element_type=jnp.float32)
        o_ref[0] = (logits + bfc_ref[...]).astype(o_ref.dtype)

    out = pl.pallas_call(
        kernel,
        out_shape=jax.ShapeDtypeStruct((N, 1, ncls), jnp.float32),
        grid=(N,),
        in_specs=[
            pl.BlockSpec((1, HW1, K1), lambda n: (n, 0, 0)),
            pl.BlockSpec(w1.shape, lambda n: (0, 0)),
            pl.BlockSpec(b1.shape, lambda n: (0, 0)),
            pl.BlockSpec(w2.shape, lambda n: (0, 0)),
            pl.BlockSpec(b2.shape, lambda n: (0, 0)),
            pl.BlockSpec(w3.shape, lambda n: (0, 0)),
            pl.BlockSpec(b3.shape, lambda n: (0, 0)),
            pl.BlockSpec(w4.shape, lambda n: (0, 0)),
            pl.BlockSpec(b4.shape, lambda n: (0, 0)),
            pl.BlockSpec(wfc.shape, lambda n: (0, 0)),
            pl.BlockSpec(bfc.shape, lambda n: (0, 0)),
        ],
        out_specs=pl.BlockSpec((1, 1, ncls), lambda n: (n, 0, 0)),
        scratch_shapes=[
            pltpu.VMEM((rows2, C1), jnp.float32),                 # padded act, stage 2
            pltpu.VMEM((rows3, C2), jnp.float32),                 # padded act, stage 3
            pltpu.VMEM((rows4, C3), jnp.float32),                 # padded act, stage 4
            pltpu.VMEM(((H1 // 2) * W1, C1), jnp.float32),        # H-pooled buf, stage 1
            pltpu.VMEM(((H2 // 2) * W2, C2), jnp.float32),        # H-pooled buf, stage 2
            pltpu.VMEM(((H3 // 2) * W3, C3), jnp.float32),        # H-pooled buf, stage 3
        ],
        compiler_params=pltpu.CompilerParams(
            dimension_semantics=("parallel",)),                   # 1 image / TC on v7x
    )(p1, w1, b1, w2, b2, w3, b3, w4, b4, wfc, bfc)
    return out.reshape(N, ncls)


_forward_jit = jax.jit(lightweight_cnn_forward)


# ----------------------------------------------------------------------------
# Model
# ----------------------------------------------------------------------------
class LightweightCNNPallas:
    """Eval-mode forward of LightweightCNN: 4x [Conv3x3 + BN + ReLU (+MaxPool2)],
    AdaptiveAvgPool((1,1)), Dropout (identity in eval), Linear(256, num_classes)."""

    def __init__(self, key, input_channels=3, num_classes=2):
        self.num_classes = num_classes
        self.eps = 1e-5
        chans = [input_channels, 32, 64, 128, 256]
        keys = jax.random.split(key, 4 * 6 + 2)
        self.layers = []
        ki = 0
        for i in range(4):
            cin, cout = chans[i], chans[i + 1]
            w = 0.1 * jax.random.normal(keys[ki], (cout, cin, 3, 3), jnp.float32); ki += 1
            b = 0.1 * jax.random.normal(keys[ki], (cout,), jnp.float32); ki += 1
            gamma = 1.0 + 0.1 * jax.random.normal(keys[ki], (cout,), jnp.float32); ki += 1
            beta = 0.1 * jax.random.normal(keys[ki], (cout,), jnp.float32); ki += 1
            mean = 0.1 * jax.random.normal(keys[ki], (cout,), jnp.float32); ki += 1
            var = 1.0 + 0.1 * jax.random.uniform(keys[ki], (cout,), jnp.float32); ki += 1
            self.layers.append(dict(w=w, b=b, gamma=gamma, beta=beta, mean=mean, var=var))
        self.fc_w = 0.1 * jax.random.normal(keys[ki], (num_classes, 256), jnp.float32); ki += 1
        self.fc_b = 0.1 * jax.random.normal(keys[ki], (num_classes,), jnp.float32)

        # Fold eval-mode BatchNorm into each conv, flatten to (9*Cin, Cout) in
        # (kh, kw, cin) row order (matching the in-kernel tap order), and cast
        # the conv matmul weights to bf16 (f32 accumulation in-kernel).
        folded = []
        for L in self.layers:
            scale = L["gamma"] / jnp.sqrt(L["var"] + self.eps)               # (Cout,)
            w_eff = L["w"] * scale[:, None, None, None]                      # (Cout,Cin,3,3)
            b_eff = (L["b"] - L["mean"]) * scale + L["beta"]                 # (Cout,)
            cout = w_eff.shape[0]
            w_flat = w_eff.transpose(2, 3, 1, 0).reshape(-1, cout)           # (9*Cin, Cout)
            folded.append((w_flat.astype(jnp.bfloat16),
                           b_eff.reshape(1, cout).astype(jnp.float32)))
        wfc = self.fc_w.T.astype(jnp.float32)                                # (256, ncls)
        bfc = self.fc_b.reshape(1, -1).astype(jnp.float32)                   # (1, ncls)
        self.params = (tuple(folded), (wfc, bfc))

    def __call__(self, x_nchw):
        return _forward_jit(self.params, x_nchw)


# ----------------------------------------------------------------------------
# Pure-JAX reference (validation only)
# ----------------------------------------------------------------------------
def _forward_ref(model, x_nchw):
    if x_nchw.ndim == 3:
        x_nchw = x_nchw[None]
    x = x_nchw.transpose(0, 2, 3, 1)                # NHWC
    for i, L in enumerate(model.layers):
        w_hwio = L["w"].transpose(2, 3, 1, 0)       # OIHW -> HWIO
        y = jax.lax.conv_general_dilated(
            x, w_hwio, window_strides=(1, 1), padding=((1, 1), (1, 1)),
            dimension_numbers=("NHWC", "HWIO", "NHWC"),
            precision=jax.lax.Precision.HIGHEST)
        y = y + L["b"]
        y = (y - L["mean"]) / jnp.sqrt(L["var"] + model.eps) * L["gamma"] + L["beta"]
        y = jnp.maximum(y, 0.0)
        if i < 3:
            y = jax.lax.reduce_window(y, -jnp.inf, jax.lax.max,
                                      (1, 2, 2, 1), (1, 2, 2, 1), "VALID")
        else:
            y = jnp.mean(y, axis=(1, 2))            # AdaptiveAvgPool2d((1,1)) + flatten
        x = y
    return x @ model.fc_w.T + model.fc_b            # Dropout is identity in eval


if __name__ == "__main__":
    key = jax.random.PRNGKey(0)
    kx, kp = jax.random.split(key)
    x = jax.random.normal(kx, (2, 3, 32, 32), jnp.float32)   # small NCHW image batch

    model = LightweightCNNPallas(kp, input_channels=3, num_classes=2)
    logits = jax.block_until_ready(model(x))
    assert logits.shape == (2, 2), logits.shape

    ref = jax.block_until_ready(_forward_ref(model, x))
    # bf16 MXU inputs with f32 accumulation (per v6e/v7x guidance) -> ~1% rel err.
    assert np.allclose(np.asarray(logits), np.asarray(ref), rtol=5e-2, atol=5e-2), \
        np.max(np.abs(np.asarray(logits) - np.asarray(ref)))

    print("KERNEL_OK")
</pallas_src>

<mosaic_0001>
module attributes {stable_mosaic.version = 11 : i64} {
  func.func @kernel(%arg0: i32, %arg1: memref<1x1024x27xbf16, #tpu.memory_space<vmem>>, %arg2: memref<27x32xbf16, #tpu.memory_space<vmem>>, %arg3: memref<1x32xf32, #tpu.memory_space<vmem>>, %arg4: memref<288x64xbf16, #tpu.memory_space<vmem>>, %arg5: memref<1x64xf32, #tpu.memory_space<vmem>>, %arg6: memref<576x128xbf16, #tpu.memory_space<vmem>>, %arg7: memref<1x128xf32, #tpu.memory_space<vmem>>, %arg8: memref<1152x256xbf16, #tpu.memory_space<vmem>>, %arg9: memref<1x256xf32, #tpu.memory_space<vmem>>, %arg10: memref<256x2xf32, #tpu.memory_space<vmem>>, %arg11: memref<1x2xf32, #tpu.memory_space<vmem>>, %arg12: memref<1x1x2xf32, #tpu.memory_space<vmem>>, %arg13: memref<304x32xf32, #tpu.memory_space<vmem>>, %arg14: memref<96x64xf32, #tpu.memory_space<vmem>>, %arg15: memref<32x128xf32, #tpu.memory_space<vmem>>, %arg16: memref<512x32xf32, #tpu.memory_space<vmem>>, %arg17: memref<128x64xf32, #tpu.memory_space<vmem>>, %arg18: memref<32x128xf32, #tpu.memory_space<vmem>>) attributes {dimension_semantics = [#tpu.dimension_semantics<parallel>], iteration_bounds = array<i64: 2>, scalar_prefetch = 0 : i64, scratch_operands = 6 : i64, tpu.core_type = #tpu.core_type<tc>, window_params = [{transform_indices = @transform_0, window_bounds = array<i64: 1, 1024, 27>}, {pipeline_mode = #tpu.pipeline_mode<synchronous>, transform_indices = @transform_1, window_bounds = array<i64: 27, 32>}, {pipeline_mode = #tpu.pipeline_mode<synchronous>, transform_indices = @transform_2, window_bounds = array<i64: 1, 32>}, {pipeline_mode = #tpu.pipeline_mode<synchronous>, transform_indices = @transform_3, window_bounds = array<i64: 288, 64>}, {pipeline_mode = #tpu.pipeline_mode<synchronous>, transform_indices = @transform_4, window_bounds = array<i64: 1, 64>}, {pipeline_mode = #tpu.pipeline_mode<synchronous>, transform_indices = @transform_5, window_bounds = array<i64: 576, 128>}, {pipeline_mode = #tpu.pipeline_mode<synchronous>, transform_indices = @transform_6, window_bounds = array<i64: 1, 128>}, {pipeline_mode = #tpu.pipeline_mode<synchronous>, transform_indices = @transform_7, window_bounds = array<i64: 1152, 256>}, {pipeline_mode = #tpu.pipeline_mode<synchronous>, transform_indices = @transform_8, window_bounds = array<i64: 1, 256>}, {pipeline_mode = #tpu.pipeline_mode<synchronous>, transform_indices = @transform_9, window_bounds = array<i64: 256, 2>}, {pipeline_mode = #tpu.pipeline_mode<synchronous>, transform_indices = @transform_10, window_bounds = array<i64: 1, 2>}, {transform_indices = @transform_11, window_bounds = array<i64: 1, 1, 2>}]} {
    %c0 = arith.constant 0 : index
    %c0_0 = arith.constant 0 : index
    %c0_1 = arith.constant 0 : index
    %0 = vector.load %arg1[%c0, %c0_0, %c0_1] : memref<1x1024x27xbf16, #tpu.memory_space<vmem>>, vector<1x1024x27xbf16>
    %1 = vector.shape_cast %0 : vector<1x1024x27xbf16> to vector<1024x27xbf16>
    %c0_2 = arith.constant 0 : index
    %c0_3 = arith.constant 0 : index
    %2 = vector.load %arg2[%c0_2, %c0_3] : memref<27x32xbf16, #tpu.memory_space<vmem>>, vector<27x32xbf16>
    %cst = arith.constant dense<0.000000e+00> : vector<1024x32xf32>
    %3 = tpu.matmul %1, %2, %cst {dimension_numbers = #tpu.dot_dimension_numbers<[1], [0], [0], [1], [0, 0, 1, 1], [], []>} : vector<1024x27xbf16>, vector<27x32xbf16>, vector<1024x32xf32> -> vector<1024x32xf32>
    %c0_4 = arith.constant 0 : index
    %c0_5 = arith.constant 0 : index
    %4 = vector.load %arg3[%c0_4, %c0_5] : memref<1x32xf32, #tpu.memory_space<vmem>>, vector<1x32xf32>
    %5 = vector.broadcast %4 : vector<1x32xf32> to vector<1024x32xf32>
    %6 = arith.addf %3, %5 : vector<1024x32xf32>
    %cst_6 = arith.constant 0.000000e+00 : f32
    %7 = vector.broadcast %cst_6 : f32 to vector<1024x32xf32>
    %8 = arith.maximumf %6, %7 : vector<1024x32xf32>
    %9 = vector.extract_strided_slice %8 {offsets = [0, 0], sizes = [32, 32], strides = [1, 1]} : vector<1024x32xf32> to vector<32x32xf32>
    %10 = vector.extract_strided_slice %8 {offsets = [32, 0], sizes = [32, 32], strides = [1, 1]} : vector<1024x32xf32> to vector<32x32xf32>
    %11 = arith.maximumf %9, %10 : vector<32x32xf32>
    %c0_7 = arith.constant 0 : index
    %c0_8 = arith.constant 0 : index
    %12 = vector.load %arg16[%c0_7, %c0_8] : memref<512x32xf32, #tpu.memory_space<vmem>>, vector<32x32xf32>
    tpu.vector_store %arg16[%c0_7, %c0_8], %11 {strides = array<i32>} : memref<512x32xf32, #tpu.memory_space<vmem>>, vector<32x32xf32>,
    %13 = vector.extract_strided_slice %8 {offsets = [64, 0], sizes = [32, 32], strides = [1, 1]} : vector<1024x32xf32> to vector<32x32xf32>
    %14 = vector.extract_strided_slice %8 {offsets = [96, 0], sizes = [32, 32], strides = [1, 1]} : vector<1024x32xf32> to vector<32x32xf32>
    %15 = arith.maximumf %13, %14 : vector<32x32xf32>
    %c32 = arith.constant 32 : index
    %c0_9 = arith.constant 0 : index
    %16 = vector.load %arg16[%c32, %c0_9] : memref<512x32xf32, #tpu.memory_space<vmem>>, vector<32x32xf32>
    tpu.vector_store %arg16[%c32, %c0_9], %15 {strides = array<i32>} : memref<512x32xf32, #tpu.memory_space<vmem>>, vector<32x32xf32>,
    %17 = vector.extract_strided_slice %8 {offsets = [128, 0], sizes = [32, 32], strides = [1, 1]} : vector<1024x32xf32> to vector<32x32xf32>
    %18 = vector.extract_strided_slice %8 {offsets = [160, 0], sizes = [32, 32], strides = [1, 1]} : vector<1024x32xf32> to vector<32x32xf32>
    %19 = arith.maximumf %17, %18 : vector<32x32xf32>
    %c64 = arith.constant 64 : index
    %c0_10 = arith.constant 0 : index
    %20 = vector.load %arg16[%c64, %c0_10] : memref<512x32xf32, #tpu.memory_space<vmem>>, vector<32x32xf32>
    tpu.vector_store %arg16[%c64, %c0_10], %19 {strides = array<i32>} : memref<512x32xf32, #tpu.memory_space<vmem>>, vector<32x32xf32>,
    %21 = vector.extract_strided_slice %8 {offsets = [192, 0], sizes = [32, 32], strides = [1, 1]} : vector<1024x32xf32> to vector<32x32xf32>
    %22 = vector.extract_strided_slice %8 {offsets = [224, 0], sizes = [32, 32], strides = [1, 1]} : vector<1024x32xf32> to vector<32x32xf32>
    %23 = arith.maximumf %21, %22 : vector<32x32xf32>
    %c96 = arith.constant 96 : index
    %c0_11 = arith.constant 0 : index
    %24 = vector.load %arg16[%c96, %c0_11] : memref<512x32xf32, #tpu.memory_space<vmem>>, vector<32x32xf32>
    tpu.vector_store %arg16[%c96, %c0_11], %23 {strides = array<i32>} : memref<512x32xf32, #tpu.memory_space<vmem>>, vector<32x32xf32>,
    %25 = vector.extract_strided_slice %8 {offsets = [256, 0], sizes = [32, 32], strides = [1, 1]} : vector<1024x32xf32> to vector<32x32xf32>
    %26 = vector.extract_strided_slice %8 {offsets = [288, 0], sizes = [32, 32], strides = [1, 1]} : vector<1024x32xf32> to vector<32x32xf32>
    %27 = arith.maximumf %25, %26 : vector<32x32xf32>
    %c128 = arith.constant 128 : index
    %c0_12 = arith.constant 0 : index
    %28 = vector.load %arg16[%c128, %c0_12] : memref<512x32xf32, #tpu.memory_space<vmem>>, vector<32x32xf32>
    tpu.vector_store %arg16[%c128, %c0_12], %27 {strides = array<i32>} : memref<512x32xf32, #tpu.memory_space<vmem>>, vector<32x32xf32>,
    %29 = vector.extract_strided_slice %8 {offsets = [320, 0], sizes = [32, 32], strides = [1, 1]} : vector<1024x32xf32> to vector<32x32xf32>
    %30 = vector.extract_strided_slice %8 {offsets = [352, 0], sizes = [32, 32], strides = [1, 1]} : vector<1024x32xf32> to vector<32x32xf32>
    %31 = arith.maximumf %29, %30 : vector<32x32xf32>
    %c160 = arith.constant 160 : index
    %c0_13 = arith.constant 0 : index
    %32 = vector.load %arg16[%c160, %c0_13] : memref<512x32xf32, #tpu.memory_space<vmem>>, vector<32x32xf32>
    tpu.vector_store %arg16[%c160, %c0_13], %31 {strides = array<i32>} : memref<512x32xf32, #tpu.memory_space<vmem>>, vector<32x32xf32>,
    %33 = vector.extract_strided_slice %8 {offsets = [384, 0], sizes = [32, 32], strides = [1, 1]} : vector<1024x32xf32> to vector<32x32xf32>
    %34 = vector.extract_strided_slice %8 {offsets = [416, 0], sizes = [32, 32], strides = [1, 1]} : vector<1024x32xf32> to vector<32x32xf32>
    %35 = arith.maximumf %33, %34 : vector<32x32xf32>
    %c192 = arith.constant 192 : index
    %c0_14 = arith.constant 0 : index
    %36 = vector.load %arg16[%c192, %c0_14] : memref<512x32xf32, #tpu.memory_space<vmem>>, vector<32x32xf32>
    tpu.vector_store %arg16[%c192, %c0_14], %35 {strides = array<i32>} : memref<512x32xf32, #tpu.memory_space<vmem>>, vector<32x32xf32>,
    %37 = vector.extract_strided_slice %8 {offsets = [448, 0], sizes = [32, 32], strides = [1, 1]} : vector<1024x32xf32> to vector<32x32xf32>
    %38 = vector.extract_strided_slice %8 {offsets = [480, 0], sizes = [32, 32], strides = [1, 1]} : vector<1024x32xf32> to vector<32x32xf32>
    %39 = arith.maximumf %37, %38 : vector<32x32xf32>
    %c224 = arith.constant 224 : index
    %c0_15 = arith.constant 0 : index
    %40 = vector.load %arg16[%c224, %c0_15] : memref<512x32xf32, #tpu.memory_space<vmem>>, vector<32x32xf32>
    tpu.vector_store %arg16[%c224, %c0_15], %39 {strides = array<i32>} : memref<512x32xf32, #tpu.memory_space<vmem>>, vector<32x32xf32>,
    %41 = vector.extract_strided_slice %8 {offsets = [512, 0], sizes = [32, 32], strides = [1, 1]} : vector<1024x32xf32> to vector<32x32xf32>
    %42 = vector.extract_strided_slice %8 {offsets = [544, 0], sizes = [32, 32], strides = [1, 1]} : vector<1024x32xf32> to vector<32x32xf32>
    %43 = arith.maximumf %41, %42 : vector<32x32xf32>
    %c256 = arith.constant 256 : index
    %c0_16 = arith.constant 0 : index
    %44 = vector.load %arg16[%c256, %c0_16] : memref<512x32xf32, #tpu.memory_space<vmem>>, vector<32x32xf32>
    tpu.vector_store %arg16[%c256, %c0_16], %43 {strides = array<i32>} : memref<512x32xf32, #tpu.memory_space<vmem>>, vector<32x32xf32>,
    %45 = vector.extract_strided_slice %8 {offsets = [576, 0], sizes = [32, 32], strides = [1, 1]} : vector<1024x32xf32> to vector<32x32xf32>
    %46 = vector.extract_strided_slice %8 {offsets = [608, 0], sizes = [32, 32], strides = [1, 1]} : vector<1024x32xf32> to vector<32x32xf32>
    %47 = arith.maximumf %45, %46 : vector<32x32xf32>
    %c288 = arith.constant 288 : index
    %c0_17 = arith.constant 0 : index
    %48 = vector.load %arg16[%c288, %c0_17] : memref<512x32xf32, #tpu.memory_space<vmem>>, vector<32x32xf32>
    tpu.vector_store %arg16[%c288, %c0_17], %47 {strides = array<i32>} : memref<512x32xf32, #tpu.memory_space<vmem>>, vector<32x32xf32>,
    %49 = vector.extract_strided_slice %8 {offsets = [640, 0], sizes = [32, 32], strides = [1, 1]} : vector<1024x32xf32> to vector<32x32xf32>
    %50 = vector.extract_strided_slice %8 {offsets = [672, 0], sizes = [32, 32], strides = [1, 1]} : vector<1024x32xf32> to vector<32x32xf32>
    %51 = arith.maximumf %49, %50 : vector<32x32xf32>
    %c320 = arith.constant 320 : index
    %c0_18 = arith.constant 0 : index
    %52 = vector.load %arg16[%c320, %c0_18] : memref<512x32xf32, #tpu.memory_space<vmem>>, vector<32x32xf32>
    tpu.vector_store %arg16[%c320, %c0_18], %51 {strides = array<i32>} : memref<512x32xf32, #tpu.memory_space<vmem>>, vector<32x32xf32>,
    %53 = vector.extract_strided_slice %8 {offsets = [704, 0], sizes = [32, 32], strides = [1, 1]} : vector<1024x32xf32> to vector<32x32xf32>
    %54 = vector.extract_strided_slice %8 {offsets = [736, 0], sizes = [32, 32], strides = [1, 1]} : vector<1024x32xf32> to vector<32x32xf32>
    %55 = arith.maximumf %53, %54 : vector<32x32xf32>
    %c352 = arith.constant 352 : index
    %c0_19 = arith.constant 0 : index
    %56 = vector.load %arg16[%c352, %c0_19] : memref<512x32xf32, #tpu.memory_space<vmem>>, vector<32x32xf32>
    tpu.vector_store %arg16[%c352, %c0_19], %55 {strides = array<i32>} : memref<512x32xf32, #tpu.memory_space<vmem>>, vector<32x32xf32>,
    %57 = vector.extract_strided_slice %8 {offsets = [768, 0], sizes = [32, 32], strides = [1, 1]} : vector<1024x32xf32> to vector<32x32xf32>
    %58 = vector.extract_strided_slice %8 {offsets = [800, 0], sizes = [32, 32], strides = [1, 1]} : vector<1024x32xf32> to vector<32x32xf32>
    %59 = arith.maximumf %57, %58 : vector<32x32xf32>
    %c384 = arith.constant 384 : index
    %c0_20 = arith.constant 0 : index
    %60 = vector.load %arg16[%c384, %c0_20] : memref<512x32xf32, #tpu.memory_space<vmem>>, vector<32x32xf32>
    tpu.vector_store %arg16[%c384, %c0_20], %59 {strides = array<i32>} : memref<512x32xf32, #tpu.memory_space<vmem>>, vector<32x32xf32>,
    %61 = vector.extract_strided_slice %8 {offsets = [832, 0], sizes = [32, 32], strides = [1, 1]} : vector<1024x32xf32> to vector<32x32xf32>
    %62 = vector.extract_strided_slice %8 {offsets = [864, 0], sizes = [32, 32], strides = [1, 1]} : vector<1024x32xf32> to vector<32x32xf32>
    %63 = arith.maximumf %61, %62 : vector<32x32xf32>
    %c416 = arith.constant 416 : index
    %c0_21 = arith.constant 0 : index
    %64 = vector.load %arg16[%c416, %c0_21] : memref<512x32xf32, #tpu.memory_space<vmem>>, vector<32x32xf32>
    tpu.vector_store %arg16[%c416, %c0_21], %63 {strides = array<i32>} : memref<512x32xf32, #tpu.memory_space<vmem>>, vector<32x32xf32>,
    %65 = vector.extract_strided_slice %8 {offsets = [896, 0], sizes = [32, 32], strides = [1, 1]} : vector<1024x32xf32> to vector<32x32xf32>
    %66 = vector.extract_strided_slice %8 {offsets = [928, 0], sizes = [32, 32], strides = [1, 1]} : vector<1024x32xf32> to vector<32x32xf32>
    %67 = arith.maximumf %65, %66 : vector<32x32xf32>
    %c448 = arith.constant 448 : index
    %c0_22 = arith.constant 0 : index
    %68 = vector.load %arg16[%c448, %c0_22] : memref<512x32xf32, #tpu.memory_space<vmem>>, vector<32x32xf32>
    tpu.vector_store %arg16[%c448, %c0_22], %67 {strides = array<i32>} : memref<512x32xf32, #tpu.memory_space<vmem>>, vector<32x32xf32>,
    %69 = vector.extract_strided_slice %8 {offsets = [960, 0], sizes = [32, 32], strides = [1, 1]} : vector<1024x32xf32> to vector<32x32xf32>
    %70 = vector.extract_strided_slice %8 {offsets = [992, 0], sizes = [32, 32], strides = [1, 1]} : vector<1024x32xf32> to vector<32x32xf32>
    %71 = arith.maximumf %69, %70 : vector<32x32xf32>
    %c480 = arith.constant 480 : index
    %c0_23 = arith.constant 0 : index
    %72 = vector.load %arg16[%c480, %c0_23] : memref<512x32xf32, #tpu.memory_space<vmem>>, vector<32x32xf32>
    tpu.vector_store %arg16[%c480, %c0_23], %71 {strides = array<i32>} : memref<512x32xf32, #tpu.memory_space<vmem>>, vector<32x32xf32>,
    %c0_24 = arith.constant 0 : index
    %c0_25 = arith.constant 0 : index
    %73 = tpu.strided_load %arg16[%c0_24, %c0_25] {strides = array<i32: 2, 1>} : memref<512x32xf32, #tpu.memory_space<vmem>>, vector<256x32xf32>
    %c1 = arith.constant 1 : index
    %c0_26 = arith.constant 0 : index
    %74 = tpu.strided_load %arg16[%c1, %c0_26] {strides = array<i32: 2, 1>} : memref<512x32xf32, #tpu.memory_space<vmem>>, vector<256x32xf32>
    %75 = arith.maximumf %73, %74 : vector<256x32xf32>
    %cst_27 = arith.constant 0.000000e+00 : f32
    %76 = vector.broadcast %cst_27 : f32 to vector<304x32xf32>
    %c0_28 = arith.constant 0 : index
    %c0_29 = arith.constant 0 : index
    %77 = vector.load %arg13[%c0_28, %c0_29] : memref<304x32xf32, #tpu.memory_space<vmem>>, vector<304x32xf32>
    tpu.vector_store %arg13[%c0_28, %c0_29], %76 {strides = array<i32>} : memref<304x32xf32, #tpu.memory_space<vmem>>, vector<304x32xf32>,
    %c24 = arith.constant 24 : index
    %c0_30 = arith.constant 0 : index
    %78 = vector.load %arg13[%c24, %c0_30] : memref<304x32xf32, #tpu.memory_space<vmem>>, vector<256x32xf32>
    tpu.vector_store %arg13[%c24, %c0_30], %75 {strides = array<i32>} : memref<304x32xf32, #tpu.memory_space<vmem>>, vector<256x32xf32>,
    %79 = tpu.iota {dimensions = array<i32: 0>} : vector<256x32xi32>
    %c15_i32 = arith.constant 15 : i32
    %80 = vector.broadcast %c15_i32 : i32 to vector<256x32xi32>
    %81 = arith.andi %79, %80 : vector<256x32xi32>
    %c0_i32 = arith.constant 0 : i32
    %82 = vector.broadcast %c0_i32 : i32 to vector<256x32xi32>
    %83 = arith.cmpi ne, %81, %82 : vector<256x32xi32>
    %c15_i32_31 = arith.constant 15 : i32
    %84 = vector.broadcast %c15_i32_31 : i32 to vector<256x32xi32>
    %85 = arith.cmpi ne, %81, %84 : vector<256x32xi32>
    %c7 = arith.constant 7 : index
    %c0_32 = arith.constant 0 : index
    %86 = vector.load %arg13[%c7, %c0_32] : memref<304x32xf32, #tpu.memory_space<vmem>>, vector<256x32xf32>
    %cst_33 = arith.constant 0.000000e+00 : f32
    %87 = vector.broadcast %cst_33 : f32 to vector<256x32xf32>
    %88 = arith.select %83, %86, %87 : vector<256x32xi1>, vector<256x32xf32>
    %c8 = arith.constant 8 : index
    %c0_34 = arith.constant 0 : index
    %89 = vector.load %arg13[%c8, %c0_34] : memref<304x32xf32, #tpu.memory_space<vmem>>, vector<256x32xf32>
    %c9 = arith.constant 9 : index
    %c0_35 = arith.constant 0 : index
    %90 = vector.load %arg13[%c9, %c0_35] : memref<304x32xf32, #tpu.memory_space<vmem>>, vector<256x32xf32>
    %cst_36 = arith.constant 0.000000e+00 : f32
    %91 = vector.broadcast %cst_36 : f32 to vector<256x32xf32>
    %92 = arith.select %85, %90, %91 : vector<256x32xi1>, vector<256x32xf32>
    %c23 = arith.constant 23 : index
    %c0_37 = arith.constant 0 : index
    %93 = vector.load %arg13[%c23, %c0_37] : memref<304x32xf32, #tpu.memory_space<vmem>>, vector<256x32xf32>
    %cst_38 = arith.constant 0.000000e+00 : f32
    %94 = vector.broadcast %cst_38 : f32 to vector<256x32xf32>
    %95 = arith.select %83, %93, %94 : vector<256x32xi1>, vector<256x32xf32>
    %c24_39 = arith.constant 24 : index
    %c0_40 = arith.constant 0 : index
    %96 = vector.load %arg13[%c24_39, %c0_40] : memref<304x32xf32, #tpu.memory_space<vmem>>, vector<256x32xf32>
    %c25 = arith.constant 25 : index
    %c0_41 = arith.constant 0 : index
    %97 = vector.load %arg13[%c25, %c0_41] : memref<304x32xf32, #tpu.memory_space<vmem>>, vector<256x32xf32>
    %cst_42 = arith.constant 0.000000e+00 : f32
    %98 = vector.broadcast %cst_42 : f32 to vector<256x32xf32>
    %99 = arith.select %85, %97, %98 : vector<256x32xi1>, vector<256x32xf32>
    %c39 = arith.constant 39 : index
    %c0_43 = arith.constant 0 : index
    %100 = vector.load %arg13[%c39, %c0_43] : memref<304x32xf32, #tpu.memory_space<vmem>>, vector<256x32xf32>
    %cst_44 = arith.constant 0.000000e+00 : f32
    %101 = vector.broadcast %cst_44 : f32 to vector<256x32xf32>
    %102 = arith.select %83, %100, %101 : vector<256x32xi1>, vector<256x32xf32>
    %c40 = arith.constant 40 : index
    %c0_45 = arith.constant 0 : index
    %103 = vector.load %arg13[%c40, %c0_45] : memref<304x32xf32, #tpu.memory_space<vmem>>, vector<256x32xf32>
    %c41 = arith.constant 41 : index
    %c0_46 = arith.constant 0 : index
    %104 = vector.load %arg13[%c41, %c0_46] : memref<304x32xf32, #tpu.memory_space<vmem>>, vector<256x32xf32>
    %cst_47 = arith.constant 0.000000e+00 : f32
    %105 = vector.broadcast %cst_47 : f32 to vector<256x32xf32>
    %106 = arith.select %85, %104, %105 : vector<256x32xi1>, vector<256x32xf32>
    %107 = tpu.concatenate %88, %89, %92, %95, %96, %99, %102, %103, %106 in 1 : vector<256x32xf32>, vector<256x32xf32>, vector<256x32xf32>, vector<256x32xf32>, vector<256x32xf32>, vector<256x32xf32>, vector<256x32xf32>, vector<256x32xf32>, vector<256x32xf32> -> vector<256x288xf32>
    %108 = arith.truncf %107 : vector<256x288xf32> to vector<256x288xbf16>
    %c0_48 = arith.constant 0 : index
    %c0_49 = arith.constant 0 : index
    %109 = vector.load %arg4[%c0_48, %c0_49] : memref<288x64xbf16, #tpu.memory_space<vmem>>, vector<288x64xbf16>
    %cst_50 = arith.constant dense<0.000000e+00> : vector<256x64xf32>
    %110 = tpu.matmul %108, %109, %cst_50 {dimension_numbers = #tpu.dot_dimension_numbers<[1], [0], [0], [1], [0, 0, 1, 1], [], []>} : vector<256x288xbf16>, vector<288x64xbf16>, vector<256x64xf32> -> vector<256x64xf32>
    %c0_51 = arith.constant 0 : index
    %c0_52 = arith.constant 0 : index
    %111 = vector.load %arg5[%c0_51, %c0_52] : memref<1x64xf32, #tpu.memory_space<vmem>>, vector<1x64xf32>
    %112 = vector.broadcast %111 : vector<1x64xf32> to vector<256x64xf32>
    %113 = arith.addf %110, %112 : vector<256x64xf32>
    %cst_53 = arith.constant 0.000000e+00 : f32
    %114 = vector.broadcast %cst_53 : f32 to vector<256x64xf32>
    %115 = arith.maximumf %113, %114 : vector<256x64xf32>
    %116 = vector.extract_strided_slice %115 {offsets = [0, 0], sizes = [16, 64], strides = [1, 1]} : vector<256x64xf32> to vector<16x64xf32>
    %117 = vector.extract_strided_slice %115 {offsets = [16, 0], sizes = [16, 64], strides = [1, 1]} : vector<256x64xf32> to vector<16x64xf32>
    %118 = arith.maximumf %116, %117 : vector<16x64xf32>
    %c0_54 = arith.constant 0 : index
    %c0_55 = arith.constant 0 : index
    %119 = vector.load %arg17[%c0_54, %c0_55] : memref<128x64xf32, #tpu.memory_space<vmem>>, vector<16x64xf32>
    tpu.vector_store %arg17[%c0_54, %c0_55], %118 {strides = array<i32>} : memref<128x64xf32, #tpu.memory_space<vmem>>, vector<16x64xf32>,
    %120 = vector.extract_strided_slice %115 {offsets = [32, 0], sizes = [16, 64], strides = [1, 1]} : vector<256x64xf32> to vector<16x64xf32>
    %121 = vector.extract_strided_slice %115 {offsets = [48, 0], sizes = [16, 64], strides = [1, 1]} : vector<256x64xf32> to vector<16x64xf32>
    %122 = arith.maximumf %120, %121 : vector<16x64xf32>
    %c16 = arith.constant 16 : index
    %c0_56 = arith.constant 0 : index
    %123 = vector.load %arg17[%c16, %c0_56] : memref<128x64xf32, #tpu.memory_space<vmem>>, vector<16x64xf32>
    tpu.vector_store %arg17[%c16, %c0_56], %122 {strides = array<i32>} : memref<128x64xf32, #tpu.memory_space<vmem>>, vector<16x64xf32>,
    %124 = vector.extract_strided_slice %115 {offsets = [64, 0], sizes = [16, 64], strides = [1, 1]} : vector<256x64xf32> to vector<16x64xf32>
    %125 = vector.extract_strided_slice %115 {offsets = [80, 0], sizes = [16, 64], strides = [1, 1]} : vector<256x64xf32> to vector<16x64xf32>
    %126 = arith.maximumf %124, %125 : vector<16x64xf32>
    %c32_57 = arith.constant 32 : index
    %c0_58 = arith.constant 0 : index
    %127 = vector.load %arg17[%c32_57, %c0_58] : memref<128x64xf32, #tpu.memory_space<vmem>>, vector<16x64xf32>
    tpu.vector_store %arg17[%c32_57, %c0_58], %126 {strides = array<i32>} : memref<128x64xf32, #tpu.memory_space<vmem>>, vector<16x64xf32>,
    %128 = vector.extract_strided_slice %115 {offsets = [96, 0], sizes = [16, 64], strides = [1, 1]} : vector<256x64xf32> to vector<16x64xf32>
    %129 = vector.extract_strided_slice %115 {offsets = [112, 0], sizes = [16, 64], strides = [1, 1]} : vector<256x64xf32> to vector<16x64xf32>
    %130 = arith.maximumf %128, %129 : vector<16x64xf32>
    %c48 = arith.constant 48 : index
    %c0_59 = arith.constant 0 : index
    %131 = vector.load %arg17[%c48, %c0_59] : memref<128x64xf32, #tpu.memory_space<vmem>>, vector<16x64xf32>
    tpu.vector_store %arg17[%c48, %c0_59], %130 {strides = array<i32>} : memref<128x64xf32, #tpu.memory_space<vmem>>, vector<16x64xf32>,
    %132 = vector.extract_strided_slice %115 {offsets = [128, 0], sizes = [16, 64], strides = [1, 1]} : vector<256x64xf32> to vector<16x64xf32>
    %133 = vector.extract_strided_slice %115 {offsets = [144, 0], sizes = [16, 64], strides = [1, 1]} : vector<256x64xf32> to vector<16x64xf32>
    %134 = arith.maximumf %132, %133 : vector<16x64xf32>
    %c64_60 = arith.constant 64 : index
    %c0_61 = arith.constant 0 : index
    %135 = vector.load %arg17[%c64_60, %c0_61] : memref<128x64xf32, #tpu.memory_space<vmem>>, vector<16x64xf32>
    tpu.vector_store %arg17[%c64_60, %c0_61], %134 {strides = array<i32>} : memref<128x64xf32, #tpu.memory_space<vmem>>, vector<16x64xf32>,
    %136 = vector.extract_strided_slice %115 {offsets = [160, 0], sizes = [16, 64], strides = [1, 1]} : vector<256x64xf32> to vector<16x64xf32>
    %137 = vector.extract_strided_slice %115 {offsets = [176, 0], sizes = [16, 64], strides = [1, 1]} : vector<256x64xf32> to vector<16x64xf32>
    %138 = arith.maximumf %136, %137 : vector<16x64xf32>
    %c80 = arith.constant 80 : index
    %c0_62 = arith.constant 0 : index
    %139 = vector.load %arg17[%c80, %c0_62] : memref<128x64xf32, #tpu.memory_space<vmem>>, vector<16x64xf32>
    tpu.vector_store %arg17[%c80, %c0_62], %138 {strides = array<i32>} : memref<128x64xf32, #tpu.memory_space<vmem>>, vector<16x64xf32>,
    %140 = vector.extract_strided_slice %115 {offsets = [192, 0], sizes = [16, 64], strides = [1, 1]} : vector<256x64xf32> to vector<16x64xf32>
    %141 = vector.extract_strided_slice %115 {offsets = [208, 0], sizes = [16, 64], strides = [1, 1]} : vector<256x64xf32> to vector<16x64xf32>
    %142 = arith.maximumf %140, %141 : vector<16x64xf32>
    %c96_63 = arith.constant 96 : index
    %c0_64 = arith.constant 0 : index
    %143 = vector.load %arg17[%c96_63, %c0_64] : memref<128x64xf32, #tpu.memory_space<vmem>>, vector<16x64xf32>
    tpu.vector_store %arg17[%c96_63, %c0_64], %142 {strides = array<i32>} : memref<128x64xf32, #tpu.memory_space<vmem>>, vector<16x64xf32>,
    %144 = vector.extract_strided_slice %115 {offsets = [224, 0], sizes = [16, 64], strides = [1, 1]} : vector<256x64xf32> to vector<16x64xf32>
    %145 = vector.extract_strided_slice %115 {offsets = [240, 0], sizes = [16, 64], strides = [1, 1]} : vector<256x64xf32> to vector<16x64xf32>
    %146 = arith.maximumf %144, %145 : vector<16x64xf32>
    %c112 = arith.constant 112 : index
    %c0_65 = arith.constant 0 : index
    %147 = vector.load %arg17[%c112, %c0_65] : memref<128x64xf32, #tpu.memory_space<vmem>>, vector<16x64xf32>
    tpu.vector_store %arg17[%c112, %c0_65], %146 {strides = array<i32>} : memref<128x64xf32, #tpu.memory_space<vmem>>, vector<16x64xf32>,
    %c0_66 = arith.constant 0 : index
    %c0_67 = arith.constant 0 : index
    %148 = tpu.strided_load %arg17[%c0_66, %c0_67] {strides = array<i32: 2, 1>} : memref<128x64xf32, #tpu.memory_space<vmem>>, vector<64x64xf32>
    %c1_68 = arith.constant 1 : index
    %c0_69 = arith.constant 0 : index
    %149 = tpu.strided_load %arg17[%c1_68, %c0_69] {strides = array<i32: 2, 1>} : memref<128x64xf32, #tpu.memory_space<vmem>>, vector<64x64xf32>
    %150 = arith.maximumf %148, %149 : vector<64x64xf32>
    %cst_70 = arith.constant 0.000000e+00 : f32
    %151 = vector.broadcast %cst_70 : f32 to vector<96x64xf32>
    %c0_71 = arith.constant 0 : index
    %c0_72 = arith.constant 0 : index
    %152 = vector.load %arg14[%c0_71, %c0_72] : memref<96x64xf32, #tpu.memory_space<vmem>>, vector<96x64xf32>
    tpu.vector_store %arg14[%c0_71, %c0_72], %151 {strides = array<i32>} : memref<96x64xf32, #tpu.memory_space<vmem>>, vector<96x64xf32>,
    %c16_73 = arith.constant 16 : index
    %c0_74 = arith.constant 0 : index
    %153 = vector.load %arg14[%c16_73, %c0_74] : memref<96x64xf32, #tpu.memory_space<vmem>>, vector<64x64xf32>
    tpu.vector_store %arg14[%c16_73, %c0_74], %150 {strides = array<i32>} : memref<96x64xf32, #tpu.memory_space<vmem>>, vector<64x64xf32>,
    %154 = tpu.iota {dimensions = array<i32: 0>} : vector<64x64xi32>
    %c7_i32 = arith.constant 7 : i32
    %155 = vector.broadcast %c7_i32 : i32 to vector<64x64xi32>
    %156 = arith.andi %154, %155 : vector<64x64xi32>
    %c0_i32_75 = arith.constant 0 : i32
    %157 = vector.broadcast %c0_i32_75 : i32 to vector<64x64xi32>
    %158 = arith.cmpi ne, %156, %157 : vector<64x64xi32>
    %c7_i32_76 = arith.constant 7 : i32
    %159 = vector.broadcast %c7_i32_76 : i32 to vector<64x64xi32>
    %160 = arith.cmpi ne, %156, %159 : vector<64x64xi32>
    %c7_77 = arith.constant 7 : index
    %c0_78 = arith.constant 0 : index
    %161 = vector.load %arg14[%c7_77, %c0_78] : memref<96x64xf32, #tpu.memory_space<vmem>>, vector<64x64xf32>
    %cst_79 = arith.constant 0.000000e+00 : f32
    %162 = vector.broadcast %cst_79 : f32 to vector<64x64xf32>
    %163 = arith.select %158, %161, %162 : vector<64x64xi1>, vector<64x64xf32>
    %c8_80 = arith.constant 8 : index
    %c0_81 = arith.constant 0 : index
    %164 = vector.load %arg14[%c8_80, %c0_81] : memref<96x64xf32, #tpu.memory_space<vmem>>, vector<64x64xf32>
    %c9_82 = arith.constant 9 : index
    %c0_83 = arith.constant 0 : index
    %165 = vector.load %arg14[%c9_82, %c0_83] : memref<96x64xf32, #tpu.memory_space<vmem>>, vector<64x64xf32>
    %cst_84 = arith.constant 0.000000e+00 : f32
    %166 = vector.broadcast %cst_84 : f32 to vector<64x64xf32>
    %167 = arith.select %160, %165, %166 : vector<64x64xi1>, vector<64x64xf32>
    %c15 = arith.constant 15 : index
    %c0_85 = arith.constant 0 : index
    %168 = vector.load %arg14[%c15, %c0_85] : memref<96x64xf32, #tpu.memory_space<vmem>>, vector<64x64xf32>
    %cst_86 = arith.constant 0.000000e+00 : f32
    %169 = vector.broadcast %cst_86 : f32 to vector<64x64xf32>
    %170 = arith.select %158, %168, %169 : vector<64x64xi1>, vector<64x64xf32>
    %c16_87 = arith.constant 16 : index
    %c0_88 = arith.constant 0 : index
    %171 = vector.load %arg14[%c16_87, %c0_88] : memref<96x64xf32, #tpu.memory_space<vmem>>, vector<64x64xf32>
    %c17 = arith.constant 17 : index
    %c0_89 = arith.constant 0 : index
    %172 = vector.load %arg14[%c17, %c0_89] : memref<96x64xf32, #tpu.memory_space<vmem>>, vector<64x64xf32>
    %cst_90 = arith.constant 0.000000e+00 : f32
    %173 = vector.broadcast %cst_90 : f32 to vector<64x64xf32>
    %174 = arith.select %160, %172, %173 : vector<64x64xi1>, vector<64x64xf32>
    %c23_91 = arith.constant 23 : index
    %c0_92 = arith.constant 0 : index
    %175 = vector.load %arg14[%c23_91, %c0_92] : memref<96x64xf32, #tpu.memory_space<vmem>>, vector<64x64xf32>
    %cst_93 = arith.constant 0.000000e+00 : f32
    %176 = vector.broadcast %cst_93 : f32 to vector<64x64xf32>
    %177 = arith.select %158, %175, %176 : vector<64x64xi1>, vector<64x64xf32>
    %c24_94 = arith.constant 24 : index
    %c0_95 = arith.constant 0 : index
    %178 = vector.load %arg14[%c24_94, %c0_95] : memref<96x64xf32, #tpu.memory_space<vmem>>, vector<64x64xf32>
    %c25_96 = arith.constant 25 : index
    %c0_97 = arith.constant 0 : index
    %179 = vector.load %arg14[%c25_96, %c0_97] : memref<96x64xf32, #tpu.memory_space<vmem>>, vector<64x64xf32>
    %cst_98 = arith.constant 0.000000e+00 : f32
    %180 = vector.broadcast %cst_98 : f32 to vector<64x64xf32>
    %181 = arith.select %160, %179, %180 : vector<64x64xi1>, vector<64x64xf32>
    %182 = tpu.concatenate %163, %164, %167, %170, %171, %174, %177, %178, %181 in 1 : vector<64x64xf32>, vector<64x64xf32>, vector<64x64xf32>, vector<64x64xf32>, vector<64x64xf32>, vector<64x64xf32>, vector<64x64xf32>, vector<64x64xf32>, vector<64x64xf32> -> vector<64x576xf32>
    %183 = arith.truncf %182 : vector<64x576xf32> to vector<64x576xbf16>
    %c0_99 = arith.constant 0 : index
    %c0_100 = arith.constant 0 : index
    %184 = vector.load %arg6[%c0_99, %c0_100] : memref<576x128xbf16, #tpu.memory_space<vmem>>, vector<576x128xbf16>
    %cst_101 = arith.constant dense<0.000000e+00> : vector<64x128xf32>
    %185 = tpu.matmul %183, %184, %cst_101 {dimension_numbers = #tpu.dot_dimension_numbers<[1], [0], [0], [1], [0, 0, 1, 1], [], []>} : vector<64x576xbf16>, vector<576x128xbf16>, vector<64x128xf32> -> vector<64x128xf32>
    %c0_102 = arith.constant 0 : index
    %c0_103 = arith.constant 0 : index
    %186 = vector.load %arg7[%c0_102, %c0_103] : memref<1x128xf32, #tpu.memory_space<vmem>>, vector<1x128xf32>
    %187 = vector.broadcast %186 : vector<1x128xf32> to vector<64x128xf32>
    %188 = arith.addf %185, %187 : vector<64x128xf32>
    %cst_104 = arith.constant 0.000000e+00 : f32
    %189 = vector.broadcast %cst_104 : f32 to vector<64x128xf32>
    %190 = arith.maximumf %188, %189 : vector<64x128xf32>
    %191 = vector.extract_strided_slice %190 {offsets = [0, 0], sizes = [8, 128], strides = [1, 1]} : vector<64x128xf32> to vector<8x128xf32>
    %192 = vector.extract_strided_slice %190 {offsets = [8, 0], sizes = [8, 128], strides = [1, 1]} : vector<64x128xf32> to vector<8x128xf32>
    %193 = arith.maximumf %191, %192 : vector<8x128xf32>
    %c0_105 = arith.constant 0 : index
    %c0_106 = arith.constant 0 : index
    %194 = vector.load %arg18[%c0_105, %c0_106] : memref<32x128xf32, #tpu.memory_space<vmem>>, vector<8x128xf32>
    tpu.vector_store %arg18[%c0_105, %c0_106], %193 {strides = array<i32>} : memref<32x128xf32, #tpu.memory_space<vmem>>, vector<8x128xf32>,
    %195 = vector.extract_strided_slice %190 {offsets = [16, 0], sizes = [8, 128], strides = [1, 1]} : vector<64x128xf32> to vector<8x128xf32>
    %196 = vector.extract_strided_slice %190 {offsets = [24, 0], sizes = [8, 128], strides = [1, 1]} : vector<64x128xf32> to vector<8x128xf32>
    %197 = arith.maximumf %195, %196 : vector<8x128xf32>
    %c8_107 = arith.constant 8 : index
    %c0_108 = arith.constant 0 : index
    %198 = vector.load %arg18[%c8_107, %c0_108] : memref<32x128xf32, #tpu.memory_space<vmem>>, vector<8x128xf32>
    tpu.vector_store %arg18[%c8_107, %c0_108], %197 {strides = array<i32>} : memref<32x128xf32, #tpu.memory_space<vmem>>, vector<8x128xf32>,
    %199 = vector.extract_strided_slice %190 {offsets = [32, 0], sizes = [8, 128], strides = [1, 1]} : vector<64x128xf32> to vector<8x128xf32>
    %200 = vector.extract_strided_slice %190 {offsets = [40, 0], sizes = [8, 128], strides = [1, 1]} : vector<64x128xf32> to vector<8x128xf32>
    %201 = arith.maximumf %199, %200 : vector<8x128xf32>
    %c16_109 = arith.constant 16 : index
    %c0_110 = arith.constant 0 : index
    %202 = vector.load %arg18[%c16_109, %c0_110] : memref<32x128xf32, #tpu.memory_space<vmem>>, vector<8x128xf32>
    tpu.vector_store %arg18[%c16_109, %c0_110], %201 {strides = array<i32>} : memref<32x128xf32, #tpu.memory_space<vmem>>, vector<8x128xf32>,
    %203 = vector.extract_strided_slice %190 {offsets = [48, 0], sizes = [8, 128], strides = [1, 1]} : vector<64x128xf32> to vector<8x128xf32>
    %204 = vector.extract_strided_slice %190 {offsets = [56, 0], sizes = [8, 128], strides = [1, 1]} : vector<64x128xf32> to vector<8x128xf32>
    %205 = arith.maximumf %203, %204 : vector<8x128xf32>
    %c24_111 = arith.constant 24 : index
    %c0_112 = arith.constant 0 : index
    %206 = vector.load %arg18[%c24_111, %c0_112] : memref<32x128xf32, #tpu.memory_space<vmem>>, vector<8x128xf32>
    tpu.vector_store %arg18[%c24_111, %c0_112], %205 {strides = array<i32>} : memref<32x128xf32, #tpu.memory_space<vmem>>, vector<8x128xf32>,
    %c0_113 = arith.constant 0 : index
    %c0_114 = arith.constant 0 : index
    %207 = tpu.strided_load %arg18[%c0_113, %c0_114] {strides = array<i32: 2, 1>} : memref<32x128xf32, #tpu.memory_space<vmem>>, vector<16x128xf32>
    %c1_115 = arith.constant 1 : index
    %c0_116 = arith.constant 0 : index
    %208 = tpu.strided_load %arg18[%c1_115, %c0_116] {strides = array<i32: 2, 1>} : memref<32x128xf32, #tpu.memory_space<vmem>>, vector<16x128xf32>
    %209 = arith.maximumf %207, %208 : vector<16x128xf32>
    %cst_117 = arith.constant 0.000000e+00 : f32
    %210 = vector.broadcast %cst_117 : f32 to vector<32x128xf32>
    %c0_118 = arith.constant 0 : index
    %c0_119 = arith.constant 0 : index
    %211 = vector.load %arg15[%c0_118, %c0_119] : memref<32x128xf32, #tpu.memory_space<vmem>>, vector<32x128xf32>
    tpu.vector_store %arg15[%c0_118, %c0_119], %210 {strides = array<i32>} : memref<32x128xf32, #tpu.memory_space<vmem>>, vector<32x128xf32>,
    %c8_120 = arith.constant 8 : index
    %c0_121 = arith.constant 0 : index
    %212 = vector.load %arg15[%c8_120, %c0_121] : memref<32x128xf32, #tpu.memory_space<vmem>>, vector<16x128xf32>
    tpu.vector_store %arg15[%c8_120, %c0_121], %209 {strides = array<i32>} : memref<32x128xf32, #tpu.memory_space<vmem>>, vector<16x128xf32>,
    %213 = tpu.iota {dimensions = array<i32: 0>} : vector<16x128xi32>
    %c3_i32 = arith.constant 3 : i32
    %214 = vector.broadcast %c3_i32 : i32 to vector<16x128xi32>
    %215 = arith.andi %213, %214 : vector<16x128xi32>
    %c0_i32_122 = arith.constant 0 : i32
    %216 = vector.broadcast %c0_i32_122 : i32 to vector<16x128xi32>
    %217 = arith.cmpi ne, %215, %216 : vector<16x128xi32>
    %c3_i32_123 = arith.constant 3 : i32
    %218 = vector.broadcast %c3_i32_123 : i32 to vector<16x128xi32>
    %219 = arith.cmpi ne, %215, %218 : vector<16x128xi32>
    %c3 = arith.constant 3 : index
    %c0_124 = arith.constant 0 : index
    %220 = vector.load %arg15[%c3, %c0_124] : memref<32x128xf32, #tpu.memory_space<vmem>>, vector<16x128xf32>
    %cst_125 = arith.constant 0.000000e+00 : f32
    %221 = vector.broadcast %cst_125 : f32 to vector<16x128xf32>
    %222 = arith.select %217, %220, %221 : vector<16x128xi1>, vector<16x128xf32>
    %c4 = arith.constant 4 : index
    %c0_126 = arith.constant 0 : index
    %223 = vector.load %arg15[%c4, %c0_126] : memref<32x128xf32, #tpu.memory_space<vmem>>, vector<16x128xf32>
    %c5 = arith.constant 5 : index
    %c0_127 = arith.constant 0 : index
    %224 = vector.load %arg15[%c5, %c0_127] : memref<32x128xf32, #tpu.memory_space<vmem>>, vector<16x128xf32>
    %cst_128 = arith.constant 0.000000e+00 : f32
    %225 = vector.broadcast %cst_128 : f32 to vector<16x128xf32>
    %226 = arith.select %219, %224, %225 : vector<16x128xi1>, vector<16x128xf32>
    %c7_129 = arith.constant 7 : index
    %c0_130 = arith.constant 0 : index
    %227 = vector.load %arg15[%c7_129, %c0_130] : memref<32x128xf32, #tpu.memory_space<vmem>>, vector<16x128xf32>
    %cst_131 = arith.constant 0.000000e+00 : f32
    %228 = vector.broadcast %cst_131 : f32 to vector<16x128xf32>
    %229 = arith.select %217, %227, %228 : vector<16x128xi1>, vector<16x128xf32>
    %c8_132 = arith.constant 8 : index
    %c0_133 = arith.constant 0 : index
    %230 = vector.load %arg15[%c8_132, %c0_133] : memref<32x128xf32, #tpu.memory_space<vmem>>, vector<16x128xf32>
    %c9_134 = arith.constant 9 : index
    %c0_135 = arith.constant 0 : index
    %231 = vector.load %arg15[%c9_134, %c0_135] : memref<32x128xf32, #tpu.memory_space<vmem>>, vector<16x128xf32>
    %cst_136 = arith.constant 0.000000e+00 : f32
    %232 = vector.broadcast %cst_136 : f32 to vector<16x128xf32>
    %233 = arith.select %219, %231, %232 : vector<16x128xi1>, vector<16x128xf32>
    %c11 = arith.constant 11 : index
    %c0_137 = arith.constant 0 : index
    %234 = vector.load %arg15[%c11, %c0_137] : memref<32x128xf32, #tpu.memory_space<vmem>>, vector<16x128xf32>
    %cst_138 = arith.constant 0.000000e+00 : f32
    %235 = vector.broadcast %cst_138 : f32 to vector<16x128xf32>
    %236 = arith.select %217, %234, %235 : vector<16x128xi1>, vector<16x128xf32>
    %c12 = arith.constant 12 : index
    %c0_139 = arith.constant 0 : index
    %237 = vector.load %arg15[%c12, %c0_139] : memref<32x128xf32, #tpu.memory_space<vmem>>, vector<16x128xf32>
    %c13 = arith.constant 13 : index
    %c0_140 = arith.constant 0 : index
    %238 = vector.load %arg15[%c13, %c0_140] : memref<32x128xf32, #tpu.memory_space<vmem>>, vector<16x128xf32>
    %cst_141 = arith.constant 0.000000e+00 : f32
    %239 = vector.broadcast %cst_141 : f32 to vector<16x128xf32>
    %240 = arith.select %219, %238, %239 : vector<16x128xi1>, vector<16x128xf32>
    %241 = tpu.concatenate %222, %223, %226, %229, %230, %233, %236, %237, %240 in 1 : vector<16x128xf32>, vector<16x128xf32>, vector<16x128xf32>, vector<16x128xf32>, vector<16x128xf32>, vector<16x128xf32>, vector<16x128xf32>, vector<16x128xf32>, vector<16x128xf32> -> vector<16x1152xf32>
    %242 = arith.truncf %241 : vector<16x1152xf32> to vector<16x1152xbf16>
    %c0_142 = arith.constant 0 : index
    %c0_143 = arith.constant 0 : index
    %243 = vector.load %arg8[%c0_142, %c0_143] : memref<1152x256xbf16, #tpu.memory_space<vmem>>, vector<1152x256xbf16>
    %cst_144 = arith.constant dense<0.000000e+00> : vector<16x256xf32>
    %244 = tpu.matmul %242, %243, %cst_144 {dimension_numbers = #tpu.dot_dimension_numbers<[1], [0], [0], [1], [0, 0, 1, 1], [], []>} : vector<16x1152xbf16>, vector<1152x256xbf16>, vector<16x256xf32> -> vector<16x256xf32>
    %c0_145 = arith.constant 0 : index
    %c0_146 = arith.constant 0 : index
    %245 = vector.load %arg9[%c0_145, %c0_146] : memref<1x256xf32, #tpu.memory_space<vmem>>, vector<1x256xf32>
    %246 = vector.broadcast %245 : vector<1x256xf32> to vector<16x256xf32>
    %247 = arith.addf %244, %246 : vector<16x256xf32>
    %cst_147 = arith.constant 0.000000e+00 : f32
    %248 = vector.broadcast %cst_147 : f32 to vector<16x256xf32>
    %249 = arith.maximumf %247, %248 : vector<16x256xf32>
    %cst_148 = arith.constant dense<0.000000e+00> : vector<256xf32>
    %250 = vector.multi_reduction <add>, %249, %cst_148 [0] : vector<16x256xf32> to vector<256xf32>
    %251 = vector.shape_cast %250 : vector<256xf32> to vector<1x256xf32>
    %cst_149 = arith.constant 6.250000e-02 : f32
    %252 = vector.broadcast %cst_149 : f32 to vector<1x256xf32>
    %253 = arith.mulf %251, %252 : vector<1x256xf32>
    %c0_150 = arith.constant 0 : index
    %c0_151 = arith.constant 0 : index
    %254 = vector.load %arg10[%c0_150, %c0_151] : memref<256x2xf32, #tpu.memory_space<vmem>>, vector<256x2xf32>
    %cst_152 = arith.constant dense<0.000000e+00> : vector<1x2xf32>
    %255 = tpu.matmul %253, %254, %cst_152 {dimension_numbers = #tpu.dot_dimension_numbers<[1], [0], [0], [1], [0, 0, 1, 1], [], []>} : vector<1x256xf32>, vector<256x2xf32>, vector<1x2xf32> -> vector<1x2xf32>
    %c0_153 = arith.constant 0 : index
    %c0_154 = arith.constant 0 : index
    %256 = vector.load %arg11[%c0_153, %c0_154] : memref<1x2xf32, #tpu.memory_space<vmem>>, vector<1x2xf32>
    %257 = arith.addf %255, %256 : vector<1x2xf32>
    %c0_155 = arith.constant 0 : index
    %c0_156 = arith.constant 0 : index
    %c0_157 = arith.constant 0 : index
    %258 = vector.load %arg12[%c0_155, %c0_156, %c0_157] : memref<1x1x2xf32, #tpu.memory_space<vmem>>, vector<1x1x2xf32>
    %259 = vector.shape_cast %258 : vector<1x1x2xf32> to vector<1x2xf32>
    %260 = vector.shape_cast %257 : vector<1x2xf32> to vector<1x1x2xf32>
    tpu.vector_store %arg12[%c0_155, %c0_156, %c0_157], %260 {strides = array<i32>} : memref<1x1x2xf32, #tpu.memory_space<vmem>>, vector<1x1x2xf32>,
    return
  }
  func.func @transform_0(%arg0: i32) -> (i32, i32, i32) {
    %c0_i32 = arith.constant 0 : i32
    %c0_i32_0 = arith.constant 0 : i32
    %c0_i32_1 = arith.constant 0 : i32
    return %arg0, %c0_i32, %c0_i32_0 : i32, i32, i32
  }
  func.func @transform_1(%arg0: i32) -> (i32, i32) {
    %c0_i32 = arith.constant 0 : i32
    %c0_i32_0 = arith.constant 0 : i32
    %c0_i32_1 = arith.constant 0 : i32
    return %c0_i32, %c0_i32_0 : i32, i32
  }
  func.func @transform_2(%arg0: i32) -> (i32, i32) {
    %c0_i32 = arith.constant 0 : i32
    %c0_i32_0 = arith.constant 0 : i32
    %c0_i32_1 = arith.constant 0 : i32
    return %c0_i32, %c0_i32_0 : i32, i32
  }
  func.func @transform_3(%arg0: i32) -> (i32, i32) {
    %c0_i32 = arith.constant 0 : i32
    %c0_i32_0 = arith.constant 0 : i32
    %c0_i32_1 = arith.constant 0 : i32
    return %c0_i32, %c0_i32_0 : i32, i32
  }
  func.func @transform_4(%arg0: i32) -> (i32, i32) {
    %c0_i32 = arith.constant 0 : i32
    %c0_i32_0 = arith.constant 0 : i32
    %c0_i32_1 = arith.constant 0 : i32
    return %c0_i32, %c0_i32_0 : i32, i32
  }
  func.func @transform_5(%arg0: i32) -> (i32, i32) {
    %c0_i32 = arith.constant 0 : i32
    %c0_i32_0 = arith.constant 0 : i32
    %c0_i32_1 = arith.constant 0 : i32
    return %c0_i32, %c0_i32_0 : i32, i32
  }
  func.func @transform_6(%arg0: i32) -> (i32, i32) {
    %c0_i32 = arith.constant 0 : i32
    %c0_i32_0 = arith.constant 0 : i32
    %c0_i32_1 = arith.constant 0 : i32
    return %c0_i32, %c0_i32_0 : i32, i32
  }
  func.func @transform_7(%arg0: i32) -> (i32, i32) {
    %c0_i32 = arith.constant 0 : i32
    %c0_i32_0 = arith.constant 0 : i32
    %c0_i32_1 = arith.constant 0 : i32
    return %c0_i32, %c0_i32_0 : i32, i32
  }
  func.func @transform_8(%arg0: i32) -> (i32, i32) {
    %c0_i32 = arith.constant 0 : i32
    %c0_i32_0 = arith.constant 0 : i32
    %c0_i32_1 = arith.constant 0 : i32
    return %c0_i32, %c0_i32_0 : i32, i32
  }
  func.func @transform_9(%arg0: i32) -> (i32, i32) {
    %c0_i32 = arith.constant 0 : i32
    %c0_i32_0 = arith.constant 0 : i32
    %c0_i32_1 = arith.constant 0 : i32
    return %c0_i32, %c0_i32_0 : i32, i32
  }
  func.func @transform_10(%arg0: i32) -> (i32, i32) {
    %c0_i32 = arith.constant 0 : i32
    %c0_i32_0 = arith.constant 0 : i32
    %c0_i32_1 = arith.constant 0 : i32
    return %c0_i32, %c0_i32_0 : i32, i32
  }
  func.func @transform_11(%arg0: i32) -> (i32, i32, i32) {
    %c0_i32 = arith.constant 0 : i32
    %c0_i32_0 = arith.constant 0 : i32
    %c0_i32_1 = arith.constant 0 : i32
    return %arg0, %c0_i32, %c0_i32_0 : i32, i32, i32
  }
}

</mosaic_0001>

<bundles_post_ra>
// kernel: lightweight_cnn_forward.1
= control target key start
LH: loop header
LB: loop body
LE: loop exit
PB: predicated region body
PF: predicated region fallthrough
CT: control target
= control target key end

     0   :  { %s11363_s0 = inlined_call_operand.vmem [shape: bf16[2,1024,27], index: 0, kind: input, shape index: {}]   ;;  %s11364_s1 = inlined_call_operand.vmem [shape: bf16[27,32], index: 1, kind: input, shape index: {}]   ;;  %s11365_s2 = inlined_call_operand.vmem [shape: f32[1,32], index: 2, kind: input, shape index: {}]   ;;  %s11366_s3 = inlined_call_operand.vmem [shape: bf16[288,64], index: 3, kind: input, shape index: {}]   ;;  %s11367_s4 = inlined_call_operand.vmem [shape: f32[1,64], index: 4, kind: input, shape index: {}]   ;;  %s11368_s5 = inlined_call_operand.vmem [shape: bf16[576,128], index: 5, kind: input, shape index: {}]   ;;  %s11369_s6 = inlined_call_operand.vmem [shape: f32[1,128], index: 6, kind: input, shape index: {}]   ;;  %s11370_s7 = inlined_call_operand.vmem [shape: bf16[1152,256], index: 7, kind: input, shape index: {}]   ;;  %s11371_s8 = inlined_call_operand.vmem [shape: f32[1,256], index: 8, kind: input, shape index: {}]   ;;  %s11372_s9 = inlined_call_operand.vmem [shape: f32[256,2], index: 9, kind: input, shape index: {}]   ;;  %s11373_s10 = inlined_call_operand.vmem [shape: f32[1,2], index: 10, kind: input, shape index: {}]   ;;  %s11374_s11 = inlined_call_operand.hbm [shape: f32[2,1,2], index: 11, kind: output, shape index: {}]  }
   0x1   :  { %11398 = sst [smem:[#allocation24_spill]] %s11363_s0 }
   0x2   :  { %16 = vsyncpa [#allocation9], 0 }
   0x3   :  { %18 = vsyncpa [#allocation9 + $0x1], 0  ;;  %s8295_s17 = smov 0   ;;  %s8297_s18 = smov 0  }
   0x4   :  { %s8299_s19 = smov 0   ;;  %s8301_s20 = smov 0  }
   0x5 LB: > { %s8316_s21 = sadd.s32 4294967295, %s8226_s20   ;;  %s6258_s22 = sadd.s32 4294967294, %s8226_s20   ;;  %s8226_s20 = sphi %s8301_s20, %s11791_s20   ;;  %s8222_s19 = sphi %s8299_s19, %s11790_s19   ;;  %s8218_s18 = sphi %s8297_s18, %s11789_s18   ;;  %s8214_s17 = sphi %s8295_s17, %s11788_s17  }
   0x6   : > { %s8320_s23 = sadd.s32 1, %s8226_s20   ;;  %s267_s24 = sadd.s32 1, %s8222_s19 }
   0x7   : > { %s264_s25 = ssub.s32 %s8226_s20, %s8320_s23  ;;  %p277_p0 = scmp.ne.s32.totalorder %s8222_s19, %s8218_s18 }
   0x8   : > { %p265_p1 = scmp.eq.s32.totalorder %s264_s25, 0  ;;  %p278_p2 = scmp.eq.s32.totalorder %s8316_s21, 1 }
   0x9   : > { %p283_p3 = scmp.ne.s32.totalorder %s8218_s18, %s8214_s17  ;;  %p284_p4 = scmp.eq.s32.totalorder %s6258_s22, 1 }
   0xa   : > { %s8331_s26 = scalar_select %p265_p1, %s8222_s19, %s267_s24  }
   0xb   : > { %p8333_p5 = por %p278_p2, %p277_p0  ;;  %p8337_p6 = por %p284_p4, %p283_p3 }
   0xc   : > { %p6261_p7 = scmp.ge.s32.totalorder %s8226_s20, 1  ;;  %p340_p8 = scmp.lt.s32.totalorder %s8226_s20, 3 }
   0xe   : > { %p341_p9 = pnand %p6261_p7, %p340_p8 }
  0x10   : > { %344 = sbr.rel (%p341_p9) target bundleno = 2002 (0x7d2), region = 64 }
  0x17   : > { %v7786_v0 = vld [vmem:[%s11364_s1] sm:$0xff]   ;;  %vm1048_vm0 = vcmask 1044480   ;;  %v7787_v1 = vld [vmem:[%s11364_s1 + $0x8] sm:$0x3f]   ;;  %vm1049_vm1 = vcmask 1045504   ;;  %p379_p10 = scmp.lt.s32.totalorder %s8316_s21, 1 }
  0x18   : > { %6956 = vmatprep.subr.bf16.mxu0 %v7786_v0  ;;  %vm855_vm2 = vcmask 220160   ;;  %7172 = vmatprep.subr.bf16.mxu1 %v7786_v0  ;;  %v8228_v2 = vmov 65535   ;;  %s11401_s0 = sld [smem:[#allocation24_spill]]  ;;  %vm11393_vm3 = vcmask 261120   ;;  %v8229_v38 = vmov 0.0   ;;  %s8230_s25 = smov 32  }
  0x19   : > { %6957 = vmatpush3.bf16.msra.mxu0 %v7786_v0  ;;  %v1050_v3 = vsel %vm1048_vm0, 4294967295, %v8228_v2  ;;  %7174 = vmatpush3.bf16.msra.mxu1 %v7786_v0  ;;  %s380_s14 = scalar_select %p379_p10, %s8316_s21, 1  ;;  %2019 = vst.msk [vmem:[#allocation2 + $0x18] sm:$0xff] %vm11393_vm3, %v8229_v38  ;;  %2020 = vst.msk [vmem:[#allocation2 + $0x20] sm:$0xff] %vm11393_vm3, %v8229_v38  ;;  %v7852_v51 = vld [vmem:[%s11366_s3 + $0x40] sm:$0xff]   ;;  %v7857_v60 = vld [vmem:[%s11366_s3 + $0x88] sm:$0xff]  }
  0x1a   : > { %v1051_v4 = vsel %vm1049_vm1, %v1050_v3, 0  ;;  %2016 = vst.msk [vmem:[#allocation2] sm:$0xff] %vm11393_vm3, %v8229_v38  ;;  %2017 = vst.msk [vmem:[#allocation2 + $0x8] sm:$0xff] %vm11393_vm3, %v8229_v38  ;;  %v7853_v52 = vld [vmem:[%s11366_s3] sm:$0xff]   ;;  %v7854_v63 = vld [vmem:[%s11366_s3 + $0x48] sm:$0xff]   ;;  %vm11396_vm4 = vcmask 523264  }
  0x1b   : > { %v1053_v5 = vand.u32 %v7787_v1, %v1051_v4  ;;  %s6636_s15 = sshll.u32 %s380_s14, 9  ;;  %2018 = vst.msk [vmem:[#allocation2 + $0x10] sm:$0xff] %vm11393_vm3, %v8229_v38  ;;  %2021 = vst.msk [vmem:[#allocation2 + $0x28] sm:$0xff] %vm11393_vm3, %v8229_v38  ;;  %v7856_v57 = vld [vmem:[%s11366_s3 + $0x80] sm:$0xff]   ;;  %v7855_v0 = vld [vmem:[%s11366_s3 + $0x8] sm:$0xff]   ;;  %s8231_s30 = smov 64  }
  0x1c   : > { %2022 = vst.msk [vmem:[#allocation2 + $0x30] sm:$0xff] %vm11393_vm3, %v8229_v38  ;;  %2023 = vst.msk [vmem:[#allocation2 + $0x38] sm:$0xff] %vm11393_vm3, %v8229_v38  ;;  %s6633_s14 = sshll.u32 %s8316_s21, 4  ;;  %s8234_s21 = smov [#allocation8]  }
  0x1d   : > { %6958 = vmatprep.subr.bf16.mxu0 %v1053_v5  ;;  %7173 = vmatprep.subr.bf16.mxu1 %v1053_v5  ;;  %2024 = vst.msk [vmem:[#allocation2 + $0x40] sm:$0xff] %vm11393_vm3, %v8229_v38  ;;  %2025 = vst.msk [vmem:[#allocation2 + $0x48] sm:$0xff] %vm11393_vm3, %v8229_v38 }
  0x1e   : > { %s8354_s24 = scalar_lea.vmem %s11401_s0, %s6636_s15  ;;  %6959 = vmatpush3.bf16.msra.mxu0 %v1053_v5  ;;  %7175 = vmatpush3.bf16.msra.mxu1 %v1053_v5  ;;  %2026 = vst.msk [vmem:[#allocation2 + $0x50] sm:$0xff] %vm11393_vm3, %v8229_v38  ;;  %2027 = vst.msk [vmem:[#allocation2 + $0x58] sm:$0xff] %vm11393_vm3, %v8229_v38  ;;  %s8232_s15 = smov 96  }
  0x1f   : > { %v7788_v6 = vld [vmem:[%s8354_s24] sm:$0xff]   ;;  %v7789_v7 = vld [vmem:[%s8354_s24 + $0x8] sm:$0xff]   ;;  %v7790_v8 = vld [vmem:[%s8354_s24 + $0x10] sm:$0xff]   ;;  %2028 = vst.msk [vmem:[#allocation2 + $0x60] sm:$0xff] %vm11393_vm3, %v8229_v38  ;;  %6703 = vmatprep.subr.bf16.mxu0 %v7852_v51  ;;  %7088 = vmatprep.subr.bf16.mxu1 %v7856_v57 }
  0x20   : > { %6960 = vmatprep.mubr.msk.bf16.mxu0 %vm855_vm2, %v7788_v6  ;;  %v7791_v9 = vld [vmem:[%s8354_s24 + $0x18] sm:$0xff]   ;;  %v7792_v10 = vld [vmem:[%s8354_s24 + $0x20] sm:$0xff]   ;;  %v7793_v11 = vld [vmem:[%s8354_s24 + $0x28] sm:$0xff]   ;;  %2029 = vst.msk [vmem:[#allocation2 + $0x68] sm:$0xff] %vm11393_vm3, %v8229_v38 }
  0x21   : > { %6961 = vmatmul.mubr.msk.bf16.vlgmr.msra.gmra.mrb[0].mxu0 %vm855_vm2, %v7789_v7  ;;  %v7794_v12 = vld [vmem:[%s8354_s24 + $0x30] sm:$0xff]   ;;  %v7795_v13 = vld [vmem:[%s8354_s24 + $0x38] sm:$0xff]   ;;  %v7796_v14 = vld [vmem:[%s8354_s24 + $0x40] sm:$0xff]   ;;  %2030 = vst.msk [vmem:[#allocation2 + $0x70] sm:$0xff] %vm11393_vm3, %v8229_v38 }
  0x22   : > { %6964 = vmatprep.mubr.msk.bf16.mxu0 %vm855_vm2, %v7790_v8  ;;  %v7797_v15 = vld [vmem:[%s8354_s24 + $0x48] sm:$0xff]   ;;  %v7798_v16 = vld [vmem:[%s8354_s24 + $0x50] sm:$0xff]   ;;  %v7799_v17 = vld [vmem:[%s8354_s24 + $0x58] sm:$0xff]   ;;  %2031 = vst.msk [vmem:[#allocation2 + $0x78] sm:$0xff] %vm11393_vm3, %v8229_v38  ;;  %6704 = vmatpush3.bf16.msra.mxu0 %v7853_v52 }
  0x23   : > { %v7800_v18 = vld [vmem:[%s8354_s24 + $0x60] sm:$0xff]   ;;  %v7801_v19 = vld [vmem:[%s8354_s24 + $0x68] sm:$0xff]   ;;  %v7802_v20 = vld [vmem:[%s8354_s24 + $0x70] sm:$0xff]   ;;  %2032 = vst.msk [vmem:[#allocation2 + $0x80] sm:$0xff] %vm11393_vm3, %v8229_v38  ;;  %6705 = vmatprep.subr.bf16.mxu0 %v7854_v63 }
  0x24   : > { %v7803_v21 = vld [vmem:[%s8354_s24 + $0x78] sm:$0xff]   ;;  %v7804_v22 = vld [vmem:[%s8354_s24 + $0x80] sm:$0xff]   ;;  %v7805_v23 = vld [vmem:[%s8354_s24 + $0x88] sm:$0xff]   ;;  %2033 = vst.msk [vmem:[#allocation2 + $0x88] sm:$0xff] %vm11393_vm3, %v8229_v38 }
  0x25   : > { %v7806_v24 = vld [vmem:[%s8354_s24 + $0x90] sm:$0xff]   ;;  %v7807_v25 = vld [vmem:[%s8354_s24 + $0x98] sm:$0xff]   ;;  %v7808_v26 = vld [vmem:[%s8354_s24 + $0xa0] sm:$0xff]   ;;  %2034 = vst.msk [vmem:[#allocation2 + $0x90] sm:$0xff] %vm11393_vm3, %v8229_v38 }
  0x26   : > { %v7809_v27 = vld [vmem:[%s8354_s24 + $0xa8] sm:$0xff]   ;;  %v7810_v28 = vld [vmem:[%s8354_s24 + $0xb0] sm:$0xff]   ;;  %v7811_v29 = vld [vmem:[%s8354_s24 + $0xb8] sm:$0xff]   ;;  %2035 = vst.msk [vmem:[#allocation2 + $0x98] sm:$0xff] %vm11393_vm3, %v8229_v38  ;;  %6706 = vmatpush3.bf16.msra.mxu0 %v7855_v0 }
  0x27   : > { %v7812_v30 = vld [vmem:[%s8354_s24 + $0xc0] sm:$0xff]   ;;  %v7813_v31 = vld [vmem:[%s8354_s24 + $0xc8] sm:$0xff]   ;;  %v7814_v32 = vld [vmem:[%s8354_s24 + $0xd0] sm:$0xff]   ;;  %2036 = vst.msk [vmem:[#allocation2 + $0xa0] sm:$0xff] %vm11393_vm3, %v8229_v38 }
  0x28   : > { %v7815_v33 = vld [vmem:[%s8354_s24 + $0xd8] sm:$0xff]   ;;  %v7816_v34 = vld [vmem:[%s8354_s24 + $0xe0] sm:$0xff]   ;;  %v7817_v35 = vld [vmem:[%s8354_s24 + $0xe8] sm:$0xff]   ;;  %2037 = vst.msk [vmem:[#allocation2 + $0xa8] sm:$0xff] %vm11393_vm3, %v8229_v38 }
  0x29   : > { %6965 = vmatmul.mubr.msk.bf16.gmra.mrb[4].mxu0 %vm855_vm2, %v7791_v9  ;;  %v7818_v36 = vld [vmem:[%s8354_s24 + $0xf0] sm:$0xff]   ;;  %2038 = vst.msk [vmem:[#allocation2 + $0xb0] sm:$0xff] %vm11393_vm3, %v8229_v38  ;;  %2039 = vst.msk [vmem:[#allocation2 + $0xb8] sm:$0xff] %vm11393_vm3, %v8229_v38  ;;  %v7851_v39 = vld [vmem:[%s8354_s24 + $0x1f8] sm:$0xff]  }
  0x2a   : > { %6968 = vmatprep.mubr.msk.bf16.mxu0 %vm855_vm2, %v7792_v10  ;;  %v7849_v37 = vld [vmem:[%s8354_s24 + $0x1f0] sm:$0xff]   ;;  %2040 = vst.msk [vmem:[#allocation2 + $0xc0] sm:$0xff] %vm11393_vm3, %v8229_v38  ;;  %2041 = vst.msk [vmem:[#allocation2 + $0xc8] sm:$0xff] %vm11393_vm3, %v8229_v38  ;;  %v7819_v40 = vld [vmem:[%s8354_s24 + $0xf8] sm:$0xff]  }
  0x2b   : > { %2042 = vst.msk [vmem:[#allocation2 + $0xd0] sm:$0xff] %vm11393_vm3, %v8229_v38  ;;  %2043 = vst.msk [vmem:[#allocation2 + $0xd8] sm:$0xff] %vm11393_vm3, %v8229_v38  ;;  %7084 = vmatprep.mubr.msk.bf16.mxu1 %vm855_vm2, %v7849_v37  ;;  %v7820_v41 = vld [vmem:[%s8354_s24 + $0x100] sm:$0xff]   ;;  %v2279_v42 = vld [vmem:[#allocation2 + $0x8] sm:$0xff] }
  0x2c   : > { %2044 = vst.msk [vmem:[#allocation2 + $0xe0] sm:$0xff] %vm11393_vm3, %v8229_v38  ;;  %2045 = vst.msk [vmem:[#allocation2 + $0xe8] sm:$0xff] %vm11393_vm3, %v8229_v38  ;;  %7085 = vmatmul.mubr.msk.bf16.vlgmr.msra.gmra.mrb[0].mxu1 %vm855_vm2, %v7851_v39  ;;  %v2280_v43 = vld [vmem:[#allocation2 + $0x10] sm:$0xff]  ;;  %v7821_v44 = vld [vmem:[%s8354_s24 + $0x108] sm:$0xff]  }
  0x2d   : > { %2046 = vst.msk [vmem:[#allocation2 + $0xf0] sm:$0xff] %vm11393_vm3, %v8229_v38  ;;  %2047 = vst.msk [vmem:[#allocation2 + $0xf8] sm:$0xff] %vm11393_vm3, %v8229_v38  ;;  %v7241_v45 = vpack.i.bf16 %v2280_v43, %v2279_v42  ;;  %v7822_v46 = vld [vmem:[%s8354_s24 + $0x110] sm:$0xff]   ;;  %v7823_v47 = vld [vmem:[%s8354_s24 + $0x118] sm:$0xff]   ;;  %7089 = vmatpush3.bf16.msra.mxu1 %v7856_v57 }
  0x2e   : > { %2048 = vst.msk [vmem:[#allocation2 + $0x100] sm:$0xff] %vm11393_vm3, %v8229_v38  ;;  %2049 = vst.msk [vmem:[#allocation2 + $0x108] sm:$0xff] %vm11393_vm3, %v8229_v38  ;;  %v7824_v48 = vld [vmem:[%s8354_s24 + $0x120] sm:$0xff]   ;;  %v7825_v49 = vld [vmem:[%s8354_s24 + $0x128] sm:$0xff]   ;;  %7090 = vmatprep.subr.bf16.mxu1 %v7857_v60 }
  0x2f   : > { %2050 = vst.msk [vmem:[#allocation2 + $0x110] sm:$0xff] %vm11393_vm3, %v8229_v38  ;;  %2051 = vst.msk [vmem:[#allocation2 + $0x118] sm:$0xff] %vm11393_vm3, %v8229_v38  ;;  %7242 = vrot.lane.b32.xlu0 %v7241_v45, %s8230_s25  ;;  %v7826_v50 = vld [vmem:[%s8354_s24 + $0x130] sm:$0xff]   ;;  %v7827_v53 = vld [vmem:[%s8354_s24 + $0x138] sm:$0xff]  }
  0x30   : > { %2052 = vst.msk [vmem:[#allocation2 + $0x120] sm:$0xff] %vm11393_vm3, %v8229_v38  ;;  %2053 = vst.msk [vmem:[#allocation2 + $0x128] sm:$0xff] %vm11393_vm3, %v8229_v38  ;;  %v7828_v54 = vld [vmem:[%s8354_s24 + $0x140] sm:$0xff]   ;;  %v7829_v55 = vld [vmem:[%s8354_s24 + $0x148] sm:$0xff]  }
  0x31   : > { %6969 = vmatmul.mubr.msk.bf16.gmra.mrb[8].mxu0 %vm855_vm2, %v7793_v11  ;;  %4926 = vst [vmem:[#allocation4] sm:$0xff] %v8229_v38  ;;  %4929 = vst [vmem:[#allocation4 + $0x18] sm:$0xff] %v8229_v38  ;;  %v7830_v56 = vld [vmem:[%s8354_s24 + $0x150] sm:$0xff]   ;;  %v7831_v58 = vld [vmem:[%s8354_s24 + $0x158] sm:$0xff]   ;;  %7091 = vmatpush3.bf16.msra.mxu1 %v7857_v60 }
  0x32   : > { %6972 = vmatprep.mubr.msk.bf16.mxu0 %vm855_vm2, %v7794_v12  ;;  %v7832_v59 = vld [vmem:[%s8354_s24 + $0x160] sm:$0xff]   ;;  %v7833_v61 = vld [vmem:[%s8354_s24 + $0x168] sm:$0xff]   ;;  %v7834_v62 = vld [vmem:[%s8354_s24 + $0x170] sm:$0xff]   ;;  %4121 = vst.msk [vmem:[#allocation3] sm:$0xff] %vm11396_vm4, %v8229_v38 }
  0x33   : > { %v7835_v1 = vld [vmem:[%s8354_s24 + $0x178] sm:$0xff]   ;;  %v7836_v2 = vld [vmem:[%s8354_s24 + $0x180] sm:$0xff]   ;;  %v7837_v3 = vld [vmem:[%s8354_s24 + $0x188] sm:$0xff]   ;;  %4122 = vst.msk [vmem:[#allocation3 + $0x8] sm:$0xff] %vm11396_vm4, %v8229_v38 }
  0x34   : > { %v7838_v4 = vld [vmem:[%s8354_s24 + $0x190] sm:$0xff]   ;;  %v7839_v5 = vld [vmem:[%s8354_s24 + $0x198] sm:$0xff]   ;;  %v7840_v6 = vld [vmem:[%s8354_s24 + $0x1a0] sm:$0xff]   ;;  %4123 = vst.msk [vmem:[#allocation3 + $0x10] sm:$0xff] %vm11396_vm4, %v8229_v38 }
  0x35   : > { %v7841_v7 = vld [vmem:[%s8354_s24 + $0x1a8] sm:$0xff]   ;;  %v7842_v8 = vld [vmem:[%s8354_s24 + $0x1b0] sm:$0xff]   ;;  %4124 = vst.msk [vmem:[#allocation3 + $0x18] sm:$0xff] %vm11396_vm4, %v8229_v38  ;;  %4125 = vst.msk [vmem:[#allocation3 + $0x20] sm:$0xff] %vm11396_vm4, %v8229_v38 }
  0x36   : > { %v7858_v9 = vld [vmem:[%s11366_s3 + $0x50] sm:$0xff]   ;;  %4126 = vst.msk [vmem:[#allocation3 + $0x28] sm:$0xff] %vm11396_vm4, %v8229_v38  ;;  %4127 = vst.msk [vmem:[#allocation3 + $0x30] sm:$0xff] %vm11396_vm4, %v8229_v38 }
  0x37   : > { %v7859_v10 = vld [vmem:[%s11366_s3 + $0x10] sm:$0xff]   ;;  %6707 = vmatprep.subr.bf16.mxu0 %v7858_v9  ;;  %4128 = vst.msk [vmem:[#allocation3 + $0x38] sm:$0xff] %vm11396_vm4, %v8229_v38  ;;  %4129 = vst.msk [vmem:[#allocation3 + $0x40] sm:$0xff] %vm11396_vm4, %v8229_v38 }
  0x38   : > { %6708 = vmatpush3.bf16.msra.mxu0 %v7859_v10  ;;  %4130 = vst.msk [vmem:[#allocation3 + $0x48] sm:$0xff] %vm11396_vm4, %v8229_v38  ;;  %4131 = vst.msk [vmem:[#allocation3 + $0x50] sm:$0xff] %vm11396_vm4, %v8229_v38 }
  0x39   : > { %6973 = vmatmul.mubr.msk.bf16.gmra.mrb[12].mxu0 %vm855_vm2, %v7795_v13  ;;  %v7843_v13 = vld [vmem:[%s8354_s24 + $0x1b8] sm:$0xff]   ;;  %4132 = vst.msk [vmem:[#allocation3 + $0x58] sm:$0xff] %vm11396_vm4, %v8229_v38  ;;  %v7862_v38 = vld [vmem:[%s11366_s3 + $0x60] sm:$0xff]  }
  0x3a   : > { %6976 = vmatprep.mubr.msk.bf16.mxu0 %vm855_vm2, %v7796_v14 }
  0x41   : > { %6977 = vmatmul.mubr.msk.bf16.gmra.mrb[16].mxu0 %vm855_vm2, %v7797_v15  ;;  %v7844_v15 = vld [vmem:[%s8354_s24 + $0x1c0] sm:$0xff]  }
  0x42   : > { %6980 = vmatprep.mubr.msk.bf16.mxu0 %vm855_vm2, %v7798_v16 }
  0x49   : > { %6981 = vmatmul.mubr.msk.bf16.gmra.mrb[20].mxu0 %vm855_vm2, %v7799_v17  ;;  %v8578_v17 = vld [vmem:[%s11365_s2] ss:$0 sm:$0xff] }
  0x4a   : > { %6984 = vmatprep.mubr.msk.bf16.mxu0 %vm855_vm2, %v7800_v18 }
  0x51   : > { %6985 = vmatmul.mubr.msk.bf16.gmra.mrb[24].mxu0 %vm855_vm2, %v7801_v19 }
  0x52   : > { %6988 = vmatprep.mubr.msk.bf16.mxu0 %vm855_vm2, %v7802_v20 }
  0x59   : > { %6989 = vmatmul.mubr.msk.bf16.gmra.mrb[28].mxu0 %vm855_vm2, %v7803_v21 }
  0x5a   : > { %6992 = vmatprep.mubr.msk.bf16.mxu0 %vm855_vm2, %v7804_v22 }
  0x61   : > { %6993 = vmatmul.mubr.msk.bf16.gmra.mrb[32].mxu0 %vm855_vm2, %v7805_v23 }
  0x62   : > { %6996 = vmatprep.mubr.msk.bf16.mxu0 %vm855_vm2, %v7806_v24  ;;  %v7845_v24 = vld [vmem:[%s8354_s24 + $0x1c8] sm:$0xff]  }
  0x69   : > { %6997 = vmatmul.mubr.msk.bf16.gmra.mrb[36].mxu0 %vm855_vm2, %v7807_v25 }
  0x6a   : > { %7000 = vmatprep.mubr.msk.bf16.mxu0 %vm855_vm2, %v7808_v26 }
  0x71   : > { %7001 = vmatmul.mubr.msk.bf16.gmra.mrb[40].mxu0 %vm855_vm2, %v7809_v27 }
  0x72   : > { %7004 = vmatprep.mubr.msk.bf16.mxu0 %vm855_vm2, %v7810_v28  ;;  %v7846_v28 = vld [vmem:[%s8354_s24 + $0x1d0] sm:$0xff]  }
  0x79   : > { %7005 = vmatmul.mubr.msk.bf16.gmra.mrb[44].mxu0 %vm855_vm2, %v7811_v29 }
  0x7a   : > { %7008 = vmatprep.mubr.msk.bf16.mxu0 %vm855_vm2, %v7812_v30 }
  0x81   : > { %7009 = vmatmul.mubr.msk.bf16.gmra.mrb[48].mxu0 %vm855_vm2, %v7813_v31 }
  0x82   : > { %7012 = vmatprep.mubr.msk.bf16.mxu0 %vm855_vm2, %v7814_v32 }
  0x89   : > { %7013 = vmatmul.mubr.msk.bf16.gmra.mrb[52].mxu0 %vm855_vm2, %v7815_v33 }
  0x8a   : > { %7016 = vmatprep.mubr.msk.bf16.mxu0 %vm855_vm2, %v7816_v34 }
  0x91   : > { %7017 = vmatmul.mubr.msk.bf16.gmra.mrb[56].mxu0 %vm855_vm2, %v7817_v35 }
  0x92   : > { %7020 = vmatprep.mubr.msk.bf16.mxu0 %vm855_vm2, %v7818_v36 }
  0x99   : > { %7021 = vmatmul.mubr.msk.bf16.gmra.mrb[60].mxu0 %vm855_vm2, %v7819_v40 }
  0x9a   : > { %7024 = vmatprep.mubr.msk.bf16.mxu0 %vm855_vm2, %v7820_v41 }
  0xa1   : > { %7025 = vmatmul.mubr.msk.bf16.gmra.mrb[64].mxu0 %vm855_vm2, %v7821_v44 }
  0xa2   : > { %7028 = vmatprep.mubr.msk.bf16.mxu0 %vm855_vm2, %v7822_v46 }
  0xa9   : > { %7029 = vmatmul.mubr.msk.bf16.gmra.mrb[68].mxu0 %vm855_vm2, %v7823_v47  ;;  %v7847_v47 = vld [vmem:[%s8354_s24 + $0x1d8] sm:$0xff]  }
  0xaa   : > { %7032 = vmatprep.mubr.msk.bf16.mxu0 %vm855_vm2, %v7824_v48  ;;  %v2086_v48 = vlaneseq }
  0xac   : > { %v8601_v52 = vshrl.u32 %v2086_v48, 7 }
  0xb1   : > { %7033 = vmatmul.mubr.msk.bf16.gmra.mrb[72].mxu0 %vm855_vm2, %v7825_v49 }
  0xb2   : > { %7036 = vmatprep.mubr.msk.bf16.mxu0 %vm855_vm2, %v7826_v50  ;;  %v7848_v50 = vld [vmem:[%s8354_s24 + $0x1e0] sm:$0xff]  }
  0xb9   : > { %7037 = vmatmul.mubr.msk.bf16.gmra.mrb[76].mxu0 %vm855_vm2, %v7827_v53 }
  0xba   : > { %7040 = vmatprep.mubr.msk.bf16.mxu0 %vm855_vm2, %v7828_v54 }
  0xc1   : > { %7041 = vmatmul.mubr.msk.bf16.gmra.mrb[80].mxu0 %vm855_vm2, %v7829_v55 }
  0xc2   : > { %7044 = vmatprep.mubr.msk.bf16.mxu0 %vm855_vm2, %v7830_v56 }
  0xc9   : > { %7045 = vmatmul.mubr.msk.bf16.gmra.mrb[84].mxu0 %vm855_vm2, %v7831_v58  ;;  %v7850_v58 = vld [vmem:[%s8354_s24 + $0x1e8] sm:$0xff]   ;;  %s11321_s24 = scalar_lea.hbm %s11374_s11, %s6633_s14 }
  0xca   : > { %7048 = vmatprep.mubr.msk.bf16.mxu0 %vm855_vm2, %v7832_v59 }
  0xd1   : > { %7049 = vmatmul.mubr.msk.bf16.gmra.mrb[88].mxu0 %vm855_vm2, %v7833_v61 }
  0xd2   : > { %7052 = vmatprep.mubr.msk.bf16.mxu0 %vm855_vm2, %v7834_v62 }
  0xd9   : > { %7053 = vmatmul.mubr.msk.bf16.gmra.mrb[92].mxu0 %vm855_vm2, %v7835_v1  ;;  %v8610_v1 = vadd.s32 8, %v8601_v52 }
  0xda   : > { %7056 = vmatprep.mubr.msk.bf16.mxu0 %vm855_vm2, %v7836_v2 }
  0xdb   : > { %11402 = vst [vmem:[#allocation11_spill] sm:$0xff] %v8610_v1 }
  0xe1   : > { %7057 = vmatmul.mubr.msk.bf16.gmra.mrb[96].mxu0 %vm855_vm2, %v7837_v3 }
  0xe2   : > { %7060 = vmatprep.mubr.msk.bf16.mxu0 %vm855_vm2, %v7838_v4 }
  0xe9   : > { %7061 = vmatmul.mubr.msk.bf16.gmra.mrb[100].mxu0 %vm855_vm2, %v7839_v5 }
  0xea   : > { %7064 = vmatprep.mubr.msk.bf16.mxu0 %vm855_vm2, %v7840_v6  ;;  %v8615_v6 = vadd.s32 16, %v8601_v52 }
  0xec   : > { %11403 = vst [vmem:[#allocation12_spill] sm:$0xff] %v8615_v6 }
  0xf1   : > { %7065 = vmatmul.mubr.msk.bf16.gmra.mrb[104].mxu0 %vm855_vm2, %v7841_v7 }
  0xf2   : > { %7068 = vmatprep.mubr.msk.bf16.mxu0 %vm855_vm2, %v7842_v8 }
  0xf4   : > { %v6962_v11 = vpop.f32.mrb[0].mxu0 }
  0xf5   : > { %v1089_v12 = vpop.f32.mrb[1].mxu0  ;;  %v1098_v18 = vadd.f32 %v6962_v11, %v8578_v17 }
  0xf6   : > { %v6963_v14 = vpop.f32.mrb[2].mxu0  ;;  %v1090_v19 = vadd.f32 %v8578_v17, %v1089_v12 }
  0xf7   : > { %v1092_v16 = vpop.f32.mrb[3].mxu0  ;;  %v1101_v21 = vadd.f32 %v6963_v14, %v8578_v17  ;;  %v1602_v29 = vmax.f32 %v1098_v18, 0.0  ;;  %v7860_v14 = vld [vmem:[%s11366_s3 + $0x58] sm:$0xff]  }
  0xf8   : > { %v1093_v25 = vadd.f32 %v8578_v17, %v1092_v16  ;;  %v1600_v33 = vmax.f32 %v1090_v19, 0.0  ;;  %6709 = vmatprep.subr.bf16.mxu0 %v7860_v14 }
  0xf9   : > { %7069 = vmatmul.mubr.msk.bf16.gmra.mrb[108].mxu0 %vm855_vm2, %v7843_v13  ;;  %v1603_v36 = vmax.f32 %v1101_v21, 0.0 }
  0xfa   : > { %7072 = vmatprep.mubr.msk.bf16.mxu0 %vm855_vm2, %v7844_v15  ;;  %v1601_v40 = vmax.f32 %v1093_v25, 0.0  ;;  %v7861_v15 = vld [vmem:[%s11366_s3 + $0x18] sm:$0xff]  }
  0xfb   : > { %6710 = vmatpush3.bf16.msra.mxu0 %v7861_v15 }
  0xfc   : > { %v6966_v20 = vpop.f32.mrb[4].mxu0  ;;  %6711 = vmatprep.subr.bf16.mxu0 %v7862_v38  ;;  %v7869_v38 = vld [vmem:[%s11366_s3 + $0x38] sm:$0xff]  }
  0xfd   : > { %v1114_v22 = vadd.f32 %v6966_v20, %v8578_v17  ;;  %v1105_v23 = vpop.f32.mrb[5].mxu0  ;;  %v2120_v20 = vand.u32 15, %v8610_v1 }
  0xfe   : > { %v1106_v26 = vadd.f32 %v8578_v17, %v1105_v23  ;;  %v6967_v27 = vpop.f32.mrb[6].mxu0 }
  0xff   : > { %v1606_v30 = vmax.f32 %v1114_v22, 0.0  ;;  %v1117_v31 = vadd.f32 %v6967_v27, %v8578_v17  ;;  %v1108_v32 = vpop.f32.mrb[7].mxu0  ;;  %vm8634_vm5 = vcmp.ne.s32.totalorder %v2120_v20, 15  ;;  %v8710_v20 = vadd.s32 24, %v8601_v52 }
 0x100   : > { %v1604_v34 = vmax.f32 %v1106_v26, 0.0  ;;  %v1109_v35 = vadd.f32 %v8578_v17, %v1108_v32  ;;  %v2119_v32 = vand.u32 15, %v8601_v52 }
 0x101   : > { %v1730_v37 = vmax.f32 %v1602_v29, %v1606_v30  ;;  %v1607_v39 = vmax.f32 %v1117_v31, 0.0  ;;  %7073 = vmatmul.mubr.msk.bf16.gmra.mrb[112].mxu0 %vm855_vm2, %v7845_v24  ;;  %v2121_v24 = vand.u32 15, %v8615_v6  ;;  %11411 = vst [vmem:[#allocation14_spill] sm:$0xff] %v8710_v20 }
 0x102   : > { %v1728_v41 = vmax.f32 %v1600_v33, %v1604_v34  ;;  %v1605_v42 = vmax.f32 %v1109_v35, 0.0  ;;  %7076 = vmatprep.mubr.msk.bf16.mxu0 %vm855_vm2, %v7846_v28  ;;  %vm8675_vm7 = vcmp.ne.s32.totalorder %v2119_v32, 0  ;;  %v7868_v32 = vld [vmem:[%s11366_s3 + $0x78] sm:$0xff]  }
 0x103   : > { %1735 = vst.msk [vmem:[#allocation5 + $0x10] sm:$0xff] %vm11393_vm3, %v1730_v37  ;;  %v1731_v43 = vmax.f32 %v1603_v36, %v1607_v39  ;;  %vm8639_vm6 = vcmp.ne.s32.totalorder %v2121_v24, 0 }
 0x104   : > { %1733 = vst.msk [vmem:[#allocation5] sm:$0xff] %vm11393_vm3, %v1728_v41  ;;  %v1729_v44 = vmax.f32 %v1601_v40, %v1605_v42  ;;  %v6970_v45 = vpop.f32.mrb[8].mxu0  ;;  %v2311_v40 = vld [vmem:[#allocation2 + $0x9] sm:$0xff] }
 0x105   : > { %1736 = vst.msk [vmem:[#allocation5 + $0x18] sm:$0xff] %vm11393_vm3, %v1731_v43  ;;  %v1121_v46 = vpop.f32.mrb[9].mxu0  ;;  %v1130_v53 = vadd.f32 %v6970_v45, %v8578_v17  ;;  %v7863_v45 = vld [vmem:[%s11366_s3 + $0x20] sm:$0xff]  }
 0x106   : > { %1734 = vst.msk [vmem:[#allocation5 + $0x8] sm:$0xff] %vm11393_vm3, %v1729_v44  ;;  %v6971_v49 = vpop.f32.mrb[10].mxu0  ;;  %v1122_v56 = vadd.f32 %v8578_v17, %v1121_v46  ;;  %6712 = vmatpush3.bf16.msra.mxu0 %v7863_v45 }
 0x107   : > { %v1124_v51 = vpop.f32.mrb[11].mxu0  ;;  %v1133_v62 = vadd.f32 %v6971_v49, %v8578_v17  ;;  %v1610_v7 = vmax.f32 %v1130_v53, 0.0 }
 0x108   : > { %v1125_v3 = vadd.f32 %v8578_v17, %v1124_v51  ;;  %v1608_v11 = vmax.f32 %v1122_v56, 0.0 }
 0x109   : > { %7077 = vmatmul.mubr.msk.bf16.gmra.mrb[116].mxu0 %vm855_vm2, %v7847_v47  ;;  %v1611_v16 = vmax.f32 %v1133_v62, 0.0 }
 0x10a   : > { %7080 = vmatprep.mubr.msk.bf16.mxu0 %vm855_vm2, %v7848_v50  ;;  %v1609_v21 = vmax.f32 %v1125_v3, 0.0 }
 0x10c   : > { %v1859_v54 = vld [vmem:[#allocation5 + $0x10] ss:$2 sm:$0xff]  ;;  %v1923_v55 = vld [vmem:[#allocation5 + $0x11] ss:$2 sm:$0xff]  ;;  %v6974_v57 = vpop.f32.mrb[12].mxu0 }
 0x10d   : > { %v1985_v59 = vmax.f32 %v1859_v54, %v1923_v55  ;;  %v1857_v60 = vld [vmem:[#allocation5] ss:$2 sm:$0xff]  ;;  %v1921_v61 = vld [vmem:[#allocation5 + $0x1] ss:$2 sm:$0xff]  ;;  %v1146_v63 = vadd.f32 %v6974_v57, %v8578_v17  ;;  %v1137_v0 = vpop.f32.mrb[13].mxu0 }
 0x10e   : > { %v1984_v2 = vmax.f32 %v1857_v60, %v1921_v61  ;;  %v1138_v4 = vadd.f32 %v8578_v17, %v1137_v0  ;;  %v6975_v5 = vpop.f32.mrb[14].mxu0  ;;  %v7864_v0 = vld [vmem:[%s11366_s3 + $0x68] sm:$0xff]  }
 0x10f   : > { %v1614_v8 = vmax.f32 %v1146_v63, 0.0  ;;  %v1149_v9 = vadd.f32 %v6975_v5, %v8578_v17  ;;  %v1140_v10 = vpop.f32.mrb[15].mxu0  ;;  %2055 = vst.msk [vmem:[#allocation2 + $0x20] sm:$0xff] %vm11393_vm3, %v1985_v59  ;;  %6713 = vmatprep.subr.bf16.mxu0 %v7864_v0 }
 0x110   : > { %v1612_v12 = vmax.f32 %v1138_v4, 0.0  ;;  %v1141_v13 = vadd.f32 %v8578_v17, %v1140_v10  ;;  %2054 = vst.msk [vmem:[#allocation2 + $0x18] sm:$0xff] %vm11393_vm3, %v1984_v2 }
 0x111   : > { %v1739_v18 = vmax.f32 %v1610_v7, %v1614_v8  ;;  %v1615_v19 = vmax.f32 %v1149_v9, 0.0  ;;  %7081 = vmatmul.mubr.msk.bf16.gmra.mrb[120].mxu0 %vm855_vm2, %v7850_v58  ;;  %v8701_v7 = vadd.s32 32, %v8601_v52  ;;  %v7865_v8 = vld [vmem:[%s11366_s3 + $0x28] sm:$0xff]  }
 0x112   : > { %v1737_v22 = vmax.f32 %v1608_v11, %v1612_v12  ;;  %v1613_v23 = vmax.f32 %v1141_v13, 0.0  ;;  %6714 = vmatpush3.bf16.msra.mxu0 %v7865_v8  ;;  %v8761_v8 = vadd.s32 40, %v8601_v52 }
 0x113   : > { %1743 = vst.msk [vmem:[#allocation5 + $0x30] sm:$0xff] %vm11393_vm3, %v1739_v18  ;;  %v1740_v25 = vmax.f32 %v1611_v16, %v1615_v19  ;;  %11410 = vst [vmem:[#allocation13_spill] sm:$0xff] %v8701_v7 }
 0x114   : > { %1741 = vst.msk [vmem:[#allocation5 + $0x20] sm:$0xff] %vm11393_vm3, %v1737_v22  ;;  %v1738_v26 = vmax.f32 %v1609_v21, %v1613_v23  ;;  %v6978_v27 = vpop.f32.mrb[16].mxu0  ;;  %v7866_v21 = vld [vmem:[%s11366_s3 + $0x70] sm:$0xff]   ;;  %11416 = vst [vmem:[#allocation15_spill] sm:$0xff] %v8761_v8 }
 0x115   : > { %1744 = vst.msk [vmem:[#allocation5 + $0x38] sm:$0xff] %vm11393_vm3, %v1740_v25  ;;  %v1153_v28 = vpop.f32.mrb[17].mxu0  ;;  %v1162_v44 = vadd.f32 %v6978_v27, %v8578_v17  ;;  %v7867_v23 = vld [vmem:[%s11366_s3 + $0x30] sm:$0xff]   ;;  %6715 = vmatprep.subr.bf16.mxu0 %v7866_v21 }
 0x116   : > { %1742 = vst.msk [vmem:[#allocation5 + $0x28] sm:$0xff] %vm11393_vm3, %v1738_v26  ;;  %v6979_v29 = vpop.f32.mrb[18].mxu0  ;;  %v2282_v30 = vld [vmem:[#allocation2 + $0x20] sm:$0xff]  ;;  %v1154_v48 = vadd.f32 %v8578_v17, %v1153_v28  ;;  %v2123_v26 = vand.u32 15, %v8701_v7  ;;  %6716 = vmatpush3.bf16.msra.mxu0 %v7867_v23 }
 0x117   : > { %v1156_v34 = vpop.f32.mrb[19].mxu0  ;;  %v2281_v35 = vld [vmem:[#allocation2 + $0x18] sm:$0xff]  ;;  %v1165_v56 = vadd.f32 %v6979_v29, %v8578_v17  ;;  %v1618_v2 = vmax.f32 %v1162_v44, 0.0  ;;  %6717 = vmatprep.subr.bf16.mxu0 %v7868_v32 }
 0x118   : > { %v2312_v36 = vld [vmem:[#allocation2 + $0x11] sm:$0xff]  ;;  %v7246_v39 = vpack.i.bf16 %v2282_v30, %v2281_v35  ;;  %v2218_v51 = vld [vmem:[#allocation2 + $0x1f] sm:$0xff]  ;;  %v1157_v61 = vadd.f32 %v8578_v17, %v1156_v34  ;;  %v1616_v9 = vmax.f32 %v1154_v48, 0.0  ;;  %v2122_v30 = vand.u32 15, %v8710_v20 }
 0x119   : > { %v8667_v37 = vld [vmem:[#allocation2 + $0x17] sm:$0xff]  ;;  %v2344_v41 = vsel %vm8634_vm5, %v2312_v36, 0.0  ;;  %v1619_v13 = vmax.f32 %v1165_v56, 0.0  ;;  %vm8729_vm8 = vcmp.ne.s32.totalorder %v2123_v26, 0 }
 0x11a   : > { %7247 = vrot.lane.b32.xlu1 %v7246_v39, %s8230_s25  ;;  %v7251_v50 = vpack.i.bf16 %v2344_v41, %v2311_v40  ;;  %v2377_v59 = vsel %vm8675_vm7, %v8667_v37, 0.0  ;;  %v1617_v16 = vmax.f32 %v1157_v61, 0.0  ;;  %vm8743_vm9 = vcmp.ne.s32.totalorder %v2122_v30, 15  ;;  %6718 = vmatpush3.bf16.msra.mxu0 %v7869_v38 }
 0x11b   : > { %v7256_v12 = vpack.i.bf16 %v2218_v51, %v2377_v59 }
 0x11c   : > { %v1863_v46 = vld [vmem:[#allocation5 + $0x30] ss:$2 sm:$0xff]  ;;  %v1927_v47 = vld [vmem:[#allocation5 + $0x31] ss:$2 sm:$0xff]  ;;  %v6982_v49 = vpop.f32.mrb[20].mxu0 }
 0x11d   : > { %v1987_v53 = vmax.f32 %v1863_v46, %v1927_v47  ;;  %v1861_v54 = vld [vmem:[#allocation5 + $0x20] ss:$2 sm:$0xff]  ;;  %v1925_v55 = vld [vmem:[#allocation5 + $0x21] ss:$2 sm:$0xff]  ;;  %v1178_v57 = vadd.f32 %v6982_v49, %v8578_v17  ;;  %v1169_v58 = vpop.f32.mrb[21].mxu0  ;;  %v2096_v47 = vadd.s32 72, %v8601_v52 }
 0x11e   : > { %v1986_v60 = vmax.f32 %v1861_v54, %v1925_v55  ;;  %v1170_v62 = vadd.f32 %v8578_v17, %v1169_v58  ;;  %v6983_v63 = vpop.f32.mrb[22].mxu0  ;;  %7252 = vrot.lane.b32.xlu1 %v7251_v50, %s8231_s30  ;;  %v2313_v49 = vld [vmem:[#allocation2 + $0x19] sm:$0xff] }
 0x11f   : > { %v1622_v3 = vmax.f32 %v1178_v57, 0.0  ;;  %2057 = vst.msk [vmem:[#allocation2 + $0x30] sm:$0xff] %vm11393_vm3, %v1987_v53  ;;  %v1181_v4 = vadd.f32 %v6983_v63, %v8578_v17  ;;  %v1172_v5 = vpop.f32.mrb[23].mxu0 }
 0x120   : > { %2056 = vst.msk [vmem:[#allocation2 + $0x28] sm:$0xff] %vm11393_vm3, %v1986_v60  ;;  %v1620_v10 = vmax.f32 %v1170_v62, 0.0  ;;  %v1173_v11 = vadd.f32 %v8578_v17, %v1172_v5 }
 0x121   : > { %v1747_v14 = vmax.f32 %v1618_v2, %v1622_v3  ;;  %v1623_v15 = vmax.f32 %v1181_v4, 0.0 }
 0x122   : > { %v1745_v18 = vmax.f32 %v1616_v9, %v1620_v10  ;;  %v1621_v19 = vmax.f32 %v1173_v11, 0.0  ;;  %7257 = vrot.lane.b32.xlu1 %v7256_v12, %s8232_s15 }
 0x123   : > { %1751 = vst.msk [vmem:[#allocation5 + $0x50] sm:$0xff] %vm11393_vm3, %v1747_v14  ;;  %v1748_v22 = vmax.f32 %v1619_v13, %v1623_v15  ;;  %v8766_v13 = vadd.s32 48, %v8601_v52 }
 0x124   : > { %1749 = vst.msk [vmem:[#allocation5 + $0x40] sm:$0xff] %vm11393_vm3, %v1745_v18  ;;  %v1746_v24 = vmax.f32 %v1617_v16, %v1621_v19  ;;  %v6986_v25 = vpop.f32.mrb[24].mxu0 }
 0x125   : > { %1752 = vst.msk [vmem:[#allocation5 + $0x58] sm:$0xff] %vm11393_vm3, %v1748_v22  ;;  %v1185_v27 = vpop.f32.mrb[25].mxu0  ;;  %v1194_v48 = vadd.f32 %v6986_v25, %v8578_v17  ;;  %11417 = vst [vmem:[#allocation16_spill] sm:$0xff] %v8766_v13 }
 0x126   : > { %1750 = vst.msk [vmem:[#allocation5 + $0x48] sm:$0xff] %vm11393_vm3, %v1746_v24  ;;  %v6987_v28 = vpop.f32.mrb[26].mxu0  ;;  %v2284_v29 = vld [vmem:[#allocation2 + $0x30] sm:$0xff]  ;;  %v1186_v54 = vadd.f32 %v8578_v17, %v1185_v27  ;;  %v2124_v27 = vand.u32 15, %v8761_v8 }
 0x127   : > { %v1188_v34 = vpop.f32.mrb[27].mxu0  ;;  %v2283_v35 = vld [vmem:[#allocation2 + $0x28] sm:$0xff]  ;;  %v1197_v61 = vadd.f32 %v6987_v28, %v8578_v17  ;;  %v1626_v9 = vmax.f32 %v1194_v48, 0.0 }
 0x128   : > { %v2314_v36 = vld [vmem:[#allocation2 + $0x21] sm:$0xff]  ;;  %v7261_v40 = vpack.i.bf16 %v2284_v29, %v2283_v35  ;;  %v2220_v45 = vld [vmem:[#allocation2 + $0x2f] sm:$0xff]  ;;  %v1189_v3 = vadd.f32 %v8578_v17, %v1188_v34  ;;  %v1624_v14 = vmax.f32 %v1186_v54, 0.0  ;;  %v2125_v34 = vand.u32 15, %v8766_v13 }
 0x129   : > { %v8727_v39 = vld [vmem:[#allocation2 + $0x27] sm:$0xff]  ;;  %v2414_v44 = vsel %vm8634_vm5, %v2314_v36, 0.0  ;;  %v2346_v0 = vsel %vm8743_vm9, %v2314_v36, 0.0  ;;  %v1627_v19 = vmax.f32 %v1197_v61, 0.0  ;;  %vm8781_vm10 = vcmp.ne.s32.totalorder %v2124_v27, 15 }
 0x12a   : > { %v2447_v46 = vsel %vm8675_vm7, %v8727_v39, 0.0  ;;  %7262 = vrot.lane.b32.xlu0 %v7261_v40, %s8232_s15  ;;  %7267 = vrot.lane.b32.xlu1 %v7261_v40, %s8230_s25  ;;  %v7271_v56 = vpack.i.bf16 %v2414_v44, %v2313_v49  ;;  %v7281_v18 = vpack.i.bf16 %v2346_v0, %v2313_v49  ;;  %v2379_v23 = vsel %vm8639_vm6, %v8727_v39, 0.0 }
 0x12b   : > { %v7276_v57 = vpack.i.bf16 %v2220_v45, %v2447_v46  ;;  %v1625_v24 = vmax.f32 %v1189_v3, 0.0  ;;  %v7286_v32 = vpack.i.bf16 %v2220_v45, %v2379_v23  ;;  %vm8787_vm11 = vcmp.ne.s32.totalorder %v2125_v34, 0 }
 0x12c   : > { %v1867_v51 = vld [vmem:[#allocation5 + $0x50] ss:$2 sm:$0xff]  ;;  %v1931_v53 = vld [vmem:[#allocation5 + $0x51] ss:$2 sm:$0xff]  ;;  %v6990_v55 = vpop.f32.mrb[28].mxu0  ;;  %v8802_v61 = vadd.s32 56, %v8601_v52 }
 0x12d   : > { %v1989_v58 = vmax.f32 %v1867_v51, %v1931_v53  ;;  %v1865_v59 = vld [vmem:[#allocation5 + $0x40] ss:$2 sm:$0xff]  ;;  %v1929_v60 = vld [vmem:[#allocation5 + $0x41] ss:$2 sm:$0xff]  ;;  %v1210_v62 = vadd.f32 %v6990_v55, %v8578_v17  ;;  %v1201_v63 = vpop.f32.mrb[29].mxu0 }
 0x12e   : > { %v1988_v2 = vmax.f32 %v1865_v59, %v1929_v60  ;;  %v1202_v4 = vadd.f32 %v8578_v17, %v1201_v63  ;;  %v6991_v5 = vpop.f32.mrb[30].mxu0  ;;  %7272 = vrot.lane.b32.xlu0 %v7271_v56, %s8230_s25  ;;  %7277 = vrot.lane.b32.xlu1 %v7276_v57, %s8231_s30  ;;  %v2315_v53 = vld [vmem:[#allocation2 + $0x29] sm:$0xff]  ;;  %11422 = vst [vmem:[#allocation17_spill] sm:$0xff] %v8802_v61 }
 0x12f   : > { %2059 = vst.msk [vmem:[#allocation2 + $0x40] sm:$0xff] %vm11393_vm3, %v1989_v58  ;;  %v1630_v10 = vmax.f32 %v1210_v62, 0.0  ;;  %v1213_v11 = vadd.f32 %v6991_v5, %v8578_v17  ;;  %v1204_v12 = vpop.f32.mrb[31].mxu0 }
 0x130   : > { %2058 = vst.msk [vmem:[#allocation2 + $0x38] sm:$0xff] %vm11393_vm3, %v1988_v2  ;;  %v1628_v15 = vmax.f32 %v1202_v4, 0.0  ;;  %v1205_v16 = vadd.f32 %v8578_v17, %v1204_v12 }
 0x131   : > { %v1755_v21 = vmax.f32 %v1626_v9, %v1630_v10  ;;  %v1631_v22 = vmax.f32 %v1213_v11, 0.0 }
 0x132   : > { %v1753_v25 = vmax.f32 %v1624_v14, %v1628_v15  ;;  %v1629_v26 = vmax.f32 %v1205_v16, 0.0  ;;  %7282 = vrot.lane.b32.xlu1 %v7281_v18, %s8231_s30 }
 0x133   : > { %1759 = vst.msk [vmem:[#allocation5 + $0x70] sm:$0xff] %vm11393_vm3, %v1755_v21  ;;  %v1756_v28 = vmax.f32 %v1627_v19, %v1631_v22  ;;  %v2095_v22 = vadd.s32 64, %v8601_v52 }
 0x134   : > { %1757 = vst.msk [vmem:[#allocation5 + $0x60] sm:$0xff] %vm11393_vm3, %v1753_v25  ;;  %v1754_v29 = vmax.f32 %v1625_v24, %v1629_v26  ;;  %v6994_v30 = vpop.f32.mrb[32].mxu0 }
 0x135   : > { %1760 = vst.msk [vmem:[#allocation5 + $0x78] sm:$0xff] %vm11393_vm3, %v1756_v28  ;;  %v1217_v35 = vpop.f32.mrb[33].mxu0  ;;  %v1226_v58 = vadd.f32 %v6994_v30, %v8578_v17 }
 0x136   : > { %1758 = vst.msk [vmem:[#allocation5 + $0x68] sm:$0xff] %vm11393_vm3, %v1754_v29  ;;  %v6995_v36 = vpop.f32.mrb[34].mxu0  ;;  %7287 = vrot.lane.b32.xlu1 %v7286_v32, %s8232_s15  ;;  %v2286_v40 = vld [vmem:[#allocation2 + $0x40] sm:$0xff]  ;;  %v1218_v59 = vadd.f32 %v8578_v17, %v1217_v35 }
 0x137   : > { %v1220_v44 = vpop.f32.mrb[35].mxu0  ;;  %v2285_v46 = vld [vmem:[#allocation2 + $0x38] sm:$0xff]  ;;  %v1229_v11 = vadd.f32 %v6995_v36, %v8578_v17  ;;  %v1634_v23 = vmax.f32 %v1226_v58, 0.0 }
 0x138   : > { %v2316_v48 = vld [vmem:[#allocation2 + $0x31] sm:$0xff]  ;;  %v7291_v49 = vpack.i.bf16 %v2286_v40, %v2285_v46  ;;  %v2222_v60 = vld [vmem:[#allocation2 + $0x3f] sm:$0xff]  ;;  %v1221_v18 = vadd.f32 %v8578_v17, %v1220_v44  ;;  %v1632_v24 = vmax.f32 %v1218_v59, 0.0 }
 0x139   : > { %v8785_v45 = vld [vmem:[#allocation2 + $0x37] sm:$0xff]  ;;  %v2484_v54 = vsel %vm8634_vm5, %v2316_v48, 0.0  ;;  %v2416_v55 = vsel %vm8743_vm9, %v2316_v48, 0.0  ;;  %v2348_v56 = vsel %vm8781_vm10, %v2316_v48, 0.0  ;;  %v1635_v34 = vmax.f32 %v1229_v11, 0.0 }
 0x13a   : > { %7292 = vrot.lane.b32.xlu0 %v7291_v49, %s8232_s15  ;;  %7297 = vrot.lane.b32.xlu1 %v7291_v49, %s8230_s25  ;;  %v3451_v57 = vpack.c.bf16 %v2484_v54, %v2315_v53  ;;  %v7301_v2 = vpack.i.bf16 %v2416_v55, %v2315_v53  ;;  %v7311_v3 = vpack.i.bf16 %v2348_v56, %v2315_v53  ;;  %v2449_v4 = vsel %vm8639_vm6, %v8785_v45, 0.0 }
 0x13b   : > { %v2381_v15 = vsel %vm8729_vm8, %v8785_v45, 0.0  ;;  %v7306_v30 = vpack.i.bf16 %v2222_v60, %v2449_v4  ;;  %v1633_v40 = vmax.f32 %v1221_v18, 0.0  ;;  %v2126_v49 = vand.u32 15, %v8802_v61 }
 0x13c   : > { %v1871_v62 = vld [vmem:[#allocation5 + $0x70] ss:$2 sm:$0xff]  ;;  %v1935_v63 = vld [vmem:[#allocation5 + $0x71] ss:$2 sm:$0xff]  ;;  %7092 = vmatprep.mubr.msk.bf16.mxu1 %vm11393_vm3, %v3451_v57  ;;  %v6998_v0 = vpop.f32.mrb[36].mxu0  ;;  %v7316_v32 = vpack.i.bf16 %v2222_v60, %v2381_v15  ;;  %v2127_v55 = vand.u32 15, %v2095_v22 }
 0x13d   : > { %v1991_v5 = vmax.f32 %v1871_v62, %v1935_v63  ;;  %v1869_v9 = vld [vmem:[#allocation5 + $0x60] ss:$2 sm:$0xff]  ;;  %v1933_v10 = vld [vmem:[#allocation5 + $0x61] ss:$2 sm:$0xff]  ;;  %v1242_v12 = vadd.f32 %v6998_v0, %v8578_v17  ;;  %v1233_v14 = vpop.f32.mrb[37].mxu0  ;;  %vm8832_vm12 = vcmp.ne.s32.totalorder %v2126_v49, 15 }
 0x13e   : > { %v1990_v16 = vmax.f32 %v1869_v9, %v1933_v10  ;;  %v1234_v19 = vadd.f32 %v8578_v17, %v1233_v14  ;;  %v6999_v21 = vpop.f32.mrb[38].mxu0  ;;  %7302 = vrot.lane.b32.xlu0 %v7301_v2, %s8230_s25  ;;  %7312 = vrot.lane.b32.xlu1 %v7311_v3, %s8231_s30  ;;  %v2317_v0 = vld [vmem:[#allocation2 + $0x39] sm:$0xff]  ;;  %vm8840_vm13 = vcmp.ne.s32.totalorder %v2127_v55, 0 }
 0x13f   : > { %2061 = vst.msk [vmem:[#allocation2 + $0x50] sm:$0xff] %vm11393_vm3, %v1991_v5  ;;  %v1638_v25 = vmax.f32 %v1242_v12, 0.0  ;;  %v1245_v26 = vadd.f32 %v6999_v21, %v8578_v17  ;;  %v1236_v27 = vpop.f32.mrb[39].mxu0 }
 0x140   : > { %2060 = vst.msk [vmem:[#allocation2 + $0x48] sm:$0xff] %vm11393_vm3, %v1990_v16  ;;  %v1636_v28 = vmax.f32 %v1234_v19, 0.0  ;;  %v1237_v29 = vadd.f32 %v8578_v17, %v1236_v27 }
 0x141   : > { %v1763_v35 = vmax.f32 %v1634_v23, %v1638_v25  ;;  %v1639_v36 = vmax.f32 %v1245_v26, 0.0 }
 0x142   : > { %v1761_v44 = vmax.f32 %v1632_v24, %v1636_v28  ;;  %v1637_v46 = vmax.f32 %v1237_v29, 0.0  ;;  %7307 = vrot.lane.b32.xlu0 %v7306_v30, %s8231_s30  ;;  %7317 = vrot.lane.b32.xlu1 %v7316_v32, %s8232_s15 }
 0x143   : > { %1767 = vst.msk [vmem:[#allocation5 + $0x90] sm:$0xff] %vm11393_vm3, %v1763_v35  ;;  %v1764_v48 = vmax.f32 %v1635_v34, %v1639_v36 }
 0x144   : > { %1765 = vst.msk [vmem:[#allocation5 + $0x80] sm:$0xff] %vm11393_vm3, %v1761_v44  ;;  %v1762_v53 = vmax.f32 %v1633_v40, %v1637_v46  ;;  %v7002_v54 = vpop.f32.mrb[40].mxu0 }
 0x145   : > { %1768 = vst.msk [vmem:[#allocation5 + $0x98] sm:$0xff] %vm11393_vm3, %v1764_v48  ;;  %v1249_v56 = vpop.f32.mrb[41].mxu0  ;;  %v1258_v12 = vadd.f32 %v7002_v54, %v8578_v17 }
 0x146   : > { %1766 = vst.msk [vmem:[#allocation5 + $0x88] sm:$0xff] %vm11393_vm3, %v1762_v53  ;;  %v7003_v57 = vpop.f32.mrb[42].mxu0  ;;  %v2288_v58 = vld [vmem:[#allocation2 + $0x50] sm:$0xff]  ;;  %v1250_v18 = vadd.f32 %v8578_v17, %v1249_v56  ;;  %v2097_v53 = vadd.s32 80, %v8601_v52 }
 0x147   : > { %v2318_v59 = vld [vmem:[#allocation2 + $0x41] sm:$0xff]  ;;  %v1252_v60 = vpop.f32.mrb[43].mxu0  ;;  %v1261_v19 = vadd.f32 %v7003_v57, %v8578_v17  ;;  %v2224_v23 = vld [vmem:[#allocation2 + $0x4f] sm:$0xff]  ;;  %v1642_v44 = vmax.f32 %v1258_v12, 0.0 }
 0x148   : > { %v2287_v62 = vld [vmem:[#allocation2 + $0x48] sm:$0xff]  ;;  %v2486_v2 = vsel %vm8743_vm9, %v2318_v59, 0.0  ;;  %v2418_v10 = vsel %vm8781_vm10, %v2318_v59, 0.0  ;;  %v2350_v11 = vsel %vm8832_vm12, %v2318_v59, 0.0  ;;  %v1253_v34 = vadd.f32 %v8578_v17, %v1252_v60 }
 0x149   : > { %v7321_v3 = vpack.i.bf16 %v2288_v58, %v2287_v62  ;;  %v8838_v4 = vld [vmem:[#allocation2 + $0x47] sm:$0xff]  ;;  %v3454_v9 = vpack.c.bf16 %v2486_v2, %v2317_v0  ;;  %v7331_v22 = vpack.i.bf16 %v2418_v10, %v2317_v0  ;;  %v7341_v29 = vpack.i.bf16 %v2350_v11, %v2317_v0 }
 0x14a   : > { %v2451_v30 = vsel %vm8729_vm8, %v8838_v4, 0.0  ;;  %v2383_v40 = vsel %vm8787_vm11, %v8838_v4, 0.0  ;;  %v1640_v54 = vmax.f32 %v1250_v18, 0.0  ;;  %v1643_v58 = vmax.f32 %v1261_v19, 0.0 }
 0x14b   : > { %7322 = vrot.lane.b32.xlu0 %v7321_v3, %s8232_s15  ;;  %7327 = vrot.lane.b32.xlu1 %v7321_v3, %s8230_s25  ;;  %v7336_v57 = vpack.i.bf16 %v2224_v23, %v2451_v30  ;;  %v7346_v62 = vpack.i.bf16 %v2224_v23, %v2383_v40  ;;  %v1641_v0 = vmax.f32 %v1253_v34, 0.0  ;;  %v2098_v40 = vadd.s32 88, %v8601_v52 }
 0x14c   : > { %7093 = vmatmul.mubr.msk.bf16.vlgmr.msra.gmra.mrb[4].mxu1 %vm11393_vm3, %v3454_v9  ;;  %v1875_v15 = vld [vmem:[#allocation5 + $0x90] ss:$2 sm:$0xff]  ;;  %v1939_v16 = vld [vmem:[#allocation5 + $0x91] ss:$2 sm:$0xff]  ;;  %v7006_v21 = vpop.f32.mrb[44].mxu0  ;;  %v2128_v9 = vand.u32 15, %v2096_v47 }
 0x14d   : > { %v1993_v24 = vmax.f32 %v1875_v15, %v1939_v16  ;;  %v1873_v25 = vld [vmem:[#allocation5 + $0x80] ss:$2 sm:$0xff]  ;;  %v1937_v26 = vld [vmem:[#allocation5 + $0x81] ss:$2 sm:$0xff]  ;;  %v1274_v27 = vadd.f32 %v7006_v21, %v8578_v17  ;;  %v1265_v28 = vpop.f32.mrb[45].mxu0  ;;  %v2129_v15 = vand.u32 15, %v2097_v53 }
 0x14e   : > { %v1992_v32 = vmax.f32 %v1873_v25, %v1937_v26  ;;  %v1266_v35 = vadd.f32 %v8578_v17, %v1265_v28  ;;  %v7007_v36 = vpop.f32.mrb[46].mxu0  ;;  %vm8880_vm14 = vcmp.ne.s32.totalorder %v2128_v9, 15 }
 0x14f   : > { %7332 = vrot.lane.b32.xlu0 %v7331_v22, %s8230_s25  ;;  %2063 = vst.msk [vmem:[#allocation2 + $0x60] sm:$0xff] %vm11393_vm3, %v1993_v24  ;;  %v1646_v46 = vmax.f32 %v1274_v27, 0.0  ;;  %v1277_v48 = vadd.f32 %v7007_v36, %v8578_v17  ;;  %7342 = vrot.lane.b32.xlu1 %v7341_v29, %s8231_s30  ;;  %v1268_v49 = vpop.f32.mrb[47].mxu0  ;;  %vm8886_vm15 = vcmp.ne.s32.totalorder %v2129_v15, 0  ;;  %v2319_v27 = vld [vmem:[#allocation2 + $0x49] sm:$0xff] }
 0x150   : > { %2062 = vst.msk [vmem:[#allocation2 + $0x58] sm:$0xff] %vm11393_vm3, %v1992_v32  ;;  %v1644_v55 = vmax.f32 %v1266_v35, 0.0  ;;  %v1269_v56 = vadd.f32 %v8578_v17, %v1268_v49 }
 0x151   : > { %v1771_v59 = vmax.f32 %v1642_v44, %v1646_v46  ;;  %v1647_v60 = vmax.f32 %v1277_v48, 0.0 }
 0x152   : > { %v1769_v2 = vmax.f32 %v1640_v54, %v1644_v55  ;;  %v1645_v3 = vmax.f32 %v1269_v56, 0.0 }
 0x153   : > { %7337 = vrot.lane.b32.xlu0 %v7336_v57, %s8231_s30  ;;  %1775 = vst.msk [vmem:[#allocation5 + $0xb0] sm:$0xff] %vm11393_vm3, %v1771_v59  ;;  %v1772_v10 = vmax.f32 %v1643_v58, %v1647_v60  ;;  %7347 = vrot.lane.b32.xlu1 %v7346_v62, %s8232_s15 }
 0x154   : > { %1773 = vst.msk [vmem:[#allocation5 + $0xa0] sm:$0xff] %vm11393_vm3, %v1769_v2  ;;  %v1770_v11 = vmax.f32 %v1641_v0, %v1645_v3  ;;  %v7010_v12 = vpop.f32.mrb[48].mxu0 }
 0x155   : > { %1776 = vst.msk [vmem:[#allocation5 + $0xb8] sm:$0xff] %vm11393_vm3, %v1772_v10  ;;  %v1281_v16 = vpop.f32.mrb[49].mxu0  ;;  %v1290_v34 = vadd.f32 %v7010_v12, %v8578_v17  ;;  %v2099_v10 = vadd.s32 96, %v8601_v52 }
 0x156   : > { %1774 = vst.msk [vmem:[#allocation5 + $0xa8] sm:$0xff] %vm11393_vm3, %v1770_v11  ;;  %v7011_v18 = vpop.f32.mrb[50].mxu0  ;;  %v2290_v19 = vld [vmem:[#allocation2 + $0x60] sm:$0xff]  ;;  %v1282_v35 = vadd.f32 %v8578_v17, %v1281_v16 }
 0x157   : > { %v1284_v47 = vpop.f32.mrb[51].mxu0  ;;  %v2289_v22 = vld [vmem:[#allocation2 + $0x58] sm:$0xff]  ;;  %v1293_v58 = vadd.f32 %v7011_v18, %v8578_v17  ;;  %v1650_v11 = vmax.f32 %v1290_v34, 0.0  ;;  %v2130_v34 = vand.u32 15, %v2098_v40 }
 0x158   : > { %v2320_v23 = vld [vmem:[#allocation2 + $0x51] sm:$0xff]  ;;  %v7351_v24 = vpack.i.bf16 %v2290_v19, %v2289_v22  ;;  %v2226_v36 = vld [vmem:[#allocation2 + $0x5f] sm:$0xff]  ;;  %v1285_v2 = vadd.f32 %v8578_v17, %v1284_v47  ;;  %v1648_v12 = vmax.f32 %v1282_v35, 0.0 }
 0x159   : > { %v8884_v25 = vld [vmem:[#allocation2 + $0x57] sm:$0xff]  ;;  %v2488_v28 = vsel %vm8781_vm10, %v2320_v23, 0.0  ;;  %v2420_v29 = vsel %vm8832_vm12, %v2320_v23, 0.0  ;;  %v2352_v30 = vsel %vm8880_vm14, %v2320_v23, 0.0  ;;  %vm8928_vm0 = vcmp.ne.s32.totalorder %v2130_v34, 15 }
 0x15a   : > { %7352 = vrot.lane.b32.xlu0 %v7351_v24, %s8232_s15  ;;  %7357 = vrot.lane.b32.xlu1 %v7351_v24, %s8230_s25  ;;  %v3457_v32 = vpack.c.bf16 %v2488_v28, %v2319_v27  ;;  %v7361_v49 = vpack.i.bf16 %v2420_v29, %v2319_v27  ;;  %v7371_v53 = vpack.i.bf16 %v2352_v30, %v2319_v27  ;;  %v2453_v54 = vsel %vm8787_vm11, %v8884_v25, 0.0 }
 0x15b   : > { %v2385_v62 = vsel %vm8840_vm13, %v8884_v25, 0.0  ;;  %v7366_v22 = vpack.i.bf16 %v2226_v36, %v2453_v54  ;;  %v1651_v24 = vmax.f32 %v1293_v58, 0.0  ;;  %v1649_v29 = vmax.f32 %v1285_v2, 0.0 }
 0x15c   : > { %v1879_v44 = vld [vmem:[#allocation5 + $0xb0] ss:$2 sm:$0xff]  ;;  %v1943_v46 = vld [vmem:[#allocation5 + $0xb1] ss:$2 sm:$0xff]  ;;  %7096 = vmatprep.mubr.msk.bf16.mxu1 %vm11393_vm3, %v3457_v32  ;;  %v7014_v48 = vpop.f32.mrb[52].mxu0  ;;  %v7376_v23 = vpack.i.bf16 %v2226_v36, %v2385_v62 }
 0x15d   : > { %v1995_v55 = vmax.f32 %v1879_v44, %v1943_v46  ;;  %v1877_v56 = vld [vmem:[#allocation5 + $0xa0] ss:$2 sm:$0xff]  ;;  %v1941_v57 = vld [vmem:[#allocation5 + $0xa1] ss:$2 sm:$0xff]  ;;  %v1306_v59 = vadd.f32 %v7014_v48, %v8578_v17  ;;  %v1297_v60 = vpop.f32.mrb[53].mxu0  ;;  %v2131_v48 = vand.u32 15, %v2099_v10 }
 0x15e   : > { %v1994_v0 = vmax.f32 %v1877_v56, %v1941_v57  ;;  %v1298_v3 = vadd.f32 %v8578_v17, %v1297_v60  ;;  %v7015_v9 = vpop.f32.mrb[54].mxu0  ;;  %7362 = vrot.lane.b32.xlu0 %v7361_v49, %s8230_s25  ;;  %7372 = vrot.lane.b32.xlu1 %v7371_v53, %s8231_s30  ;;  %v2321_v60 = vld [vmem:[#allocation2 + $0x59] sm:$0xff] }
 0x15f   : > { %2065 = vst.msk [vmem:[#allocation2 + $0x70] sm:$0xff] %vm11393_vm3, %v1995_v55  ;;  %v1654_v15 = vmax.f32 %v1306_v59, 0.0  ;;  %v1309_v16 = vadd.f32 %v7015_v9, %v8578_v17  ;;  %v1300_v18 = vpop.f32.mrb[55].mxu0  ;;  %vm8934_vm1 = vcmp.ne.s32.totalorder %v2131_v48, 0  ;;  %v11434_v59 = vmov 0 }
 0x160   : > { %2064 = vst.msk [vmem:[#allocation2 + $0x68] sm:$0xff] %vm11393_vm3, %v1994_v0  ;;  %v1652_v19 = vmax.f32 %v1298_v3, 0.0  ;;  %v1301_v47 = vadd.f32 %v8578_v17, %v1300_v18  ;;  %v11435_v59 = vsel %vm8934_vm1, 4294967295, %v11434_v59  ;;  %v2101_v48 = vadd.s32 112, %v8601_v52 }
 0x161   : > { %v1779_v27 = vmax.f32 %v1650_v11, %v1654_v15  ;;  %v1655_v28 = vmax.f32 %v1309_v16, 0.0  ;;  %11436 = vst [vmem:[#allocation19_spill] sm:$0xff] %v11435_v59 }
 0x162   : > { %v1777_v30 = vmax.f32 %v1648_v12, %v1652_v19  ;;  %v1653_v32 = vmax.f32 %v1301_v47, 0.0  ;;  %7367 = vrot.lane.b32.xlu0 %v7366_v22, %s8231_s30  ;;  %7377 = vrot.lane.b32.xlu1 %v7376_v23, %s8232_s15  ;;  %v2100_v12 = vadd.s32 104, %v8601_v52 }
 0x163   : > { %1783 = vst.msk [vmem:[#allocation5 + $0xd0] sm:$0xff] %vm11393_vm3, %v1779_v27  ;;  %v1780_v35 = vmax.f32 %v1651_v24, %v1655_v28 }
 0x164   : > { %1781 = vst.msk [vmem:[#allocation5 + $0xc0] sm:$0xff] %vm11393_vm3, %v1777_v30  ;;  %v1778_v44 = vmax.f32 %v1649_v29, %v1653_v32  ;;  %v7018_v46 = vpop.f32.mrb[56].mxu0 }
 0x165   : > { %1784 = vst.msk [vmem:[#allocation5 + $0xd8] sm:$0xff] %vm11393_vm3, %v1780_v35  ;;  %v1313_v36 = vpop.f32.mrb[57].mxu0  ;;  %v1322_v9 = vadd.f32 %v7018_v46, %v8578_v17 }
 0x166   : > { %1782 = vst.msk [vmem:[#allocation5 + $0xc8] sm:$0xff] %vm11393_vm3, %v1778_v44  ;;  %v7019_v49 = vpop.f32.mrb[58].mxu0  ;;  %v2292_v53 = vld [vmem:[#allocation2 + $0x70] sm:$0xff]  ;;  %v1314_v10 = vadd.f32 %v8578_v17, %v1313_v36 }
 0x167   : > { %v1316_v40 = vpop.f32.mrb[59].mxu0  ;;  %v2291_v55 = vld [vmem:[#allocation2 + $0x68] sm:$0xff]  ;;  %v1325_v28 = vadd.f32 %v7019_v49, %v8578_v17  ;;  %v1658_v36 = vmax.f32 %v1322_v9, 0.0 }
 0x168   : > { %v2322_v56 = vld [vmem:[#allocation2 + $0x61] sm:$0xff]  ;;  %v7381_v57 = vpack.i.bf16 %v2292_v53, %v2291_v55  ;;  %v2228_v11 = vld [vmem:[#allocation2 + $0x6f] sm:$0xff]  ;;  %v1317_v35 = vadd.f32 %v8578_v17, %v1316_v40  ;;  %v1656_v49 = vmax.f32 %v1314_v10, 0.0  ;;  %v8970_v55 = vld [vmem:[%s11365_s2] ss:$0 sm:$0xff] }
 0x169   : > { %v8932_v58 = vld [vmem:[#allocation2 + $0x67] sm:$0xff]  ;;  %v2490_v62 = vsel %vm8832_vm12, %v2322_v56, 0.0  ;;  %v2422_v0 = vsel %vm8880_vm14, %v2322_v56, 0.0  ;;  %v2354_v2 = vsel %vm8928_vm0, %v2322_v56, 0.0  ;;  %v8973_v56 = vpop.f32.mrb[0].mxu1 }
 0x16a   : > { %11433 = vst [vmem:[#allocation18_spill] sm:$0xff] %v8932_v58  ;;  %7382 = vrot.lane.b32.xlu0 %v7381_v57, %s8232_s15  ;;  %7387 = vrot.lane.b32.xlu1 %v7381_v57, %s8230_s25  ;;  %v3460_v3 = vpack.c.bf16 %v2490_v62, %v2321_v60  ;;  %v7391_v19 = vpack.i.bf16 %v2422_v0, %v2321_v60  ;;  %v2455_v22 = vsel %vm8840_vm13, %v8932_v58, 0.0  ;;  %v2387_v32 = vsel %vm8886_vm15, %v8932_v58, 0.0 }
 0x16b   : > { %v7401_v47 = vpack.i.bf16 %v2354_v2, %v2321_v60  ;;  %v7396_v62 = vpack.i.bf16 %v2228_v11, %v2455_v22  ;;  %v7406_v0 = vpack.i.bf16 %v2228_v11, %v2387_v32  ;;  %v8977_v2 = vpop.f32.mrb[1].mxu1 }
 0x16c   : > { %v1883_v15 = vld [vmem:[#allocation5 + $0xd0] ss:$2 sm:$0xff]  ;;  %v1947_v16 = vld [vmem:[#allocation5 + $0xd1] ss:$2 sm:$0xff]  ;;  %7097 = vmatmul.mubr.msk.bf16.gmra.mrb[8].mxu1 %vm11393_vm3, %v3460_v3  ;;  %v7022_v18 = vpop.f32.mrb[60].mxu0  ;;  %v1659_v3 = vmax.f32 %v1325_v28, 0.0 }
 0x16d   : > { %v1997_v23 = vmax.f32 %v1883_v15, %v1947_v16  ;;  %v1881_v24 = vld [vmem:[#allocation5 + $0xc0] ss:$2 sm:$0xff]  ;;  %v1945_v27 = vld [vmem:[#allocation5 + $0xc1] ss:$2 sm:$0xff]  ;;  %v1338_v29 = vadd.f32 %v7022_v18, %v8578_v17  ;;  %v1329_v30 = vpop.f32.mrb[61].mxu0  ;;  %v8979_v15 = vpop.f32.mrb[2].mxu1 }
 0x16e   : > { %v1996_v34 = vmax.f32 %v1881_v24, %v1945_v27  ;;  %v1330_v44 = vadd.f32 %v8578_v17, %v1329_v30  ;;  %v7023_v46 = vpop.f32.mrb[62].mxu0  ;;  %7392 = vrot.lane.b32.xlu0 %v7391_v19, %s8230_s25  ;;  %7402 = vrot.lane.b32.xlu1 %v7401_v47, %s8231_s30  ;;  %v1657_v16 = vmax.f32 %v1317_v35, 0.0  ;;  %v2132_v47 = vand.u32 15, %v2100_v12 }
 0x16f   : > { %2067 = vst.msk [vmem:[#allocation2 + $0x80] sm:$0xff] %vm11393_vm3, %v1997_v23  ;;  %v1662_v53 = vmax.f32 %v1338_v29, 0.0  ;;  %v1341_v40 = vadd.f32 %v8970_v55, %v7023_v46  ;;  %v1332_v17 = vpop.f32.mrb[63].mxu0  ;;  %v8983_v23 = vpop.f32.mrb[3].mxu1  ;;  %v2133_v27 = vand.u32 15, %v2101_v48  ;;  %v2323_v48 = vld [vmem:[#allocation2 + $0x69] sm:$0xff] }
 0x170   : > { %2066 = vst.msk [vmem:[#allocation2 + $0x78] sm:$0xff] %vm11393_vm3, %v1996_v34  ;;  %v1660_v57 = vmax.f32 %v1330_v44, 0.0  ;;  %v1333_v60 = vadd.f32 %v8970_v55, %v1332_v17  ;;  %vm8989_vm2 = vcmp.ne.s32.totalorder %v2132_v47, 15 }
 0x171   : > { %v1787_v9 = vmax.f32 %v1658_v36, %v1662_v53  ;;  %v1663_v10 = vmax.f32 %v1341_v40, 0.0  ;;  %vm8995_vm5 = vcmp.ne.s32.totalorder %v2133_v27, 0  ;;  %v11440_v36 = vmov 0 }
 0x172   : > { %v1785_v18 = vmax.f32 %v1656_v49, %v1660_v57  ;;  %v1661_v19 = vmax.f32 %v1333_v60, 0.0  ;;  %7397 = vrot.lane.b32.xlu0 %v7396_v62, %s8231_s30  ;;  %7407 = vrot.lane.b32.xlu1 %v7406_v0, %s8232_s15  ;;  %v11441_v36 = vsel %vm8995_vm5, 4294967295, %v11440_v36  ;;  %v2102_v0 = vadd.s32 120, %v8601_v52 }
 0x173   : > { %1791 = vst.msk [vmem:[#allocation5 + $0xf0] sm:$0xff] %vm11393_vm3, %v1787_v9  ;;  %v1788_v11 = vmax.f32 %v1659_v3, %v1663_v10  ;;  %11442 = vst [vmem:[#allocation21_spill] sm:$0xff] %v11441_v36 }
 0x174   : > { %1789 = vst.msk [vmem:[#allocation5 + $0xe0] sm:$0xff] %vm11393_vm3, %v1785_v18  ;;  %v1786_v22 = vmax.f32 %v1657_v16, %v1661_v19  ;;  %v7026_v24 = vpop.f32.mrb[64].mxu0 }
 0x175   : > { %1792 = vst.msk [vmem:[#allocation5 + $0xf8] sm:$0xff] %vm11393_vm3, %v1788_v11  ;;  %v1345_v28 = vpop.f32.mrb[65].mxu0  ;;  %v1354_v57 = vadd.f32 %v8970_v55, %v7026_v24 }
 0x176   : > { %1790 = vst.msk [vmem:[#allocation5 + $0xe8] sm:$0xff] %vm11393_vm3, %v1786_v22  ;;  %v7027_v29 = vpop.f32.mrb[66].mxu0  ;;  %v2294_v30 = vld [vmem:[#allocation2 + $0x80] sm:$0xff]  ;;  %v1346_v60 = vadd.f32 %v8970_v55, %v1345_v28 }
 0x177   : > { %v1348_v12 = vpop.f32.mrb[67].mxu0  ;;  %v2293_v34 = vld [vmem:[#allocation2 + $0x78] sm:$0xff]  ;;  %v1357_v24 = vadd.f32 %v8970_v55, %v7027_v29  ;;  %v1666_v29 = vmax.f32 %v1354_v57, 0.0  ;;  %v2134_v57 = vand.u32 15, %v2102_v0  ;;  %v9042_v0 = vadd.s32 136, %v8601_v52 }
 0x178   : > { %v2324_v35 = vld [vmem:[#allocation2 + $0x71] sm:$0xff]  ;;  %v7411_v44 = vpack.i.bf16 %v2294_v30, %v2293_v34  ;;  %v2230_v62 = vld [vmem:[#allocation2 + $0x7f] sm:$0xff] }
 0x179   : > { %v8993_v46 = vld [vmem:[#allocation2 + $0x77] sm:$0xff]  ;;  %v2492_v49 = vsel %vm8880_vm14, %v2324_v35, 0.0  ;;  %v2424_v53 = vsel %vm8928_vm0, %v2324_v35, 0.0  ;;  %v2356_v40 = vsel %vm8989_vm2, %v2324_v35, 0.0  ;;  %v1349_v35 = vadd.f32 %v8970_v55, %v1348_v12 }
 0x17a   : > { %11439 = vst [vmem:[#allocation20_spill] sm:$0xff] %v8993_v46  ;;  %7412 = vrot.lane.b32.xlu0 %v7411_v44, %s8232_s15  ;;  %7417 = vrot.lane.b32.xlu1 %v7411_v44, %s8230_s25  ;;  %v3463_v17 = vpack.c.bf16 %v2492_v49, %v2323_v48  ;;  %v7421_v16 = vpack.i.bf16 %v2424_v53, %v2323_v48  ;;  %v2457_v19 = vsel %vm8886_vm15, %v8993_v46, 0.0  ;;  %v2389_v30 = vsel %vm8934_vm1, %v8993_v46, 0.0 }
 0x17b   : > { %v7431_v18 = vpack.i.bf16 %v2356_v40, %v2323_v48  ;;  %v2103_v49 = vadd.s32 128, %v8601_v52  ;;  %v1664_v53 = vmax.f32 %v1346_v60, 0.0  ;;  %vm9037_vm9 = vcmp.ne.s32.totalorder %v2134_v57, 15 }
 0x17c   : > { %v1887_v3 = vld [vmem:[#allocation5 + $0xf0] ss:$2 sm:$0xff]  ;;  %v1951_v9 = vld [vmem:[#allocation5 + $0xf1] ss:$2 sm:$0xff]  ;;  %7100 = vmatprep.mubr.msk.bf16.mxu1 %vm11393_vm3, %v3463_v17  ;;  %v7030_v10 = vpop.f32.mrb[68].mxu0  ;;  %v2136_v54 = vand.u32 15, %v9042_v0 }
 0x17d   : > { %v1999_v47 = vmax.f32 %v1887_v3, %v1951_v9  ;;  %v1885_v11 = vld [vmem:[#allocation5 + $0xe0] ss:$2 sm:$0xff]  ;;  %v1949_v22 = vld [vmem:[#allocation5 + $0xe1] ss:$2 sm:$0xff]  ;;  %v1370_v27 = vadd.f32 %v8970_v55, %v7030_v10  ;;  %v1361_v28 = vpop.f32.mrb[69].mxu0  ;;  %v7426_v10 = vpack.i.bf16 %v2230_v62, %v2457_v19  ;;  %v2135_v19 = vand.u32 15, %v2103_v49 }
 0x17e   : > { %v1998_v34 = vmax.f32 %v1885_v11, %v1949_v22  ;;  %v1362_v44 = vadd.f32 %v8970_v55, %v1361_v28  ;;  %v7031_v48 = vpop.f32.mrb[70].mxu0  ;;  %7422 = vrot.lane.b32.xlu0 %v7421_v16, %s8230_s25  ;;  %7432 = vrot.lane.b32.xlu1 %v7431_v18, %s8231_s30  ;;  %v7436_v11 = vpack.i.bf16 %v2230_v62, %v2389_v30  ;;  %v1667_v16 = vmax.f32 %v1357_v24, 0.0 }
 0x17f   : > { %2069 = vst.msk [vmem:[#allocation2 + $0x90] sm:$0xff] %vm11393_vm3, %v1999_v47  ;;  %v1670_v40 = vmax.f32 %v1370_v27, 0.0  ;;  %v1373_v17 = vadd.f32 %v8970_v55, %v7031_v48  ;;  %v1364_v3 = vpop.f32.mrb[71].mxu0  ;;  %v1665_v28 = vmax.f32 %v1349_v35, 0.0  ;;  %v9044_v35 = vld [vmem:[#allocation2 + $0x7] sm:$0xff]  ;;  %v9046_v48 = vpop.permute.xlu0 %7242  ;;  %v9049_v49 = vadd.s32 144, %v8601_v52 }
 0x180   : > { %2068 = vst.msk [vmem:[#allocation2 + $0x88] sm:$0xff] %vm11393_vm3, %v1998_v34  ;;  %v1668_v12 = vmax.f32 %v1362_v44, 0.0  ;;  %v1365_v9 = vadd.f32 %v8970_v55, %v1364_v3  ;;  %vm9053_vm10 = vcmp.ne.s32.totalorder %v2135_v19, 0  ;;  %vm9108_vm12 = vcmp.ne.s32.totalorder %v2136_v54, 15 }
 0x181   : > { %v1795_v22 = vmax.f32 %v1666_v29, %v1670_v40  ;;  %v1671_v18 = vmax.f32 %v1373_v17, 0.0  ;;  %v11446_v40 = vmov 0  ;;  %v2325_v17 = vld [vmem:[#allocation2 + $0x79] sm:$0xff]  ;;  %v2137_v57 = vand.u32 15, %v9049_v49 }
 0x182   : > { %v1793_v21 = vmax.f32 %v1664_v53, %v1668_v12  ;;  %v1669_v63 = vmax.f32 %v1365_v9, 0.0  ;;  %7427 = vrot.lane.b32.xlu0 %v7426_v10, %s8231_s30  ;;  %7437 = vrot.lane.b32.xlu1 %v7436_v11, %s8232_s15  ;;  %v11447_v40 = vsel %vm9053_vm10, 4294967295, %v11446_v40  ;;  %v2247_v10 = vsel %vm8675_vm7, %v9044_v35, 0.0 }
 0x183   : > { %1799 = vst.msk [vmem:[#allocation5 + $0x110] sm:$0xff] %vm11393_vm3, %v1795_v22  ;;  %v1796_v60 = vmax.f32 %v1667_v16, %v1671_v18  ;;  %v7245_v16 = vunpack.i.h.bf16 %v9046_v48  ;;  %vm11391_vm7 = vcmask 785408   ;;  %vm9112_vm14 = vcmp.ne.s32.totalorder %v2137_v57, 0 }
 0x184   : > { %1797 = vst.msk [vmem:[#allocation5 + $0x100] sm:$0xff] %vm11393_vm3, %v1793_v21  ;;  %v1794_v47 = vmax.f32 %v1665_v28, %v1669_v63  ;;  %v7034_v27 = vpop.f32.mrb[72].mxu0 }
 0x185   : > { %1800 = vst.msk [vmem:[#allocation5 + $0x118] sm:$0xff] %vm11393_vm3, %v1796_v60  ;;  %v1377_v62 = vpop.f32.mrb[73].mxu0  ;;  %v1386_v22 = vadd.f32 %v8970_v55, %v7034_v27  ;;  %v7244_v27 = vunpack.i.l.bf16 %v9046_v48 }
 0x186   : > { %1798 = vst.msk [vmem:[#allocation5 + $0x108] sm:$0xff] %vm11393_vm3, %v1794_v47  ;;  %v7035_v24 = vpop.f32.mrb[74].mxu0  ;;  %v2296_v30 = vld [vmem:[#allocation2 + $0x90] sm:$0xff]  ;;  %v1378_v18 = vadd.f32 %v8970_v55, %v1377_v62 }
 0x187   : > { %v1380_v21 = vpop.f32.mrb[75].mxu0  ;;  %v2295_v63 = vld [vmem:[#allocation2 + $0x88] sm:$0xff] }
 0x188   : > { %v2326_v44 = vld [vmem:[#allocation2 + $0x81] sm:$0xff]  ;;  %v7441_v29 = vpack.i.bf16 %v2296_v30, %v2295_v63  ;;  %v2232_v28 = vld [vmem:[#allocation2 + $0x8f] sm:$0xff] }
 0x189   : > { %v9051_v53 = vld [vmem:[#allocation2 + $0x87] sm:$0xff]  ;;  %v2494_v3 = vsel %vm8928_vm0, %v2326_v44, 0.0  ;;  %v2426_v12 = vsel %vm8989_vm2, %v2326_v44, 0.0  ;;  %v2358_v9 = vsel %vm9037_vm9, %v2326_v44, 0.0 }
 0x18a   : > { %11445 = vst [vmem:[#allocation22_spill] sm:$0xff] %v9051_v53  ;;  %7442 = vrot.lane.b32.xlu0 %v7441_v29, %s8232_s15  ;;  %7447 = vrot.lane.b32.xlu1 %v7441_v29, %s8230_s25  ;;  %v3466_v11 = vpack.c.bf16 %v2494_v3, %v2325_v17  ;;  %v7451_v35 = vpack.i.bf16 %v2426_v12, %v2325_v17  ;;  %v2459_v62 = vsel %vm8934_vm1, %v9051_v53, 0.0 }
 0x18b   : > { %v7461_v0 = vpack.i.bf16 %v2358_v9, %v2325_v17  ;;  %v1389_v29 = vadd.f32 %v8970_v55, %v7035_v24  ;;  %v1381_v17 = vadd.f32 %v8970_v55, %v1380_v21  ;;  %v1674_v24 = vmax.f32 %v1386_v22, 0.0 }
 0x18c   : > { %v1891_v60 = vld [vmem:[#allocation5 + $0x110] ss:$2 sm:$0xff]  ;;  %v1955_v47 = vld [vmem:[#allocation5 + $0x111] ss:$2 sm:$0xff]  ;;  %7101 = vmatmul.mubr.msk.bf16.gmra.mrb[12].mxu1 %vm11393_vm3, %v3466_v11  ;;  %v7038_v19 = vpop.f32.mrb[76].mxu0  ;;  %v9077_v30 = vpop.permute.xlu1 %7247  ;;  %v2391_v11 = vsel %vm8995_vm5, %v9051_v53, 0.0  ;;  %v7456_v14 = vpack.i.bf16 %v2232_v28, %v2459_v62 }
 0x18d   : > { %v2001_v63 = vmax.f32 %v1891_v60, %v1955_v47  ;;  %v1889_v44 = vld [vmem:[#allocation5 + $0x100] ss:$2 sm:$0xff]  ;;  %v1953_v49 = vld [vmem:[#allocation5 + $0x101] ss:$2 sm:$0xff]  ;;  %v1402_v3 = vadd.f32 %v8970_v55, %v7038_v19  ;;  %v1393_v43 = vpop.f32.mrb[77].mxu0  ;;  %v9093_v60 = vadd.s32 152, %v8601_v52 }
 0x18e   : > { %v2000_v12 = vmax.f32 %v1889_v44, %v1953_v49  ;;  %v1394_v48 = vadd.f32 %v8970_v55, %v1393_v43  ;;  %v7039_v9 = vpop.f32.mrb[78].mxu0  ;;  %7452 = vrot.lane.b32.xlu0 %v7451_v35, %s8230_s25  ;;  %7462 = vrot.lane.b32.xlu1 %v7461_v0, %s8231_s30  ;;  %v1672_v47 = vmax.f32 %v1378_v18, 0.0  ;;  %v2216_v43 = vld [vmem:[#allocation2 + $0xf] sm:$0xff]  ;;  %v7466_v0 = vpack.i.bf16 %v2232_v28, %v2391_v11 }
 0x18f   : > { %2071 = vst.msk [vmem:[#allocation2 + $0xa0] sm:$0xff] %vm11393_vm3, %v2001_v63  ;;  %v1678_v19 = vmax.f32 %v1402_v3, 0.0  ;;  %v1405_v38 = vadd.f32 %v8970_v55, %v7039_v9  ;;  %v1396_v44 = vpop.f32.mrb[79].mxu0  ;;  %v1675_v31 = vmax.f32 %v1389_v29, 0.0  ;;  %v9100_v63 = vadd.s32 160, %v8601_v52 }
 0x190   : > { %2070 = vst.msk [vmem:[#allocation2 + $0x98] sm:$0xff] %vm11393_vm3, %v2000_v12  ;;  %v1676_v21 = vmax.f32 %v1394_v48, 0.0  ;;  %v1397_v49 = vadd.f32 %v8970_v55, %v1396_v44  ;;  %v7253_v35 = vpop.permute.xlu1 %7252  ;;  %v1673_v22 = vmax.f32 %v1381_v17, 0.0  ;;  %v3255_v48 = vsel %vm11393_vm3, %v2247_v10, %v7244_v27 }
 0x191   : > { %v1803_v50 = vmax.f32 %v1674_v24, %v1678_v19  ;;  %v1679_v42 = vmax.f32 %v1405_v38, 0.0  ;;  %v3256_v28 = vsel %vm11393_vm3, %v2216_v43, %v7245_v16  ;;  %v9121_v16 = vadd.s32 168, %v8601_v52 }
 0x192   : > { %v1801_v18 = vmax.f32 %v1672_v47, %v1676_v21  ;;  %v1677_v3 = vmax.f32 %v1397_v49, 0.0  ;;  %7457 = vrot.lane.b32.xlu0 %v7456_v14, %s8231_s30  ;;  %7467 = vrot.lane.b32.xlu1 %v7466_v0, %s8232_s15  ;;  %v9126_v11 = vadd.s32 184, %v8601_v52  ;;  %v9129_v17 = vadd.s32 176, %v8601_v52 }
 0x193   : > { %1807 = vst.msk [vmem:[#allocation5 + $0x130] sm:$0xff] %vm11393_vm3, %v1803_v50  ;;  %v1804_v12 = vmax.f32 %v1675_v31, %v1679_v42  ;;  %v7255_v42 = vunpack.i.h.bf16 %v7253_v35  ;;  %v9132_v9 = vadd.s32 200, %v8601_v52  ;;  %v9135_v24 = vadd.s32 192, %v8601_v52 }
 0x194   : > { %1805 = vst.msk [vmem:[#allocation5 + $0x120] sm:$0xff] %vm11393_vm3, %v1801_v18  ;;  %v1802_v38 = vmax.f32 %v1673_v22, %v1677_v3  ;;  %v7042_v62 = vpop.f32.mrb[80].mxu0  ;;  %v9117_v50 = vpop.permute.xlu1 %7257  ;;  %v7254_v47 = vunpack.i.l.bf16 %v7253_v35  ;;  %v9141_v49 = vadd.s32 216, %v8601_v52  ;;  %v9144_v0 = vadd.s32 208, %v8601_v52 }
 0x195   : > { %1808 = vst.msk [vmem:[#allocation5 + $0x138] sm:$0xff] %vm11393_vm3, %v1804_v12  ;;  %v1409_v31 = vpop.f32.mrb[81].mxu0  ;;  %v9138_v19 = vadd.f32 %v8970_v55, %v7042_v62  ;;  %v7260_v22 = vunpack.i.h.bf16 %v9117_v50  ;;  %v9151_v35 = vadd.f32 %v8970_v55, %v8973_v56  ;;  %v9154_v12 = vadd.s32 224, %v8601_v52  ;;  %v2327_v62 = vld [vmem:[#allocation2 + $0x89] sm:$0xff] }
 0x196   : > { %1806 = vst.msk [vmem:[#allocation5 + $0x128] sm:$0xff] %vm11393_vm3, %v1802_v38  ;;  %v7043_v27 = vpop.f32.mrb[82].mxu0  ;;  %v2298_v57 = vld [vmem:[#allocation2 + $0xa0] sm:$0xff]  ;;  %v3289_v38 = vsel %vm11396_vm4, %v3256_v28, %v7255_v42  ;;  %v3288_v8 = vsel %vm11396_vm4, %v3255_v48, %v7254_v47 }
 0x197   : > { %v1412_v44 = vpop.f32.mrb[83].mxu0  ;;  %v2297_v21 = vld [vmem:[#allocation2 + $0x98] sm:$0xff]  ;;  %v1682_v28 = vmax.f32 %v9138_v19, 0.0 }
 0x198   : > { %v2328_v43 = vld [vmem:[#allocation2 + $0x91] sm:$0xff]  ;;  %v7471_v18 = vpack.i.bf16 %v2298_v57, %v2297_v21  ;;  %v1410_v57 = vadd.f32 %v8970_v55, %v1409_v31  ;;  %v1421_v21 = vadd.f32 %v8970_v55, %v7043_v27  ;;  %v1413_v32 = vadd.f32 %v8970_v55, %v1412_v44  ;;  %v2234_v42 = vld [vmem:[#allocation2 + $0x9f] sm:$0xff] }
 0x199   : > { %v9147_v3 = vld [vmem:[#allocation2 + $0x97] sm:$0xff]  ;;  %v2496_v54 = vsel %vm8989_vm2, %v2328_v43, 0.0  ;;  %v2428_v10 = vsel %vm9037_vm9, %v2328_v43, 0.0  ;;  %v2360_v61 = vsel %vm9108_vm12, %v2328_v43, 0.0  ;;  %v7259_v43 = vunpack.i.l.bf16 %v9117_v50 }
 0x19a   : > { %11452 = vst [vmem:[#allocation23_spill] sm:$0xff] %v9147_v3  ;;  %7472 = vrot.lane.b32.xlu0 %v7471_v18, %s8232_s15  ;;  %v3469_v56 = vpack.c.bf16 %v2496_v54, %v2327_v62  ;;  %7477 = vrot.lane.b32.xlu1 %v7471_v18, %s8230_s25  ;;  %v9174_v54 = vsel %vm11391_vm7, %v3289_v38, %v7260_v22  ;;  %v2461_v44 = vsel %vm8995_vm5, %v9147_v3, 0.0  ;;  %v2393_v50 = vsel %vm9053_vm10, %v9147_v3, 0.0 }
 0x19b   : > { %v7481_v19 = vpack.i.bf16 %v2428_v10, %v2327_v62  ;;  %v7491_v38 = vpack.i.bf16 %v2360_v61, %v2327_v62  ;;  %v1680_v6 = vmax.f32 %v1410_v57, 0.0  ;;  %v1683_v10 = vmax.f32 %v1421_v21, 0.0 }
 0x19c   : > { %v1895_v27 = vld [vmem:[#allocation5 + $0x130] ss:$2 sm:$0xff]  ;;  %v1959_v13 = vld [vmem:[#allocation5 + $0x131] ss:$2 sm:$0xff]  ;;  %7104 = vmatprep.mubr.msk.bf16.mxu1 %vm11393_vm3, %v3469_v56  ;;  %v7046_v48 = vpop.f32.mrb[84].mxu0  ;;  %v7263_v47 = vpop.permute.xlu0 %7262  ;;  %v7486_v62 = vpack.i.bf16 %v2234_v42, %v2461_v44 }
 0x19d   : > { %v2003_v18 = vmax.f32 %v1895_v27, %v1959_v13  ;;  %v1893_v7 = vld [vmem:[#allocation5 + $0x120] ss:$2 sm:$0xff]  ;;  %v1957_v20 = vld [vmem:[#allocation5 + $0x121] ss:$2 sm:$0xff]  ;;  %v1434_v31 = vadd.f32 %v8970_v55, %v7046_v48  ;;  %v9182_v1 = vpop.permute.xlu1 %7267  ;;  %v1425_v22 = vpop.f32.mrb[85].mxu0  ;;  %v1681_v13 = vmax.f32 %v1413_v32, 0.0  ;;  %v7264_v44 = vunpack.i.l.bf16 %v7263_v47 }
 0x19e   : > { %v2002_v56 = vmax.f32 %v1893_v7, %v1957_v20  ;;  %v1426_v53 = vadd.f32 %v8970_v55, %v1425_v22  ;;  %v7047_v46 = vpop.f32.mrb[86].mxu0  ;;  %7482 = vrot.lane.b32.xlu0 %v7481_v19, %s8230_s25  ;;  %7492 = vrot.lane.b32.xlu1 %v7491_v38, %s8231_s30  ;;  %v7265_v7 = vunpack.i.h.bf16 %v7263_v47  ;;  %v7496_v22 = vpack.i.bf16 %v2234_v42, %v2393_v50 }
 0x19f   : > { %2073 = vst.msk [vmem:[#allocation2 + $0xb0] sm:$0xff] %vm11393_vm3, %v2003_v18  ;;  %v1686_v27 = vmax.f32 %v1434_v31, 0.0  ;;  %v1437_v48 = vadd.f32 %v8970_v55, %v7047_v46  ;;  %v1428_v61 = vpop.f32.mrb[87].mxu0  ;;  %v3321_v42 = vsel %vm11391_vm7, %v3288_v8, %v7259_v43 }
 0x1a0   : > { %2072 = vst.msk [vmem:[#allocation2 + $0xa8] sm:$0xff] %vm11393_vm3, %v2002_v56  ;;  %v1684_v20 = vmax.f32 %v1426_v53, 0.0  ;;  %v1429_v57 = vadd.f32 %v8970_v55, %v1428_v61  ;;  %v7273_v21 = vpop.permute.xlu0 %7272  ;;  %v8123_v53 = vld [vmem:[#allocation2 + $0x20] sm:$0xff]  ;;  %v8124_v61 = vld [vmem:[#allocation2 + $0x18] sm:$0xff] }
 0x1a1   : > { %v1811_v3 = vmax.f32 %v1682_v28, %v1686_v27  ;;  %v1687_v19 = vmax.f32 %v1437_v48, 0.0  ;;  %v7275_v36 = vunpack.i.h.bf16 %v7273_v21  ;;  %v7274_v18 = vunpack.i.l.bf16 %v7273_v21  ;;  %v7278_v32 = vpop.permute.xlu1 %7277 }
 0x1a2   : > { %v1809_v31 = vmax.f32 %v1680_v6, %v1684_v20  ;;  %v1685_v58 = vmax.f32 %v1429_v57, 0.0  ;;  %v7280_v46 = vunpack.i.h.bf16 %v7278_v32  ;;  %v7279_v59 = vunpack.i.l.bf16 %v7278_v32  ;;  %7487 = vrot.lane.b32.xlu0 %v7486_v62, %s8231_s30  ;;  %7497 = vrot.lane.b32.xlu1 %v7496_v22, %s8232_s15 }
 0x1a3   : > { %1815 = vst.msk [vmem:[#allocation5 + $0x150] sm:$0xff] %vm11393_vm3, %v1811_v3  ;;  %v1812_v38 = vmax.f32 %v1683_v10, %v1687_v19  ;;  %v3354_v56 = vsel %vm11393_vm3, %v8123_v53, %v7275_v36  ;;  %v3353_v28 = vsel %vm11393_vm3, %v8124_v61, %v7274_v18  ;;  %v11453_v62 = vand.u32 15, %v9093_v60  ;;  %v2329_v61 = vld [vmem:[#allocation2 + $0x99] sm:$0xff] }
 0x1a4   : > { %1813 = vst.msk [vmem:[#allocation5 + $0x140] sm:$0xff] %vm11393_vm3, %v1809_v31  ;;  %v1810_v6 = vmax.f32 %v1681_v13, %v1685_v58  ;;  %v7050_v50 = vpop.f32.mrb[88].mxu0  ;;  %v3385_v27 = vsel %vm11396_vm4, %v3353_v28, %v7279_v59  ;;  %v3386_v3 = vsel %vm11396_vm4, %v3354_v56, %v7280_v46  ;;  %v2140_v13 = vand.u32 15, %v9121_v16 }
 0x1a5   : > { %1816 = vst.msk [vmem:[#allocation5 + $0x158] sm:$0xff] %vm11393_vm3, %v1812_v38  ;;  %v9204_v47 = vpop.permute.xlu1 %7282  ;;  %v1441_v36 = vpop.f32.mrb[89].mxu0  ;;  %v3417_v10 = vsel %vm11391_vm7, %v3385_v27, %v7264_v44  ;;  %v3418_v48 = vsel %vm11391_vm7, %v3386_v3, %v7265_v7  ;;  %vm9210_vm0 = vcmp.ne.s32.totalorder %v11453_v62, 15  ;;  %v2141_v20 = vand.u32 15, %v9129_v17 }
 0x1a6   : > { %1814 = vst.msk [vmem:[#allocation5 + $0x148] sm:$0xff] %vm11393_vm3, %v1810_v6  ;;  %v7051_v58 = vpop.f32.mrb[90].mxu0  ;;  %v3450_v59 = vpack.c.bf16 %v3418_v48, %v3417_v10  ;;  %v2300_v43 = vld [vmem:[#allocation2 + $0xb0] sm:$0xff]  ;;  %v9219_v57 = vadd.f32 %v8970_v55, %v8977_v2  ;;  %v3449_v7 = vpack.c.bf16 %v9174_v54, %v3321_v42  ;;  %v11456_v31 = vand.u32 15, %v9100_v63 }
 0x1a7   : > { %v1444_v60 = vpop.f32.mrb[91].mxu0  ;;  %v2299_v21 = vld [vmem:[#allocation2 + $0xa8] sm:$0xff]  ;;  %v9241_v28 = vadd.f32 %v8970_v55, %v8979_v15  ;;  %v7249_v6 = vunpack.i.l.bf16 %v9077_v30  ;;  %v1450_v10 = vadd.f32 %v8970_v55, %v7050_v50  ;;  %v1442_v48 = vadd.f32 %v8970_v55, %v1441_v36 }
 0x1a8   : > { %v2330_v22 = vld [vmem:[#allocation2 + $0xa1] sm:$0xff]  ;;  %3728 = vmatprep.mubr.bf16.mxu0 %v3450_v59  ;;  %vm9227_vm2 = vcmp.ne.s32.totalorder %v11456_v31, 0  ;;  %v7501_v56 = vpack.i.bf16 %v2300_v43, %v2299_v21  ;;  %v7284_v50 = vunpack.i.l.bf16 %v9204_v47  ;;  %v1453_v36 = vadd.f32 %v8970_v55, %v7051_v58 }
 0x1a9   : > { %v9235_v53 = vpop.permute.xlu1 %7287  ;;  %3729 = vmatmul.mubr.bf16.vlgmr.msra.gmra.mrb[124].mxu0 %v3449_v7  ;;  %v2498_v63 = vsel %vm9037_vm9, %v2330_v22, 0.0  ;;  %v2430_v34 = vsel %vm9108_vm12, %v2330_v22, 0.0  ;;  %v2362_v15 = vsel %vm9210_vm0, %v2330_v22, 0.0  ;;  %v9254_v62 = vld [vmem:[#allocation2 + $0xa7] sm:$0xff]  ;;  %v7285_v7 = vunpack.i.h.bf16 %v9204_v47 }
 0x1aa   : > { %v3472_v27 = vpack.c.bf16 %v2498_v63, %v2329_v61  ;;  %7502 = vrot.lane.b32.xlu0 %v7501_v56, %s8232_s15  ;;  %7507 = vrot.lane.b32.xlu1 %v7501_v56, %s8230_s25  ;;  %v1445_v21 = vadd.f32 %v8970_v55, %v1444_v60  ;;  %v7511_v44 = vpack.i.bf16 %v2430_v34, %v2329_v61  ;;  %v2236_v60 = vld [vmem:[#allocation2 + $0xaf] sm:$0xff]  ;;  %vm9281_vm9 = vcmp.ne.s32.totalorder %v2140_v13, 15 }
 0x1ab   : > { %v7521_v18 = vpack.i.bf16 %v2362_v15, %v2329_v61  ;;  %vm9287_vm7 = vcmp.ne.s32.totalorder %v2141_v20, 0  ;;  %v7290_v16 = vunpack.i.h.bf16 %v9235_v53  ;;  %v7289_v13 = vunpack.i.l.bf16 %v9235_v53 }
 0x1ac   : > { %v1899_v59 = vld [vmem:[#allocation5 + $0x150] ss:$2 sm:$0xff]  ;;  %v1963_v43 = vld [vmem:[#allocation5 + $0x151] ss:$2 sm:$0xff]  ;;  %7105 = vmatmul.mubr.msk.bf16.gmra.mrb[16].mxu1 %vm11393_vm3, %v3472_v27  ;;  %v7054_v31 = vpop.f32.mrb[92].mxu0  ;;  %v9261_v56 = vpop.permute.xlu0 %7292  ;;  %v2463_v27 = vsel %vm9053_vm10, %v9254_v62, 0.0 }
 0x1ad   : > { %v2005_v63 = vmax.f32 %v1899_v59, %v1963_v43  ;;  %v1897_v38 = vld [vmem:[#allocation5 + $0x140] ss:$2 sm:$0xff]  ;;  %v1961_v22 = vld [vmem:[#allocation5 + $0x141] ss:$2 sm:$0xff]  ;;  %v1466_v3 = vadd.f32 %v8970_v55, %v7054_v31  ;;  %v9264_v2 = vpop.permute.xlu1 %7297  ;;  %v1457_v54 = vpop.f32.mrb[93].mxu0  ;;  %v2395_v59 = vsel %vm9112_vm14, %v9254_v62, 0.0 }
 0x1ae   : > { %v2004_v47 = vmax.f32 %v1897_v38, %v1961_v22  ;;  %v1458_v58 = vadd.f32 %v8970_v55, %v1457_v54  ;;  %v7055_v32 = vpop.f32.mrb[94].mxu0  ;;  %v1690_v43 = vmax.f32 %v1450_v10, 0.0  ;;  %v1688_v31 = vmax.f32 %v1442_v48, 0.0  ;;  %7512 = vrot.lane.b32.xlu0 %v7511_v44, %s8230_s25  ;;  %7522 = vrot.lane.b32.xlu1 %v7521_v18, %s8231_s30 }
 0x1af   : > { %2075 = vst.msk [vmem:[#allocation2 + $0xc0] sm:$0xff] %vm11393_vm3, %v2005_v63  ;;  %v1694_v19 = vmax.f32 %v1466_v3, 0.0  ;;  %v1469_v61 = vadd.f32 %v8970_v55, %v7055_v32  ;;  %v1460_v54 = vpop.f32.mrb[95].mxu0  ;;  %v1691_v38 = vmax.f32 %v1453_v36, 0.0  ;;  %v1689_v34 = vmax.f32 %v1445_v21, 0.0 }
 0x1b0   : > { %2074 = vst.msk [vmem:[#allocation2 + $0xb8] sm:$0xff] %vm11393_vm3, %v2004_v47  ;;  %v1692_v15 = vmax.f32 %v1458_v58, 0.0  ;;  %v1461_v22 = vadd.f32 %v8970_v55, %v1460_v54  ;;  %v7303_v42 = vpop.permute.xlu0 %7302  ;;  %v7516_v44 = vpack.i.bf16 %v2236_v60, %v2463_v27  ;;  %v7526_v48 = vpack.i.bf16 %v2236_v60, %v2395_v59 }
 0x1b1   : > { %v1819_v32 = vmax.f32 %v1690_v43, %v1694_v19  ;;  %v1695_v3 = vmax.f32 %v1469_v61, 0.0  ;;  %v7305_v63 = vunpack.i.h.bf16 %v7303_v42  ;;  %v7304_v47 = vunpack.i.l.bf16 %v7303_v42  ;;  %v9294_v58 = vpop.permute.xlu1 %7312  ;;  %v8125_v42 = vld [vmem:[#allocation2 + $0x1f] sm:$0xff] }
 0x1b2   : > { %v1817_v36 = vmax.f32 %v1688_v31, %v1692_v15  ;;  %v1693_v21 = vmax.f32 %v1461_v22, 0.0  ;;  %7517 = vrot.lane.b32.xlu0 %v7516_v44, %s8231_s30  ;;  %7527 = vrot.lane.b32.xlu1 %v7526_v48, %s8232_s15  ;;  %v2267_v17 = vsel %vm9227_vm2, %v9254_v62, 0.0  ;;  %v11463_v20 = vsel %vm8639_vm6, %v8667_v37, 0.0 }
 0x1b3   : > { %1823 = vst.msk [vmem:[#allocation5 + $0x170] sm:$0xff] %vm11393_vm3, %v1819_v32  ;;  %v1820_v19 = vmax.f32 %v1691_v38, %v1695_v3  ;;  %v3257_v53 = vsel %vm11393_vm3, %v11463_v20, %v7249_v6  ;;  %v11464_v60 = vunpack.i.h.bf16 %v9077_v30  ;;  %v9314_v61 = vadd.f32 %v8970_v55, %v8983_v23  ;;  %v8127_v23 = vld [vmem:[#allocation2 + $0x28] sm:$0xff] }
 0x1b4   : > { %1821 = vst.msk [vmem:[#allocation5 + $0x160] sm:$0xff] %vm11393_vm3, %v1817_v36  ;;  %v1818_v59 = vmax.f32 %v1689_v34, %v1693_v21  ;;  %v7058_v43 = vpop.f32.mrb[96].mxu0  ;;  %v7308_v31 = vpop.permute.xlu0 %7307  ;;  %v3290_v37 = vsel %vm11396_vm4, %v3257_v53, %v7284_v50  ;;  %v7295_v38 = vunpack.i.h.bf16 %v9261_v56  ;;  %v7294_v15 = vunpack.i.l.bf16 %v9261_v56  ;;  %v8126_v34 = vld [vmem:[#allocation2 + $0x30] sm:$0xff] }
 0x1b5   : > { %v3258_v27 = vsel %vm11393_vm3, %v8125_v42, %v11464_v60  ;;  %1824 = vst.msk [vmem:[#allocation5 + $0x178] sm:$0xff] %vm11393_vm3, %v1820_v19  ;;  %v7310_v6 = vunpack.i.h.bf16 %v7308_v31  ;;  %v7309_v54 = vunpack.i.l.bf16 %v7308_v31  ;;  %v1473_v30 = vpop.f32.mrb[97].mxu0  ;;  %v3356_v22 = vsel %vm11393_vm3, %v8126_v34, %v7305_v63  ;;  %v9333_v60 = vpop.permute.xlu1 %7317  ;;  %v2331_v31 = vld [vmem:[#allocation2 + $0xa9] sm:$0xff] }
 0x1b6   : > { %v3291_v33 = vsel %vm11396_vm4, %v3258_v27, %v7285_v7  ;;  %1822 = vst.msk [vmem:[#allocation5 + $0x168] sm:$0xff] %vm11393_vm3, %v1818_v59  ;;  %v3355_v32 = vsel %vm11393_vm3, %v8127_v23, %v7304_v47  ;;  %v7059_v7 = vpop.f32.mrb[98].mxu0  ;;  %v2302_v3 = vld [vmem:[#allocation2 + $0xc0] sm:$0xff]  ;;  %vm11465_vm6 = vcmask 785408   ;;  %v7270_v20 = vunpack.i.h.bf16 %v9182_v1 }
 0x1b7   : > { %v1476_v50 = vpop.f32.mrb[99].mxu0  ;;  %v2301_v44 = vld [vmem:[#allocation2 + $0xb8] sm:$0xff]  ;;  %v3387_v48 = vsel %vm11396_vm4, %v3355_v32, %v7309_v54  ;;  %v3388_v36 = vsel %vm11396_vm4, %v3356_v22, %v7310_v6  ;;  %v3323_v19 = vsel %vm11465_vm6, %v3290_v37, %v7289_v13  ;;  %vm11466_vm10 = vmmov %vm11465_vm6  ;;  %v7269_v63 = vunpack.i.l.bf16 %v9182_v1 }
 0x1b8   : > { %v2332_v21 = vld [vmem:[#allocation2 + $0xb1] sm:$0xff]  ;;  %v3324_v56 = vsel %vm11466_vm10, %v3291_v33, %v7290_v16  ;;  %v7531_v53 = vpack.i.bf16 %v2302_v3, %v2301_v44  ;;  %v7299_v47 = vunpack.i.l.bf16 %v9264_v2  ;;  %vm11467_vm3 = vmmov %vm11465_vm6  ;;  %v1482_v54 = vadd.f32 %v8970_v55, %v7058_v43  ;;  %v2238_v34 = vld [vmem:[#allocation2 + $0xbf] sm:$0xff] }
 0x1b9   : > { %v9330_v42 = vld [vmem:[#allocation2 + $0xb7] sm:$0xff]  ;;  %v3419_v27 = vsel %vm11467_vm3, %v3387_v48, %v7294_v15  ;;  %vm11468_vm5 = vmmov %vm11467_vm3  ;;  %v2500_v13 = vsel %vm9108_vm12, %v2332_v21, 0.0  ;;  %v3452_v37 = vpack.c.bf16 %v3324_v56, %v3323_v19  ;;  %v2432_v6 = vsel %vm9210_vm0, %v2332_v21, 0.0 }
 0x1ba   : > { %v3420_v59 = vsel %vm11468_vm5, %v3388_v36, %v7295_v38  ;;  %7532 = vrot.lane.b32.xlu0 %v7531_v53, %s8232_s15  ;;  %7537 = vrot.lane.b32.xlu1 %v7531_v53, %s8230_s25  ;;  %v3475_v33 = vpack.c.bf16 %v2500_v13, %v2331_v31  ;;  %v1474_v15 = vadd.f32 %v8970_v55, %v1473_v30  ;;  %v2364_v38 = vsel %vm9281_vm9, %v2332_v21, 0.0 }
 0x1bb   : > { %v3453_v16 = vpack.c.bf16 %v3420_v59, %v3419_v27  ;;  %v2465_v29 = vsel %vm9112_vm14, %v9330_v42, 0.0  ;;  %v1485_v32 = vadd.f32 %v8970_v55, %v7059_v7  ;;  %vm11469_vm3 = vcmask 261120  }
 0x1bc   : > { %v1903_v22 = vld [vmem:[#allocation5 + $0x170] ss:$2 sm:$0xff]  ;;  %v1967_v23 = vld [vmem:[#allocation5 + $0x171] ss:$2 sm:$0xff]  ;;  %7108 = vmatprep.mubr.msk.bf16.mxu1 %vm11469_vm3, %v3475_v33  ;;  %v7062_v3 = vpop.f32.mrb[100].mxu0  ;;  %v7541_v43 = vpack.i.bf16 %v2432_v6, %v2331_v31  ;;  %v7551_v30 = vpack.i.bf16 %v2364_v38, %v2331_v31  ;;  %v2269_v48 = vsel %vm9287_vm7, %v9330_v42, 0.0  ;;  %v1477_v56 = vadd.f32 %v8970_v55, %v1476_v50  ;;  %vm11470_vm5 = vmmov %vm11469_vm3 }
 0x1bd   : > { %3736 = vmatprep.mubr.bf16.mxu0 %v3453_v16  ;;  %v9352_v44 = vpop.permute.xlu0 %7322  ;;  %v2007_v36 = vmax.f32 %v1903_v22, %v1967_v23  ;;  %v1901_v21 = vld [vmem:[#allocation5 + $0x160] ss:$2 sm:$0xff]  ;;  %v1965_v19 = vld [vmem:[#allocation5 + $0x161] ss:$2 sm:$0xff]  ;;  %v1498_v53 = vadd.f32 %v8970_v55, %v7062_v3  ;;  %v9359_v7 = vpop.permute.xlu1 %7327  ;;  %v2397_v59 = vsel %vm9227_vm2, %v9330_v42, 0.0  ;;  %v7315_v13 = vunpack.i.h.bf16 %v9294_v58  ;;  %vm11471_vm10 = vmmov %vm11469_vm3 }
 0x1be   : > { %3737 = vmatmul.mubr.bf16.gmra.mrb[128].mxu0 %v3452_v37  ;;  %v1489_v27 = vpop.f32.mrb[101].mxu0  ;;  %v2006_v31 = vmax.f32 %v1901_v21, %v1965_v19  ;;  %v7314_v16 = vunpack.i.l.bf16 %v9294_v58  ;;  %7542 = vrot.lane.b32.xlu0 %v7541_v43, %s8230_s25  ;;  %v1698_v50 = vmax.f32 %v1482_v54, 0.0  ;;  %v1696_v37 = vmax.f32 %v1474_v15, 0.0 }
 0x1bf   : > { %v1490_v33 = vadd.f32 %v8970_v55, %v1489_v27  ;;  %v7063_v6 = vpop.f32.mrb[102].mxu0  ;;  %7552 = vrot.lane.b32.xlu1 %v7551_v30, %s8231_s30  ;;  %2077 = vst.msk [vmem:[#allocation2 + $0xd0] sm:$0xff] %vm11470_vm5, %v2007_v36  ;;  %v1702_v38 = vmax.f32 %v1498_v53, 0.0  ;;  %v7546_v19 = vpack.i.bf16 %v2238_v34, %v2465_v29  ;;  %v7556_v27 = vpack.i.bf16 %v2238_v34, %v2397_v59  ;;  %vm11478_vm5 = vmmov %vm11469_vm3 }
 0x1c0   : > { %v1501_v22 = vadd.f32 %v8970_v55, %v7063_v6  ;;  %v1492_v23 = vpop.f32.mrb[103].mxu0  ;;  %2076 = vst.msk [vmem:[#allocation2 + $0xc8] sm:$0xff] %vm11471_vm10, %v2006_v31  ;;  %v11472_v43 = vand.u32 15, %v9126_v11  ;;  %v1699_v54 = vmax.f32 %v1485_v32, 0.0  ;;  %v1697_v15 = vmax.f32 %v1477_v56, 0.0  ;;  %v8128_v11 = vld [vmem:[#allocation2 + $0x2f] sm:$0xff]  ;;  %vm11480_vm10 = vmmov %vm11469_vm3 }
 0x1c1   : > { %v1700_v3 = vmax.f32 %v1490_v33, 0.0  ;;  %v1493_v58 = vadd.f32 %v8970_v55, %v1492_v23  ;;  %v7333_v21 = vpop.permute.xlu0 %7332  ;;  %v1827_v36 = vmax.f32 %v1698_v50, %v1702_v38  ;;  %v11475_v6 = vand.u32 15, %v9135_v24  ;;  %v9393_v50 = vpop.permute.xlu1 %7342 }
 0x1c2   : > { %vm9375_vm12 = vcmp.ne.s32.totalorder %v11472_v43, 15  ;;  %v1703_v53 = vmax.f32 %v1501_v22, 0.0  ;;  %v7335_v29 = vunpack.i.h.bf16 %v7333_v21  ;;  %v7334_v34 = vunpack.i.l.bf16 %v7333_v21  ;;  %7547 = vrot.lane.b32.xlu0 %v7546_v19, %s8231_s30 }
 0x1c3   : > { %vm9381_vm6 = vcmp.ne.s32.totalorder %v11475_v6, 0  ;;  %v1825_v55 = vmax.f32 %v1696_v37, %v1700_v3  ;;  %v1701_v33 = vmax.f32 %v1493_v58, 0.0  ;;  %7557 = vrot.lane.b32.xlu1 %v7556_v27, %s8232_s15  ;;  %v3260_v32 = vsel %vm11469_vm3, %v8128_v11, %v7270_v20  ;;  %1831 = vst.msk [vmem:[#allocation5 + $0x190] sm:$0xff] %vm11478_vm5, %v1827_v36  ;;  %vm11482_vm5 = vmmov %vm11469_vm3  ;;  %v8130_v27 = vld [vmem:[#allocation2 + $0x38] sm:$0xff] }
 0x1c4   : > { %v7320_v56 = vunpack.i.h.bf16 %v9333_v60  ;;  %v7319_v24 = vunpack.i.l.bf16 %v9333_v60  ;;  %v1828_v59 = vmax.f32 %v1699_v54, %v1703_v53  ;;  %v11479_v37 = vsel %vm8729_vm8, %v8727_v39, 0.0  ;;  %v7066_v23 = vpop.f32.mrb[104].mxu0  ;;  %vm11483_vm8 = vmmov %vm11469_vm3 }
 0x1c5   : > { %v3259_v38 = vsel %vm11480_vm10, %v11479_v37, %v7269_v63  ;;  %v7300_v22 = vunpack.i.h.bf16 %v9264_v2  ;;  %v11481_v20 = vsel %vm8787_vm11, %v8785_v45, 0.0  ;;  %1829 = vst.msk [vmem:[#allocation5 + $0x180] sm:$0xff] %vm11482_vm5, %v1825_v55  ;;  %v1826_v1 = vmax.f32 %v1697_v15, %v1701_v33  ;;  %v7338_v41 = vpop.permute.xlu0 %7337  ;;  %v1505_v21 = vpop.f32.mrb[105].mxu0  ;;  %vm11484_vm11 = vmmov %vm11469_vm3 }
 0x1c6   : > { %v9410_v60 = vsel %vm11469_vm3, %v11481_v20, %v7299_v47  ;;  %v3292_v39 = vsel %vm11396_vm4, %v3259_v38, %v7314_v16  ;;  %v3293_v63 = vsel %vm11396_vm4, %v3260_v32, %v7315_v13  ;;  %1832 = vst.msk [vmem:[#allocation5 + $0x198] sm:$0xff] %vm11483_vm8, %v1828_v59  ;;  %v7340_v3 = vunpack.i.h.bf16 %v7338_v41  ;;  %v8129_v47 = vld [vmem:[#allocation2 + $0x40] sm:$0xff]  ;;  %vm11485_vm10 = vmmov %vm11469_vm3  ;;  %v7067_v16 = vpop.f32.mrb[106].mxu0  ;;  %v2304_v54 = vld [vmem:[#allocation2 + $0xd0] sm:$0xff]  ;;  %v9430_v59 = vpop.permute.xlu1 %7347 }
 0x1c7   : > { %v7339_v58 = vunpack.i.l.bf16 %v7338_v41  ;;  %v7325_v51 = vunpack.i.h.bf16 %v9352_v44  ;;  %v7324_v45 = vunpack.i.l.bf16 %v9352_v44  ;;  %1830 = vst.msk [vmem:[#allocation5 + $0x188] sm:$0xff] %vm11484_vm11, %v1826_v1  ;;  %v3358_v19 = vsel %vm11485_vm10, %v8129_v47, %v7335_v29  ;;  %v1508_v36 = vpop.f32.mrb[107].mxu0  ;;  %v2303_v53 = vld [vmem:[#allocation2 + $0xc8] sm:$0xff]  ;;  %v2333_v20 = vld [vmem:[#allocation2 + $0xb9] sm:$0xff] }
 0x1c8   : > { %v3357_v43 = vsel %vm11469_vm3, %v8130_v27, %v7334_v34  ;;  %v3390_v15 = vsel %vm11396_vm4, %v3358_v19, %v7340_v3  ;;  %v2334_v6 = vld [vmem:[#allocation2 + $0xc1] sm:$0xff]  ;;  %vm11486_vm5 = vcmask 785408   ;;  %v7330_v33 = vunpack.i.h.bf16 %v9359_v7 }
 0x1c9   : > { %v3389_v13 = vsel %vm11396_vm4, %v3357_v43, %v7339_v58  ;;  %v3325_v55 = vsel %vm11486_vm5, %v3292_v39, %v7319_v24  ;;  %vm11487_vm8 = vmmov %vm11486_vm5  ;;  %v7345_v29 = vunpack.i.h.bf16 %v9393_v50  ;;  %v7561_v11 = vpack.i.bf16 %v2304_v54, %v2303_v53  ;;  %v9427_v32 = vld [vmem:[#allocation2 + $0xc7] sm:$0xff] }
 0x1ca   : > { %v3326_v44 = vsel %vm11487_vm8, %v3293_v63, %v7320_v56  ;;  %v7344_v34 = vunpack.i.l.bf16 %v9393_v50  ;;  %vm11488_vm11 = vmmov %vm11486_vm5  ;;  %v2502_v24 = vsel %vm9210_vm0, %v2334_v6, 0.0  ;;  %v2434_v39 = vsel %vm9281_vm9, %v2334_v6, 0.0  ;;  %v9443_v63 = vld [vmem:[%s11365_s2] ss:$0 sm:$0xff] }
 0x1cb   : > { %v3421_v37 = vsel %vm11488_vm11, %v3389_v13, %v7324_v45  ;;  %vm11489_vm10 = vmmov %vm11486_vm5  ;;  %7562 = vrot.lane.b32.xlu0 %v7561_v11, %s8232_s15  ;;  %7567 = vrot.lane.b32.xlu1 %v7561_v11, %s8230_s25  ;;  %v3478_v1 = vpack.c.bf16 %v2502_v24, %v2333_v20  ;;  %v3455_v41 = vpack.c.bf16 %v3326_v44, %v3325_v55  ;;  %v2366_v58 = vsel %vm9375_vm12, %v2334_v6, 0.0 }
 0x1cc   : > { %v3422_v38 = vsel %vm11489_vm10, %v3390_v15, %v7325_v51  ;;  %v1514_v3 = vadd.f32 %v9443_v63, %v7066_v23  ;;  %v1506_v8 = vadd.f32 %v9443_v63, %v1505_v21  ;;  %v2240_v51 = vld [vmem:[#allocation2 + $0xcf] sm:$0xff]  ;;  %v2467_v45 = vsel %vm9227_vm2, %v9427_v32, 0.0  ;;  %vm11490_vm0 = vmmov %vm11469_vm3  ;;  %v7070_v43 = vpop.f32.mrb[108].mxu0  ;;  %v9454_v54 = vpop.permute.xlu0 %7352 }
 0x1cd   : > { %v3456_v56 = vpack.c.bf16 %v3422_v38, %v3421_v37  ;;  %v1907_v47 = vld [vmem:[#allocation5 + $0x190] ss:$2 sm:$0xff]  ;;  %v1971_v19 = vld [vmem:[#allocation5 + $0x191] ss:$2 sm:$0xff]  ;;  %v1517_v27 = vadd.f32 %v9443_v63, %v7067_v16  ;;  %7109 = vmatmul.mubr.msk.bf16.gmra.mrb[20].mxu1 %vm11490_vm0, %v3478_v1  ;;  %v7571_v23 = vpack.i.bf16 %v2434_v39, %v2333_v20  ;;  %v7581_v21 = vpack.i.bf16 %v2366_v58, %v2333_v20  ;;  %v9461_v16 = vpop.permute.xlu1 %7357  ;;  %v1521_v11 = vpop.f32.mrb[109].mxu0  ;;  %vm11491_vm3 = vmmov %vm11490_vm0 }
 0x1ce   : > { %v2271_v13 = vsel %vm9381_vm6, %v9427_v32, 0.0  ;;  %v2009_v15 = vmax.f32 %v1907_v47, %v1971_v19  ;;  %v1905_v53 = vld [vmem:[#allocation5 + $0x180] ss:$2 sm:$0xff]  ;;  %v1969_v6 = vld [vmem:[#allocation5 + $0x181] ss:$2 sm:$0xff]  ;;  %v1509_v55 = vadd.f32 %v9443_v63, %v1508_v36  ;;  %v1530_v44 = vadd.f32 %v9443_v63, %v7070_v43  ;;  %v7071_v1 = vpop.f32.mrb[110].mxu0  ;;  %vm11492_vm5 = vmmov %vm11490_vm0 }
 0x1cf   : > { %3744 = vmatprep.mubr.bf16.mxu0 %v3456_v56  ;;  %v2399_v37 = vsel %vm9287_vm7, %v9427_v32, 0.0  ;;  %v2008_v38 = vmax.f32 %v1905_v53, %v1969_v6  ;;  %v7350_v20 = vunpack.i.h.bf16 %v9430_v59  ;;  %v7349_v24 = vunpack.i.l.bf16 %v9430_v59  ;;  %7572 = vrot.lane.b32.xlu0 %v7571_v23, %s8230_s25  ;;  %v1524_v47 = vpop.f32.mrb[111].mxu0  ;;  %vm11499_vm10 = vmmov %vm11490_vm0 }
 0x1d0   : > { %3745 = vmatmul.mubr.bf16.gmra.mrb[132].mxu0 %v3455_v41  ;;  %v1522_v56 = vadd.f32 %v9443_v63, %v1521_v11  ;;  %7582 = vrot.lane.b32.xlu1 %v7581_v21, %s8231_s30  ;;  %2079 = vst.msk [vmem:[#allocation2 + $0xe0] sm:$0xff] %vm11491_vm3, %v2009_v15  ;;  %v1706_v36 = vmax.f32 %v1514_v3, 0.0  ;;  %v1704_v41 = vmax.f32 %v1506_v8, 0.0  ;;  %v1710_v39 = vmax.f32 %v1530_v44, 0.0  ;;  %v7363_v43 = vpop.permute.xlu0 %7362  ;;  %vm11500_vm3 = vmmov %vm11490_vm0 }
 0x1d1   : > { %v1533_v58 = vadd.f32 %v9443_v63, %v7071_v1  ;;  %2078 = vst.msk [vmem:[#allocation2 + $0xd8] sm:$0xff] %vm11492_vm5, %v2008_v38  ;;  %v1525_v59 = vadd.f32 %v9443_v63, %v1524_v47  ;;  %v7576_v53 = vpack.i.bf16 %v2240_v51, %v2467_v45  ;;  %v7586_v6 = vpack.i.bf16 %v2240_v51, %v2399_v37  ;;  %v7373_v37 = vpop.permute.xlu1 %7372  ;;  %vm11504_vm2 = vmmov %vm11500_vm3 }
 0x1d2   : > { %v1708_v19 = vmax.f32 %v1522_v56, 0.0  ;;  %v11493_v23 = vand.u32 15, %v9132_v9  ;;  %v1707_v3 = vmax.f32 %v1517_v27, 0.0  ;;  %v1705_v8 = vmax.f32 %v1509_v55, 0.0  ;;  %v8132_v9 = vld [vmem:[#allocation2 + $0x3f] sm:$0xff] }
 0x1d3   : > { %v1835_v15 = vmax.f32 %v1706_v36, %v1710_v39  ;;  %v1711_v44 = vmax.f32 %v1533_v58, 0.0  ;;  %v11496_v11 = vand.u32 15, %v9144_v0  ;;  %v1709_v1 = vmax.f32 %v1525_v59, 0.0  ;;  %7577 = vrot.lane.b32.xlu0 %v7576_v53, %s8231_s30  ;;  %v8133_v53 = vld [vmem:[#allocation2 + $0x4f] sm:$0xff] }
 0x1d4   : > { %vm9477_vm8 = vcmp.ne.s32.totalorder %v11493_v23, 15  ;;  %v1833_v56 = vmax.f32 %v1704_v41, %v1708_v19  ;;  %v7365_v45 = vunpack.i.h.bf16 %v7363_v43  ;;  %v7364_v51 = vunpack.i.l.bf16 %v7363_v43  ;;  %7587 = vrot.lane.b32.xlu1 %v7586_v6, %s8232_s15  ;;  %v7368_v58 = vpop.permute.xlu0 %7367  ;;  %v8135_v23 = vld [vmem:[#allocation2 + $0x48] sm:$0xff] }
 0x1d5   : > { %vm9483_vm11 = vcmp.ne.s32.totalorder %v11496_v11, 0  ;;  %v3262_v27 = vsel %vm11499_vm10, %v8132_v9, %v7300_v22  ;;  %v3294_v0 = vsel %vm11396_vm4, %v9410_v60, %v7344_v34  ;;  %1839 = vst.msk [vmem:[#allocation5 + $0x1b0] sm:$0xff] %vm11490_vm0, %v1835_v15  ;;  %v1836_v55 = vmax.f32 %v1707_v3, %v1711_v44  ;;  %v7074_v22 = vpop.f32.mrb[112].mxu0  ;;  %vm11502_vm10 = vmmov %vm11490_vm0 }
 0x1d6   : > { %v1727_v36 = vmax.f32 %v9241_v28, 0.0  ;;  %v7329_v41 = vunpack.i.l.bf16 %v9359_v7  ;;  %v3295_v39 = vsel %vm11396_vm4, %v3262_v27, %v7345_v29  ;;  %1837 = vst.msk [vmem:[#allocation5 + $0x1a0] sm:$0xff] %vm11500_vm3, %v1833_v56  ;;  %v1834_v2 = vmax.f32 %v1705_v8, %v1709_v1  ;;  %v1537_v59 = vpop.f32.mrb[113].mxu0  ;;  %vm11505_vm4 = vmmov %vm11504_vm2  ;;  %v8134_v29 = vld [vmem:[#allocation2 + $0x50] sm:$0xff] }
 0x1d7   : > { %vm11501_vm5 = vcmask 785408   ;;  %1840 = vst.msk [vmem:[#allocation5 + $0x1b8] sm:$0xff] %vm11502_vm10, %v1836_v55  ;;  %v7374_v60 = vunpack.i.l.bf16 %v7373_v37  ;;  %v7370_v34 = vunpack.i.h.bf16 %v7368_v58  ;;  %v7369_v19 = vunpack.i.l.bf16 %v7368_v58  ;;  %vm11506_vm3 = vmmov %vm11504_vm2  ;;  %v7075_v8 = vpop.f32.mrb[114].mxu0  ;;  %v2306_v15 = vld [vmem:[#allocation2 + $0xe0] sm:$0xff] }
 0x1d8   : > { %v3327_v47 = vsel %vm11501_vm5, %v3294_v0, %v7349_v24  ;;  %vm11503_vm0 = vmmov %vm11501_vm5  ;;  %v3264_v50 = vsel %vm11504_vm2, %v8133_v53, %v7330_v33  ;;  %1838 = vst.msk [vmem:[#allocation5 + $0x1a8] sm:$0xff] %vm11505_vm4, %v1834_v2  ;;  %v3360_v6 = vsel %vm11506_vm3, %v8134_v29, %v7365_v45  ;;  %v7375_v3 = vunpack.i.h.bf16 %v7373_v37  ;;  %v1540_v33 = vpop.f32.mrb[115].mxu0  ;;  %v2305_v56 = vld [vmem:[#allocation2 + $0xd8] sm:$0xff] }
 0x1d9   : > { %v3328_v43 = vsel %vm11503_vm0, %v3295_v39, %v7350_v20  ;;  %vm11507_vm5 = vmmov %vm11504_vm2  ;;  %v7355_v44 = vunpack.i.h.bf16 %v9454_v54  ;;  %v7354_v20 = vunpack.i.l.bf16 %v9454_v54  ;;  %vm11508_vm10 = vcmask 523264   ;;  %v2336_v1 = vld [vmem:[#allocation2 + $0xd1] sm:$0xff]  ;;  %v2335_v39 = vld [vmem:[#allocation2 + $0xc9] sm:$0xff] }
 0x1da   : > { %v3359_v24 = vsel %vm11507_vm5, %v8135_v23, %v7364_v51  ;;  %vm11509_vm0 = vmmov %vm11508_vm10  ;;  %v11510_v45 = vsel %vm8840_vm13, %v8838_v4, 0.0  ;;  %v7591_v37 = vpack.i.bf16 %v2306_v15, %v2305_v56  ;;  %v3458_v9 = vpack.c.bf16 %v3328_v43, %v3327_v47  ;;  %v9521_v27 = vld [vmem:[#allocation2 + $0xd7] sm:$0xff] }
 0x1db   : > { %v3391_v11 = vsel %vm11508_vm10, %v3359_v24, %v7369_v19  ;;  %v3392_v7 = vsel %vm11509_vm0, %v3360_v6, %v7370_v34  ;;  %vm11511_vm4 = vmmov %vm11504_vm2  ;;  %vm11513_vm3 = vcmask 785408   ;;  %v2504_v2 = vsel %vm9281_vm9, %v2336_v1, 0.0  ;;  %v2242_v19 = vld [vmem:[#allocation2 + $0xdf] sm:$0xff] }
 0x1dc   : > { %v3263_v51 = vsel %vm11511_vm4, %v11510_v45, %v7329_v41  ;;  %vm11512_vm2 = vmmov %vm11509_vm0  ;;  %v3423_v54 = vsel %vm11513_vm3, %v3391_v11, %v7354_v20  ;;  %7592 = vrot.lane.b32.xlu0 %v7591_v37, %s8232_s15  ;;  %7597 = vrot.lane.b32.xlu1 %v7591_v37, %s8230_s25  ;;  %v3481_v41 = vpack.c.bf16 %v2504_v2, %v2335_v39  ;;  %v2436_v58 = vsel %vm9375_vm12, %v2336_v1, 0.0  ;;  %v7078_v6 = vpop.f32.mrb[116].mxu0 }
 0x1dd   : > { %v9524_v0 = vsel %vm11512_vm2, %v3263_v51, %v7374_v60  ;;  %vm11514_vm5 = vmmov %vm11513_vm3  ;;  %v1546_v47 = vadd.f32 %v9443_v63, %v7074_v22  ;;  %v7378_v60 = vpop.permute.xlu1 %7377  ;;  %v1538_v34 = vadd.f32 %v9443_v63, %v1537_v59  ;;  %v2368_v10 = vsel %vm9477_vm8, %v2336_v1, 0.0  ;;  %v9546_v22 = vpop.permute.xlu0 %7382 }
 0x1de   : > { %v3424_v55 = vsel %vm11514_vm5, %v3392_v7, %v7355_v44  ;;  %vm11515_vm10 = vmmov %vm11509_vm0  ;;  %v2469_v43 = vsel %vm9287_vm7, %v9521_v27, 0.0  ;;  %v1911_v53 = vld [vmem:[#allocation5 + $0x1b0] ss:$2 sm:$0xff]  ;;  %v1549_v29 = vadd.f32 %v9443_v63, %v7075_v8  ;;  %v7601_v23 = vpack.i.bf16 %v2436_v58, %v2335_v39  ;;  %v1553_v8 = vpop.f32.mrb[117].mxu0 }
 0x1df   : > { %v9531_v5 = vsel %vm11515_vm10, %v3264_v50, %v7375_v3  ;;  %v3459_v4 = vpack.c.bf16 %v3424_v55, %v3423_v54  ;;  %v1975_v50 = vld [vmem:[#allocation5 + $0x1b1] ss:$2 sm:$0xff]  ;;  %vm11516_vm13 = vmmov %vm11511_vm4  ;;  %v7611_v59 = vpack.i.bf16 %v2368_v10, %v2335_v39  ;;  %v2273_v24 = vsel %vm9483_vm11, %v9521_v27, 0.0  ;;  %v1909_v15 = vld [vmem:[#allocation5 + $0x1a0] ss:$2 sm:$0xff]  ;;  %v7079_v37 = vpop.f32.mrb[118].mxu0 }
 0x1e0   : > { %7112 = vmatprep.mubr.msk.bf16.mxu1 %vm11516_vm13, %v3481_v41  ;;  %v2011_v3 = vmax.f32 %v1911_v53, %v1975_v50  ;;  %v1973_v44 = vld [vmem:[#allocation5 + $0x1a1] ss:$2 sm:$0xff]  ;;  %v1541_v20 = vadd.f32 %v9443_v63, %v1540_v33  ;;  %v1562_v11 = vadd.f32 %v9443_v63, %v7078_v6  ;;  %v2401_v7 = vsel %vm9381_vm6, %v9521_v27, 0.0  ;;  %7602 = vrot.lane.b32.xlu0 %v7601_v23, %s8230_s25  ;;  %vm11517_vm9 = vmmov %vm11511_vm4  ;;  %v1556_v2 = vpop.f32.mrb[119].mxu0 }
 0x1e1   : > { %3752 = vmatprep.mubr.bf16.mxu0 %v3459_v4  ;;  %v2010_v56 = vmax.f32 %v1909_v15, %v1973_v44  ;;  %v7380_v1 = vunpack.i.h.bf16 %v7378_v60  ;;  %v7379_v45 = vunpack.i.l.bf16 %v7378_v60  ;;  %v1554_v51 = vadd.f32 %v9443_v63, %v1553_v8  ;;  %7612 = vrot.lane.b32.xlu1 %v7611_v59, %s8231_s30  ;;  %v9560_v55 = vpop.permute.xlu1 %7387  ;;  %vm11518_vm0 = vmmov %vm11511_vm4  ;;  %v7393_v58 = vpop.permute.xlu0 %7392 }
 0x1e2   : > { %3753 = vmatmul.mubr.bf16.gmra.mrb[136].mxu0 %v3458_v9  ;;  %2081 = vst.msk [vmem:[#allocation2 + $0xf0] sm:$0xff] %vm11517_vm9, %v2011_v3  ;;  %v1714_v33 = vmax.f32 %v1546_v47, 0.0  ;;  %v1712_v54 = vmax.f32 %v1538_v34, 0.0  ;;  %v1718_v9 = vmax.f32 %v1562_v11, 0.0  ;;  %v1565_v39 = vadd.f32 %v9443_v63, %v7079_v37  ;;  %vm11522_vm2 = vmmov %vm11518_vm0 }
 0x1e3   : > { %2080 = vst.msk [vmem:[#allocation2 + $0xe8] sm:$0xff] %vm11518_vm0, %v2010_v56  ;;  %v1716_v4 = vmax.f32 %v1554_v51, 0.0  ;;  %v1557_v41 = vadd.f32 %v9443_v63, %v1556_v2  ;;  %v7606_v60 = vpack.i.bf16 %v2242_v19, %v2469_v43  ;;  %v7616_v10 = vpack.i.bf16 %v2242_v19, %v2401_v7  ;;  %vm11523_vm5 = vmmov %vm11513_vm3 }
 0x1e4   : > { %v11519_v53 = vand.u32 15, %v9141_v49  ;;  %v1715_v47 = vmax.f32 %v1549_v29, 0.0  ;;  %v1713_v34 = vmax.f32 %v1541_v20, 0.0  ;;  %v1843_v6 = vmax.f32 %v1714_v33, %v1718_v9  ;;  %vm11524_vm10 = vmmov %vm11518_vm0  ;;  %v7082_v8 = vpop.f32.mrb[120].mxu0  ;;  %v8136_v33 = vld [vmem:[#allocation2 + $0x60] sm:$0xff]  ;;  %v8137_v9 = vld [vmem:[#allocation2 + $0x58] sm:$0xff] }
 0x1e5   : > { %v1719_v23 = vmax.f32 %v1565_v39, 0.0  ;;  %v1841_v59 = vmax.f32 %v1712_v54, %v1716_v4  ;;  %v1717_v3 = vmax.f32 %v1557_v41, 0.0  ;;  %v7395_v15 = vunpack.i.h.bf16 %v7393_v58  ;;  %7607 = vrot.lane.b32.xlu0 %v7606_v60, %s8231_s30  ;;  %7617 = vrot.lane.b32.xlu1 %v7616_v10, %s8232_s15  ;;  %v7398_v7 = vpop.permute.xlu0 %7397  ;;  %vm11525_vm13 = vmmov %vm11518_vm0  ;;  %v1569_v37 = vpop.f32.mrb[121].mxu0 }
 0x1e6   : > { %vm9567_vm4 = vcmp.ne.s32.totalorder %v11519_v53, 15  ;;  %v7394_v44 = vunpack.i.l.bf16 %v7393_v58  ;;  %1847 = vst.msk [vmem:[#allocation5 + $0x1d0] sm:$0xff] %vm11522_vm2, %v1843_v6  ;;  %v1725_v49 = vmax.f32 %v9314_v61, 0.0  ;;  %v9577_v43 = vsel %vm11513_vm3, %v9524_v0, %v7379_v45  ;;  %v9593_v45 = vpop.permute.xlu1 %7402  ;;  %vm11526_vm9 = vmmov %vm11518_vm0 }
 0x1e7   : > { %v1844_v19 = vmax.f32 %v1715_v47, %v1719_v23  ;;  %v9581_v29 = vsel %vm11523_vm5, %v9531_v5, %v7380_v1  ;;  %v7385_v20 = vunpack.i.h.bf16 %v9546_v22  ;;  %1845 = vst.msk [vmem:[#allocation5 + $0x1c0] sm:$0xff] %vm11524_vm10, %v1841_v59  ;;  %v1842_v11 = vmax.f32 %v1713_v34, %v1717_v3  ;;  %vm11527_vm2 = vmmov %vm11518_vm0 }
 0x1e8   : > { %v9586_v56 = vadd.s32 232, %v8601_v52  ;;  %v9589_v61 = vadd.s32 240, %v8601_v52  ;;  %v7384_v0 = vunpack.i.l.bf16 %v9546_v22  ;;  %v1578_v5 = vadd.f32 %v9443_v63, %v7082_v8  ;;  %v7083_v22 = vpop.f32.mrb[122].mxu0 }
 0x1e9   : > { %1848 = vst.msk [vmem:[#allocation5 + $0x1d8] sm:$0xff] %vm11525_vm13, %v1844_v19  ;;  %v7400_v1 = vunpack.i.h.bf16 %v7398_v7  ;;  %v7399_v51 = vunpack.i.l.bf16 %v7398_v7  ;;  %v3362_v54 = vsel %vm11518_vm0, %v8136_v33, %v7395_v15  ;;  %v3361_v39 = vsel %vm11527_vm2, %v8137_v9, %v7394_v44  ;;  %v9600_v4 = vld [vmem:[#allocation2 + $0xf0] sm:$0xff]  ;;  %v1572_v47 = vpop.f32.mrb[123].mxu0  ;;  %vm11538_vm2 = vmmov %vm11518_vm0 }
 0x1ea   : > { %1846 = vst.msk [vmem:[#allocation5 + $0x1c8] sm:$0xff] %vm11526_vm9, %v1842_v11  ;;  %v1570_v2 = vadd.f32 %v9443_v63, %v1569_v37  ;;  %v3461_v41 = vpack.c.bf16 %v9581_v29, %v9577_v43  ;;  %v1722_v58 = vmax.f32 %v1578_v5, 0.0  ;;  %vm11528_vm3 = vcmask 523264   ;;  %v9607_v34 = vld [vmem:[#allocation2 + $0xe8] sm:$0xff]  ;;  %v2337_v5 = vld [vmem:[#allocation2 + $0xd9] sm:$0xff]  ;;  %vm11534_vm9 = vmmov %vm11518_vm0 }
 0x1eb   : > { %v3393_v60 = vsel %vm11528_vm3, %v3361_v39, %v7399_v51  ;;  %vm11529_vm5 = vmmov %vm11528_vm3  ;;  %v1581_v53 = vadd.f32 %v9443_v63, %v7083_v22  ;;  %v2338_v6 = vld [vmem:[#allocation2 + $0xe1] sm:$0xff]  ;;  %v1573_v59 = vadd.f32 %v9443_v63, %v1572_v47  ;;  %v7621_v3 = vpack.i.bf16 %v9600_v4, %v9607_v34 }
 0x1ec   : > { %v3394_v10 = vsel %vm11529_vm5, %v3362_v54, %v7400_v1  ;;  %v1720_v23 = vmax.f32 %v1570_v2, 0.0  ;;  %v11530_v15 = vmax.f32 %v9151_v35, 0.0  ;;  %vm11531_vm10 = vcmask 785408   ;;  %v9622_v35 = vld [vmem:[#allocation2 + $0xe7] sm:$0xff]  ;;  %v9634_v9 = vpop.permute.xlu0 %7412  ;;  %vm11539_vm3 = vmmov %vm11518_vm0 }
 0x1ed   : > { %v1723_v19 = vmax.f32 %v1581_v53, 0.0  ;;  %v3425_v43 = vsel %vm11531_vm10, %v3393_v60, %v7384_v0  ;;  %vm11532_vm13 = vmmov %vm11531_vm10  ;;  %v11533_v11 = vmax.f32 %v9219_v57, 0.0  ;;  %v1721_v7 = vmax.f32 %v1573_v59, 0.0  ;;  %7622 = vrot.lane.b32.xlu0 %v7621_v3, %s8232_s15  ;;  %7627 = vrot.lane.b32.xlu1 %v7621_v3, %s8230_s25  ;;  %v9625_v0 = vpop.permute.xlu1 %7407 }
 0x1ee   : > { %v1851_v44 = vmax.f32 %v1722_v58, %v11530_v15  ;;  %v3426_v29 = vsel %vm11532_vm13, %v3394_v10, %v7385_v20  ;;  %v2506_v1 = vsel %vm9375_vm12, %v2338_v6, 0.0  ;;  %v2438_v51 = vsel %vm9477_vm8, %v2338_v6, 0.0  ;;  %vm11540_vm5 = vmmov %vm11518_vm0 }
 0x1ef   : > { %v1849_v8 = vmax.f32 %v1720_v23, %v11533_v11  ;;  %v3462_v63 = vpack.c.bf16 %v3426_v29, %v3425_v43  ;;  %v1852_v57 = vmax.f32 %v1723_v19, %v1727_v36  ;;  %v3484_v20 = vpack.c.bf16 %v2506_v1, %v2337_v5  ;;  %vm11541_vm10 = vmmov %vm11518_vm0 }
 0x1f0   : > { %1855 = vst.msk [vmem:[#allocation5 + $0x1f0] sm:$0xff] %vm11534_vm9, %v1851_v44  ;;  %v2370_v37 = vsel %vm9567_vm4, %v2338_v6, 0.0  ;;  %v1915_v33 = vld [vmem:[#allocation5 + $0x1d0] ss:$2 sm:$0xff]  ;;  %v1979_v54 = vld [vmem:[#allocation5 + $0x1d1] ss:$2 sm:$0xff]  ;;  %v1850_v30 = vmax.f32 %v1721_v7, %v1725_v49  ;;  %v7631_v39 = vpack.i.bf16 %v2438_v51, %v2337_v5  ;;  %v7359_v6 = vunpack.i.l.bf16 %v9461_v16  ;;  %vm11542_vm13 = vmmov %vm11518_vm0  ;;  %v7423_v44 = vpop.permute.xlu0 %7422 }
 0x1f1   : > { %1853 = vst.msk [vmem:[#allocation5 + $0x1e0] sm:$0xff] %vm11518_vm0, %v1849_v8  ;;  %3760 = vmatprep.mubr.bf16.mxu0 %v3462_v63  ;;  %v7641_v2 = vpack.i.bf16 %v2370_v37, %v2337_v5  ;;  %v11535_v28 = vand.u32 15, %v9154_v12  ;;  %v2013_v22 = vmax.f32 %v1915_v33, %v1979_v54  ;;  %v1913_v58 = vld [vmem:[#allocation5 + $0x1c0] ss:$2 sm:$0xff]  ;;  %v1977_v60 = vld [vmem:[#allocation5 + $0x1c1] ss:$2 sm:$0xff]  ;;  %7113 = vmatmul.mubr.msk.bf16.gmra.mrb[24].mxu1 %vm11539_vm3, %v3484_v20  ;;  %v7405_v23 = vunpack.i.h.bf16 %v9593_v45  ;;  %v9660_v59 = vpop.permute.xlu1 %7417 }
 0x1f2   : > { %1856 = vst.msk [vmem:[#allocation5 + $0x1f8] sm:$0xff] %vm11538_vm2, %v1852_v57  ;;  %3761 = vmatmul.mubr.bf16.gmra.mrb[140].mxu0 %v3461_v41  ;;  %v9644_v49 = vld [vmem:[#allocation2 + $0xef] sm:$0xff]  ;;  %v2471_v10 = vsel %vm9381_vm6, %v9622_v35, 0.0  ;;  %v2012_v53 = vmax.f32 %v1913_v58, %v1977_v60  ;;  %7632 = vrot.lane.b32.xlu0 %v7631_v39, %s8230_s25  ;;  %v2403_v12 = vsel %vm9483_vm11, %v9622_v35, 0.0  ;;  %v2148_v47 = vand.u32 15, %v9586_v56  ;;  %vm11546_vm2 = vmmov %vm11518_vm0 }
 0x1f3   : > { %vm9638_vm12 = vcmp.ne.s32.totalorder %v11535_v28, 0  ;;  %1854 = vst.msk [vmem:[#allocation5 + $0x1e8] sm:$0xff] %vm11540_vm5, %v1850_v30  ;;  %7642 = vrot.lane.b32.xlu1 %v7641_v2, %s8231_s30  ;;  %v7360_v41 = vunpack.i.h.bf16 %v9461_v16  ;;  %v2149_v3 = vand.u32 15, %v9589_v61  ;;  %v7404_v15 = vunpack.i.l.bf16 %v9593_v45  ;;  %v8138_v45 = vld [vmem:[#allocation2 + $0x5f] sm:$0xff]  ;;  %v8139_v60 = vld [vmem:[#allocation2 + $0x70] sm:$0xff] }
 0x1f4   : > { %2083 = vst.msk [vmem:[#allocation2 + $0x100] sm:$0xff] %vm11541_vm10, %v2013_v22  ;;  %v7636_v19 = vpack.i.bf16 %v9644_v49, %v2471_v10  ;;  %v7646_v56 = vpack.i.bf16 %v9644_v49, %v2403_v12  ;;  %v2275_v16 = vsel %vm9638_vm12, %v9622_v35, 0.0  ;;  %v7425_v43 = vunpack.i.h.bf16 %v7423_v44  ;;  %v7428_v37 = vpop.permute.xlu0 %7427 }
 0x1f5   : > { %2082 = vst.msk [vmem:[#allocation2 + $0xf8] sm:$0xff] %vm11542_vm13, %v2012_v53  ;;  %v7424_v29 = vunpack.i.l.bf16 %v7423_v44  ;;  %vm9672_vm9 = vcmp.ne.s32.totalorder %v2148_v47, 15  ;;  %v3266_v11 = vsel %vm11518_vm0, %v8138_v45, %v7360_v41  ;;  %v11545_v8 = vsel %vm8886_vm15, %v8884_v25, 0.0  ;;  %v9692_v2 = vpop.permute.xlu1 %7432  ;;  %vm11551_vm15 = vmmov %vm11518_vm0  ;;  %v8140_v53 = vld [vmem:[#allocation2 + $0x68] sm:$0xff] }
 0x1f6   : > { %7637 = vrot.lane.b32.xlu0 %v7636_v19, %s8231_s30  ;;  %v3265_v7 = vsel %vm11546_vm2, %v11545_v8, %v7359_v6  ;;  %v7410_v63 = vunpack.i.h.bf16 %v9625_v0  ;;  %v7409_v5 = vunpack.i.l.bf16 %v9625_v0  ;;  %vm11547_vm3 = vcmask 523264   ;;  %vm11552_vm13 = vmmov %vm11518_vm0 }
 0x1f7   : > { %7647 = vrot.lane.b32.xlu1 %v7646_v56, %s8232_s15  ;;  %v3298_v1 = vsel %vm11547_vm3, %v3265_v7, %v7404_v15  ;;  %vm11548_vm5 = vmmov %vm11547_vm3  ;;  %v2118_v33 = vadd.s32 248, %v8601_v52  ;;  %vm9687_vm10 = vcmp.ne.s32.totalorder %v2149_v3, 0  ;;  %v7415_v39 = vunpack.i.h.bf16 %v9634_v9  ;;  %v2339_v56 = vld [vmem:[#allocation2 + $0xe9] sm:$0xff] }
 0x1f8   : > { %v3299_v57 = vsel %vm11548_vm5, %v3266_v11, %v7405_v23  ;;  %v7430_v0 = vunpack.i.h.bf16 %v7428_v37  ;;  %v7429_v28 = vunpack.i.l.bf16 %v7428_v37  ;;  %v7414_v58 = vunpack.i.l.bf16 %v9634_v9  ;;  %vm11553_vm2 = vmmov %vm11547_vm3 }
 0x1f9   : > { %v1919_v20 = vld [vmem:[#allocation5 + $0x1f0] ss:$2 sm:$0xff]  ;;  %v1983_v51 = vld [vmem:[#allocation5 + $0x1f1] ss:$2 sm:$0xff]  ;;  %v3364_v10 = vsel %vm11551_vm15, %v8139_v60, %v7425_v43  ;;  %v3363_v12 = vsel %vm11552_vm13, %v8140_v53, %v7424_v29  ;;  %vm11554_vm3 = vmmov %vm11553_vm2  ;;  %vm11555_vm5 = vcmask 785408  }
 0x1fa   : > { %v2015_v25 = vmax.f32 %v1919_v20, %v1983_v51  ;;  %v1917_v26 = vld [vmem:[#allocation5 + $0x1e0] ss:$2 sm:$0xff]  ;;  %v1981_v30 = vld [vmem:[#allocation5 + $0x1e1] ss:$2 sm:$0xff]  ;;  %v3395_v41 = vsel %vm11553_vm2, %v3363_v12, %v7429_v28  ;;  %v3396_v6 = vsel %vm11554_vm3, %v3364_v10, %v7430_v0  ;;  %v3331_v15 = vsel %vm11555_vm5, %v3298_v1, %v7409_v5  ;;  %vm11556_vm6 = vmmov %vm11555_vm5 }
 0x1fb   : > { %v2014_v22 = vmax.f32 %v1917_v26, %v1981_v30  ;;  %v9697_v47 = vld [vmem:[#allocation2 + $0x100] sm:$0xff]  ;;  %v3332_v9 = vsel %vm11556_vm6, %v3299_v57, %v7410_v63  ;;  %vm11557_vm15 = vmmov %vm11518_vm0  ;;  %v9725_v57 = vpop.permute.xlu1 %7437  ;;  %v2150_v51 = vand.u32 15, %v2118_v33  ;;  %v7390_v33 = vunpack.i.h.bf16 %v9560_v55 }
 0x1fc   : > { %2085 = vst.msk [vmem:[#allocation2 + $0x110] sm:$0xff] %vm11518_vm0, %v2015_v25  ;;  %v9702_v23 = vld [vmem:[#allocation2 + $0xf8] sm:$0xff]  ;;  %vm11558_vm13 = vmmov %vm11555_vm5  ;;  %v3464_v20 = vpack.c.bf16 %v3332_v9, %v3331_v15  ;;  %v9732_v25 = vpop.permute.xlu0 %7442  ;;  %v7389_v28 = vunpack.i.l.bf16 %v9560_v55  ;;  %v7435_v12 = vunpack.i.h.bf16 %v9692_v2 }
 0x1fd   : > { %v2340_v3 = vld [vmem:[#allocation2 + $0xf1] sm:$0xff]  ;;  %2084 = vst.msk [vmem:[#allocation2 + $0x108] sm:$0xff] %vm11557_vm15, %v2014_v22  ;;  %v7651_v19 = vpack.i.bf16 %v9697_v47, %v9702_v23  ;;  %v3427_v45 = vsel %vm11558_vm13, %v3395_v41, %v7414_v58  ;;  %vm11559_vm0 = vmmov %vm11555_vm5  ;;  %v9720_v1 = vld [vmem:[#allocation2 + $0xff] sm:$0xff]  ;;  %v7434_v41 = vunpack.i.l.bf16 %v9692_v2 }
 0x1fe   : > { %v9706_v44 = vld [vmem:[#allocation2 + $0xf7] sm:$0xff]  ;;  %v2508_v43 = vsel %vm9477_vm8, %v2340_v3, 0.0  ;;  %v2372_v29 = vsel %vm9672_vm9, %v2340_v3, 0.0  ;;  %v3428_v7 = vsel %vm11559_vm0, %v3396_v6, %v7415_v39  ;;  %v2440_v63 = vsel %vm9567_vm4, %v2340_v3, 0.0  ;;  %vm11560_vm6 = vmmov %vm11557_vm15 }
 0x1ff   : > { %v3487_v11 = vpack.c.bf16 %v2508_v43, %v2339_v56  ;;  %v7666_v8 = vpack.i.bf16 %v2372_v29, %v2339_v56  ;;  %7652 = vrot.lane.b32.xlu0 %v7651_v19, %s8232_s15  ;;  %v3465_v5 = vpack.c.bf16 %v3428_v7, %v3427_v45  ;;  %v2405_v21 = vsel %vm9638_vm12, %v9706_v44, 0.0  ;;  %v9743_v22 = vpop.permute.xlu1 %7447  ;;  %v2341_v15 = vld [vmem:[#allocation2 + $0xf9] sm:$0xff]  ;;  %vm11563_vm2 = vmmov %vm11560_vm6 }
 0x200   : > { %v2277_v37 = vsel %vm9687_vm10, %v9706_v44, 0.0  ;;  %v7656_v26 = vpack.i.bf16 %v2440_v63, %v2339_v56  ;;  %v7671_v30 = vpack.i.bf16 %v9720_v1, %v2405_v21  ;;  %v2473_v39 = vsel %vm9483_vm11, %v9706_v44, 0.0  ;;  %v7453_v55 = vpop.permute.xlu0 %7452  ;;  %v11565_v63 = vld [vmem:[#allocation18_spill] sm:$0xff]  ;;  %vm11568_vm5 = vmmov %vm11554_vm3 }
 0x201   : > { %7116 = vmatprep.mubr.msk.bf16.mxu1 %vm11560_vm6, %v3487_v11  ;;  %7667 = vrot.lane.b32.xlu1 %v7666_v8, %s8231_s30  ;;  %vm9751_vm8 = vcmp.ne.s32.totalorder %v2150_v51, 15  ;;  %v7661_v6 = vpack.i.bf16 %v9720_v1, %v2473_v39  ;;  %v7455_v29 = vunpack.i.h.bf16 %v7453_v55  ;;  %v7454_v45 = vunpack.i.l.bf16 %v7453_v55  ;;  %v8141_v8 = vld [vmem:[#allocation2 + $0x6f] sm:$0xff]  ;;  %vm11569_vm15 = vmmov %vm11563_vm2 }
 0x202   : > { %3768 = vmatprep.mubr.bf16.mxu0 %v3465_v5  ;;  %v3268_v7 = vsel %vm11563_vm2, %v8141_v8, %v7390_v33  ;;  %v11566_v5 = vsel %vm8934_vm1, %v11565_v63, 0.0  ;;  %v7439_v51 = vunpack.i.l.bf16 %v9725_v57  ;;  %vm11570_vm1 = vmmov %vm11563_vm2 }
 0x203   : > { %3769 = vmatmul.mubr.bf16.gmra.mrb[144].mxu0 %v3464_v20  ;;  %7657 = vrot.lane.b32.xlu0 %v7656_v26, %s8230_s25  ;;  %v9739_v0 = vld [vmem:[#allocation2 + $0x111] sm:$0xff]  ;;  %v7440_v20 = vunpack.i.h.bf16 %v9725_v57  ;;  %v3301_v39 = vsel %vm11568_vm5, %v3268_v7, %v7435_v12  ;;  %v7444_v12 = vunpack.i.l.bf16 %v9732_v25  ;;  %vm11571_vm13 = vmmov %vm11570_vm1 }
 0x204   : > { %v2342_v58 = vld [vmem:[#allocation2 + $0x101] sm:$0xff]  ;;  %v9746_v60 = vld [vmem:[#allocation2 + $0x109] sm:$0xff]  ;;  %v2512_v10 = vsel %vm9672_vm9, %v9739_v0, 0.0  ;;  %v7458_v33 = vpop.permute.xlu0 %7457  ;;  %vm11572_vm0 = vmmov %vm11570_vm1 }
 0x205   : > { %7672 = vrot.lane.b32.xlu1 %v7671_v30, %s8232_s15  ;;  %v2510_v3 = vsel %vm9567_vm4, %v2342_v58, 0.0  ;;  %v3493_v9 = vpack.c.bf16 %v2512_v10, %v9746_v60  ;;  %v9761_v56 = vld [vmem:[#allocation2 + $0x108] sm:$0xff]  ;;  %v9763_v43 = vld [vmem:[#allocation2 + $0x110] sm:$0xff]  ;;  %v2374_v2 = vsel %vm9751_vm8, %v2342_v58, 0.0  ;;  %vm11567_vm4 = vmmov %vm11563_vm2  ;;  %v7445_v10 = vunpack.i.h.bf16 %v9732_v25 }
 0x206   : > { %v3490_v11 = vpack.c.bf16 %v2510_v3, %v2341_v15  ;;  %v3267_v21 = vsel %vm11567_vm4, %v11566_v5, %v7389_v28  ;;  %v2375_v26 = vld [vmem:[#allocation2 + $0x107] sm:$0xff]  ;;  %v7676_v55 = vpack.i.bf16 %v9763_v43, %v9761_v56  ;;  %v9783_v28 = vpop.permute.xlu1 %7462  ;;  %v7460_v57 = vunpack.i.h.bf16 %v7458_v33  ;;  %v2376_v50 = vld [vmem:[#allocation2 + $0x10f] sm:$0xff]  ;;  %vm11573_vm6 = vmmov %vm11554_vm3 }
 0x207   : > { %7662 = vrot.lane.b32.xlu0 %v7661_v6, %s8231_s30  ;;  %v3300_v30 = vsel %vm11554_vm3, %v3267_v21, %v7434_v41  ;;  %v7459_v6 = vunpack.i.l.bf16 %v7458_v33  ;;  %v2442_v41 = vsel %vm9672_vm9, %v2342_v58, 0.0  ;;  %v8142_v3 = vld [vmem:[#allocation2 + $0x80] sm:$0xff]  ;;  %vm11574_vm2 = vmmov %vm11554_vm3  ;;  %vm11575_vm9 = vcmask 785408  }
 0x208   : > { %7117 = vmatmul.mubr.msk.bf16.gmra.mrb[28].mxu1 %vm11569_vm15, %v3490_v11  ;;  %v3366_v8 = vsel %vm11571_vm13, %v8142_v3, %v7455_v29  ;;  %v8143_v11 = vld [vmem:[#allocation2 + $0x78] sm:$0xff]  ;;  %v3333_v61 = vsel %vm11575_vm9, %v3300_v30, %v7439_v51  ;;  %vm11576_vm4 = vmmov %vm11575_vm9  ;;  %v7681_v58 = vpack.i.bf16 %v2442_v41, %v2341_v15  ;;  %v2475_v33 = vsel %vm9638_vm12, %v2375_v26, 0.0  ;;  %v2482_v30 = vld [vmem:[#allocation2 + $0x121] sm:$0xff] }
 0x209   : > { %7697 = vrot.lane.b32.xlu1 %v7651_v19, %s8230_s25  ;;  %7120 = vmatprep.mubr.msk.bf16.mxu1 %vm11570_vm1, %v3493_v9  ;;  %v7711_v19 = vpack.i.bf16 %v2374_v2, %v2341_v15  ;;  %v3365_v7 = vsel %vm11572_vm0, %v8143_v11, %v7454_v45  ;;  %v2407_v9 = vsel %vm9687_vm10, %v2375_v26, 0.0  ;;  %v3398_v2 = vsel %vm11574_vm2, %v3366_v8, %v7460_v57  ;;  %vm11577_vm3 = vmmov %vm11576_vm4  ;;  %v2481_v51 = vld [vmem:[#allocation2 + $0x119] sm:$0xff] }
 0x20a   : > { %v3397_v63 = vsel %vm11573_vm6, %v3365_v7, %v7459_v6  ;;  %v3334_v25 = vsel %vm11576_vm4, %v3301_v39, %v7440_v20  ;;  %vm11578_vm5 = vmmov %vm11577_vm3  ;;  %v7716_v5 = vpack.i.bf16 %v2376_v50, %v2407_v9  ;;  %v7468_v57 = vpop.permute.xlu1 %7467  ;;  %v7686_v15 = vpack.i.bf16 %v2376_v50, %v2475_v33  ;;  %v2445_v6 = vld [vmem:[#allocation2 + $0x117] sm:$0xff]  ;;  %v2480_v9 = vld [vmem:[#allocation2 + $0x120] sm:$0xff] }
 0x20b   : > { %7677 = vrot.lane.b32.xlu0 %v7676_v55, %s8232_s15  ;;  %v3429_v29 = vsel %vm11577_vm3, %v3397_v63, %v7444_v12  ;;  %v3430_v45 = vsel %vm11578_vm5, %v3398_v2, %v7445_v10  ;;  %v3467_v55 = vpack.c.bf16 %v3334_v25, %v3333_v61  ;;  %v2514_v39 = vsel %vm9751_vm8, %v2482_v30, 0.0  ;;  %vm11579_vm15 = vmmov %vm11572_vm0  ;;  %v2479_v50 = vld [vmem:[#allocation2 + $0x118] sm:$0xff] }
 0x20c   : > { %v3468_v21 = vpack.c.bf16 %v3430_v45, %v3429_v29  ;;  %v7473_v20 = vpop.permute.xlu0 %7472  ;;  %v2444_v10 = vsel %vm9751_vm8, %v9739_v0, 0.0  ;;  %v3496_v26 = vpack.c.bf16 %v2514_v39, %v2481_v51  ;;  %v7420_v41 = vunpack.i.h.bf16 %v9660_v59  ;;  %v2446_v0 = vld [vmem:[#allocation2 + $0x11f] sm:$0xff]  ;;  %vm11580_vm8 = vmmov %vm11572_vm0 }
 0x20d   : > { %7712 = vrot.lane.b32.xlu1 %v7711_v19, %s8231_s30  ;;  %v7419_v12 = vunpack.i.l.bf16 %v9660_v59  ;;  %v7691_v8 = vpack.i.bf16 %v2444_v10, %v9746_v60  ;;  %v7465_v11 = vunpack.i.h.bf16 %v9783_v28  ;;  %v7464_v53 = vunpack.i.l.bf16 %v9783_v28  ;;  %v8144_v59 = vld [vmem:[#allocation2 + $0x7f] sm:$0xff]  ;;  %vm11585_vm13 = vmmov %vm11572_vm0 }
 0x20e   : > { %3776 = vmatprep.mubr.bf16.mxu0 %v3468_v21  ;;  %v9811_v19 = vpop.permute.xlu1 %7477  ;;  %v2477_v7 = vsel %vm9687_vm10, %v2445_v6, 0.0  ;;  %v7470_v61 = vunpack.i.h.bf16 %v7468_v57  ;;  %v7469_v25 = vunpack.i.l.bf16 %v7468_v57  ;;  %v11581_v60 = vld [vmem:[#allocation21_spill] sm:$0xff]  ;;  %v11583_v29 = vld [vmem:[#allocation20_spill] sm:$0xff]  ;;  %v7706_v33 = vpack.i.bf16 %v2480_v9, %v2479_v50  ;;  %vm11586_vm0 = vmmov %vm11574_vm2 }
 0x20f   : > { %7682 = vrot.lane.b32.xlu0 %v7681_v58, %s8230_s25  ;;  %3777 = vmatmul.mubr.bf16.gmra.mrb[148].mxu0 %v3467_v55  ;;  %v3270_v58 = vsel %vm11580_vm8, %v8144_v59, %v7420_v41  ;;  %vm11582_vm1 = vnez %v11581_v60  ;;  %v7701_v21 = vpack.i.bf16 %v2446_v0, %v2477_v7  ;;  %vm11587_vm6 = vmmov %vm11586_vm0  ;;  %v7475_v57 = vunpack.i.h.bf16 %v7473_v20  ;;  %v8146_v41 = vld [vmem:[#allocation2 + $0x88] sm:$0xff] }
 0x210   : > { %7121 = vmatmul.mubr.msk.bf16.gmra.mrb[32].mxu1 %vm11579_vm15, %v3496_v26  ;;  %v7483_v3 = vpop.permute.xlu0 %7482  ;;  %v11584_v45 = vsel %vm11582_vm1, %v11583_v29, 0.0  ;;  %v3303_v51 = vsel %vm11587_vm6, %v3270_v58, %v7465_v11  ;;  %v7474_v10 = vunpack.i.l.bf16 %v7473_v20  ;;  %v8145_v26 = vld [vmem:[#allocation2 + $0x90] sm:$0xff]  ;;  %vm11588_vm2 = vmmov %vm11580_vm8  ;;  %v7449_v60 = vunpack.i.l.bf16 %v9743_v22 }
 0x211   : > { %7717 = vrot.lane.b32.xlu1 %v7716_v5, %s8232_s15  ;;  %v7485_v63 = vunpack.i.h.bf16 %v7483_v3  ;;  %v7484_v2 = vunpack.i.l.bf16 %v7483_v3  ;;  %v3269_v28 = vsel %vm11585_vm13, %v11584_v45, %v7419_v12  ;;  %vm11589_vm9 = vmmov %vm11588_vm2 }
 0x212   : > { %v3302_v55 = vsel %vm11586_vm0, %v3269_v28, %v7464_v53  ;;  %v7493_v30 = vpop.permute.xlu1 %7492  ;;  %vm11590_vm4 = vmmov %vm11586_vm0 }
 0x213   : > { %7687 = vrot.lane.b32.xlu0 %v7686_v15, %s8231_s30  ;;  %v3368_v6 = vsel %vm11588_vm2, %v8145_v26, %v7485_v63  ;;  %v3367_v3 = vsel %vm11589_vm9, %v8146_v41, %v7484_v2  ;;  %vm11591_vm3 = vmmov %vm11586_vm0  ;;  %v3335_v53 = vsel %vm11578_vm5, %v3302_v55, %v7469_v25  ;;  %v7495_v45 = vunpack.i.h.bf16 %v7493_v30 }
 0x214   : > { %v7488_v5 = vpop.permute.xlu0 %7487  ;;  %vm11592_vm15 = vmmov %vm11578_vm5  ;;  %v7494_v28 = vunpack.i.l.bf16 %v7493_v30  ;;  %vm11596_vm0 = vnez %v11447_v40 }
 0x215   : > { %v7490_v15 = vunpack.i.h.bf16 %v7488_v5  ;;  %v7489_v39 = vunpack.i.l.bf16 %v7488_v5  ;;  %v3336_v11 = vsel %vm11592_vm15, %v3303_v51, %v7470_v61  ;;  %vm11593_vm8 = vmmov %vm11578_vm5  ;;  %v7450_v61 = vunpack.i.h.bf16 %v9743_v22 }
 0x216   : > { %vm11594_vm1 = vmmov %vm11578_vm5  ;;  %v3470_v50 = vpack.c.bf16 %v3336_v11, %v3335_v53  ;;  %v7498_v9 = vpop.permute.xlu1 %7497  ;;  %v8148_v11 = vld [vmem:[#allocation2 + $0xa0] sm:$0xff] }
 0x217   : > { %7692 = vrot.lane.b32.xlu0 %v7691_v8, %s8230_s25  ;;  %v3399_v12 = vsel %vm11590_vm4, %v3367_v3, %v7489_v39  ;;  %v3400_v8 = vsel %vm11591_vm3, %v3368_v6, %v7490_v15  ;;  %v7500_v55 = vunpack.i.h.bf16 %v7498_v9  ;;  %v7499_v51 = vunpack.i.l.bf16 %v7498_v9  ;;  %v8147_v15 = vld [vmem:[#allocation2 + $0x8f] sm:$0xff]  ;;  %vm11595_vm13 = vmmov %vm11588_vm2 }
 0x218   : > { %v3431_v0 = vsel %vm11593_vm8, %v3399_v12, %v7474_v10  ;;  %v3432_v20 = vsel %vm11594_vm1, %v3400_v8, %v7475_v57  ;;  %v3272_v39 = vsel %vm11595_vm13, %v8147_v15, %v7450_v61  ;;  %v11597_v57 = vld [vmem:[#allocation22_spill] sm:$0xff]  ;;  %vm11599_vm6 = vmmov %vm11588_vm2 }
 0x219   : > { %v3471_v7 = vpack.c.bf16 %v3432_v20, %v3431_v0  ;;  %v11598_v10 = vsel %vm11596_vm0, %v11597_v57, 0.0  ;;  %vm11600_vm2 = vmmov %vm11591_vm3  ;;  %v8149_v20 = vld [vmem:[#allocation2 + $0x98] sm:$0xff] }
 0x21a   : > { %v3271_v26 = vsel %vm11599_vm6, %v11598_v10, %v7449_v60  ;;  %vm11601_vm9 = vmmov %vm11600_vm2 }
 0x21b   : > { %7702 = vrot.lane.b32.xlu0 %v7701_v21, %s8231_s30  ;;  %3784 = vmatprep.mubr.bf16.mxu0 %v3471_v7  ;;  %v3304_v41 = vsel %vm11600_vm2, %v3271_v26, %v7494_v28  ;;  %v3305_v30 = vsel %vm11601_vm9, %v3272_v39, %v7495_v45  ;;  %vm11602_vm4 = vmmov %vm11599_vm6  ;;  %v7479_v39 = vunpack.i.l.bf16 %v9811_v19 }
 0x21c   : > { %3785 = vmatmul.mubr.bf16.gmra.mrb[152].mxu0 %v3470_v50  ;;  %v7503_v63 = vpop.permute.xlu0 %7502  ;;  %v9842_v59 = vpop.permute.xlu1 %7507  ;;  %vm11603_vm3 = vmmov %vm11602_vm4  ;;  %v3338_v61 = vsel %vm11594_vm1, %v3305_v30, %v7500_v55  ;;  %v8150_v30 = vld [vmem:[#allocation2 + $0x9f] sm:$0xff] }
 0x21d   : > { %v7505_v8 = vunpack.i.h.bf16 %v7503_v63  ;;  %v7504_v53 = vunpack.i.l.bf16 %v7503_v63  ;;  %vm11604_vm5 = vmmov %vm11600_vm2 }
 0x21e   : > { %vm11605_vm15 = vmmov %vm11600_vm2 }
 0x21f   : > { %7707 = vrot.lane.b32.xlu0 %v7706_v33, %s8232_s15  ;;  %v9840_v2 = vpop.f32.mrb[4].mxu1  ;;  %vm11606_vm8 = vmmov %vm11594_vm1  ;;  %s377_s15 = sand.u32 1, %s8218_s18  }
 0x220   : > { %v9844_v58 = vpop.f32.mrb[5].mxu1  ;;  %v7513_v29 = vpop.permute.xlu0 %7512  ;;  %v3337_v9 = vsel %vm11606_vm8, %v3304_v41, %v7499_v51  ;;  %vm11607_vm13 = vmmov %vm11594_vm1  ;;  %s378_s0 = scalar_lea.vmem [#allocation8], %s377_s15  ;;  %s6191_s12 = scalar_lea.sflag [#allocation9], %s377_s15 }
 0x221   : > { %v9846_v25 = vpop.f32.mrb[6].mxu1  ;;  %v7515_v21 = vunpack.i.h.bf16 %v7513_v29  ;;  %v7514_v33 = vunpack.i.l.bf16 %v7513_v29  ;;  %v7523_v6 = vpop.permute.xlu1 %7522  ;;  %vm11608_vm0 = vmmov %vm11594_vm1  ;;  %v3473_v28 = vpack.c.bf16 %v3338_v61, %v3337_v9  ;;  %v8151_v9 = vld [vmem:[#allocation2 + $0xb0] sm:$0xff]  ;;  %s6203_s16 = sshll.u32 %s378_s0, 4  ;;  %s11323_s16 = int_to_ptr.vmem [resolvable:$true] %s6203_s16 }
 0x222   : > { %v9850_v5 = vpop.f32.mrb[7].mxu1  ;;  %v7525_v51 = vunpack.i.h.bf16 %v7523_v6  ;;  %v7524_v10 = vunpack.i.l.bf16 %v7523_v6  ;;  %vm11609_vm6 = vmmov %vm11603_vm3  ;;  %s8164_s25 = scalar_lea.vmem %s11323_s16, 16 }
 0x223   : > { %v3370_v0 = vsel %vm11602_vm4, %v8148_v11, %v7515_v21  ;;  %v3369_v40 = vsel %vm11603_vm3, %v8149_v20, %v7514_v33  ;;  %v7480_v33 = vunpack.i.h.bf16 %v9811_v19  ;;  %vm11612_vm2 = vmmov %vm11603_vm3  ;;  %p8165_p11 = scmp.ne.s32.totalorder %s11323_s16, %s8164_s25 }
 0x224   : > { %v7518_v22 = vpop.permute.xlu0 %7517  ;;  %vm11613_vm9 = vmmov %vm11604_vm5 }
 0x225   : > { %v7520_v3 = vunpack.i.h.bf16 %v7518_v22  ;;  %v7519_v12 = vunpack.i.l.bf16 %v7518_v22  ;;  %v7528_v63 = vpop.permute.xlu1 %7527  ;;  %vm11614_vm4 = vmmov %vm11604_vm5  ;;  %p8166_p12 = pnand %p8165_p11, %p8333_p5 }
 0x226   : > { %v7530_v22 = vunpack.i.h.bf16 %v7528_v63  ;;  %v7529_v41 = vunpack.i.l.bf16 %v7528_v63  ;;  %vm11615_vm3 = vmmov %vm11612_vm2 }
 0x227   : > { %v3401_v7 = vsel %vm11604_vm5, %v3369_v40, %v7519_v12  ;;  %v3402_v50 = vsel %vm11605_vm15, %v3370_v0, %v7520_v3  ;;  %v3274_v3 = vsel %vm11609_vm6, %v8150_v30, %v7480_v33  ;;  %v11610_v12 = vld [vmem:[#allocation23_spill] sm:$0xff]  ;;  %vm11616_vm5 = vmmov %vm11612_vm2  ;;  %v7510_v30 = vunpack.i.h.bf16 %v9842_v59  ;;  %p8167_p13 = pneg %p8166_p12 }
 0x228   : > { %v3433_v60 = vsel %vm11607_vm13, %v3401_v7, %v7504_v53  ;;  %v3434_v29 = vsel %vm11608_vm0, %v3402_v50, %v7505_v8  ;;  %v11611_v8 = vsel %vm9112_vm14, %v11610_v12, 0.0  ;;  %v3307_v19 = vsel %vm11614_vm4, %v3274_v3, %v7525_v51  ;;  %vm11617_vm15 = vmmov %vm11614_vm4 }
 0x229   : > { %v3474_v45 = vpack.c.bf16 %v3434_v29, %v3433_v60  ;;  %v3273_v53 = vsel %vm11612_vm2, %v11611_v8, %v7479_v39  ;;  %v8152_v60 = vld [vmem:[#allocation2 + $0xa8] sm:$0xff]  ;;  %vm11618_vm14 = vmmov %vm11614_vm4 }
 0x22a   : > { %v3306_v0 = vsel %vm11613_vm9, %v3273_v53, %v7524_v10  ;;  %vm11619_vm8 = vmmov %vm11608_vm0 }
 0x22b   : > { %3792 = vmatprep.mubr.bf16.mxu0 %v3474_v45  ;;  %v3339_v63 = vsel %vm11619_vm8, %v3306_v0, %v7529_v41  ;;  %vm11620_vm1 = vmmov %vm11608_vm0  ;;  %v7509_v41 = vunpack.i.l.bf16 %v9842_v59 }
 0x22c   : > { %v7533_v21 = vpop.permute.xlu0 %7532  ;;  %3793 = vmatmul.mubr.bf16.gmra.mrb[156].mxu0 %v3473_v28  ;;  %v9868_v15 = vpop.permute.xlu1 %7537  ;;  %v3340_v28 = vsel %vm11620_vm1, %v3307_v19, %v7530_v22  ;;  %vm11621_vm13 = vmmov %vm11608_vm0 }
 0x22d   : > { %v7535_v7 = vunpack.i.h.bf16 %v7533_v21  ;;  %v7534_v50 = vunpack.i.l.bf16 %v7533_v21  ;;  %v3476_v21 = vpack.c.bf16 %v3340_v28, %v3339_v63  ;;  %vm11622_vm6 = vmmov %vm11612_vm2  ;;  %v8154_v28 = vld [vmem:[#allocation2 + $0xc0] sm:$0xff] }
 0x22e   : > { %vm11624_vm9 = vmmov %vm11615_vm3 }
 0x22f   : > { %v3275_v59 = vsel %vm11624_vm9, %v2267_v17, %v7509_v41  ;;  %vm11629_vm1 = vmmov %vm11608_vm0 }
 0x230   : > { %v7543_v57 = vpop.permute.xlu0 %7542  ;;  %vm11632_vm2 = vmmov %vm11616_vm5 }
 0x231   : > { %v7545_v55 = vunpack.i.h.bf16 %v7543_v57  ;;  %v7544_v26 = vunpack.i.l.bf16 %v7543_v57  ;;  %v7553_v20 = vpop.permute.xlu1 %7552  ;;  %vm11633_vm9 = vmmov %vm11632_vm2 }
 0x232   : > { %v7555_v12 = vunpack.i.h.bf16 %v7553_v20  ;;  %v7554_v8 = vunpack.i.l.bf16 %v7553_v20 }
 0x233   : > { %v3372_v61 = vsel %vm11615_vm3, %v8151_v9, %v7545_v55  ;;  %v3371_v14 = vsel %vm11616_vm5, %v8152_v60, %v7544_v26  ;;  %vm11625_vm3 = vmmov %vm11614_vm4 }
 0x234   : > { %v7548_v11 = vpop.permute.xlu0 %7547  ;;  %v3308_v20 = vsel %vm11614_vm4, %v3275_v59, %v7554_v8  ;;  %vm11628_vm8 = vmmov %vm11625_vm3 }
 0x235   : > { %v7550_v6 = vunpack.i.h.bf16 %v7548_v11  ;;  %v7549_v40 = vunpack.i.l.bf16 %v7548_v11  ;;  %v7558_v51 = vpop.permute.xlu1 %7557  ;;  %vm11634_vm4 = vmmov %vm11625_vm3 }
 0x236   : > { %vm11638_vm7 = vmmov %vm11625_vm3 }
 0x237   : > { %v3403_v29 = vsel %vm11617_vm15, %v3371_v14, %v7549_v40  ;;  %v3404_v45 = vsel %vm11618_vm14, %v3372_v61, %v7550_v6  ;;  %v7560_v6 = vunpack.i.h.bf16 %v7558_v51  ;;  %v7559_v40 = vunpack.i.l.bf16 %v7558_v51  ;;  %vm11626_vm15 = vmmov %vm11616_vm5 }
 0x238   : > { %v3435_v33 = vsel %vm11621_vm13, %v3403_v29, %v7534_v50  ;;  %v3436_v39 = vsel %vm11608_vm0, %v3404_v45, %v7535_v7  ;;  %v8153_v7 = vld [vmem:[#allocation2 + $0xaf] sm:$0xff]  ;;  %vm11627_vm14 = vmmov %vm11625_vm3 }
 0x239   : > { %v3477_v57 = vpack.c.bf16 %v3436_v39, %v3435_v33  ;;  %v3276_v50 = vsel %vm11622_vm6, %v8153_v7, %v7510_v30  ;;  %v8155_v39 = vld [vmem:[#allocation2 + $0xb8] sm:$0xff]  ;;  %vm11630_vm13 = vmmov %vm11608_vm0 }
 0x23a   : > { %v3309_v61 = vsel %vm11625_vm3, %v3276_v50, %v7555_v12  ;;  %vm11631_vm6 = vmmov %vm11608_vm0 }
 0x23b   : > { %3800 = vmatprep.mubr.bf16.mxu0 %v3477_v57  ;;  %v3341_v57 = vsel %vm11629_vm1, %v3308_v20, %v7559_v40  ;;  %vm11640_vm1 = vmmov %vm11608_vm0 }
 0x23c   : > { %3801 = vmatmul.mubr.bf16.gmra.mrb[160].mxu0 %v3476_v21  ;;  %v3342_v21 = vsel %vm11630_vm13, %v3309_v61, %v7560_v6  ;;  %v8156_v61 = vld [vmem:[#allocation2 + $0xbf] sm:$0xff]  ;;  %vm11641_vm13 = vmmov %vm11608_vm0 }
 0x23d   : > { %v7563_v10 = vpop.permute.xlu0 %7562  ;;  %v9888_v55 = vpop.permute.xlu1 %7567 }
 0x23e   : > { %v7565_v45 = vunpack.i.h.bf16 %v7563_v10  ;;  %v7564_v63 = vunpack.i.l.bf16 %v7563_v10  ;;  %v3479_v10 = vpack.c.bf16 %v3342_v21, %v3341_v57  ;;  %v8158_v57 = vld [vmem:[#allocation2 + $0xc8] sm:$0xff] }
 0x23f   : > { %v9890_v26 = vpop.f32.mrb[8].mxu1 }
 0x240   : > { %v9894_v3 = vpop.f32.mrb[9].mxu1 }
 0x241   : > { %v7573_v22 = vpop.permute.xlu0 %7572  ;;  %v9896_v53 = vpop.f32.mrb[10].mxu1 }
 0x242   : > { %v7575_v11 = vunpack.i.h.bf16 %v7573_v22  ;;  %v7574_v0 = vunpack.i.l.bf16 %v7573_v22  ;;  %v9898_v19 = vpop.f32.mrb[11].mxu1  ;;  %v7583_v60 = vpop.permute.xlu1 %7582 }
 0x243   : > { %v7585_v40 = vunpack.i.h.bf16 %v7583_v60  ;;  %v7584_v50 = vunpack.i.l.bf16 %v7583_v60 }
 0x244   : > { %v3374_v33 = vsel %vm11616_vm5, %v8154_v28, %v7575_v11  ;;  %v3373_v46 = vsel %vm11626_vm15, %v8155_v39, %v7574_v0  ;;  %v7540_v11 = vunpack.i.h.bf16 %v9868_v15  ;;  %v7539_v0 = vunpack.i.l.bf16 %v9868_v15  ;;  %vm11635_vm5 = vmmov %vm11632_vm2 }
 0x245   : > { %v7578_v9 = vpop.permute.xlu0 %7577  ;;  %vm11636_vm15 = vmmov %vm11632_vm2 }
 0x246   : > { %v7580_v14 = vunpack.i.h.bf16 %v7578_v9  ;;  %v7579_v29 = vunpack.i.l.bf16 %v7578_v9  ;;  %v7588_v22 = vpop.permute.xlu1 %7587 }
 0x247   : > { %v7590_v9 = vunpack.i.h.bf16 %v7588_v22  ;;  %v7589_v20 = vunpack.i.l.bf16 %v7588_v22 }
 0x248   : > { %v3405_v62 = vsel %vm11627_vm14, %v3373_v46, %v7579_v29  ;;  %v3406_v17 = vsel %vm11628_vm8, %v3374_v33, %v7580_v14  ;;  %v3278_v14 = vsel %vm11632_vm2, %v8156_v61, %v7540_v11  ;;  %v3277_v29 = vsel %vm11633_vm9, %v2269_v48, %v7539_v0  ;;  %vm11637_vm14 = vmmov %vm11625_vm3 }
 0x249   : > { %v3437_v51 = vsel %vm11608_vm0, %v3405_v62, %v7564_v63  ;;  %v3438_v30 = vsel %vm11631_vm6, %v3406_v17, %v7565_v45  ;;  %v3310_v63 = vsel %vm11634_vm4, %v3277_v29, %v7584_v50  ;;  %v3311_v15 = vsel %vm11625_vm3, %v3278_v14, %v7585_v40  ;;  %v8157_v62 = vld [vmem:[#allocation2 + $0xd0] sm:$0xff]  ;;  %vm11639_vm8 = vmmov %vm11608_vm0 }
 0x24a   : > { %v3480_v41 = vpack.c.bf16 %v3438_v30, %v3437_v51  ;;  %v3343_v21 = vsel %vm11639_vm8, %v3310_v63, %v7589_v20  ;;  %v3344_v51 = vsel %vm11640_vm1, %v3311_v15, %v7590_v9  ;;  %v7570_v40 = vunpack.i.h.bf16 %v9888_v55  ;;  %vm11642_vm6 = vmmov %vm11632_vm2 }
 0x24b   : > { %v3482_v22 = vpack.c.bf16 %v3344_v51, %v3343_v21  ;;  %v7569_v50 = vunpack.i.l.bf16 %v9888_v55  ;;  %vm11644_vm9 = vmmov %vm11635_vm5  ;;  %v8161_v51 = vld [vmem:[#allocation2 + $0xd8] sm:$0xff] }
 0x24c   : > { %3808 = vmatprep.mubr.bf16.mxu0 %v3480_v41  ;;  %vm11645_vm4 = vmmov %vm11625_vm3 }
 0x24d   : > { %3809 = vmatmul.mubr.bf16.gmra.mrb[164].mxu0 %v3479_v10  ;;  %v3279_v55 = vsel %vm11644_vm9, %v2271_v13, %v7569_v50  ;;  %vm11649_vm8 = vmmov %vm11608_vm0 }
 0x24e   : > { %v7593_v12 = vpop.permute.xlu0 %7592  ;;  %v9916_v8 = vpop.permute.xlu1 %7597  ;;  %vm11650_vm1 = vmmov %vm11608_vm0 }
 0x24f   : > { %v7595_v39 = vunpack.i.h.bf16 %v7593_v12  ;;  %v7594_v46 = vunpack.i.l.bf16 %v7593_v12  ;;  %vm11653_vm2 = vmmov %vm11635_vm5 }
 0x250   : > { %vm11654_vm9 = vmmov %vm11625_vm3 }
 0x252   : > { %v7603_v7 = vpop.permute.xlu0 %7602 }
 0x253   : > { %v7605_v6 = vunpack.i.h.bf16 %v7603_v7  ;;  %v7604_v59 = vunpack.i.l.bf16 %v7603_v7  ;;  %v7613_v28 = vpop.permute.xlu1 %7612 }
 0x254   : > { %v7615_v9 = vunpack.i.h.bf16 %v7613_v28  ;;  %v7614_v20 = vunpack.i.l.bf16 %v7613_v28 }
 0x255   : > { %v3376_v17 = vsel %vm11635_vm5, %v8157_v62, %v7605_v6  ;;  %v3375_v18 = vsel %vm11636_vm15, %v8158_v57, %v7604_v59  ;;  %vm11646_vm15 = vmmov %vm11635_vm5 }
 0x256   : > { %v3312_v28 = vsel %vm11645_vm4, %v3279_v55, %v7614_v20  ;;  %v7599_v20 = vunpack.i.l.bf16 %v9916_v8  ;;  %vm11655_vm4 = vmmov %vm11625_vm3 }
 0x257   : > { %v7608_v45 = vpop.permute.xlu0 %7607  ;;  %v7618_v12 = vpop.permute.xlu1 %7617  ;;  %vm11659_vm11 = vmmov %vm11655_vm4 }
 0x258   : > { %v7610_v60 = vunpack.i.h.bf16 %v7608_v45  ;;  %v7609_v33 = vunpack.i.l.bf16 %v7608_v45  ;;  %v7620_v63 = vunpack.i.h.bf16 %v7618_v12  ;;  %v7619_v15 = vunpack.i.l.bf16 %v7618_v12 }
 0x25a   : > { %v3407_v42 = vsel %vm11637_vm14, %v3375_v18, %v7609_v33  ;;  %v3408_v48 = vsel %vm11638_vm7, %v3376_v17, %v7610_v60  ;;  %v8159_v60 = vld [vmem:[#allocation2 + $0xcf] sm:$0xff]  ;;  %vm11647_vm14 = vmmov %vm11625_vm3 }
 0x25b   : > { %v3439_v30 = vsel %vm11641_vm13, %v3407_v42, %v7594_v46  ;;  %v3440_v41 = vsel %vm11608_vm0, %v3408_v48, %v7595_v39  ;;  %v3280_v33 = vsel %vm11642_vm6, %v8159_v60, %v7570_v40  ;;  %v8160_v48 = vld [vmem:[#allocation2 + $0xe0] sm:$0xff]  ;;  %vm11648_vm7 = vmmov %vm11625_vm3 }
 0x25c   : > { %v3483_v10 = vpack.c.bf16 %v3440_v41, %v3439_v30  ;;  %v3313_v46 = vsel %vm11625_vm3, %v3280_v33, %v7615_v9  ;;  %v3345_v30 = vsel %vm11649_vm8, %v3312_v28, %v7619_v15  ;;  %vm11651_vm13 = vmmov %vm11608_vm0  ;;  %v7600_v9 = vunpack.i.h.bf16 %v9916_v8 }
 0x25d   : > { %v3346_v41 = vsel %vm11650_vm1, %v3313_v46, %v7620_v63  ;;  %vm11652_vm6 = vmmov %vm11635_vm5  ;;  %v3281_v46 = vsel %vm11653_vm2, %v2273_v24, %v7599_v20  ;;  %v9991_v20 = vld [vmem:[%s11367_s4] ss:$0 sm:$0xff] }
 0x25e   : > { %3816 = vmatprep.mubr.bf16.mxu0 %v3483_v10  ;;  %vm11656_vm3 = vmmov %vm11653_vm2 }
 0x25f   : > { %v7623_v11 = vpop.permute.xlu0 %7622  ;;  %3817 = vmatmul.mubr.bf16.gmra.mrb[168].mxu0 %v3482_v22  ;;  %v9936_v0 = vpop.permute.xlu1 %7627  ;;  %vm11662_vm8 = vmmov %vm11608_vm0 }
 0x260   : > { %v9938_v7 = vpop.f32.mrb[12].mxu1  ;;  %v7625_v18 = vunpack.i.h.bf16 %v7623_v11  ;;  %v7624_v42 = vunpack.i.l.bf16 %v7623_v11  ;;  %v3485_v11 = vpack.c.bf16 %v3346_v41, %v3345_v30  ;;  %vm11663_vm1 = vmmov %vm11608_vm0 }
 0x261   : > { %v9942_v6 = vpop.f32.mrb[13].mxu1 }
 0x262   : > { %v9944_v61 = vpop.f32.mrb[14].mxu1 }
 0x263   : > { %v9946_v45 = vpop.f32.mrb[15].mxu1 }
 0x264   : > { %v7633_v59 = vpop.permute.xlu0 %7632 }
 0x265   : > { %v7635_v14 = vunpack.i.h.bf16 %v7633_v59  ;;  %v7634_v29 = vunpack.i.l.bf16 %v7633_v59  ;;  %v7643_v62 = vpop.permute.xlu1 %7642 }
 0x266   : > { %v7644_v15 = vunpack.i.l.bf16 %v7643_v62 }
 0x267   : > { %v3378_v21 = vsel %vm11635_vm5, %v8160_v48, %v7635_v14  ;;  %v3377_v31 = vsel %vm11646_vm15, %v8161_v51, %v7634_v29  ;;  %v7645_v29 = vunpack.i.h.bf16 %v7643_v62  ;;  %vm11657_vm5 = vmmov %vm11653_vm2 }
 0x268   : > { %v7638_v39 = vpop.permute.xlu0 %7637  ;;  %vm11658_vm15 = vmmov %vm11655_vm4 }
 0x269   : > { %v7640_v17 = vunpack.i.h.bf16 %v7638_v39  ;;  %v7639_v57 = vunpack.i.l.bf16 %v7638_v39  ;;  %v7648_v40 = vpop.permute.xlu1 %7647  ;;  %v8162_v39 = vld [vmem:[#allocation2 + $0xdf] sm:$0xff] }
 0x26a   : > { %v7650_v33 = vunpack.i.h.bf16 %v7648_v40  ;;  %v7649_v55 = vunpack.i.l.bf16 %v7648_v40  ;;  %v3282_v28 = vsel %vm11652_vm6, %v8162_v39, %v7600_v9  ;;  %vm11666_vm6 = vmmov %vm11655_vm4 }
 0x26b   : > { %v3409_v32 = vsel %vm11647_vm14, %v3377_v31, %v7639_v57  ;;  %v3410_v13 = vsel %vm11648_vm7, %v3378_v21, %v7640_v17  ;;  %v3314_v57 = vsel %vm11654_vm9, %v3281_v46, %v7644_v15  ;;  %v3315_v8 = vsel %vm11655_vm4, %v3282_v28, %v7645_v29  ;;  %vm11660_vm14 = vmmov %vm11608_vm0 }
 0x26c   : > { %v3441_v10 = vsel %vm11651_vm13, %v3409_v32, %v7624_v42  ;;  %v3442_v22 = vsel %vm11608_vm0, %v3410_v13, %v7625_v18  ;;  %v3347_v31 = vsel %vm11660_vm14, %v3314_v57, %v7649_v55  ;;  %vm11661_vm7 = vmmov %vm11608_vm0 }
 0x26d   : > { %v3486_v12 = vpack.c.bf16 %v3442_v22, %v3441_v10  ;;  %v3348_v32 = vsel %vm11661_vm7, %v3315_v8, %v7650_v33  ;;  %vm11664_vm13 = vmmov %vm11653_vm2 }
 0x26e   : > { %v3488_v22 = vpack.c.bf16 %v3348_v32, %v3347_v31  ;;  %vm11665_vm0 = vmmov %vm11653_vm2 }
 0x26f   : > { %3824 = vmatprep.mubr.bf16.mxu0 %v3486_v12  ;;  %v7629_v12 = vunpack.i.l.bf16 %v9936_v0  ;;  %vm11667_vm2 = vmmov %vm11655_vm4 }
 0x270   : > { %3825 = vmatmul.mubr.bf16.gmra.mrb[172].mxu0 %v3485_v11  ;;  %vm11668_vm12 = vmmov %vm11665_vm0 }
 0x271   : > { %v7653_v50 = vpop.permute.xlu0 %7652  ;;  %vm11669_vm9 = vmmov %vm11665_vm0 }
 0x272   : > { %v7655_v48 = vunpack.i.h.bf16 %v7653_v50  ;;  %v7654_v21 = vunpack.i.l.bf16 %v7653_v50  ;;  %vm11670_vm4 = vmmov %vm11667_vm2 }
 0x273   : > { %v7668_v59 = vpop.permute.xlu1 %7667  ;;  %vm11675_vm14 = vmmov %vm11663_vm1 }
 0x274   : > { %v7670_v11 = vunpack.i.h.bf16 %v7668_v59  ;;  %v7669_v40 = vunpack.i.l.bf16 %v7668_v59  ;;  %v3283_v59 = vsel %vm11665_vm0, %v2275_v16, %v7629_v12  ;;  %vm11676_vm7 = vmmov %vm11665_vm0 }
 0x275   : > { %v7658_v14 = vpop.permute.xlu0 %7657 }
 0x276   : > { %v7660_v60 = vunpack.i.h.bf16 %v7658_v14  ;;  %v7659_v63 = vunpack.i.l.bf16 %v7658_v14  ;;  %v3316_v46 = vsel %vm11666_vm6, %v3283_v59, %v7669_v40  ;;  %vm11680_vm6 = vmmov %vm11665_vm0 }
 0x277   : > { %v7673_v18 = vpop.permute.xlu1 %7672 }
 0x278   : > { %v3380_v51 = vsel %vm11656_vm3, %v9600_v4, %v7660_v60  ;;  %v3379_v38 = vsel %vm11657_vm5, %v9607_v34, %v7659_v63  ;;  %v7630_v4 = vunpack.i.h.bf16 %v9936_v0  ;;  %v7675_v33 = vunpack.i.h.bf16 %v7673_v18  ;;  %vm11671_vm3 = vmmov %vm11667_vm2 }
 0x279   : > { %v7663_v17 = vpop.permute.xlu0 %7662  ;;  %v7674_v55 = vunpack.i.l.bf16 %v7673_v18  ;;  %vm11672_vm5 = vmmov %vm11663_vm1 }
 0x27a   : > { %v7665_v62 = vunpack.i.h.bf16 %v7663_v17  ;;  %v7664_v42 = vunpack.i.l.bf16 %v7663_v17  ;;  %v3284_v0 = vsel %vm11664_vm13, %v9644_v49, %v7630_v4  ;;  %vm11683_vm10 = vmmov %vm11672_vm5 }
 0x27b   : > { %v9986_v34 = vpop.permute.xlu1 %7697  ;;  %v3317_v17 = vsel %vm11667_vm2, %v3284_v0, %v7670_v11 }
 0x27c   : > { %v3411_v27 = vsel %vm11658_vm15, %v3379_v38, %v7664_v42  ;;  %v3412_v24 = vsel %vm11659_vm11, %v3380_v51, %v7665_v62  ;;  %v6719_v9 = vpop.f32.mrb[124].mxu0  ;;  %vm11673_vm15 = vmmov %vm11663_vm1  ;;  %v7700_v4 = vunpack.i.h.bf16 %v9986_v34  ;;  %v7699_v12 = vunpack.i.l.bf16 %v9986_v34 }
 0x27d   : > { %v7678_v13 = vpop.permute.xlu0 %7677  ;;  %v3443_v30 = vsel %vm11662_vm8, %v3411_v27, %v7654_v21  ;;  %v3444_v41 = vsel %vm11663_vm1, %v3412_v24, %v7655_v48  ;;  %v6720_v14 = vpop.f32.mrb[125].mxu0  ;;  %vm11674_vm11 = vmmov %vm11663_vm1 }
 0x27e   : > { %v3489_v10 = vpack.c.bf16 %v3444_v41, %v3443_v30  ;;  %v6721_v60 = vadd.f32 %v6720_v14, %v6719_v9  ;;  %v6722_v63 = vpop.f32.mrb[126].mxu0  ;;  %v7680_v36 = vunpack.i.h.bf16 %v7678_v13  ;;  %v7679_v42 = vunpack.i.l.bf16 %v7678_v13  ;;  %vm11677_vm8 = vmmov %vm11665_vm0 }
 0x27f   : > { %v10000_v39 = vpop.f32.mrb[16].mxu1  ;;  %v6723_v28 = vpop.f32.mrb[127].mxu0  ;;  %v3349_v13 = vsel %vm11672_vm5, %v3316_v46, %v7674_v55  ;;  %v3350_v30 = vsel %vm11673_vm15, %v3317_v17, %v7675_v33  ;;  %v3286_v0 = vsel %vm11676_vm7, %v9720_v1, %v7700_v4  ;;  %v3285_v34 = vsel %vm11677_vm8, %v2277_v37, %v7699_v12  ;;  %vm11678_vm1 = vmmov %vm11667_vm2 }
 0x280   : > { %3832 = vmatprep.mubr.bf16.mxu0 %v3489_v10  ;;  %v3731_v57 = vadd.f32 %v6721_v60, %v9991_v20  ;;  %v6724_v8 = vadd.f32 %v6723_v28, %v6722_v63  ;;  %v10005_v62 = vpop.f32.mrb[17].mxu1  ;;  %v7713_v35 = vpop.permute.xlu1 %7712  ;;  %vm11679_vm13 = vmmov %vm11678_vm1 }
 0x281   : > { %v7683_v50 = vpop.permute.xlu0 %7682  ;;  %3833 = vmatmul.mubr.bf16.gmra.mrb[176].mxu0 %v3488_v22  ;;  %v10007_v48 = vpop.f32.mrb[18].mxu1  ;;  %v3491_v22 = vpack.c.bf16 %v3350_v30, %v3349_v13  ;;  %v7715_v40 = vunpack.i.h.bf16 %v7713_v35  ;;  %vm11681_vm2 = vmmov %vm11678_vm1 }
 0x282   : > { %v7685_v29 = vunpack.i.h.bf16 %v7683_v50  ;;  %v7684_v15 = vunpack.i.l.bf16 %v7683_v50  ;;  %v3892_v38 = vadd.f32 %v9844_v58, %v3731_v57  ;;  %v3734_v27 = vadd.f32 %v6724_v8, %v9991_v20  ;;  %v10015_v24 = vpop.f32.mrb[19].mxu1  ;;  %vm11688_vm15 = vmmov %vm11678_vm1 }
 0x283   : > { %v7714_v50 = vunpack.i.l.bf16 %v7713_v35  ;;  %v3319_v33 = vsel %vm11679_vm13, %v3286_v0, %v7715_v40  ;;  %v4181_v0 = vld [vmem:[#allocation3 + $0x8] sm:$0xff]  ;;  %vm11691_vm7 = vmmov %vm11678_vm1 }
 0x284   : > { %v3382_v21 = vsel %vm11668_vm12, %v9697_v47, %v7685_v29  ;;  %v3381_v51 = vsel %vm11669_vm9, %v9702_v23, %v7684_v15  ;;  %v3895_v41 = vadd.f32 %v9850_v5, %v3734_v27  ;;  %v7718_v11 = vpop.permute.xlu1 %7717  ;;  %vm11682_vm12 = vmmov %vm11678_vm1 }
 0x285   : > { %v7688_v49 = vpop.permute.xlu0 %7687  ;;  %v7720_v5 = vunpack.i.h.bf16 %v7718_v11  ;;  %v7719_v15 = vunpack.i.l.bf16 %v7718_v11  ;;  %v3318_v59 = vsel %vm11678_vm1, %v3285_v34, %v7714_v50  ;;  %vm11684_vm9 = vmmov %vm11672_vm5 }
 0x286   : > { %v7690_v16 = vunpack.i.h.bf16 %v7688_v49  ;;  %v7689_v18 = vunpack.i.l.bf16 %v7688_v49  ;;  %vm11692_vm8 = vmmov %vm11678_vm1 }
 0x287   : > { %v3351_v44 = vsel %vm11683_vm10, %v3318_v59, %v7719_v15  ;;  %v3352_v37 = vsel %vm11684_vm9, %v3319_v33, %v7720_v5  ;;  %vm11704_vm10 = vmmov %vm11681_vm2 }
 0x288   : > { %v3413_v31 = vsel %vm11670_vm4, %v3381_v51, %v7689_v18  ;;  %v3414_v32 = vsel %vm11671_vm3, %v3382_v21, %v7690_v16  ;;  %vm11685_vm4 = vmmov %vm11672_vm5  ;;  %v3494_v35 = vpack.c.bf16 %v3352_v37, %v3351_v44 }
 0x289   : > { %v7693_v47 = vpop.permute.xlu0 %7692  ;;  %v3445_v10 = vsel %vm11674_vm11, %v3413_v31, %v7679_v42  ;;  %v3446_v23 = vsel %vm11675_vm14, %v3414_v32, %v7680_v36  ;;  %vm11686_vm3 = vmmov %vm11685_vm4  ;;  %v4018_v32 = vmax.f32 %v3892_v38, 0.0 }
 0x28a   : > { %v3492_v58 = vpack.c.bf16 %v3446_v23, %v3445_v10  ;;  %v7695_v14 = vunpack.i.h.bf16 %v7693_v47  ;;  %v7694_v29 = vunpack.i.l.bf16 %v7693_v47  ;;  %v4019_v47 = vmax.f32 %v3895_v41, 0.0  ;;  %vm11687_vm5 = vmmov %vm11678_vm1 }
 0x28b   : > { %vm11689_vm11 = vmmov %vm11678_vm1 }
 0x28c   : > { %3840 = vmatprep.mubr.bf16.mxu0 %v3492_v58  ;;  %v3384_v28 = vsel %vm11665_vm0, %v9763_v43, %v7695_v14  ;;  %v3383_v46 = vsel %vm11680_vm6, %v9761_v56, %v7694_v29  ;;  %vm11690_vm14 = vmmov %vm11678_vm1 }
 0x28d   : > { %v7703_v9 = vpop.permute.xlu0 %7702  ;;  %3841 = vmatmul.mubr.bf16.gmra.mrb[180].mxu0 %v3491_v22 }
 0x28e   : > { %v7705_v60 = vunpack.i.h.bf16 %v7703_v9  ;;  %v7704_v63 = vunpack.i.l.bf16 %v7703_v9 }
 0x290   : > { %v3415_v1 = vsel %vm11681_vm2, %v3383_v46, %v7704_v63  ;;  %v3416_v54 = vsel %vm11682_vm12, %v3384_v28, %v7705_v60  ;;  %v7871_v28 = vld [vmem:[%s11368_s5] sm:$0xff]   ;;  %v7872_v46 = vld [vmem:[%s11368_s5 + $0x48] sm:$0xff]   ;;  %vm11703_vm12 = vmmov %vm11681_vm2 }
 0x291   : > { %v7708_v55 = vpop.permute.xlu0 %7707  ;;  %v6725_v36 = vpop.f32.mrb[128].mxu0 }
 0x292   : > { %v7710_v17 = vunpack.i.h.bf16 %v7708_v55  ;;  %v7709_v57 = vunpack.i.l.bf16 %v7708_v55  ;;  %v6726_v43 = vpop.f32.mrb[129].mxu0  ;;  %v7870_v55 = vld [vmem:[%s11368_s5 + $0x40] sm:$0xff]  }
 0x293   : > { %v6727_v16 = vadd.f32 %v6726_v43, %v6725_v36  ;;  %v6728_v56 = vpop.f32.mrb[130].mxu0  ;;  %6833 = vmatprep.subr.bf16.mxu1 %v7870_v55 }
 0x294   : > { %v3447_v8 = vsel %vm11685_vm4, %v3415_v1, %v7709_v57  ;;  %v3448_v49 = vsel %vm11686_vm3, %v3416_v54, %v7710_v17  ;;  %v6729_v18 = vpop.f32.mrb[131].mxu0  ;;  %6834 = vmatpush3.bf16.msra.mxu1 %v7871_v28  ;;  %v7886_v28 = vld [vmem:[%s11368_s5 + $0x78] sm:$0xff]  }
 0x295   : > { %v3495_v42 = vpack.c.bf16 %v3448_v49, %v3447_v8  ;;  %v3739_v21 = vadd.f32 %v6727_v16, %v9991_v20  ;;  %v6730_v51 = vadd.f32 %v6729_v18, %v6728_v56  ;;  %6835 = vmatprep.subr.bf16.mxu1 %v7872_v46  ;;  %v7875_v18 = vld [vmem:[%s11368_s5 + $0x10] sm:$0xff]  }
 0x297   : > { %3848 = vmatprep.mubr.bf16.mxu0 %v3495_v42  ;;  %v3900_v27 = vadd.f32 %v9840_v2, %v3739_v21  ;;  %v3742_v31 = vadd.f32 %v6730_v51, %v9991_v20  ;;  %v7873_v42 = vld [vmem:[%s11368_s5 + $0x8] sm:$0xff]   ;;  %v7876_v51 = vld [vmem:[%s11368_s5 + $0x58] sm:$0xff]  }
 0x298   : > { %3849 = vmatmul.mubr.bf16.gmra.mrb[184].mxu0 %v3494_v35  ;;  %6836 = vmatpush3.bf16.msra.mxu1 %v7873_v42 }
 0x299   : > { %v4020_v13 = vmax.f32 %v3900_v27, 0.0  ;;  %v3903_v30 = vadd.f32 %v9846_v25, %v3742_v31 }
 0x29b   : > { %v4050_v10 = vmax.f32 %v4018_v32, %v4020_v13  ;;  %v4021_v23 = vmax.f32 %v3903_v30, 0.0  ;;  %v7877_v32 = vld [vmem:[%s11368_s5 + $0x18] sm:$0xff]  }
 0x29d   : > { %4052 = vst.msk [vmem:[#allocation6] sm:$0xff] %vm11687_vm5, %v4050_v10  ;;  %v4051_v58 = vmax.f32 %v4019_v47, %v4021_v23  ;;  %vm11712_vm5 = vmmov %vm11681_vm2 }
 0x29f   : > { %4053 = vst.msk [vmem:[#allocation6 + $0x8] sm:$0xff] %vm11688_vm15, %v4051_v58  ;;  %vm11713_vm15 = vmmov %vm11681_vm2 }
 0x2a0   : > { %v10051_v22 = vpop.f32.mrb[20].mxu1 }
 0x2a1   : > { %v10053_v12 = vpop.f32.mrb[21].mxu1 }
 0x2a2   : > { %v10055_v11 = vpop.f32.mrb[22].mxu1 }
 0x2a3   : > { %v6731_v4 = vpop.f32.mrb[132].mxu0  ;;  %v10057_v50 = vpop.f32.mrb[23].mxu1 }
 0x2a4   : > { %v6732_v2 = vpop.f32.mrb[133].mxu0 }
 0x2a5   : > { %v6733_v38 = vadd.f32 %v6732_v2, %v6731_v4  ;;  %v6734_v40 = vpop.f32.mrb[134].mxu0  ;;  %v7878_v2 = vld [vmem:[%s11368_s5 + $0x60] sm:$0xff]  }
 0x2a6   : > { %v6735_v25 = vpop.f32.mrb[135].mxu0  ;;  %v4082_v14 = vld [vmem:[#allocation6] ss:$2 sm:$0xff]  ;;  %v4098_v29 = vld [vmem:[#allocation6 + $0x1] ss:$2 sm:$0xff] }
 0x2a7   : > { %v3747_v41 = vadd.f32 %v6733_v38, %v9991_v20  ;;  %v6736_v9 = vadd.f32 %v6735_v25, %v6734_v40  ;;  %v4113_v60 = vmax.f32 %v4082_v14, %v4098_v29  ;;  %v7879_v25 = vld [vmem:[%s11368_s5 + $0x20] sm:$0xff]   ;;  %v7880_v29 = vld [vmem:[%s11368_s5 + $0x68] sm:$0xff]  }
 0x2a9   : > { %v3908_v5 = vadd.f32 %v9894_v3, %v3747_v41  ;;  %v3750_v15 = vadd.f32 %v6736_v9, %v9991_v20  ;;  %4133 = vst.msk [vmem:[#allocation3 + $0x10] sm:$0xff] %vm11689_vm11, %v4113_v60  ;;  %v4141_v60 = vand.u32 7, %v8601_v52  ;;  %vm11714_vm11 = vmmov %vm11681_vm2 }
 0x2ab   : > { %v3911_v63 = vadd.f32 %v9898_v19, %v3750_v15  ;;  %v4022_v8 = vmax.f32 %v3908_v5, 0.0  ;;  %v7881_v5 = vld [vmem:[%s11368_s5 + $0x28] sm:$0xff]   ;;  %vm10140_vm1 = vcmp.ne.s32.totalorder %v4141_v60, 0  ;;  %vm10163_vm6 = vcmp.ne.s32.totalorder %v4141_v60, 7 }
 0x2ad   : > { %v4023_v43 = vmax.f32 %v3911_v63, 0.0 }
 0x2b0   : > { %v4182_v34 = vld [vmem:[#allocation3 + $0x10] sm:$0xff] }
 0x2b1   : > { %v7726_v33 = vpack.i.bf16 %v4182_v34, %v4181_v0  ;;  %v7882_v0 = vld [vmem:[%s11368_s5 + $0x100] sm:$0xff]   ;;  %v7883_v34 = vld [vmem:[%s11368_s5 + $0x70] sm:$0xff]  }
 0x2b2   : > { %7124 = vmatprep.subr.bf16.mxu0 %v7882_v0  ;;  %v10144_v46 = vld [vmem:[#allocation3 + $0xf] sm:$0xff] }
 0x2b3   : > { %7727 = vrot.lane.b32.xlu1 %v7726_v33, %s8231_s30  ;;  %v11694_v33 = vld [vmem:[#allocation11_spill] sm:$0xff]  ;;  %7125 = vmatpush3.bf16.msra.mxu0 %v7882_v0 }
 0x2b4   : > { %v4142_v55 = vand.u32 7, %v11694_v33 }
 0x2b5   : > { %v6737_v59 = vpop.f32.mrb[136].mxu0 }
 0x2b6   : > { %v6738_v3 = vpop.f32.mrb[137].mxu0  ;;  %vm10157_vm0 = vcmp.ne.s32.totalorder %v4142_v55, 0  ;;  %vm10242_vm3 = vcmp.ne.s32.totalorder %v4142_v55, 7 }
 0x2b7   : > { %v6739_v19 = vadd.f32 %v6738_v3, %v6737_v59  ;;  %v6740_v17 = vpop.f32.mrb[138].mxu0  ;;  %v7885_v59 = vld [vmem:[%s11368_s5 + $0x108] sm:$0xff]   ;;  %v7891_v3 = vld [vmem:[%s11368_s5 + $0x80] sm:$0xff]  }
 0x2b8   : > { %v6741_v57 = vpop.f32.mrb[139].mxu0  ;;  %7126 = vmatprep.subr.bf16.mxu0 %v7885_v59 }
 0x2b9   : > { %v3755_v1 = vadd.f32 %v6739_v19, %v9991_v20  ;;  %v6742_v54 = vadd.f32 %v6741_v57, %v6740_v17  ;;  %v7888_v17 = vld [vmem:[%s11368_s5 + $0x110] sm:$0xff]   ;;  %7127 = vmatpush3.bf16.msra.mxu0 %v7885_v59 }
 0x2ba   : > { %7128 = vmatprep.subr.bf16.mxu0 %v7888_v17 }
 0x2bb   : > { %v3916_v44 = vadd.f32 %v9890_v26, %v3755_v1  ;;  %v3758_v37 = vadd.f32 %v6742_v54, %v9991_v20  ;;  %v7874_v26 = vld [vmem:[%s11368_s5 + $0x50] sm:$0xff]  }
 0x2bc   : > { %6837 = vmatprep.subr.bf16.mxu1 %v7874_v26 }
 0x2bd   : > { %v4024_v49 = vmax.f32 %v3916_v44, 0.0  ;;  %v3919_v36 = vadd.f32 %v9896_v53, %v3758_v37  ;;  %6838 = vmatpush3.bf16.msra.mxu1 %v7875_v18  ;;  %v7887_v44 = vld [vmem:[%s11368_s5 + $0x38] sm:$0xff]   ;;  %7129 = vmatpush3.bf16.msra.mxu0 %v7888_v17 }
 0x2be   : > { %6839 = vmatprep.subr.bf16.mxu1 %v7876_v51 }
 0x2bf   : > { %v4054_v35 = vmax.f32 %v4022_v8, %v4024_v49  ;;  %v4025_v16 = vmax.f32 %v3919_v36, 0.0  ;;  %v4206_v49 = vsel %vm10140_vm1, %v10144_v46, 0.0 }
 0x2c1   : > { %4056 = vst.msk [vmem:[#allocation6 + $0x10] sm:$0xff] %vm11690_vm14, %v4054_v35  ;;  %v4055_v56 = vmax.f32 %v4023_v43, %v4025_v16  ;;  %6840 = vmatpush3.bf16.msra.mxu1 %v7877_v32 }
 0x2c2   : > { %6841 = vmatprep.subr.bf16.mxu1 %v7878_v2 }
 0x2c3   : > { %4057 = vst.msk [vmem:[#allocation6 + $0x18] sm:$0xff] %vm11691_vm7, %v4055_v56  ;;  %v7889_v56 = vld [vmem:[%s11368_s5 + $0x118] sm:$0xff]  }
 0x2c4   : > { %v10089_v53 = vpop.f32.mrb[24].mxu1  ;;  %7130 = vmatprep.subr.bf16.mxu0 %v7889_v56 }
 0x2c5   : > { %v6743_v21 = vpop.f32.mrb[140].mxu0  ;;  %v10094_v27 = vpop.f32.mrb[25].mxu1  ;;  %6842 = vmatpush3.bf16.msra.mxu1 %v7879_v25  ;;  %7131 = vmatpush3.bf16.msra.mxu0 %v7889_v56 }
 0x2c6   : > { %v6744_v31 = vpop.f32.mrb[141].mxu0  ;;  %v10099_v30 = vpop.f32.mrb[26].mxu1  ;;  %6843 = vmatprep.subr.bf16.mxu1 %v7880_v29 }
 0x2c7   : > { %v6745_v13 = vadd.f32 %v6744_v31, %v6743_v21  ;;  %v6746_v47 = vpop.f32.mrb[142].mxu0  ;;  %v10101_v10 = vpop.f32.mrb[27].mxu1 }
 0x2c8   : > { %v6747_v23 = vpop.f32.mrb[143].mxu0 }
 0x2c9   : > { %v3763_v58 = vadd.f32 %v6745_v13, %v9991_v20  ;;  %v6748_v4 = vadd.f32 %v6747_v23, %v6746_v47  ;;  %6844 = vmatpush3.bf16.msra.mxu1 %v7881_v5 }
 0x2ca   : > { %v4084_v38 = vld [vmem:[#allocation6 + $0x10] ss:$2 sm:$0xff]  ;;  %v4100_v40 = vld [vmem:[#allocation6 + $0x11] ss:$2 sm:$0xff]  ;;  %6845 = vmatprep.subr.bf16.mxu1 %v7883_v34 }
 0x2cb   : > { %v4114_v41 = vmax.f32 %v4084_v38, %v4100_v40  ;;  %v10111_v9 = vadd.f32 %v9942_v6, %v3763_v58  ;;  %v3766_v14 = vadd.f32 %v6748_v4, %v9991_v20  ;;  %v11693_v6 = vld [vmem:[#allocation12_spill] sm:$0xff] }
 0x2cc   : > { %v4143_v63 = vand.u32 7, %v11693_v6 }
 0x2cd   : > { %4134 = vst.msk [vmem:[#allocation3 + $0x18] sm:$0xff] %vm11692_vm8, %v4114_v41  ;;  %v3927_v15 = vadd.f32 %v9946_v45, %v3766_v14  ;;  %v7884_v45 = vld [vmem:[%s11368_s5 + $0x30] sm:$0xff]   ;;  %v4026_v58 = vmax.f32 %v10111_v9, 0.0  ;;  %vm11720_vm8 = vmmov %vm11681_vm2 }
 0x2ce   : > { %vm10148_vm13 = vcmp.ne.s32.totalorder %v4143_v63, 0  ;;  %6846 = vmatpush3.bf16.msra.mxu1 %v7884_v45  ;;  %vm10222_vm9 = vcmp.ne.s32.totalorder %v4143_v63, 7 }
 0x2cf   : > { %6847 = vmatprep.subr.bf16.mxu1 %v7886_v28  ;;  %v4027_v25 = vmax.f32 %v3927_v15, 0.0 }
 0x2d2   : > { %6848 = vmatpush3.bf16.msra.mxu1 %v7887_v44 }
 0x2d4   : > { %v10161_v1 = vld [vmem:[#allocation3 + $0x17] sm:$0xff] }
 0x2d5   : > { %v10170_v37 = vld [vmem:[#allocation3 + $0x11] sm:$0xff]  ;;  %v4207_v36 = vsel %vm10157_vm0, %v10161_v1, 0.0  ;;  %v4175_v42 = vsel %vm10148_vm13, %v10161_v1, 0.0  ;;  %v4225_v26 = vsel %vm10140_vm1, %v10161_v1, 0.0 }
 0x2d6   : > { %v6749_v8 = vpop.f32.mrb[144].mxu0  ;;  %v4216_v43 = vsel %vm10163_vm6, %v10170_v37, 0.0  ;;  %v7721_v16 = vpack.i.bf16 %v4207_v36, %v4206_v49  ;;  %v7892_v1 = vld [vmem:[%s11368_s5 + $0xc8] sm:$0xff]  }
 0x2d7   : > { %v6750_v35 = vpop.f32.mrb[145].mxu0 }
 0x2d8   : > { %v6751_v18 = vadd.f32 %v6750_v35, %v6749_v8  ;;  %v6752_v21 = vpop.f32.mrb[146].mxu0  ;;  %7722 = vrot.lane.b32.xlu0 %v7721_v16, %s8231_s30  ;;  %v11705_v16 = vld [vmem:[#allocation14_spill] sm:$0xff] }
 0x2d9   : > { %v6753_v51 = vpop.f32.mrb[147].mxu0  ;;  %v4144_v56 = vand.u32 7, %v11705_v16 }
 0x2da   : > { %v3771_v31 = vadd.f32 %v6751_v18, %v9991_v20  ;;  %v6754_v32 = vadd.f32 %v6753_v51, %v6752_v21  ;;  %v10226_v21 = vld [vmem:[#allocation3 + $0x18] sm:$0xff] }
 0x2db   : > { %v10194_v23 = vpop.f32.mrb[28].mxu1  ;;  %vm10228_vm4 = vcmp.ne.s32.totalorder %v4144_v56, 0  ;;  %vm10274_vm14 = vcmp.ne.s32.totalorder %v4144_v56, 7 }
 0x2dc   : > { %v3932_v13 = vadd.f32 %v9938_v7, %v3771_v31  ;;  %v3774_v47 = vadd.f32 %v6754_v32, %v9991_v20  ;;  %v10198_v38 = vpop.f32.mrb[29].mxu1 }
 0x2dd   : > { %v10200_v40 = vpop.f32.mrb[30].mxu1 }
 0x2de   : > { %v4028_v4 = vmax.f32 %v3932_v13, 0.0  ;;  %v3935_v2 = vadd.f32 %v9944_v61, %v3774_v47  ;;  %v10202_v29 = vpop.f32.mrb[31].mxu1 }
 0x2e0   : > { %v4058_v41 = vmax.f32 %v4026_v58, %v4028_v4  ;;  %v4029_v14 = vmax.f32 %v3935_v2, 0.0 }
 0x2e2   : > { %4060 = vst.msk [vmem:[#allocation6 + $0x20] sm:$0xff] %vm11681_vm2, %v4058_v41  ;;  %v4059_v7 = vmax.f32 %v4027_v25, %v4029_v14  ;;  %v6755_v5 = vpop.f32.mrb[148].mxu0 }
 0x2e3   : > { %v6756_v9 = vpop.f32.mrb[149].mxu0  ;;  %v10210_v49 = vpop.f32.mrb[32].mxu1 }
 0x2e4   : > { %4061 = vst.msk [vmem:[#allocation6 + $0x28] sm:$0xff] %vm11703_vm12, %v4059_v7  ;;  %v6757_v60 = vadd.f32 %v6756_v9, %v6755_v5  ;;  %v6758_v0 = vpop.f32.mrb[150].mxu0  ;;  %v10213_v36 = vpop.f32.mrb[33].mxu1  ;;  %vm11721_vm12 = vmmov %vm11681_vm2 }
 0x2e5   : > { %v6759_v61 = vpop.f32.mrb[151].mxu0  ;;  %v10215_v35 = vpop.f32.mrb[34].mxu1 }
 0x2e6   : > { %v3779_v34 = vadd.f32 %v6757_v60, %v9991_v20  ;;  %v6760_v59 = vadd.f32 %v6759_v61, %v6758_v0  ;;  %v10218_v18 = vpop.f32.mrb[35].mxu1 }
 0x2e8   : > { %v3940_v15 = vadd.f32 %v10005_v62, %v3779_v34  ;;  %v3782_v17 = vadd.f32 %v6760_v59, %v9991_v20 }
 0x2ea   : > { %v3943_v8 = vadd.f32 %v10015_v24, %v3782_v17  ;;  %v4030_v0 = vmax.f32 %v3940_v15, 0.0 }
 0x2eb   : > { %v4086_v45 = vld [vmem:[#allocation6 + $0x20] ss:$2 sm:$0xff]  ;;  %v4102_v28 = vld [vmem:[#allocation6 + $0x21] ss:$2 sm:$0xff] }
 0x2ec   : > { %v4115_v44 = vmax.f32 %v4086_v45, %v4102_v28  ;;  %v4031_v59 = vmax.f32 %v3943_v8, 0.0 }
 0x2ee   : > { %4135 = vst.msk [vmem:[#allocation3 + $0x20] sm:$0xff] %vm11704_vm10, %v4115_v44  ;;  %vm11722_vm10 = vmmov %vm11681_vm2 }
 0x2ef   : > { %v6761_v51 = vpop.f32.mrb[152].mxu0 }
 0x2f0   : > { %v6762_v47 = vpop.f32.mrb[153].mxu0 }
 0x2f1   : > { %v6763_v4 = vadd.f32 %v6762_v47, %v6761_v51  ;;  %v6764_v2 = vpop.f32.mrb[154].mxu0 }
 0x2f2   : > { %v6765_v55 = vpop.f32.mrb[155].mxu0 }
 0x2f3   : > { %v3787_v7 = vadd.f32 %v6763_v4, %v9991_v20  ;;  %v6766_v5 = vadd.f32 %v6765_v55, %v6764_v2  ;;  %v11715_v55 = vld [vmem:[#allocation13_spill] sm:$0xff] }
 0x2f5   : > { %v10232_v31 = vld [vmem:[#allocation3 + $0x20] sm:$0xff]  ;;  %v3948_v9 = vadd.f32 %v10000_v39, %v3787_v7  ;;  %v3790_v60 = vadd.f32 %v6766_v5, %v9991_v20  ;;  %v4145_v7 = vand.u32 7, %v11715_v55 }
 0x2f6   : > { %v10234_v32 = vld [vmem:[#allocation3 + $0x19] sm:$0xff]  ;;  %v7736_v6 = vpack.i.bf16 %v10232_v31, %v10226_v21 }
 0x2f7   : > { %v10236_v13 = vld [vmem:[#allocation3 + $0x1f] sm:$0xff]  ;;  %v4199_v58 = vsel %vm10222_vm9, %v10234_v32, 0.0  ;;  %v4217_v41 = vsel %vm10242_vm3, %v10234_v32, 0.0  ;;  %v4032_v61 = vmax.f32 %v3948_v9, 0.0  ;;  %v3951_v34 = vadd.f32 %v10007_v48, %v3790_v60 }
 0x2f8   : > { %v4176_v25 = vsel %vm10228_vm4, %v10236_v13, 0.0  ;;  %7737 = vrot.lane.b32.xlu1 %v7736_v6, %s8231_s30  ;;  %v10260_v14 = vpack.i.bf16 %v4217_v41, %v4216_v43  ;;  %vm10278_vm7 = vcmp.ne.s32.totalorder %v4145_v7, 0 }
 0x2f9   : > { %v4062_v45 = vmax.f32 %v4030_v0, %v4032_v61  ;;  %v4033_v28 = vmax.f32 %v3951_v34, 0.0 }
 0x2fb   : > { %4064 = vst.msk [vmem:[#allocation6 + $0x30] sm:$0xff] %vm11712_vm5, %v4062_v45  ;;  %v4063_v17 = vmax.f32 %v4031_v59, %v4033_v28  ;;  %vm11723_vm5 = vmmov %vm11681_vm2 }
 0x2fd   : > { %4065 = vst.msk [vmem:[#allocation6 + $0x38] sm:$0xff] %vm11713_vm15, %v4063_v17  ;;  %vm11724_vm15 = vmmov %vm11681_vm2 }
 0x2ff   : > { %v6767_v43 = vpop.f32.mrb[156].mxu0 }
 0x300   : > { %v6768_v44 = vpop.f32.mrb[157].mxu0 }
 0x301   : > { %v6769_v16 = vadd.f32 %v6768_v44, %v6767_v43  ;;  %v6770_v51 = vpop.f32.mrb[158].mxu0 }
 0x302   : > { %v6771_v47 = vpop.f32.mrb[159].mxu0 }
 0x303   : > { %v3795_v15 = vadd.f32 %v6769_v16, %v9991_v20  ;;  %v6772_v4 = vadd.f32 %v6771_v47, %v6770_v51 }
 0x304   : > { %v4088_v39 = vld [vmem:[#allocation6 + $0x30] ss:$2 sm:$0xff]  ;;  %v4104_v6 = vld [vmem:[#allocation6 + $0x31] ss:$2 sm:$0xff] }
 0x305   : > { %v4116_v2 = vmax.f32 %v4088_v39, %v4104_v6  ;;  %v3956_v48 = vadd.f32 %v10053_v12, %v3795_v15  ;;  %v3798_v8 = vadd.f32 %v6772_v4, %v9991_v20  ;;  %v4235_v12 = vsel %vm10163_vm6, %v10234_v32, 0.0 }
 0x307   : > { %4136 = vst.msk [vmem:[#allocation3 + $0x28] sm:$0xff] %vm11714_vm11, %v4116_v2  ;;  %v3959_v41 = vadd.f32 %v10057_v50, %v3798_v8  ;;  %v4208_v50 = vsel %vm10148_vm13, %v10236_v13, 0.0  ;;  %v4034_v8 = vmax.f32 %v3956_v48, 0.0  ;;  %vm10332_vm11 = vcmp.ne.s32.totalorder %v4145_v7, 7 }
 0x30e   : > { %v10282_v60 = vld [vmem:[#allocation3 + $0x21] sm:$0xff] }
 0x30f   : > { %v10287_v0 = vld [vmem:[#allocation3 + $0x27] sm:$0xff]  ;;  %v6773_v56 = vpop.f32.mrb[160].mxu0  ;;  %v4236_v61 = vsel %vm10242_vm3, %v10282_v60, 0.0  ;;  %v4218_v59 = vsel %vm10222_vm9, %v10282_v60, 0.0  ;;  %v4200_v45 = vsel %vm10274_vm14, %v10282_v60, 0.0 }
 0x310   : > { %v4209_v34 = vsel %vm10228_vm4, %v10287_v0, 0.0  ;;  %v6774_v28 = vpop.f32.mrb[161].mxu0  ;;  %v4383_v17 = vpack.c.bf16 %v4236_v61, %v4235_v12  ;;  %v4177_v44 = vsel %vm10278_vm7, %v10287_v0, 0.0  ;;  %v4227_v16 = vsel %vm10148_vm13, %v10287_v0, 0.0 }
 0x311   : > { %v7731_v43 = vpack.i.bf16 %v4209_v34, %v4208_v50  ;;  %v6775_v51 = vadd.f32 %v6774_v28, %v6773_v56  ;;  %v6776_v47 = vpop.f32.mrb[162].mxu0  ;;  %v4035_v50 = vmax.f32 %v3959_v41, 0.0 }
 0x312   : > { %v6777_v39 = vpop.f32.mrb[163].mxu0  ;;  %7132 = vmatprep.mubr.msk.bf16.mxu0 %vm11720_vm8, %v4383_v17  ;;  %vm11727_vm8 = vmmov %vm11681_vm2 }
 0x313   : > { %7732 = vrot.lane.b32.xlu0 %v7731_v43, %s8231_s30  ;;  %v3803_v6 = vadd.f32 %v6775_v51, %v9991_v20  ;;  %v6778_v15 = vadd.f32 %v6777_v39, %v6776_v47  ;;  %v4165_v47 = vld [vmem:[#allocation3 + $0x7] sm:$0xff] }
 0x315   : > { %v3964_v4 = vadd.f32 %v10051_v22, %v3803_v6  ;;  %v3806_v2 = vadd.f32 %v6778_v15, %v9991_v20 }
 0x317   : > { %v4036_v55 = vmax.f32 %v3964_v4, 0.0  ;;  %v3967_v12 = vadd.f32 %v10055_v11, %v3806_v2  ;;  %v4173_v11 = vsel %vm10140_vm1, %v4165_v47, 0.0 }
 0x319   : > { %v4066_v61 = vmax.f32 %v4034_v8, %v4036_v55  ;;  %v4037_v56 = vmax.f32 %v3967_v12, 0.0  ;;  %v4174_v12 = vsel %vm10157_vm0, %v10144_v46, 0.0 }
 0x31b   : > { %4068 = vst.msk [vmem:[#allocation6 + $0x40] sm:$0xff] %vm11681_vm2, %v4066_v61  ;;  %v4067_v34 = vmax.f32 %v4035_v50, %v4037_v56 }
 0x31d   : > { %4069 = vst.msk [vmem:[#allocation6 + $0x48] sm:$0xff] %vm11721_vm12, %v4067_v34  ;;  %vm11728_vm12 = vmmov %vm11681_vm2 }
 0x320   : > { %v6779_v28 = vpop.f32.mrb[164].mxu0 }
 0x321   : > { %v6780_v17 = vpop.f32.mrb[165].mxu0 }
 0x322   : > { %v6781_v43 = vadd.f32 %v6780_v17, %v6779_v28  ;;  %v6782_v51 = vpop.f32.mrb[166].mxu0  ;;  %v10330_v17 = vld [vmem:[#allocation3 + $0x28] sm:$0xff] }
 0x323   : > { %v6783_v22 = vpop.f32.mrb[167].mxu0 }
 0x324   : > { %v3811_v39 = vadd.f32 %v6781_v43, %v9991_v20  ;;  %v6784_v48 = vadd.f32 %v6783_v22, %v6782_v51  ;;  %v4090_v6 = vld [vmem:[#allocation6 + $0x40] ss:$2 sm:$0xff]  ;;  %v4106_v15 = vld [vmem:[#allocation6 + $0x41] ss:$2 sm:$0xff] }
 0x325   : > { %v7728_v41 = vpop.permute.xlu1 %7727  ;;  %v4117_v4 = vmax.f32 %v4090_v6, %v4106_v15 }
 0x326   : > { %v3972_v2 = vadd.f32 %v10094_v27, %v3811_v39  ;;  %v3814_v8 = vadd.f32 %v6784_v48, %v9991_v20  ;;  %v7730_v55 = vunpack.i.h.bf16 %v7728_v41  ;;  %v7729_v50 = vunpack.i.l.bf16 %v7728_v41 }
 0x327   : > { %4137 = vst.msk [vmem:[#allocation3 + $0x30] sm:$0xff] %vm11722_vm10, %v4117_v4  ;;  %vm11729_vm10 = vmmov %vm11681_vm2 }
 0x328   : > { %v3975_v61 = vadd.f32 %v10101_v10, %v3814_v8  ;;  %v4348_v56 = vsel %vm11723_vm5, %v4174_v12, %v7730_v55  ;;  %v4347_v34 = vsel %vm11724_vm15, %v4173_v11, %v7729_v50  ;;  %v4038_v12 = vmax.f32 %v3972_v2, 0.0  ;;  %vm11730_vm5 = vmmov %vm11681_vm2 }
 0x329   : > { %v4379_v28 = vpack.c.bf16 %v4348_v56, %v4347_v34 }
 0x32a   : > { %v4039_v34 = vmax.f32 %v3975_v61, 0.0 }
 0x32e   : > { %v10336_v43 = vld [vmem:[#allocation3 + $0x29] sm:$0xff] }
 0x32f   : > { %v10338_v51 = vld [vmem:[#allocation3 + $0x30] sm:$0xff]  ;;  %v4219_v22 = vsel %vm10274_vm14, %v10336_v43, 0.0 }
 0x330   : > { %v10340_v46 = vld [vmem:[#allocation3 + $0x2f] sm:$0xff]  ;;  %v7746_v10 = vpack.i.bf16 %v10338_v51, %v10330_v17  ;;  %v10347_v48 = vpack.i.bf16 %v4219_v22, %v4218_v59 }
 0x331   : > { %v4228_v6 = vsel %vm10228_vm4, %v10340_v46, 0.0 }
 0x332   : > { %v6785_v47 = vpop.f32.mrb[168].mxu0  ;;  %7747 = vrot.lane.b32.xlu1 %v7746_v10, %s8231_s30 }
 0x333   : > { %v6786_v39 = vpop.f32.mrb[169].mxu0 }
 0x334   : > { %v6787_v15 = vadd.f32 %v6786_v39, %v6785_v47  ;;  %v6788_v11 = vpop.f32.mrb[170].mxu0 }
 0x335   : > { %v6789_v41 = vpop.f32.mrb[171].mxu0 }
 0x336   : > { %v3819_v4 = vadd.f32 %v6787_v15, %v9991_v20  ;;  %v6790_v8 = vadd.f32 %v6789_v41, %v6788_v11 }
 0x338   : > { %v3980_v55 = vadd.f32 %v10089_v53, %v3819_v4  ;;  %v3822_v59 = vadd.f32 %v6790_v8, %v9991_v20 }
 0x33a   : > { %v4040_v50 = vmax.f32 %v3980_v55, 0.0  ;;  %v3983_v56 = vadd.f32 %v10099_v30, %v3822_v59  ;;  %v4189_v55 = vld [vmem:[#allocation3 + $0x9] sm:$0xff] }
 0x33c   : > { %v4070_v22 = vmax.f32 %v4038_v12, %v4040_v50  ;;  %v4041_v7 = vmax.f32 %v3983_v56, 0.0 }
 0x33e   : > { %4072 = vst.msk [vmem:[#allocation6 + $0x50] sm:$0xff] %vm11727_vm8, %v4070_v22  ;;  %v4071_v47 = vmax.f32 %v4039_v34, %v4041_v7  ;;  %v4197_v34 = vsel %vm10163_vm6, %v4189_v55, 0.0  ;;  %v4198_v22 = vsel %vm10242_vm3, %v10170_v37, 0.0  ;;  %v4237_v37 = vsel %vm10222_vm9, %v10336_v43, 0.0  ;;  %vm11739_vm8 = vmmov %vm11681_vm2 }
 0x340   : > { %4073 = vst.msk [vmem:[#allocation6 + $0x58] sm:$0xff] %vm11681_vm2, %v4071_v47 }
 0x343   : > { %v6791_v10 = vpop.f32.mrb[172].mxu0 }
 0x344   : > { %v6792_v39 = vpop.f32.mrb[173].mxu0 }
 0x345   : > { %v6793_v15 = vadd.f32 %v6792_v39, %v6791_v10  ;;  %v6794_v11 = vpop.f32.mrb[174].mxu0  ;;  %v11731_v10 = vld [vmem:[#allocation16_spill] sm:$0xff] }
 0x346   : > { %v6795_v41 = vpop.f32.mrb[175].mxu0  ;;  %v4147_v39 = vand.u32 7, %v11731_v10 }
 0x347   : > { %v3827_v53 = vadd.f32 %v6793_v15, %v9991_v20  ;;  %v6796_v4 = vadd.f32 %v6795_v41, %v6794_v11  ;;  %v4092_v2 = vld [vmem:[#allocation6 + $0x50] ss:$2 sm:$0xff]  ;;  %v4108_v8 = vld [vmem:[#allocation6 + $0x51] ss:$2 sm:$0xff]  ;;  %v11732_v11 = vld [vmem:[#allocation15_spill] sm:$0xff] }
 0x348   : > { %v4118_v30 = vmax.f32 %v4092_v2, %v4108_v8  ;;  %v4146_v41 = vand.u32 7, %v11732_v11  ;;  %vm10382_vm6 = vcmp.ne.s32.totalorder %v4147_v39, 0  ;;  %v4210_v8 = vsel %vm10278_vm7, %v10340_v46, 0.0 }
 0x349   : > { %v3988_v61 = vadd.f32 %v10198_v38, %v3827_v53  ;;  %v3830_v59 = vadd.f32 %v6796_v4, %v9991_v20  ;;  %vm10482_vm1 = vcmp.ne.s32.totalorder %v4147_v39, 7 }
 0x34a   : > { %v7723_v12 = vpop.permute.xlu0 %7722  ;;  %4138 = vst.msk [vmem:[#allocation3 + $0x38] sm:$0xff] %vm11728_vm12, %v4118_v30  ;;  %vm10376_vm15 = vcmp.ne.s32.totalorder %v4146_v41, 7  ;;  %vm10391_vm3 = vcmp.ne.s32.totalorder %v4146_v41, 0  ;;  %vm11740_vm12 = vmmov %vm11681_vm2 }
 0x34b   : > { %v7725_v7 = vunpack.i.h.bf16 %v7723_v12  ;;  %v7724_v50 = vunpack.i.l.bf16 %v7723_v12  ;;  %v3991_v56 = vadd.f32 %v10202_v29, %v3830_v59 }
 0x34d   : > { %v4355_v47 = vsel %vm11729_vm10, %v4197_v34, %v7724_v50  ;;  %v4356_v38 = vsel %vm11730_vm5, %v4198_v22, %v7725_v7  ;;  %v4043_v50 = vmax.f32 %v3991_v56, 0.0  ;;  %vm11741_vm10 = vmmov %vm11681_vm2 }
 0x34e   : > { %v4380_v15 = vpack.c.bf16 %v4356_v38, %v4355_v47  ;;  %vm11742_vm5 = vmmov %vm11681_vm2 }
 0x350   : > { %4738 = vmatprep.mubr.bf16.mxu1 %v4380_v15 }
 0x351   : > { %4739 = vmatmul.mubr.bf16.vlgmr.msra.gmra.mrb[36].mxu1 %v4379_v28  ;;  %v10389_v63 = vld [vmem:[#allocation3 + $0x31] sm:$0xff] }
 0x352   : > { %v10395_v28 = vld [vmem:[#allocation3 + $0x37] sm:$0xff]  ;;  %v4238_v2 = vsel %vm10274_vm14, %v10389_v63, 0.0  ;;  %v4220_v39 = vsel %vm10332_vm11, %v10389_v63, 0.0  ;;  %v11764_v0 = vsel %vm10376_vm15, %v10389_v63, 0.0 }
 0x353   : > { %v4211_v55 = vsel %vm10391_vm3, %v10395_v28, 0.0  ;;  %v4388_v12 = vpack.c.bf16 %v4238_v2, %v4237_v37  ;;  %v4042_v2 = vmax.f32 %v3988_v61, 0.0 }
 0x354   : > { %v6797_v4 = vpop.f32.mrb[176].mxu0  ;;  %v7741_v7 = vpack.i.bf16 %v4211_v55, %v4210_v8 }
 0x355   : > { %v6798_v59 = vpop.f32.mrb[177].mxu0  ;;  %7133 = vmatmul.mubr.msk.bf16.vlgmr.msra.gmra.mrb[188].mxu0 %vm11739_vm8, %v4388_v12  ;;  %vm11743_vm8 = vmmov %vm11681_vm2 }
 0x356   : > { %v6799_v22 = vadd.f32 %v6798_v59, %v6797_v4  ;;  %v6800_v47 = vpop.f32.mrb[178].mxu0  ;;  %7742 = vrot.lane.b32.xlu0 %v7741_v7, %s8231_s30 }
 0x357   : > { %v6801_v38 = vpop.f32.mrb[179].mxu0 }
 0x358   : > { %v3835_v15 = vadd.f32 %v6799_v22, %v9991_v20  ;;  %v6802_v11 = vadd.f32 %v6801_v38, %v6800_v47 }
 0x35a   : > { %v3996_v41 = vadd.f32 %v10194_v23, %v3835_v15  ;;  %v3838_v37 = vadd.f32 %v6802_v11, %v9991_v20 }
 0x35c   : > { %v4044_v8 = vmax.f32 %v3996_v41, 0.0  ;;  %v3999_v55 = vadd.f32 %v10200_v40, %v3838_v37 }
 0x35e   : > { %v4074_v34 = vmax.f32 %v4042_v2, %v4044_v8  ;;  %v4045_v4 = vmax.f32 %v3999_v55, 0.0 }
 0x360   : > { %4076 = vst.msk [vmem:[#allocation6 + $0x60] sm:$0xff] %vm11681_vm2, %v4074_v34  ;;  %v4075_v59 = vmax.f32 %v4043_v50, %v4045_v4  ;;  %v6803_v12 = vpop.f32.mrb[180].mxu0 }
 0x361   : > { %v6804_v30 = vpop.f32.mrb[181].mxu0 }
 0x362   : > { %4077 = vst.msk [vmem:[#allocation6 + $0x68] sm:$0xff] %vm11740_vm12, %v4075_v59  ;;  %v6805_v7 = vadd.f32 %v6804_v30, %v6803_v12  ;;  %v6806_v22 = vpop.f32.mrb[182].mxu0  ;;  %v4226_v30 = vsel %vm10157_vm0, %v10236_v13, 0.0  ;;  %vm11744_vm0 = vmmov %vm11681_vm2  ;;  %v7890_v13 = vld [vmem:[%s11368_s5 + $0xc0] sm:$0xff]  }
 0x363   : > { %v6807_v47 = vpop.f32.mrb[183].mxu0  ;;  %vm11745_vm2 = vmmov %vm11744_vm0  ;;  %v11746_v12 = vld [vmem:[#allocation17_spill] sm:$0xff]  ;;  %6873 = vmatprep.subr.bf16.mxu1 %v7890_v13 }
 0x364   : > { %v6808_v23 = vadd.f32 %v6807_v47, %v6806_v22  ;;  %v3843_v38 = vadd.f32 %v6805_v7, %v9991_v20  ;;  %v4148_v7 = vand.u32 7, %v11746_v12  ;;  %6874 = vmatpush3.bf16.msra.mxu1 %v7891_v3  ;;  %v7897_v12 = vld [vmem:[%s11368_s5 + $0x98] sm:$0xff]   ;;  %vm11758_vm9 = vmmov %vm11745_vm2 }
 0x365   : > { %6875 = vmatprep.subr.bf16.mxu1 %v7892_v1  ;;  %vm11759_vm14 = vmmov %vm11745_vm2 }
 0x366   : > { %v4004_v61 = vadd.f32 %v10213_v36, %v3843_v38  ;;  %v3846_v40 = vadd.f32 %v6808_v23, %v9991_v20  ;;  %v7893_v23 = vld [vmem:[%s11368_s5 + $0x88] sm:$0xff]   ;;  %vm10491_vm12 = vcmp.ne.s32.totalorder %v4148_v7, 0  ;;  %vm11765_vm13 = vmmov %vm11745_vm2 }
 0x367   : > { %vm11767_vm4 = vmmov %vm11745_vm2 }
 0x368   : > { %v4007_v56 = vadd.f32 %v10218_v18, %v3846_v40  ;;  %6876 = vmatpush3.bf16.msra.mxu1 %v7893_v23 }
 0x369   : > { %v4094_v15 = vld [vmem:[#allocation6 + $0x60] ss:$2 sm:$0xff]  ;;  %v4110_v11 = vld [vmem:[#allocation6 + $0x61] ss:$2 sm:$0xff] }
 0x36a   : > { %v7738_v34 = vpop.permute.xlu1 %7737  ;;  %v4119_v50 = vmax.f32 %v4094_v15, %v4110_v11  ;;  %v7894_v15 = vld [vmem:[%s11368_s5 + $0xd0] sm:$0xff]   ;;  %v10478_v11 = vld [vmem:[#allocation3 + $0x38] sm:$0xff] }
 0x36b   : > { %v7740_v41 = vunpack.i.h.bf16 %v7738_v34  ;;  %v7739_v37 = vunpack.i.l.bf16 %v7738_v34  ;;  %v6809_v2 = vpop.f32.mrb[184].mxu0  ;;  %6877 = vmatprep.subr.bf16.mxu1 %v7894_v15  ;;  %v7900_v15 = vld [vmem:[%s11368_s5 + $0xe8] sm:$0xff]  }
 0x36c   : > { %4139 = vst.msk [vmem:[#allocation3 + $0x40] sm:$0xff] %vm11741_vm10, %v4119_v50  ;;  %v6810_v8 = vpop.f32.mrb[185].mxu0  ;;  %v4046_v50 = vmax.f32 %v4004_v61, 0.0  ;;  %v7895_v61 = vld [vmem:[%s11368_s5 + $0x90] sm:$0xff]   ;;  %vm11751_vm10 = vmmov %vm11744_vm0 }
 0x36d   : > { %v10436_v36 = vsel %vm11742_vm5, %v4175_v42, %v7739_v37  ;;  %v10443_v18 = vsel %vm11743_vm8, %v4176_v25, %v7740_v41  ;;  %v10450_v57 = vsel %vm11744_vm0, %v4225_v26, %v7739_v37  ;;  %v10453_v55 = vsel %vm11745_vm2, %v4226_v30, %v7740_v41  ;;  %v6812_v42 = vpop.f32.mrb[186].mxu0  ;;  %6878 = vmatpush3.bf16.msra.mxu1 %v7895_v61  ;;  %vm11752_vm5 = vmmov %vm11744_vm0 }
 0x36e   : > { %v6811_v4 = vadd.f32 %v6810_v8, %v6809_v2  ;;  %v4384_v59 = vpack.c.bf16 %v10443_v18, %v10436_v36  ;;  %v4382_v26 = vpack.c.bf16 %v10453_v55, %v10450_v57  ;;  %v6813_v25 = vpop.f32.mrb[187].mxu0  ;;  %v4047_v8 = vmax.f32 %v4007_v56, 0.0  ;;  %v7896_v56 = vld [vmem:[%s11368_s5 + $0xd8] sm:$0xff]   ;;  %vm11753_vm8 = vmmov %vm11744_vm0 }
 0x36f   : > { %v6814_v47 = vadd.f32 %v6813_v25, %v6812_v42  ;;  %6879 = vmatprep.subr.bf16.mxu1 %v7896_v56  ;;  %vm10540_vm0 = vcmp.ne.s32.totalorder %v4148_v7, 7 }
 0x370   : > { %v3851_v22 = vadd.f32 %v6811_v4, %v9991_v20 }
 0x371   : > { %v3854_v40 = vadd.f32 %v6814_v47, %v9991_v20  ;;  %6880 = vmatpush3.bf16.msra.mxu1 %v7897_v12 }
 0x372   : > { %v4012_v38 = vadd.f32 %v10210_v49, %v3851_v22  ;;  %v7898_v22 = vld [vmem:[%s11368_s5 + $0xe0] sm:$0xff]  }
 0x373   : > { %v4015_v37 = vadd.f32 %v10215_v35, %v3854_v40  ;;  %v10487_v49 = vld [vmem:[#allocation3 + $0x40] sm:$0xff]  ;;  %6881 = vmatprep.subr.bf16.mxu1 %v7898_v22 }
 0x374   : > { %v4048_v41 = vmax.f32 %v4012_v38, 0.0  ;;  %v10489_v20 = vld [vmem:[#allocation3 + $0x39] sm:$0xff]  ;;  %v7756_v10 = vpack.i.bf16 %v10487_v49, %v10478_v11  ;;  %v7899_v38 = vld [vmem:[%s11368_s5 + $0xa0] sm:$0xff]  }
 0x375   : > { %v10495_v30 = vld [vmem:[#allocation3 + $0x3f] sm:$0xff]  ;;  %v4221_v35 = vsel %vm10376_vm15, %v10489_v20, 0.0  ;;  %v4049_v42 = vmax.f32 %v4015_v37, 0.0  ;;  %v4203_v3 = vsel %vm10482_vm1, %v10489_v20, 0.0  ;;  %6882 = vmatpush3.bf16.msra.mxu1 %v7899_v38  ;;  %v4233_v37 = vld [vmem:[#allocation3 + $0x50] sm:$0xff]  ;;  %v4239_v56 = vsel %vm10332_vm11, %v10489_v20, 0.0 }
 0x376   : > { %v4078_v4 = vmax.f32 %v4046_v50, %v4048_v41  ;;  %v10508_v13 = vpack.i.bf16 %v4221_v35, %v4220_v39  ;;  %7757 = vrot.lane.b32.xlu1 %v7756_v10, %s8231_s30  ;;  %v4180_v1 = vsel %vm10491_vm12, %v10495_v30, 0.0  ;;  %v7901_v50 = vld [vmem:[%s11368_s5 + $0xa8] sm:$0xff]   ;;  %6883 = vmatprep.subr.bf16.mxu1 %v7900_v15  ;;  %v7903_v10 = vld [vmem:[%s11368_s5 + $0xb0] sm:$0xff]   ;;  %v7904_v35 = vld [vmem:[%s11368_s5 + $0xf8] sm:$0xff]   ;;  %v4230_v27 = vsel %vm10391_vm3, %v10495_v30, 0.0 }
 0x377   : > { %v4079_v25 = vmax.f32 %v4047_v8, %v4049_v42  ;;  %v4234_v41 = vld [vmem:[#allocation3 + $0x51] sm:$0xff]  ;;  %v7902_v8 = vld [vmem:[%s11368_s5 + $0xf0] sm:$0xff]   ;;  %v7905_v15 = vld [vmem:[%s11368_s5 + $0xb8] sm:$0xff]  }
 0x378   : > { %4080 = vst.msk [vmem:[#allocation6 + $0x70] sm:$0xff] %vm11751_vm10, %v4078_v4  ;;  %v4242_v12 = vsel %vm10540_vm0, %v4234_v41, 0.0  ;;  %vm11756_vm10 = vmmov %vm11745_vm2 }
 0x379   : > { %4081 = vst.msk [vmem:[#allocation6 + $0x78] sm:$0xff] %vm11752_vm5, %v4079_v25  ;;  %6884 = vmatpush3.bf16.msra.mxu1 %v7901_v50  ;;  %vm11757_vm5 = vmmov %vm11745_vm2 }
 0x37a   : > { %7767 = vrot.lane.b32.xlu1 %v10347_v48, %s8231_s30  ;;  %6885 = vmatprep.subr.bf16.mxu1 %v7902_v8  ;;  %v8163_v48 = vld [vmem:[#allocation3 + $0x10] sm:$0xff] }
 0x37d   : > { %6886 = vmatpush3.bf16.msra.mxu1 %v7903_v10 }
 0x37e   : > { %6887 = vmatprep.subr.bf16.mxu1 %v7904_v35 }
 0x380   : > { %v4096_v47 = vld [vmem:[#allocation6 + $0x70] ss:$2 sm:$0xff]  ;;  %v4112_v23 = vld [vmem:[#allocation6 + $0x71] ss:$2 sm:$0xff] }
 0x381   : > { %v4120_v40 = vmax.f32 %v4096_v47, %v4112_v23  ;;  %v4212_v23 = vsel %vm10382_vm6, %v10495_v30, 0.0  ;;  %6888 = vmatpush3.bf16.msra.mxu1 %v7905_v15 }
 0x383   : > { %4140 = vst.msk [vmem:[#allocation3 + $0x48] sm:$0xff] %vm11753_vm8, %v4120_v40  ;;  %vm11760_vm8 = vmmov %vm11745_vm2 }
 0x385   : > { %v7733_v39 = vpop.permute.xlu0 %7732 }
 0x386   : > { %v7735_v61 = vunpack.i.h.bf16 %v7733_v39  ;;  %v7734_v7 = vunpack.i.l.bf16 %v7733_v39 }
 0x388   : > { %v4358_v8 = vsel %vm11756_vm10, %v4200_v45, %v7735_v61  ;;  %vm11761_vm10 = vmmov %vm11745_vm2 }
 0x38a   : > { %v10553_v4 = vld [vmem:[#allocation3 + $0x48] sm:$0xff] }
 0x38b   : > { %v10555_v42 = vld [vmem:[#allocation3 + $0x41] sm:$0xff]  ;;  %v7776_v22 = vpack.i.bf16 %v4233_v37, %v10553_v4  ;;  %v4215_v40 = vld [vmem:[#allocation3 + $0x49] sm:$0xff]  ;;  %v4357_v37 = vsel %vm11745_vm2, %v4199_v58, %v7734_v7 }
 0x38c   : > { %v10560_v25 = vld [vmem:[#allocation3 + $0x47] sm:$0xff]  ;;  %v4240_v47 = vsel %vm10376_vm15, %v10555_v42, 0.0  ;;  %v4385_v10 = vpack.c.bf16 %v4358_v8, %v4357_v37  ;;  %v4241_v39 = vsel %vm10482_vm1, %v4215_v40, 0.0  ;;  %v4222_v58 = vsel %vm10482_vm1, %v10555_v42, 0.0  ;;  %vm11770_vm15 = vmmov %vm11745_vm2 }
 0x38d   : > { %v4213_v38 = vsel %vm10491_vm12, %v10560_v25, 0.0  ;;  %v4393_v50 = vpack.c.bf16 %v4240_v47, %v4239_v56  ;;  %7777 = vrot.lane.b32.xlu1 %v7776_v22, %s8231_s30  ;;  %v4398_v62 = vpack.c.bf16 %v4242_v12, %v4241_v39  ;;  %v4231_v32 = vsel %vm10382_vm6, %v10560_v25, 0.0  ;;  %vm11777_vm1 = vmmov %vm11745_vm2 }
 0x38e   : > { %v7751_v41 = vpack.i.bf16 %v4213_v38, %v4212_v23  ;;  %4746 = vmatprep.mubr.bf16.mxu1 %v4385_v10  ;;  %v4223_v5 = vsel %vm10540_vm0, %v4215_v40, 0.0  ;;  %v11769_v23 = vsel %vm10278_vm7, %v10395_v28, 0.0  ;;  %v4204_v9 = vsel %vm10540_vm0, %v10555_v42, 0.0  ;;  %vm11772_vm7 = vmmov %vm11745_vm2 }
 0x38f   : > { %7136 = vmatprep.mubr.msk.bf16.mxu0 %vm11757_vm5, %v4393_v50  ;;  %4747 = vmatmul.mubr.bf16.gmra.mrb[40].mxu1 %v4384_v59  ;;  %v7781_v60 = vpack.i.bf16 %v4223_v5, %v4222_v58  ;;  %vm11763_vm5 = vmmov %vm11745_vm2  ;;  %v4224_v50 = vld [vmem:[#allocation3 + $0x4f] sm:$0xff] }
 0x390   : > { %7752 = vrot.lane.b32.xlu0 %v7751_v41, %s8231_s30  ;;  %7137 = vmatmul.mubr.msk.bf16.gmra.mrb[192].mxu0 %vm11758_vm9, %v4398_v62  ;;  %vm11771_vm9 = vmmov %vm11745_vm2 }
 0x391   : > { %vm11778_vm0 = vmmov %vm11777_vm1 }
 0x394   : > { %7762 = vrot.lane.b32.xlu0 %v10260_v14, %s8231_s30  ;;  %v4178_v14 = vsel %vm10391_vm3, %v10340_v46, 0.0  ;;  %vm11774_vm3 = vmmov %vm11745_vm2 }
 0x398   : > { %7772 = vrot.lane.b32.xlu0 %v10508_v13, %s8231_s30 }
 0x39c   : > { %7782 = vrot.lane.b32.xlu0 %v7781_v60, %s8231_s30  ;;  %s8168_s30 = sshll.u32 %s8234_s21, 4  ;;  %s8169_s30 = int_to_ptr.vmem [resolvable:$false] %s8168_s30 }
 0x39d   : > { %s8170_s13 = scalar_lea.vmem %s8169_s30, 32  ;;  %p8171_p0 = scmp.lt.s32.totalorder %s11323_s16, %s8169_s30 }
 0x39e   : > { %p8172_p1 = scmp.lt.s32.totalorder %s8170_s13, %s8164_s25 }
 0x3a0   : > { %p8173_p2 = por %p8172_p1, %p8171_p0 }
 0x3a2   : > { %p8174_p3 = pnand %p8173_p2, %p8167_p13 }
 0x3a4   : > { %v7748_v45 = vpop.permute.xlu1 %7747 }
 0x3a5   : > { %v7750_v35 = vunpack.i.h.bf16 %v7748_v45  ;;  %v7749_v36 = vunpack.i.l.bf16 %v7748_v45 }
 0x3a7   : > { %v4351_v18 = vsel %vm11759_vm14, %v4177_v44, %v7749_v36  ;;  %v4352_v59 = vsel %vm11760_vm8, %v4178_v14, %v7750_v35  ;;  %v4373_v13 = vsel %vm11745_vm2, %v4227_v16, %v7749_v36  ;;  %v4374_v61 = vsel %vm11761_vm10, %v4228_v6, %v7750_v35  ;;  %vm11775_vm14 = vmmov %vm11745_vm2 }
 0x3a8   : > { %v4389_v7 = vpack.c.bf16 %v4352_v59, %v4351_v18  ;;  %v4387_v56 = vpack.c.bf16 %v4374_v61, %v4373_v13  ;;  %v11762_v44 = vsel %vm10332_vm11, %v10336_v43, 0.0  ;;  %v11766_v43 = vsel %vm10382_vm6, %v10395_v28, 0.0  ;;  %vm11768_vm11 = vmmov %vm11745_vm2 }
 0x3a9   : > { %vm11773_vm6 = vmmov %vm11745_vm2 }
 0x3aa   : > { %vm11779_vm8 = vmmov %vm11778_vm0 }
 0x3ab   : > { %vm11781_vm10 = vmmov %vm11778_vm0 }
 0x3c8   : > { %v7743_v25 = vpop.permute.xlu0 %7742 }
 0x3c9   : > { %v7745_v12 = vunpack.i.h.bf16 %v7743_v25  ;;  %v7744_v22 = vunpack.i.l.bf16 %v7743_v25 }
 0x3cb   : > { %v4359_v19 = vsel %vm11763_vm5, %v11762_v44, %v7744_v22  ;;  %v4360_v24 = vsel %vm11765_vm13, %v11764_v0, %v7745_v12  ;;  %vm11782_vm5 = vmmov %vm11778_vm0 }
 0x3cc   : > { %v4390_v16 = vpack.c.bf16 %v4360_v24, %v4359_v19  ;;  %vm11783_vm13 = vmmov %vm11778_vm0 }
 0x3ce   : > { %4754 = vmatprep.mubr.bf16.mxu1 %v4390_v16 }
 0x3cf   : > { %4755 = vmatmul.mubr.bf16.gmra.mrb[44].mxu1 %v4389_v7 }
 0x3e8   : > { %v7758_v46 = vpop.permute.xlu1 %7757 }
 0x3e9   : > { %v7760_v6 = vunpack.i.h.bf16 %v7758_v46  ;;  %v7759_v47 = vunpack.i.l.bf16 %v7758_v46 }
 0x3eb   : > { %v4353_v29 = vsel %vm11767_vm4, %v11766_v43, %v7759_v47  ;;  %v4354_v63 = vsel %vm11768_vm11, %v4180_v1, %v7760_v6  ;;  %v4375_v38 = vsel %vm11770_vm15, %v11769_v23, %v7759_v47  ;;  %v4376_v53 = vsel %vm11771_vm9, %v4230_v27, %v7760_v6  ;;  %v7908_v6 = vld [vmem:[%s11370_s7 + $0x4] ss:$8 sps:$4 sm:$0xff]   ;;  %v7911_v47 = vld [vmem:[%s11370_s7 + $0x14] ss:$8 sps:$4 sm:$0xff]   ;;  %v7909_v27 = vld [vmem:[%s11370_s7 + $0x10] ss:$8 sps:$4 sm:$0xff]  }
 0x3ec   : > { %v4394_v40 = vpack.c.bf16 %v4354_v63, %v4353_v29  ;;  %v4392_v54 = vpack.c.bf16 %v4376_v53, %v4375_v38  ;;  %v7768_v15 = vpop.permute.xlu1 %7767  ;;  %v4232_v1 = vsel %vm10491_vm12, %v4224_v50, 0.0  ;;  %vm11776_vm12 = vmmov %vm11745_vm2  ;;  %5850 = vmatprep.subr.bf16.mxu1 %v7908_v6 }
 0x3ed   : > { %v7770_v42 = vunpack.i.h.bf16 %v7768_v15  ;;  %vm11780_vm2 = vmmov %vm11778_vm0 }
 0x3ef   : > { %v4366_v18 = vsel %vm11779_vm8, %v10330_v17, %v7770_v42  ;;  %v7942_v42 = vld [vmem:[%s11370_s7 + $0xc0] ss:$8 sps:$4 sm:$0xff]  }
 0x3ff   : > { %v7778_v41 = vpop.permute.xlu1 %7777 }
 0x400   : > { %v7780_v37 = vunpack.i.h.bf16 %v7778_v41  ;;  %v7779_v8 = vunpack.i.l.bf16 %v7778_v41  ;;  %v7912_v41 = vld [vmem:[%s11370_s7 + $0x20] ss:$8 sps:$4 sm:$0xff]  }
 0x402   : > { %v7753_v10 = vpop.permute.xlu0 %7752  ;;  %v4377_v28 = vsel %vm11772_vm7, %v4231_v32, %v7779_v8  ;;  %v4378_v62 = vsel %vm11773_vm6, %v4232_v1, %v7780_v37  ;;  %v7769_v32 = vunpack.i.l.bf16 %v7768_v15  ;;  %v7914_v37 = vld [vmem:[%s11370_s7 + $0x24] ss:$8 sps:$4 sm:$0xff]   ;;  %v7915_v8 = vld [vmem:[%s11370_s7 + $0x30] ss:$8 sps:$4 sm:$0xff]   ;;  %v7923_v1 = vld [vmem:[%s11370_s7 + $0x54] ss:$8 sps:$4 sm:$0xff]  }
 0x403   : > { %v7755_v39 = vunpack.i.h.bf16 %v7753_v10  ;;  %v7754_v30 = vunpack.i.l.bf16 %v7753_v10  ;;  %v4397_v60 = vpack.c.bf16 %v4378_v62, %v4377_v28  ;;  %v7917_v10 = vld [vmem:[%s11370_s7 + $0x34] ss:$8 sps:$4 sm:$0xff]   ;;  %v7926_v28 = vld [vmem:[%s11370_s7 + $0x64] ss:$8 sps:$4 sm:$0xff]   ;;  %v7924_v62 = vld [vmem:[%s11370_s7 + $0x60] ss:$8 sps:$4 sm:$0xff]  }
 0x404   : > { %v4365_v14 = vsel %vm11778_vm0, %v10232_v31, %v7769_v32  ;;  %v7947_v32 = vld [vmem:[%s11370_s7 + $0xd4] ss:$8 sps:$4 sm:$0xff]  }
 0x405   : > { %v4361_v58 = vsel %vm11774_vm3, %v4203_v3, %v7754_v30  ;;  %v4362_v5 = vsel %vm11775_vm14, %v4204_v9, %v7755_v39  ;;  %v4386_v57 = vpack.c.bf16 %v4366_v18, %v4365_v14  ;;  %v7920_v39 = vld [vmem:[%s11370_s7 + $0x44] ss:$8 sps:$4 sm:$0xff]   ;;  %v7918_v30 = vld [vmem:[%s11370_s7 + $0x40] ss:$8 sps:$4 sm:$0xff]   ;;  %v7921_v9 = vld [vmem:[%s11370_s7 + $0x50] ss:$8 sps:$4 sm:$0xff]  }
 0x406   : > { %v7763_v45 = vpop.permute.xlu0 %7762  ;;  %v4395_v2 = vpack.c.bf16 %v4362_v5, %v4361_v58  ;;  %v7927_v58 = vld [vmem:[%s11370_s7 + $0x70] ss:$8 sps:$4 sm:$0xff]   ;;  %v7929_v5 = vld [vmem:[%s11370_s7 + $0x74] ss:$8 sps:$4 sm:$0xff]   ;;  %v7950_v18 = vld [vmem:[%s11370_s7 + $0xe4] ss:$8 sps:$4 sm:$0xff]  }
 0x407   : > { %v7765_v35 = vunpack.i.h.bf16 %v7763_v45  ;;  %v7764_v36 = vunpack.i.l.bf16 %v7763_v45  ;;  %v7930_v45 = vld [vmem:[%s11370_s7 + $0x80] ss:$8 sps:$4 sm:$0xff]   ;;  %v7945_v14 = vld [vmem:[%s11370_s7 + $0xd0] ss:$8 sps:$4 sm:$0xff]   ;;  %vm6188_vm3 = vcmask 8192  }
 0x408   : > { %4762 = vmatprep.mubr.bf16.mxu1 %v4395_v2  ;;  %v7935_v2 = vld [vmem:[%s11370_s7 + $0x94] ss:$8 sps:$4 sm:$0xff]  }
 0x409   : > { %4763 = vmatmul.mubr.bf16.gmra.mrb[48].mxu1 %v4394_v40  ;;  %v4364_v34 = vsel %vm11776_vm12, %v10226_v21, %v7765_v35  ;;  %v4363_v20 = vsel %vm11777_vm1, %v8163_v48, %v7764_v36  ;;  %v7933_v35 = vld [vmem:[%s11370_s7 + $0x90] ss:$8 sps:$4 sm:$0xff]   ;;  %v7938_v36 = vld [vmem:[%s11370_s7 + $0xa4] ss:$8 sps:$4 sm:$0xff]   ;;  %v7941_v48 = vld [vmem:[%s11370_s7 + $0xb4] ss:$8 sps:$4 sm:$0xff]  }
 0x40a   : > { %4803 = vmatprep.mubr.bf16.mxu1 %v4382_v26  ;;  %v4381_v3 = vpack.c.bf16 %v4364_v34, %v4363_v20  ;;  %v7773_v59 = vpop.permute.xlu0 %7772  ;;  %v7936_v34 = vld [vmem:[%s11370_s7 + $0xa0] ss:$8 sps:$4 sm:$0xff]   ;;  %v7939_v20 = vld [vmem:[%s11370_s7 + $0xb0] ss:$8 sps:$4 sm:$0xff]  }
 0x40b   : > { %v7775_v55 = vunpack.i.h.bf16 %v7773_v59  ;;  %v7774_v26 = vunpack.i.l.bf16 %v7773_v59  ;;  %v7948_v59 = vld [vmem:[%s11370_s7 + $0xe0] ss:$8 sps:$4 sm:$0xff]  }
 0x40d   : > { %v4367_v21 = vsel %vm11780_vm2, %v10338_v51, %v7774_v26  ;;  %v4368_v13 = vsel %vm11781_vm10, %v10478_v11, %v7775_v55  ;;  %v7951_v55 = vld [vmem:[%s11370_s7 + $0xf0] ss:$8 sps:$4 sm:$0xff]   ;;  %v7956_v26 = vld [vmem:[%s11370_s7 + $0x104] ss:$8 sps:$4 sm:$0xff]  }
 0x40e   : > { %v7783_v61 = vpop.permute.xlu0 %7782  ;;  %v4391_v7 = vpack.c.bf16 %v4368_v13, %v4367_v21 }
 0x40f   : > { %v7784_v25 = vunpack.i.l.bf16 %v7783_v61 }
 0x411   : > { %4804 = vmatmul.mubr.bf16.vlgmr.msra.gmra.mrb[52].mxu1 %v4381_v3  ;;  %v4369_v31 = vsel %vm11782_vm5, %v10487_v49, %v7784_v25  ;;  %v7944_v3 = vld [vmem:[%s11370_s7 + $0xc4] ss:$8 sps:$4 sm:$0xff]  }
 0x412   : > { %4811 = vmatprep.mubr.bf16.mxu1 %v4387_v56  ;;  %v7785_v56 = vunpack.i.h.bf16 %v7783_v61 }
 0x414   : > { %v4370_v17 = vsel %vm11783_vm13, %v10553_v4, %v7785_v56  ;;  %v7906_v4 = vld [vmem:[%s11370_s7] ss:$8 sps:$4 sm:$0xff]  }
 0x415   : > { %v4396_v44 = vpack.c.bf16 %v4370_v17, %v4369_v31  ;;  %5851 = vmatpush1.bf16.msra.mxu1 %v7906_v4  ;;  %v4932_v31 = vand.u32 3, %v8601_v52  ;;  %v4933_v17 = vand.u32 3, %v11694_v33 }
 0x416   : > { %5852 = vmatprep.subr.bf16.mxu1 %v7911_v47  ;;  %v6430_v47 = vld [vmem:[%s11369_s6] ss:$0 sm:$0xff] }
 0x417   : > { %vm4936_vm4 = vcmp.ne.s32.totalorder %v4932_v31, 3  ;;  %vm4937_vm11 = vcmp.ne.s32.totalorder %v4933_v17, 3  ;;  %vm4934_vm9 = vcmp.ne.s32.totalorder %v4932_v31, 0  ;;  %vm4935_vm7 = vcmp.ne.s32.totalorder %v4933_v17, 0  ;;  %v7959_v17 = vld [vmem:[%s11370_s7 + $0x114] ss:$8 sps:$4 sm:$0xff]  }
 0x418   : > { %vm10817_vm15 = vmpackc.low %vm4937_vm11, %vm4936_vm4 }
 0x419   : > { %4812 = vmatmul.mubr.bf16.gmra.mrb[56].mxu1 %v4386_v57  ;;  %v7953_v57 = vld [vmem:[%s11370_s7 + $0xf4] ss:$8 sps:$4 sm:$0xff]   ;;  %vm10856_vm6 = vmpackc.low %vm4935_vm7, %vm4934_vm9 }
 0x41a   : > { %4819 = vmatprep.mubr.bf16.mxu1 %v4392_v54  ;;  %5853 = vmatpush1.bf16.msra.mxu1 %v7909_v27 }
 0x41b   : > { %5854 = vmatprep.subr.bf16.mxu1 %v7914_v37 }
 0x41e   : > { %5855 = vmatpush1.bf16.msra.mxu1 %v7912_v41 }
 0x41f   : > { %5856 = vmatprep.subr.bf16.mxu1 %v7917_v10 }
 0x421   : > { %4820 = vmatmul.mubr.bf16.gmra.mrb[60].mxu1 %v4391_v7 }
 0x422   : > { %4827 = vmatprep.mubr.bf16.mxu1 %v4397_v60  ;;  %5857 = vmatpush1.bf16.msra.mxu1 %v7915_v8  ;;  %v7932_v60 = vld [vmem:[%s11370_s7 + $0x84] ss:$8 sps:$4 sm:$0xff]  }
 0x423   : > { %5858 = vmatprep.subr.bf16.mxu1 %v7920_v39 }
 0x424   : > { %v6849_v12 = vpop.f32.mrb[36].mxu1 }
 0x425   : > { %v6850_v22 = vpop.f32.mrb[37].mxu1 }
 0x426   : > { %v10688_v19 = vadd.f32 %v6850_v22, %v6849_v12  ;;  %v6852_v51 = vpop.f32.mrb[38].mxu1  ;;  %5859 = vmatpush1.bf16.msra.mxu1 %v7918_v30 }
 0x427   : > { %v6853_v0 = vpop.f32.mrb[39].mxu1  ;;  %5860 = vmatprep.subr.bf16.mxu1 %v7923_v1 }
 0x428   : > { %v10690_v11 = vadd.f32 %v6853_v0, %v6852_v51  ;;  %v10692_v24 = vpop.f32.mrb[188].mxu0 }
 0x429   : > { %4828 = vmatmul.mubr.bf16.gmra.mrb[64].mxu1 %v4396_v44  ;;  %v10694_v16 = vpop.f32.mrb[189].mxu0 }
 0x42a   : > { %v10696_v46 = vpop.f32.mrb[190].mxu0  ;;  %5861 = vmatpush1.bf16.msra.mxu1 %v7921_v9  ;;  %v4744_v37 = vadd.f32 %v10690_v11, %v6430_v47 }
 0x42b   : > { %v10698_v49 = vpop.f32.mrb[191].mxu0  ;;  %5862 = vmatprep.subr.bf16.mxu1 %v7926_v28 }
 0x42e   : > { %5863 = vmatpush1.bf16.msra.mxu1 %v7924_v62 }
 0x42f   : > { %5864 = vmatprep.subr.bf16.mxu1 %v7929_v5 }
 0x432   : > { %5865 = vmatpush1.bf16.msra.mxu1 %v7927_v58 }
 0x433   : > { %5866 = vmatprep.subr.bf16.mxu1 %v7932_v60 }
 0x436   : > { %5867 = vmatpush1.bf16.msra.mxu1 %v7930_v45 }
 0x437   : > { %5868 = vmatprep.subr.bf16.mxu1 %v7935_v2 }
 0x43a   : > { %5869 = vmatpush1.bf16.msra.mxu1 %v7933_v35 }
 0x43b   : > { %5870 = vmatprep.subr.bf16.mxu1 %v7938_v36 }
 0x43e   : > { %5871 = vmatpush1.bf16.msra.mxu1 %v7936_v34 }
 0x43f   : > { %5872 = vmatprep.subr.bf16.mxu1 %v7941_v48 }
 0x442   : > { %5873 = vmatpush1.bf16.msra.mxu1 %v7939_v20 }
 0x443   : > { %5874 = vmatprep.subr.bf16.mxu1 %v7944_v3 }
 0x446   : > { %5875 = vmatpush1.bf16.msra.mxu1 %v7942_v42 }
 0x447   : > { %5876 = vmatprep.subr.bf16.mxu1 %v7947_v32 }
 0x44a   : > { %5877 = vmatpush1.bf16.msra.mxu1 %v7945_v14 }
 0x44b   : > { %5878 = vmatprep.subr.bf16.mxu1 %v7950_v18 }
 0x44e   : > { %5879 = vmatpush1.bf16.msra.mxu1 %v7948_v59 }
 0x44f   : > { %5880 = vmatprep.subr.bf16.mxu1 %v7953_v57 }
 0x452   : > { %5881 = vmatpush1.bf16.msra.mxu1 %v7951_v55 }
 0x453   : > { %5893 = vmatprep.subr.bf16.mxu1 %v7956_v26 }
 0x462   : > { %v6855_v29 = vpop.f32.mrb[40].mxu1 }
 0x463   : > { %v10712_v43 = vpop.f32.mrb[192].mxu0  ;;  %v6856_v23 = vpop.f32.mrb[41].mxu1 }
 0x464   : > { %v10714_v63 = vpop.f32.mrb[193].mxu0  ;;  %v10716_v38 = vadd.f32 %v6856_v23, %v6855_v29  ;;  %v6858_v40 = vpop.f32.mrb[42].mxu1  ;;  %v4741_v23 = vadd.f32 %v10688_v19, %v6430_v47 }
 0x465   : > { %v10718_v53 = vpop.f32.mrb[194].mxu0  ;;  %v6859_v15 = vpop.f32.mrb[43].mxu1 }
 0x466   : > { %v10720_v54 = vpop.f32.mrb[195].mxu0  ;;  %v10722_v50 = vadd.f32 %v6859_v15, %v6858_v40  ;;  %v4749_v62 = vadd.f32 %v10716_v38, %v6430_v47 }
 0x468   : > { %v4752_v2 = vadd.f32 %v10722_v50, %v6430_v47 }
 0x4a2   : > { %v6861_v21 = vpop.f32.mrb[44].mxu1 }
 0x4a3   : > { %v6862_v13 = vpop.f32.mrb[45].mxu1 }
 0x4a4   : > { %v6863_v61 = vadd.f32 %v6862_v13, %v6861_v21  ;;  %v6864_v7 = vpop.f32.mrb[46].mxu1 }
 0x4a5   : > { %v6865_v56 = vpop.f32.mrb[47].mxu1 }
 0x4a6   : > { %v6866_v25 = vadd.f32 %v6865_v56, %v6864_v7  ;;  %v4757_v3 = vadd.f32 %v6863_v61, %v6430_v47 }
 0x4a8   : > { %v4760_v59 = vadd.f32 %v6866_v25, %v6430_v47 }
 0x4dc   : > { %v6867_v12 = vpop.f32.mrb[48].mxu1 }
 0x4dd   : > { %v6868_v22 = vpop.f32.mrb[49].mxu1 }
 0x4de   : > { %v6869_v51 = vadd.f32 %v6868_v22, %v6867_v12  ;;  %v6870_v0 = vpop.f32.mrb[50].mxu1 }
 0x4df   : > { %v6871_v4 = vpop.f32.mrb[51].mxu1 }
 0x4e0   : > { %v6872_v6 = vadd.f32 %v6871_v4, %v6870_v0  ;;  %v4765_v7 = vadd.f32 %v6869_v51, %v6430_v47 }
 0x4e2   : > { %v4768_v4 = vadd.f32 %v6872_v6, %v6430_v47 }
 0x4e4   : > { %v6889_v27 = vpop.f32.mrb[52].mxu1 }
 0x4e5   : > { %v6890_v29 = vpop.f32.mrb[53].mxu1 }
 0x4e6   : > { %v6891_v40 = vadd.f32 %v6890_v29, %v6889_v27  ;;  %v6892_v15 = vpop.f32.mrb[54].mxu1 }
 0x4e7   : > { %v6893_v41 = vpop.f32.mrb[55].mxu1 }
 0x4e8   : > { %v4806_v8 = vadd.f32 %v6891_v40, %v4741_v23  ;;  %v6894_v10 = vadd.f32 %v6893_v41, %v6892_v15 }
 0x4ea   : > { %v4871_v39 = vadd.f32 %v10694_v16, %v4806_v8  ;;  %v4809_v30 = vadd.f32 %v6894_v10, %v4744_v37 }
 0x4ec   : > { %v4874_v1 = vadd.f32 %v10698_v49, %v4809_v30  ;;  %v6895_v9 = vpop.f32.mrb[56].mxu1  ;;  %v4901_v58 = vmax.f32 %v4871_v39, 0.0 }
 0x4ed   : > { %v6896_v28 = vpop.f32.mrb[57].mxu1 }
 0x4ee   : > { %v4902_v5 = vmax.f32 %v4874_v1, 0.0  ;;  %v6897_v60 = vadd.f32 %v6896_v28, %v6895_v9  ;;  %v6898_v19 = vpop.f32.mrb[58].mxu1 }
 0x4ef   : > { %v6899_v45 = vpop.f32.mrb[59].mxu1 }
 0x4f0   : > { %v4909_v35 = vmax.f32 %v4901_v58, %v4902_v5  ;;  %v4814_v11 = vadd.f32 %v6897_v60, %v4749_v62  ;;  %v6900_v36 = vadd.f32 %v6899_v45, %v6898_v19  ;;  %v7954_v62 = vld [vmem:[%s11370_s7 + $0x100] ss:$8 sps:$4 sm:$0xff]   ;;  %v7957_v60 = vld [vmem:[%s11370_s7 + $0x110] ss:$8 sps:$4 sm:$0xff]   ;;  %v7962_v19 = vld [vmem:[%s11370_s7 + $0x124] ss:$8 sps:$4 sm:$0xff]  }
 0x4f1   : > { %v7960_v45 = vld [vmem:[%s11370_s7 + $0x120] ss:$8 sps:$4 sm:$0xff]   ;;  %v8109_v58 = vld [vmem:[%s11370_s7 + $0x434] ss:$8 sps:$4 sm:$0xff]  }
 0x4f2   : > { %4910 = vst [vmem:[#allocation7] sm:$0xff] %v4909_v35  ;;  %v4879_v16 = vadd.f32 %v10692_v24, %v4814_v11  ;;  %v4817_v34 = vadd.f32 %v6900_v36, %v4752_v2  ;;  %v7965_v2 = vld [vmem:[%s11370_s7 + $0x134] ss:$8 sps:$4 sm:$0xff]   ;;  %v7963_v35 = vld [vmem:[%s11370_s7 + $0x130] ss:$8 sps:$4 sm:$0xff]  }
 0x4f3   : > { %v7968_v11 = vld [vmem:[%s11370_s7 + $0x144] ss:$8 sps:$4 sm:$0xff]   ;;  %v7966_v36 = vld [vmem:[%s11370_s7 + $0x140] ss:$8 sps:$4 sm:$0xff]  }
 0x4f4   : > { %v4882_v49 = vadd.f32 %v10696_v46, %v4817_v34  ;;  %v6901_v48 = vpop.f32.mrb[60].mxu1  ;;  %v4903_v38 = vmax.f32 %v4879_v16, 0.0  ;;  %v7971_v16 = vld [vmem:[%s11370_s7 + $0x154] ss:$8 sps:$4 sm:$0xff]   ;;  %v7969_v34 = vld [vmem:[%s11370_s7 + $0x150] ss:$8 sps:$4 sm:$0xff]  }
 0x4f5   : > { %v6902_v20 = vpop.f32.mrb[61].mxu1 }
 0x4f6   : > { %v4904_v42 = vmax.f32 %v4882_v49, 0.0  ;;  %v6903_v32 = vadd.f32 %v6902_v20, %v6901_v48  ;;  %v6904_v14 = vpop.f32.mrb[62].mxu1  ;;  %v7974_v49 = vld [vmem:[%s11370_s7 + $0x164] ss:$8 sps:$4 sm:$0xff]   ;;  %v7972_v48 = vld [vmem:[%s11370_s7 + $0x160] ss:$8 sps:$4 sm:$0xff]  }
 0x4f7   : > { %v6905_v18 = vpop.f32.mrb[63].mxu1  ;;  %v7977_v20 = vld [vmem:[%s11370_s7 + $0x174] ss:$8 sps:$4 sm:$0xff]  }
 0x4f8   : > { %v4911_v57 = vmax.f32 %v4903_v38, %v4904_v42  ;;  %v4822_v50 = vadd.f32 %v6903_v32, %v4757_v3  ;;  %v6906_v55 = vadd.f32 %v6905_v18, %v6904_v14  ;;  %v7975_v3 = vld [vmem:[%s11370_s7 + $0x170] ss:$8 sps:$4 sm:$0xff]   ;;  %v7980_v38 = vld [vmem:[%s11370_s7 + $0x184] ss:$8 sps:$4 sm:$0xff]   ;;  %v7978_v42 = vld [vmem:[%s11370_s7 + $0x180] ss:$8 sps:$4 sm:$0xff]  }
 0x4f9   : > { %v7983_v32 = vld [vmem:[%s11370_s7 + $0x194] ss:$8 sps:$4 sm:$0xff]   ;;  %v7981_v14 = vld [vmem:[%s11370_s7 + $0x190] ss:$8 sps:$4 sm:$0xff]   ;;  %v7986_v18 = vld [vmem:[%s11370_s7 + $0x1a4] ss:$8 sps:$4 sm:$0xff]  }
 0x4fa   : > { %4912 = vst [vmem:[#allocation7 + $0x8] sm:$0xff] %v4911_v57  ;;  %v4887_v26 = vadd.f32 %v10714_v63, %v4822_v50  ;;  %v4825_v21 = vadd.f32 %v6906_v55, %v4760_v59  ;;  %v7984_v59 = vld [vmem:[%s11370_s7 + $0x1a0] ss:$8 sps:$4 sm:$0xff]   ;;  %v7989_v57 = vld [vmem:[%s11370_s7 + $0x1b4] ss:$8 sps:$4 sm:$0xff]  }
 0x4fb   : > { %v7987_v50 = vld [vmem:[%s11370_s7 + $0x1b0] ss:$8 sps:$4 sm:$0xff]   ;;  %v7992_v55 = vld [vmem:[%s11370_s7 + $0x1c4] ss:$8 sps:$4 sm:$0xff]  }
 0x4fc   : > { %v4890_v24 = vadd.f32 %v10720_v54, %v4825_v21  ;;  %v6907_v13 = vpop.f32.mrb[64].mxu1  ;;  %v4905_v56 = vmax.f32 %v4887_v26, 0.0  ;;  %v7990_v26 = vld [vmem:[%s11370_s7 + $0x1c0] ss:$8 sps:$4 sm:$0xff]   ;;  %v7995_v21 = vld [vmem:[%s11370_s7 + $0x1d4] ss:$8 sps:$4 sm:$0xff]  }
 0x4fd   : > { %v6908_v46 = vpop.f32.mrb[65].mxu1 }
 0x4fe   : > { %v4906_v61 = vmax.f32 %v4890_v24, 0.0  ;;  %v6909_v12 = vadd.f32 %v6908_v46, %v6907_v13  ;;  %v6910_v22 = vpop.f32.mrb[66].mxu1  ;;  %v7993_v24 = vld [vmem:[%s11370_s7 + $0x1d0] ss:$8 sps:$4 sm:$0xff]   ;;  %v7998_v13 = vld [vmem:[%s11370_s7 + $0x1e4] ss:$8 sps:$4 sm:$0xff]  }
 0x4ff   : > { %v6911_v0 = vpop.f32.mrb[67].mxu1  ;;  %v7996_v46 = vld [vmem:[%s11370_s7 + $0x1e0] ss:$8 sps:$4 sm:$0xff]  }
 0x500   : > { %v4913_v27 = vmax.f32 %v4905_v56, %v4906_v61  ;;  %v4830_v25 = vadd.f32 %v6909_v12, %v4765_v7  ;;  %v6912_v29 = vadd.f32 %v6911_v0, %v6910_v22  ;;  %v8001_v7 = vld [vmem:[%s11370_s7 + $0x1f4] ss:$8 sps:$4 sm:$0xff]   ;;  %v7999_v56 = vld [vmem:[%s11370_s7 + $0x1f0] ss:$8 sps:$4 sm:$0xff]   ;;  %v8004_v61 = vld [vmem:[%s11370_s7 + $0x204] ss:$8 sps:$4 sm:$0xff]  }
 0x501   : > { %v4917_v23 = vld [vmem:[#allocation7] ss:$2 sm:$0xff]  ;;  %v4921_v40 = vld [vmem:[#allocation7 + $0x1] ss:$2 sm:$0xff] }
 0x502   : > { %4914 = vst [vmem:[#allocation7 + $0x10] sm:$0xff] %v4913_v27  ;;  %v4895_v63 = vadd.f32 %v10712_v43, %v4830_v25  ;;  %v4833_v15 = vadd.f32 %v6912_v29, %v4768_v4  ;;  %v10835_v41 = vmax.f32 %v4917_v23, %v4921_v40  ;;  %v8002_v27 = vld [vmem:[%s11370_s7 + $0x200] ss:$8 sps:$4 sm:$0xff]   ;;  %v8007_v29 = vld [vmem:[%s11370_s7 + $0x214] ss:$8 sps:$4 sm:$0xff]  }
 0x503   : > { %v8005_v40 = vld [vmem:[%s11370_s7 + $0x210] ss:$8 sps:$4 sm:$0xff]  }
 0x504   : > { %v4898_v54 = vadd.f32 %v10718_v53, %v4833_v15  ;;  %4930 = vst [vmem:[#allocation4 + $0x8] sm:$0xff] %v10835_v41  ;;  %v4907_v51 = vmax.f32 %v4895_v63, 0.0  ;;  %v8010_v63 = vld [vmem:[%s11370_s7 + $0x224] ss:$8 sps:$4 sm:$0xff]   ;;  %v8008_v15 = vld [vmem:[%s11370_s7 + $0x220] ss:$8 sps:$4 sm:$0xff]  }
 0x506   : > { %v4908_v37 = vmax.f32 %v4898_v54, 0.0  ;;  %v8013_v54 = vld [vmem:[%s11370_s7 + $0x234] ss:$8 sps:$4 sm:$0xff]  }
 0x508   : > { %v4915_v8 = vmax.f32 %v4907_v51, %v4908_v37  ;;  %v8011_v51 = vld [vmem:[%s11370_s7 + $0x230] ss:$8 sps:$4 sm:$0xff]   ;;  %v8016_v37 = vld [vmem:[%s11370_s7 + $0x244] ss:$8 sps:$4 sm:$0xff]  }
 0x50a   : > { %4916 = vst [vmem:[#allocation7 + $0x18] sm:$0xff] %v4915_v8  ;;  %v8014_v8 = vld [vmem:[%s11370_s7 + $0x240] ss:$8 sps:$4 sm:$0xff]  }
 0x50b   : > { %v4942_v53 = vld [vmem:[#allocation4 + $0x4] sm:$0xff] }
 0x50c   : > { %v4938_v39 = vld [vmem:[#allocation4 + $0x3] sm:$0xff] }
 0x50d   : > { %v4948_v31 = vld [vmem:[#allocation4 + $0x7] sm:$0xff] }
 0x50e   : > { %v4944_v4 = vld [vmem:[#allocation4 + $0x5] sm:$0xff] }
 0x511   : > { %v4919_v6 = vld [vmem:[#allocation7 + $0x10] ss:$2 sm:$0xff]  ;;  %v4923_v47 = vld [vmem:[#allocation7 + $0x11] ss:$2 sm:$0xff] }
 0x512   : > { %v10839_v10 = vmax.f32 %v4919_v6, %v4923_v47  ;;  %v8019_v6 = vld [vmem:[%s11370_s7 + $0x254] ss:$8 sps:$4 sm:$0xff]   ;;  %v8017_v47 = vld [vmem:[%s11370_s7 + $0x250] ss:$8 sps:$4 sm:$0xff]  }
 0x514   : > { %4931 = vst [vmem:[#allocation4 + $0x10] sm:$0xff] %v10839_v10  ;;  %v4969_v43 = vpack.c.bf16 %v10839_v10, %v10835_v41  ;;  %v8061_v41 = vld [vmem:[%s11370_s7 + $0x334] ss:$8 sps:$4 sm:$0xff]   ;;  %v8059_v10 = vld [vmem:[%s11370_s7 + $0x330] ss:$8 sps:$4 sm:$0xff]  }
 0x51b   : > { %v10848_v30 = vld [vmem:[#allocation4 + $0xc] sm:$0xff] }
 0x51c   : > { %v10850_v1 = vld [vmem:[#allocation4 + $0xb] sm:$0xff]  ;;  %v4966_v28 = vpack.c.bf16 %v10848_v30, %v4942_v53  ;;  %v8022_v53 = vld [vmem:[%s11370_s7 + $0x264] ss:$8 sps:$4 sm:$0xff]  }
 0x51d   : > { %v4949_v9 = vld [vmem:[#allocation4 + $0xf] sm:$0xff]  ;;  %v6616_v33 = vpack.c.bf16 %v10850_v1, %v4938_v39 }
 0x51e   : > { %5882 = vmatprep.mubr.bf16.mxu1 %v4966_v28  ;;  %v6619_v5 = vpack.c.bf16 %v4949_v9, %v4948_v31  ;;  %v10958_v12 = vld [vmem:[#allocation4 + $0xd] sm:$0xff]  ;;  %v8023_v28 = vld [vmem:[%s11370_s7 + $0x270] ss:$8 sps:$4 sm:$0xff]  }
 0x51f   : > { %6617 = vmatmul.mubr.msk.bf16.vlgmr.msra.gmra.mrb[68].mxu1 %vm10856_vm6, %v6616_v33  ;;  %v4954_v22 = vld [vmem:[#allocation4 + $0x9] sm:$0xff]  ;;  %v4955_v0 = vld [vmem:[#allocation4 + $0x11] sm:$0xff]  ;;  %v6622_v25 = vpack.c.bf16 %v10958_v12, %v4944_v4 }
 0x520   : > { %5894 = vmatpush1.bf16.msra.mxu1 %v7954_v62  ;;  %6620 = vmatprep.mubr.msk.bf16.mxu1 %vm10856_vm6, %v6619_v5  ;;  %v6625_v23 = vpack.c.bf16 %v4955_v0, %v4954_v22  ;;  %v8020_v39 = vld [vmem:[%s11370_s7 + $0x260] ss:$8 sps:$4 sm:$0xff]   ;;  %v8025_v9 = vld [vmem:[%s11370_s7 + $0x274] ss:$8 sps:$4 sm:$0xff]   ;;  %v8028_v62 = vld [vmem:[%s11370_s7 + $0x284] ss:$8 sps:$4 sm:$0xff]  }
 0x521   : > { %5895 = vmatprep.subr.bf16.mxu1 %v7959_v17  ;;  %v8026_v33 = vld [vmem:[%s11370_s7 + $0x280] ss:$8 sps:$4 sm:$0xff]   ;;  %v8031_v31 = vld [vmem:[%s11370_s7 + $0x294] ss:$8 sps:$4 sm:$0xff]   ;;  %v8029_v17 = vld [vmem:[%s11370_s7 + $0x290] ss:$8 sps:$4 sm:$0xff]  }
 0x522   : > { %v6101_v5 = vld [vmem:[%s11372_s9 + $0x80] sm:$0xff]  ;;  %v8067_v0 = vld [vmem:[%s11370_s7 + $0x354] ss:$8 sps:$4 sm:$0xff]   ;;  %v8065_v4 = vld [vmem:[%s11370_s7 + $0x350] ss:$8 sps:$4 sm:$0xff]  }
 0x523   : > { %v8062_v22 = vld [vmem:[%s11370_s7 + $0x340] ss:$8 sps:$4 sm:$0xff]  }
 0x524   : > { %5896 = vmatpush1.bf16.msra.mxu1 %v7957_v60  ;;  %v6102_v60 = vld [vmem:[%s11372_s9 + $0x88] sm:$0xff] }
 0x525   : > { %5897 = vmatprep.subr.bf16.mxu1 %v7962_v19  ;;  %v6085_v19 = vld [vmem:[%s11372_s9] sm:$0xff] }
 0x528   : > { %5898 = vmatpush1.bf16.msra.mxu1 %v7960_v45  ;;  %v7140_v45 = vpack.c.bf16 %v6102_v60, %v6101_v5  ;;  %v4958_v5 = vld [vmem:[#allocation4 + $0x13] sm:$0xff] }
 0x529   : > { %5899 = vmatprep.subr.bf16.mxu1 %v7965_v2  ;;  %v6086_v2 = vld [vmem:[%s11372_s9 + $0x8] sm:$0xff] }
 0x52a   : > { %7141 = vmatprep.subr.bf16.mxu0 %v7140_v45  ;;  %v8098_v60 = vld [vmem:[%s11370_s7 + $0x400] ss:$8 sps:$4 sm:$0xff]   ;;  %v8103_v45 = vld [vmem:[%s11370_s7 + $0x414] ss:$8 sps:$4 sm:$0xff]  }
 0x52c   : > { %5900 = vmatpush1.bf16.msra.mxu1 %v7963_v35  ;;  %v6103_v35 = vld [vmem:[%s11372_s9 + $0x90] sm:$0xff] }
 0x52d   : > { %5901 = vmatprep.subr.bf16.mxu1 %v7968_v11  ;;  %v6104_v11 = vld [vmem:[%s11372_s9 + $0x98] sm:$0xff] }
 0x530   : > { %5902 = vmatpush1.bf16.msra.mxu1 %v7966_v36  ;;  %v8034_v36 = vld [vmem:[%s11370_s7 + $0x2a4] ss:$8 sps:$4 sm:$0xff]  }
 0x531   : > { %5903 = vmatprep.subr.bf16.mxu1 %v7971_v16  ;;  %v7142_v16 = vpack.c.bf16 %v6086_v2, %v6085_v19  ;;  %v6628_v19 = vpack.c.bf16 %v4958_v5, %v10850_v1  ;;  %v8101_v2 = vld [vmem:[%s11370_s7 + $0x410] ss:$8 sps:$4 sm:$0xff]   ;;  %v8106_v1 = vld [vmem:[%s11370_s7 + $0x424] ss:$8 sps:$4 sm:$0xff]  }
 0x533   : > { %7143 = vmatpush3.bf16.msra.mxu0 %v7142_v16  ;;  %v8112_v16 = vld [vmem:[%s11370_s7 + $0x444] ss:$8 sps:$4 sm:$0xff]  }
 0x534   : > { %5904 = vmatpush1.bf16.msra.mxu1 %v7969_v34  ;;  %v7144_v34 = vpack.c.bf16 %v6104_v11, %v6103_v35  ;;  %v8233_v35 = vmov 0   ;;  %v8104_v11 = vld [vmem:[%s11370_s7 + $0x420] ss:$8 sps:$4 sm:$0xff]  }
 0x535   : > { %5905 = vmatprep.subr.bf16.mxu1 %v7974_v49  ;;  %v6087_v49 = vld [vmem:[%s11372_s9 + $0x10] sm:$0xff] }
 0x536   : > { %7145 = vmatprep.subr.bf16.mxu0 %v7144_v34  ;;  %v8110_v34 = vld [vmem:[%s11370_s7 + $0x440] ss:$8 sps:$4 sm:$0xff]  }
 0x538   : > { %5906 = vmatpush1.bf16.msra.mxu1 %v7972_v48  ;;  %v6088_v48 = vld [vmem:[%s11372_s9 + $0x18] sm:$0xff] }
 0x539   : > { %5907 = vmatprep.subr.bf16.mxu1 %v7977_v20  ;;  %v7146_v20 = vpack.c.bf16 %v6088_v48, %v6087_v49  ;;  %v8115_v49 = vld [vmem:[%s11370_s7 + $0x454] ss:$8 sps:$4 sm:$0xff]   ;;  %v8113_v48 = vld [vmem:[%s11370_s7 + $0x450] ss:$8 sps:$4 sm:$0xff]  }
 0x53b   : > { %7147 = vmatpush3.bf16.msra.mxu0 %v7146_v20  ;;  %v8118_v20 = vld [vmem:[%s11370_s7 + $0x464] ss:$8 sps:$4 sm:$0xff]  }
 0x53c   : > { %5908 = vmatpush1.bf16.msra.mxu1 %v7975_v3  ;;  %v8032_v3 = vld [vmem:[%s11370_s7 + $0x2a0] ss:$8 sps:$4 sm:$0xff]  }
 0x53d   : > { %5909 = vmatprep.subr.bf16.mxu1 %v7980_v38  ;;  %v8037_v38 = vld [vmem:[%s11370_s7 + $0x2b4] ss:$8 sps:$4 sm:$0xff]  }
 0x540   : > { %5910 = vmatpush1.bf16.msra.mxu1 %v7978_v42  ;;  %v8035_v42 = vld [vmem:[%s11370_s7 + $0x2b0] ss:$8 sps:$4 sm:$0xff]  }
 0x541   : > { %5911 = vmatprep.subr.bf16.mxu1 %v7983_v32  ;;  %v8040_v32 = vld [vmem:[%s11370_s7 + $0x2c4] ss:$8 sps:$4 sm:$0xff]  }
 0x544   : > { %5912 = vmatpush1.bf16.msra.mxu1 %v7981_v14  ;;  %v8038_v14 = vld [vmem:[%s11370_s7 + $0x2c0] ss:$8 sps:$4 sm:$0xff]  }
 0x545   : > { %5913 = vmatprep.subr.bf16.mxu1 %v7986_v18  ;;  %v8043_v18 = vld [vmem:[%s11370_s7 + $0x2d4] ss:$8 sps:$4 sm:$0xff]  }
 0x548   : > { %5914 = vmatpush1.bf16.msra.mxu1 %v7984_v59  ;;  %v8041_v59 = vld [vmem:[%s11370_s7 + $0x2d0] ss:$8 sps:$4 sm:$0xff]  }
 0x549   : > { %5915 = vmatprep.subr.bf16.mxu1 %v7989_v57  ;;  %v8046_v57 = vld [vmem:[%s11370_s7 + $0x2e4] ss:$8 sps:$4 sm:$0xff]  }
 0x54c   : > { %5916 = vmatpush1.bf16.msra.mxu1 %v7987_v50  ;;  %v8044_v50 = vld [vmem:[%s11370_s7 + $0x2e0] ss:$8 sps:$4 sm:$0xff]  }
 0x54d   : > { %5917 = vmatprep.subr.bf16.mxu1 %v7992_v55  ;;  %v8049_v55 = vld [vmem:[%s11370_s7 + $0x2f4] ss:$8 sps:$4 sm:$0xff]  }
 0x550   : > { %5918 = vmatpush1.bf16.msra.mxu1 %v7990_v26  ;;  %v8047_v26 = vld [vmem:[%s11370_s7 + $0x2f0] ss:$8 sps:$4 sm:$0xff]  }
 0x551   : > { %5919 = vmatprep.subr.bf16.mxu1 %v7995_v21  ;;  %v8052_v21 = vld [vmem:[%s11370_s7 + $0x304] ss:$8 sps:$4 sm:$0xff]  }
 0x554   : > { %5920 = vmatpush1.bf16.msra.mxu1 %v7993_v24  ;;  %v4961_v24 = vld [vmem:[#allocation4 + $0x14] sm:$0xff] }
 0x555   : > { %5921 = vmatprep.subr.bf16.mxu1 %v7998_v13  ;;  %v8050_v13 = vld [vmem:[%s11370_s7 + $0x300] ss:$8 sps:$4 sm:$0xff]  }
 0x558   : > { %5922 = vmatpush1.bf16.msra.mxu1 %v7996_v46  ;;  %v8055_v46 = vld [vmem:[%s11370_s7 + $0x314] ss:$8 sps:$4 sm:$0xff]  }
 0x559   : > { %5923 = vmatprep.subr.bf16.mxu1 %v8001_v7  ;;  %v4972_v7 = vpack.c.bf16 %v4961_v24, %v10848_v30  ;;  %v8056_v30 = vld [vmem:[%s11370_s7 + $0x320] ss:$8 sps:$4 sm:$0xff]   ;;  %v6091_v24 = vld [vmem:[%s11372_s9 + $0x30] sm:$0xff] }
 0x55c   : > { %5924 = vmatpush1.bf16.msra.mxu1 %v7999_v56  ;;  %v8053_v56 = vld [vmem:[%s11370_s7 + $0x310] ss:$8 sps:$4 sm:$0xff]  }
 0x55d   : > { %5936 = vmatprep.subr.bf16.mxu1 %v8004_v61  ;;  %v8058_v61 = vld [vmem:[%s11370_s7 + $0x324] ss:$8 sps:$4 sm:$0xff]  }
 0x55f   : > { %6623 = vmatmul.mubr.msk.bf16.vlgmr.msra.gmra.mrb[68].mxu1 %vm10817_vm15, %v6622_v25  ;;  %v8068_v25 = vld [vmem:[%s11370_s7 + $0x360] ss:$8 sps:$4 sm:$0xff]  }
 0x560   : > { %5937 = vmatpush1.bf16.msra.mxu1 %v8002_v27  ;;  %6626 = vmatprep.mubr.msk.bf16.mxu1 %vm10817_vm15, %v6625_v23  ;;  %v8070_v27 = vld [vmem:[%s11370_s7 + $0x364] ss:$8 sps:$4 sm:$0xff]   ;;  %v8071_v23 = vld [vmem:[%s11370_s7 + $0x370] ss:$8 sps:$4 sm:$0xff]  }
 0x561   : > { %5938 = vmatprep.subr.bf16.mxu1 %v8007_v29  ;;  %v8073_v29 = vld [vmem:[%s11370_s7 + $0x374] ss:$8 sps:$4 sm:$0xff]  }
 0x564   : > { %5939 = vmatpush1.bf16.msra.mxu1 %v8005_v40  ;;  %v8076_v40 = vld [vmem:[%s11370_s7 + $0x384] ss:$8 sps:$4 sm:$0xff]  }
 0x565   : > { %5940 = vmatprep.subr.bf16.mxu1 %v8010_v63  ;;  %v8074_v63 = vld [vmem:[%s11370_s7 + $0x380] ss:$8 sps:$4 sm:$0xff]  }
 0x568   : > { %5941 = vmatpush1.bf16.msra.mxu1 %v8008_v15  ;;  %v8079_v15 = vld [vmem:[%s11370_s7 + $0x394] ss:$8 sps:$4 sm:$0xff]  }
 0x569   : > { %5942 = vmatprep.subr.bf16.mxu1 %v8013_v54  ;;  %v8077_v54 = vld [vmem:[%s11370_s7 + $0x390] ss:$8 sps:$4 sm:$0xff]  }
 0x56c   : > { %5943 = vmatpush1.bf16.msra.mxu1 %v8011_v51  ;;  %v8082_v51 = vld [vmem:[%s11370_s7 + $0x3a4] ss:$8 sps:$4 sm:$0xff]  }
 0x56d   : > { %5944 = vmatprep.subr.bf16.mxu1 %v8016_v37  ;;  %v8080_v37 = vld [vmem:[%s11370_s7 + $0x3a0] ss:$8 sps:$4 sm:$0xff]  }
 0x570   : > { %5945 = vmatpush1.bf16.msra.mxu1 %v8014_v8  ;;  %v8085_v8 = vld [vmem:[%s11370_s7 + $0x3b4] ss:$8 sps:$4 sm:$0xff]  }
 0x571   : > { %5946 = vmatprep.subr.bf16.mxu1 %v8019_v6  ;;  %v8083_v6 = vld [vmem:[%s11370_s7 + $0x3b0] ss:$8 sps:$4 sm:$0xff]  }
 0x574   : > { %5947 = vmatpush1.bf16.msra.mxu1 %v8017_v47  ;;  %v8088_v47 = vld [vmem:[%s11370_s7 + $0x3c4] ss:$8 sps:$4 sm:$0xff]  }
 0x575   : > { %5948 = vmatprep.subr.bf16.mxu1 %v8022_v53  ;;  %v8086_v53 = vld [vmem:[%s11370_s7 + $0x3c0] ss:$8 sps:$4 sm:$0xff]  }
 0x578   : > { %5949 = vmatpush1.bf16.msra.mxu1 %v8020_v39  ;;  %v8091_v39 = vld [vmem:[%s11370_s7 + $0x3d4] ss:$8 sps:$4 sm:$0xff]  }
 0x579   : > { %5950 = vmatprep.subr.bf16.mxu1 %v8025_v9  ;;  %v8089_v9 = vld [vmem:[%s11370_s7 + $0x3d0] ss:$8 sps:$4 sm:$0xff]  }
 0x57c   : > { %5951 = vmatpush1.bf16.msra.mxu1 %v8023_v28  ;;  %v8094_v28 = vld [vmem:[%s11370_s7 + $0x3e4] ss:$8 sps:$4 sm:$0xff]  }
 0x57d   : > { %5952 = vmatprep.subr.bf16.mxu1 %v8028_v62  ;;  %v8092_v62 = vld [vmem:[%s11370_s7 + $0x3e0] ss:$8 sps:$4 sm:$0xff]  }
 0x580   : > { %5953 = vmatpush1.bf16.msra.mxu1 %v8026_v33  ;;  %v8097_v33 = vld [vmem:[%s11370_s7 + $0x3f4] ss:$8 sps:$4 sm:$0xff]  }
 0x581   : > { %5954 = vmatprep.subr.bf16.mxu1 %v8031_v31  ;;  %v8095_v31 = vld [vmem:[%s11370_s7 + $0x3f0] ss:$8 sps:$4 sm:$0xff]  }
 0x584   : > { %5955 = vmatpush1.bf16.msra.mxu1 %v8029_v17  ;;  %v8100_v17 = vld [vmem:[%s11370_s7 + $0x404] ss:$8 sps:$4 sm:$0xff]  }
 0x585   : > { %5956 = vmatprep.subr.bf16.mxu1 %v8034_v36  ;;  %v8107_v36 = vld [vmem:[%s11370_s7 + $0x430] ss:$8 sps:$4 sm:$0xff]  }
 0x588   : > { %5957 = vmatpush1.bf16.msra.mxu1 %v8032_v3  ;;  %v8116_v3 = vld [vmem:[%s11370_s7 + $0x460] ss:$8 sps:$4 sm:$0xff]  }
 0x589   : > { %5958 = vmatprep.subr.bf16.mxu1 %v8037_v38  ;;  %v8121_v38 = vld [vmem:[%s11370_s7 + $0x474] ss:$8 sps:$4 sm:$0xff]  }
 0x58c   : > { %5959 = vmatpush1.bf16.msra.mxu1 %v8035_v42  ;;  %v8119_v42 = vld [vmem:[%s11370_s7 + $0x470] ss:$8 sps:$4 sm:$0xff]  }
 0x58d   : > { %5960 = vmatprep.subr.bf16.mxu1 %v8040_v32  ;;  %v4962_v32 = vld [vmem:[#allocation4 + $0x15] sm:$0xff] }
 0x590   : > { %5961 = vmatpush1.bf16.msra.mxu1 %v8038_v14  ;;  %v6631_v14 = vpack.c.bf16 %v4962_v32, %v10958_v12  ;;  %v6090_v12 = vld [vmem:[%s11372_s9 + $0x28] sm:$0xff] }
 0x591   : > { %5962 = vmatprep.subr.bf16.mxu1 %v8043_v18  ;;  %v6105_v18 = vld [vmem:[%s11372_s9 + $0xa0] sm:$0xff] }
 0x594   : > { %5963 = vmatpush1.bf16.msra.mxu1 %v8041_v59  ;;  %v6106_v59 = vld [vmem:[%s11372_s9 + $0xa8] sm:$0xff] }
 0x595   : > { %5964 = vmatprep.subr.bf16.mxu1 %v8046_v57  ;;  %v7148_v57 = vpack.c.bf16 %v6106_v59, %v6105_v18 }
 0x597   : > { %7149 = vmatprep.subr.bf16.mxu0 %v7148_v57 }
 0x598   : > { %5965 = vmatpush1.bf16.msra.mxu1 %v8044_v50  ;;  %v6089_v50 = vld [vmem:[%s11372_s9 + $0x20] sm:$0xff] }
 0x599   : > { %5966 = vmatprep.subr.bf16.mxu1 %v8049_v55  ;;  %v7150_v44 = vpack.c.bf16 %v6090_v12, %v6089_v50  ;;  %v6107_v55 = vld [vmem:[%s11372_s9 + $0xb0] sm:$0xff] }
 0x59b   : > { %7151 = vmatpush3.bf16.msra.mxu0 %v7150_v44 }
 0x59c   : > { %5967 = vmatpush1.bf16.msra.mxu1 %v8047_v26  ;;  %v6108_v26 = vld [vmem:[%s11372_s9 + $0xb8] sm:$0xff] }
 0x59d   : > { %5979 = vmatprep.subr.bf16.mxu1 %v8052_v21  ;;  %v7152_v21 = vpack.c.bf16 %v6108_v26, %v6107_v55  ;;  %v6117_v55 = vld [vmem:[%s11373_s10] sm:$0x1] }
 0x59f   : > { %5969 = vmatmul.mubr.bf16.vlgmr.msra.gmra.mrb[68].mxu1 %v4969_v43  ;;  %v8064_v43 = vld [vmem:[%s11370_s7 + $0x344] ss:$8 sps:$4 sm:$0xff]   ;;  %7153 = vmatprep.subr.bf16.mxu0 %v7152_v21 }
 0x5a0   : > { %5980 = vmatpush1.bf16.msra.mxu1 %v8050_v13  ;;  %6011 = vmatprep.mubr.bf16.mxu1 %v4972_v7  ;;  %v6092_v13 = vld [vmem:[%s11372_s9 + $0x38] sm:$0xff]  ;;  %v6109_v7 = vld [vmem:[%s11372_s9 + $0xc0] sm:$0xff] }
 0x5a1   : > { %5981 = vmatprep.subr.bf16.mxu1 %v8055_v46  ;;  %v7154_v46 = vpack.c.bf16 %v6092_v13, %v6091_v24 }
 0x5a3   : > { %7155 = vmatpush3.bf16.msra.mxu0 %v7154_v46 }
 0x5a4   : > { %5982 = vmatpush1.bf16.msra.mxu1 %v8053_v56  ;;  %v6110_v56 = vld [vmem:[%s11372_s9 + $0xc8] sm:$0xff] }
 0x5a5   : > { %5983 = vmatprep.subr.bf16.mxu1 %v8058_v61  ;;  %v7156_v61 = vpack.c.bf16 %v6110_v56, %v6109_v7 }
 0x5a7   : > { %7157 = vmatprep.subr.bf16.mxu0 %v7156_v61 }
 0x5a8   : > { %5984 = vmatpush1.bf16.msra.mxu1 %v8056_v30  ;;  %v6093_v30 = vld [vmem:[%s11372_s9 + $0x40] sm:$0xff] }
 0x5a9   : > { %5985 = vmatprep.subr.bf16.mxu1 %v8061_v41  ;;  %v6094_v41 = vld [vmem:[%s11372_s9 + $0x48] sm:$0xff] }
 0x5ac   : > { %5986 = vmatpush1.bf16.msra.mxu1 %v8059_v10  ;;  %v7158_v10 = vpack.c.bf16 %v6094_v41, %v6093_v30 }
 0x5ad   : > { %5987 = vmatprep.subr.bf16.mxu1 %v8064_v43  ;;  %v6111_v43 = vld [vmem:[%s11372_s9 + $0xd0] sm:$0xff] }
 0x5ae   : > { %7159 = vmatpush3.bf16.msra.mxu0 %v7158_v10 }
 0x5b0   : > { %5988 = vmatpush1.bf16.msra.mxu1 %v8062_v22  ;;  %v6112_v22 = vld [vmem:[%s11372_s9 + $0xd8] sm:$0xff] }
 0x5b1   : > { %5989 = vmatprep.subr.bf16.mxu1 %v8067_v0  ;;  %v7160_v0 = vpack.c.bf16 %v6112_v22, %v6111_v43 }
 0x5b3   : > { %7161 = vmatprep.subr.bf16.mxu0 %v7160_v0 }
 0x5b4   : > { %5990 = vmatpush1.bf16.msra.mxu1 %v8065_v4  ;;  %v6095_v4 = vld [vmem:[%s11372_s9 + $0x50] sm:$0xff] }
 0x5b5   : > { %5991 = vmatprep.subr.bf16.mxu1 %v8070_v27  ;;  %v6096_v27 = vld [vmem:[%s11372_s9 + $0x58] sm:$0xff] }
 0x5b8   : > { %5992 = vmatpush1.bf16.msra.mxu1 %v8068_v25  ;;  %v6113_v25 = vld [vmem:[%s11372_s9 + $0xe0] sm:$0xff] }
 0x5b9   : > { %5993 = vmatprep.subr.bf16.mxu1 %v8073_v29  ;;  %v7162_v29 = vpack.c.bf16 %v6096_v27, %v6095_v4 }
 0x5bb   : > { %7163 = vmatpush3.bf16.msra.mxu0 %v7162_v29 }
 0x5bc   : > { %5994 = vmatpush1.bf16.msra.mxu1 %v8071_v23  ;;  %v6114_v23 = vld [vmem:[%s11372_s9 + $0xe8] sm:$0xff] }
 0x5bd   : > { %5995 = vmatprep.subr.bf16.mxu1 %v8076_v40  ;;  %v6097_v40 = vld [vmem:[%s11372_s9 + $0x60] sm:$0xff] }
 0x5c0   : > { %5996 = vmatpush1.bf16.msra.mxu1 %v8074_v63  ;;  %v6098_v63 = vld [vmem:[%s11372_s9 + $0x68] sm:$0xff] }
 0x5c1   : > { %5997 = vmatprep.subr.bf16.mxu1 %v8079_v15  ;;  %v7164_v15 = vpack.c.bf16 %v6114_v23, %v6113_v25 }
 0x5c3   : > { %7165 = vmatprep.subr.bf16.mxu0 %v7164_v15 }
 0x5c4   : > { %5998 = vmatpush1.bf16.msra.mxu1 %v8077_v54  ;;  %v6115_v54 = vld [vmem:[%s11372_s9 + $0xf0] sm:$0xff] }
 0x5c5   : > { %5999 = vmatprep.subr.bf16.mxu1 %v8082_v51  ;;  %v6116_v51 = vld [vmem:[%s11372_s9 + $0xf8] sm:$0xff] }
 0x5c8   : > { %6000 = vmatpush1.bf16.msra.mxu1 %v8080_v37  ;;  %v7166_v37 = vpack.c.bf16 %v6098_v63, %v6097_v40 }
 0x5c9   : > { %6001 = vmatprep.subr.bf16.mxu1 %v8085_v8  ;;  %v7168_v8 = vpack.c.bf16 %v6116_v51, %v6115_v54 }
 0x5ca   : > { %7167 = vmatpush3.bf16.msra.mxu0 %v7166_v37 }
 0x5cb   : > { %7169 = vmatprep.subr.bf16.mxu0 %v7168_v8 }
 0x5cc   : > { %6002 = vmatpush1.bf16.msra.mxu1 %v8083_v6  ;;  %v6099_v6 = vld [vmem:[%s11372_s9 + $0x70] sm:$0xff] }
 0x5cd   : > { %6003 = vmatprep.subr.bf16.mxu1 %v8088_v47  ;;  %v6100_v47 = vld [vmem:[%s11372_s9 + $0x78] sm:$0xff] }
 0x5d0   : > { %6004 = vmatpush1.bf16.msra.mxu1 %v8086_v53  ;;  %v7170_v53 = vpack.c.bf16 %v6100_v47, %v6099_v6 }
 0x5d1   : > { %6005 = vmatprep.subr.bf16.mxu1 %v8091_v39  ;;  %v5122_v39 = vsub.s32 0, %v8601_v52 }
 0x5d2   : > { %7171 = vmatpush3.bf16.msra.mxu0 %v7170_v53 }
 0x5d4   : > { %6006 = vmatpush1.bf16.msra.mxu1 %v8089_v9  ;;  %v5118_v9 = vld [vmem:[%s11371_s8] sm:$0x3] }
 0x5d5   : > { %6007 = vmatprep.subr.bf16.mxu1 %v8094_v28  ;;  %v5126_v28 = vsub.s32 1, %v8601_v52 }
 0x5d8   : > { %6008 = vmatpush1.bf16.msra.mxu1 %v8092_v62  ;;  %v5123_v62 = vrot.slane %v5118_v9, %v5122_v39 }
 0x5d9   : > { %6009 = vmatprep.subr.bf16.mxu1 %v8097_v33  ;;  %v5127_v33 = vrot.slane %v5118_v9, %v5126_v28 }
 0x5dc   : > { %6010 = vmatpush1.bf16.msra.mxu1 %v8095_v31 }
 0x5dd   : > { %6022 = vmatprep.subr.bf16.mxu1 %v8100_v17 }
 0x5df   : > { %6629 = vmatmul.mubr.msk.bf16.vlgmr.msra.gmra.mrb[68].mxu1 %vm10856_vm6, %v6628_v19 }
 0x5e0   : > { %6023 = vmatpush1.bf16.msra.mxu1 %v8098_v60  ;;  %6054 = vmatprep.mubr.bf16.mxu1 %v8233_v35 }
 0x5e1   : > { %6024 = vmatprep.subr.bf16.mxu1 %v8103_v45 }
 0x5e4   : > { %6025 = vmatpush1.bf16.msra.mxu1 %v8101_v2 }
 0x5e5   : > { %6026 = vmatprep.subr.bf16.mxu1 %v8106_v1 }
 0x5e8   : > { %6027 = vmatpush1.bf16.msra.mxu1 %v8104_v11 }
 0x5e9   : > { %6028 = vmatprep.subr.bf16.mxu1 %v8109_v58 }
 0x5ec   : > { %6029 = vmatpush1.bf16.msra.mxu1 %v8107_v36 }
 0x5ed   : > { %6030 = vmatprep.subr.bf16.mxu1 %v8112_v16 }
 0x5f0   : > { %6031 = vmatpush1.bf16.msra.mxu1 %v8110_v34 }
 0x5f1   : > { %6032 = vmatprep.subr.bf16.mxu1 %v8115_v49 }
 0x5f4   : > { %6033 = vmatpush1.bf16.msra.mxu1 %v8113_v48 }
 0x5f5   : > { %6034 = vmatprep.subr.bf16.mxu1 %v8118_v20 }
 0x5f8   : > { %6035 = vmatpush1.bf16.msra.mxu1 %v8116_v3 }
 0x5f9   : > { %6036 = vmatprep.subr.bf16.mxu1 %v8121_v38 }
 0x5fc   : > { %6037 = vmatpush1.bf16.msra.mxu1 %v8119_v42 }
 0x5ff   : > { %6632 = vmatmul.mubr.msk.bf16.vlgmr.msra.gmra.mrb[68].mxu1 %vm10817_vm15, %v6631_v14 }
 0x6d2   : > { %v6056_v31 = vpop.f32.mrb[68].mxu1 }
 0x6d3   : > { %v7176_v17 = vadd.f32 %v6056_v31, %v5123_v62  ;;  %v6058_v5 = vpop.f32.mrb[69].mxu1 }
 0x6d4   : > { %v7177_v60 = vadd.f32 %v6058_v5, %v5127_v33  ;;  %v6060_v19 = vpop.f32.mrb[70].mxu1 }
 0x6d5   : > { %v7178_v45 = vadd.f32 %v6060_v19, %v5123_v62  ;;  %v6062_v2 = vpop.f32.mrb[71].mxu1  ;;  %v6065_v1 = vmax.f32 %v7176_v17, 0.0 }
 0x6d6   : > { %v7179_v35 = vadd.f32 %v6062_v2, %v5127_v33  ;;  %v6066_v58 = vmax.f32 %v7177_v60, 0.0 }
 0x6d7   : > { %v6067_v11 = vmax.f32 %v7178_v45, 0.0 }
 0x6d8   : > { %v6068_v36 = vmax.f32 %v7179_v35, 0.0 }
 0x6d9   : > { %v6069_v16 = vadd.f32 %v6067_v11, %v6065_v1 }
 0x6da   : > { %v6076_v34 = vadd.f32 %v6068_v36, %v6066_v58 }
 0x6db   : > { %v6070_v49 = vrot.slane %v6069_v16, 4 }
 0x6dc   : > { %v6077_v48 = vrot.slane %v6076_v34, 4 }
 0x6dd   : > { %v6071_v52 = vadd.f32 %v6070_v49, %v6069_v16 }
 0x6de   : > { %v6078_v20 = vadd.f32 %v6077_v48, %v6076_v34 }
 0x6df   : > { %v6072_v3 = vrot.slane %v6071_v52, 2 }
 0x6e0   : > { %v6079_v38 = vrot.slane %v6078_v20, 2 }
 0x6e1   : > { %v6073_v42 = vadd.f32 %v6072_v3, %v6071_v52 }
 0x6e2   : > { %v6080_v32 = vadd.f32 %v6079_v38, %v6078_v20 }
 0x6e3   : > { %v6074_v14 = vrot.slane %v6073_v42, 1 }
 0x6e4   : > { %v6081_v18 = vrot.slane %v6080_v32, 1 }
 0x6e5   : > { %v6075_v59 = vadd.f32 %v6074_v14, %v6073_v42 }
 0x6e6   : > { %v6082_v57 = vadd.f32 %v6081_v18, %v6080_v32 }
 0x6e7   : > { %v6083_v12 = vmul.f32 0.0625, %v6075_v59 }
 0x6e8   : > { %v6084_v50 = vmul.f32 0.0625, %v6082_v57 }
 0x6ea   : > { %6182 = vmatprep.mubr.f32.mxu0 %v6084_v50 }
 0x6eb   : > { %6183 = vmatmul.mubr.f32.vlgmr.msra.gmra.mrb[196].mxu0 %v6083_v12 }
 0x7be   : > { %v6953_v44 = vpop.f32.mrb[196].mxu0 }
 0x7bf   : > { %v6954_v26 = vpop.f32.mrb[197].mxu0 }
 0x7c0   : > { %v6955_v21 = vadd.f32 %v6954_v26, %v6953_v44 }
 0x7c2   : > { %v6185_v24 = vadd.f32 %v6955_v21, %v6117_v55 }
 0x7c4   : > { %6189 = vst.msk [vmem:[%s378_s0] sm:$0x1] %vm6188_vm3, %v6185_v24 }
 0x7c5   : > { %8177 = shalt.err (!%p8174_p3)
}
 0x7c6   : > { %s8178_s15 = scalar_lea.hbm %s11321_s24, 16  ;;  %s8182_s22 = scalar_lea.hbm %s11374_s11, 32 }
 0x7c7   : > { %p8179_p4 = scmp.ne.s32.totalorder %s11321_s24, %s8178_s15  ;;  %p8183_p9 = scmp.lt.u32.totalorder %s11321_s24, %s11374_s11 }
 0x7c8   : > { %p8184_p10 = scmp.lt.u32.totalorder %s8182_s22, %s8178_s15  ;;  %p8186_p12 = scmp.lt.u32.totalorder %s8178_s15, %s11321_s24 }
 0x7c9   : > { %p8180_p7 = pnand %p8179_p4, %p8333_p5 }
 0x7ca   : > { %p8185_p11 = por %p8184_p10, %p8183_p9 }
 0x7cb   : > { %p8181_p8 = pneg %p8180_p7 }
 0x7cc   : > { %p8187_p13 = por %p8186_p12, %p8185_p11 }
 0x7ce   : > { %p8188_p0 = pnand %p8187_p13, %p8181_p8 }
 0x7d0   : > { %8191 = shalt.err (!%p8188_p0)
}
 0x7d1   : > { %7196 = dma.vmem_to_hbm [thread:$0]  (%p8333_p5), %s11323_s16, 16, %s11321_s24, %s6191_s12  }
 0x7d2 PF: > { %p7202_p1 = scmp.ge.s32.totalorder %s8226_s20, 2  ;;  %s6215_s25 = sand.u32 1, %s8214_s17  }
 0x7d3   : > { %s6216_s30 = scalar_lea.sflag [#allocation9], %s6215_s25 }
 0x7d4   : > { %p7199_p2 = pnand %p7202_p1, %p8337_p6 }
 0x7d6   : > { %8209 = dma.done.wait (!%p7199_p2), %s6216_s30, 16  }
 0x7d7   : > { %8211 = vsyncadd (!%p7199_p2), %s6216_s30, 4294967280  ;;  %p21_p3 = scmp.ge.s32.totalorder %s8320_s23, 4   ;;  %s11788_s17 = smov %s8218_s18 }
 0x7d8   : > { %s11789_s18 = smov %s8222_s19  ;;  %s11790_s19 = smov %s8331_s26 }
 0x7d9   : > { %s11791_s20 = smov %s8320_s23  ;;  %23 = sbr.rel (!%p21_p3) target bundleno = 5 (0x5), region = 180 }
 0x7e0   :  { %6220 = vsyncpa [#allocation9], 1 }
 0x7e1   :  { %6222 = vsyncpa [#allocation9 + $0x1], 1 }

</bundles_post_ra>
